<compile_context>
chip_gen: v5e
topology: v5e:2x2
jax: 0.10.0
libtpu: 0.0.40
codegen_flags: <defaults>
</compile_context>

<pallas_src>
import functools

import jax
import jax.numpy as jnp
import numpy as np
from jax.experimental import pallas as pl
from jax.experimental.pallas import tpu as pltpu

# ---------------------------------------------------------------------------
# Small, self-consistent config (mirrors the PyTorch hyper-params, scaled down:
# input_dim 398 -> 32, latent_dim 64 -> 32, dim_feedforward 256 -> 64,
# num_selected_bands 10 -> 8).
# ---------------------------------------------------------------------------
LATENT_DIM   = 32            # d_model
NUM_HEADS    = 4
HEAD_DIM     = LATENT_DIM // NUM_HEADS
NUM_LAYERS   = 2
DIM_FF       = 64
INPUT_DIM    = 32            # positional-encoding ("output") sequence length
NUM_SELECTED = 8             # memory sequence length (num_selected_bands)
BATCH        = 2
LN_EPS       = 1e-5


# ---------------------------------------------------------------------------
# Pallas kernel.  One grid step processes NB batch elements (NB = B on
# single-TC chips, NB = 1 with a batch-parallel grid on dual-TC v7x).
# All weights arrive pre-transposed / pre-split / pre-folded (see
# prepare_kernel_params), so the kernel contains no transposes, no lane
# slices and no head concat.
# ---------------------------------------------------------------------------
def decoder_kernel(x_ref, pos_ref, qk_w_ref, qk_b_ref, vo_w_ref, vo_b_ref,
                   ff1_w_ref, ff1_b_ref, ff2_w_ref, vec_ref, out_b_ref,
                   o_ref):
    D, H = LATENT_DIM, NUM_HEADS
    NB = x_ref.shape[0]                      # batch elements in this grid step
    M = x_ref.shape[1]
    T = pos_ref.shape[0]

    def layer_norm(h, gamma, beta):                        # gamma/beta: (1, D)
        mu = jnp.mean(h, axis=-1, keepdims=True)
        var = jnp.mean((h - mu) ** 2, axis=-1, keepdims=True)
        return (h - mu) * jax.lax.rsqrt(var + LN_EPS) * gamma + beta

    def attention(q_src, kv_src, Tq, Tk, qk_base, vo_base, out_bias):
        # q_src: (NB*Tq, D), kv_src: (NB*Tk, D).
        # Per-head projections on batch-stacked rows (every operand lane-dense
        # at lane 0, zero lane extracts).  Scale is folded into Q weights,
        # V and W_o are pre-folded into a single (D, D) per-head weight.
        q_h, k_h, vo_h = [], [], []
        for h in range(H):
            q_h.append(jnp.dot(q_src, qk_w_ref[qk_base + h],
                               preferred_element_type=jnp.float32)
                       + qk_b_ref[qk_base + h])
            k_h.append(jnp.dot(kv_src, qk_w_ref[qk_base + H + h],
                               preferred_element_type=jnp.float32)
                       + qk_b_ref[qk_base + H + h])
            vo_h.append(jnp.dot(kv_src, vo_w_ref[vo_base + h],
                                preferred_element_type=jnp.float32)
                        + vo_b_ref[vo_base + h])
        outs = []
        for nb in range(NB):                 # static per-batch loop (scores)
            rq = slice(nb * Tq, (nb + 1) * Tq)
            rk = slice(nb * Tk, (nb + 1) * Tk)
            acc = None
            for h in range(H):               # static head loop
                # QK^T without materializing k.T: contract the last dims.
                s = jax.lax.dot_general(
                    q_h[h][rq], k_h[h][rk],
                    dimension_numbers=(((1,), (1,)), ((), ())),
                    preferred_element_type=jnp.float32)         # (Tq, Tk)
                s = s - jnp.max(s, axis=-1, keepdims=True)
                e = jnp.exp(s)
                p = e * pl.reciprocal(jnp.sum(e, axis=-1, keepdims=True),
                                      approx=True)              # EUP recip
                pv = jnp.dot(p, vo_h[h][rk],
                             preferred_element_type=jnp.float32)  # (Tq, D)
                acc = pv if acc is None else acc + pv
            outs.append(acc)
        att = outs[0] if NB == 1 else jnp.concatenate(outs, axis=0)
        return att + out_bias

    # Raw selected bands (embedding is folded into the cross-attn weights).
    if NB == 1:
        src = x_ref[0]                                           # (M, D)
        tgt = pos_ref[...]                                       # (T, D)
    else:
        src = jnp.concatenate([x_ref[i] for i in range(NB)], axis=0)
        tgt = jnp.concatenate([pos_ref[...]] * NB, axis=0)       # (NB*T, D)

    for l in range(NUM_LAYERS):                           # static layer loop
        vbase = l * 9

        # --- self attention (post-norm) ---
        sa = attention(tgt, tgt, T, T,
                       qk_base=(l * 4 + 0) * H, vo_base=(l * 2 + 0) * H,
                       out_bias=vec_ref[vbase + 0])
        tgt = layer_norm(tgt + sa, vec_ref[vbase + 3], vec_ref[vbase + 6])

        # --- cross attention over the (pre-embedded) memory ---
        ca = attention(tgt, src, T, M,
                       qk_base=(l * 4 + 2) * H, vo_base=(l * 2 + 1) * H,
                       out_bias=vec_ref[vbase + 1])
        tgt = layer_norm(tgt + ca, vec_ref[vbase + 4], vec_ref[vbase + 7])

        # --- feed forward (Linear -> ReLU -> Linear) ---
        h1 = jnp.maximum(
            jnp.dot(tgt, ff1_w_ref[l], preferred_element_type=jnp.float32)
            + ff1_b_ref[l], 0.0)
        ff = jnp.dot(h1, ff2_w_ref[l],
                     preferred_element_type=jnp.float32) + vec_ref[vbase + 2]
        tgt = layer_norm(tgt + ff, vec_ref[vbase + 5], vec_ref[vbase + 8])

    # output_layer: Linear(D, 1) as a VPU lane reduction; store the column
    # directly (no transpose to a lane row).
    out_w = vec_ref[NUM_LAYERS * 9]                              # (1, D)
    o_ref[...] = (jnp.sum(tgt * out_w, axis=-1, keepdims=True)
                  + out_b_ref[0])


# ---------------------------------------------------------------------------
# One-time host-side weight preparation (hoisted out of the forward path).
#   * PyTorch (out,in) -> (in,out)
#   * scale folded into Q, embedding folded into cross K / V·O,
#     V and out-proj folded per head
#   * everything packed into a few slabs indexed by leading (outer) dims.
# ---------------------------------------------------------------------------
def prepare_kernel_params(p):
    D, H, hd, L = LATENT_DIM, NUM_HEADS, HEAD_DIM, NUM_LAYERS
    scale = 1.0 / float(np.sqrt(hd))
    emb_w = p["emb_w"].T                     # (D, D)  (in, out)
    emb_b = p["emb_b"]                       # (1, D)

    qk_w, qk_b, vo_w, vo_b, vec_rows = [], [], [], [], []
    for l in range(L):
        sa_w, sa_b = p["sa_inw"][l], p["sa_inb"][l]       # (3D, D), (1, 3D)
        ca_w, ca_b = p["ca_inw"][l], p["ca_inb"][l]
        sa_ow, ca_ow = p["sa_ow"][l].T, p["ca_ow"][l].T   # (D, D) (in, out)

        sa_q, sa_k, ca_q, ca_k = [], [], [], []
        sa_qb, sa_kb, ca_qb, ca_kb = [], [], [], []
        sa_vo, ca_vo, sa_vob, ca_vob = [], [], [], []
        for h in range(H):
            sl = slice(h * hd, (h + 1) * hd)
            # --- self attention ---
            wq = sa_w[0 * D:1 * D][sl].T * scale           # (D, hd)
            bq = sa_b[:, 0 * D:1 * D][:, sl] * scale       # (1, hd)
            wk = sa_w[1 * D:2 * D][sl].T
            bk = sa_b[:, 1 * D:2 * D][:, sl]
            wv = sa_w[2 * D:3 * D][sl].T
            bv = sa_b[:, 2 * D:3 * D][:, sl]
            wo = sa_ow[sl]                                 # (hd, D)
            sa_q.append(wq); sa_qb.append(bq)
            sa_k.append(wk); sa_kb.append(bk)
            sa_vo.append(wv @ wo); sa_vob.append(bv @ wo)
            # --- cross attention: fold embedding into K and V·O ---
            wq = ca_w[0 * D:1 * D][sl].T * scale
            bq = ca_b[:, 0 * D:1 * D][:, sl] * scale
            wk = ca_w[1 * D:2 * D][sl].T
            bk = ca_b[:, 1 * D:2 * D][:, sl]
            wv = ca_w[2 * D:3 * D][sl].T
            bv = ca_b[:, 2 * D:3 * D][:, sl]
            wo = ca_ow[sl]
            ca_q.append(wq); ca_qb.append(bq)
            ca_k.append(emb_w @ wk); ca_kb.append(emb_b @ wk + bk)
            ca_vo.append(emb_w @ (wv @ wo))
            ca_vob.append((emb_b @ wv + bv) @ wo)
        qk_w += sa_q + sa_k + ca_q + ca_k
        qk_b += sa_qb + sa_kb + ca_qb + ca_kb
        vo_w += sa_vo + ca_vo
        vo_b += sa_vob + ca_vob
        vec_rows += [p["sa_ob"][l], p["ca_ob"][l], p["ff2_b"][l],
                     p["ln_g"][l, 0:1], p["ln_g"][l, 1:2], p["ln_g"][l, 2:3],
                     p["ln_b"][l, 0:1], p["ln_b"][l, 1:2], p["ln_b"][l, 2:3]]
    vec_rows.append(p["out_w"])                            # (1, D)

    return dict(
        pos=p["pos"],                                      # (T, D)
        qk_w=jnp.stack(qk_w),                              # (L*4*H, D, hd)
        qk_b=jnp.stack(qk_b),                              # (L*4*H, 1, hd)
        vo_w=jnp.stack(vo_w),                              # (L*2*H, D, D)
        vo_b=jnp.stack(vo_b),                              # (L*2*H, 1, D)
        ff1_w=jnp.swapaxes(p["ff1_w"], 1, 2),              # (L, D, FF)
        ff1_b=p["ff1_b"],                                  # (L, 1, FF)
        ff2_w=jnp.swapaxes(p["ff2_w"], 1, 2),              # (L, FF, D)
        vec=jnp.stack(vec_rows),                           # (L*9+1, 1, D)
        out_b=p["out_b"].reshape(1),                       # (1,) -> SMEM
    )


# ---------------------------------------------------------------------------
# Forward wrapper: generation-split batch strategy + jitted pallas_call.
# ---------------------------------------------------------------------------
def _single_tensorcore_chip():
    try:
        kind = jax.devices()[0].device_kind.lower()
    except Exception:
        return False
    return any(s in kind for s in ("v5 lite", "v5e", "v6 lite", "v6e"))


@functools.partial(jax.jit, static_argnames=("fold_batch",))
def _decoder_call(x, kp, *, fold_batch):
    B, M, D = x.shape
    T = kp["pos"].shape[0]
    NB = B if fold_batch else 1              # batch elements per grid step

    def full(arr):
        nd = arr.ndim
        return pl.BlockSpec(arr.shape, lambda b: (0,) * nd)

    weight_names = ("pos", "qk_w", "qk_b", "vo_w", "vo_b",
                    "ff1_w", "ff1_b", "ff2_w", "vec")
    weights = [kp[k] for k in weight_names]
    in_specs = ([pl.BlockSpec((NB, M, D), lambda b: (b, 0, 0))]
                + [full(a) for a in weights]
                + [pl.BlockSpec(memory_space=pltpu.MemorySpace.SMEM)])

    out = pl.pallas_call(
        decoder_kernel,
        out_shape=jax.ShapeDtypeStruct((B * T, 1), jnp.float32),
        grid=(B // NB,),
        in_specs=in_specs,
        out_specs=pl.BlockSpec((NB * T, 1), lambda b: (b, 0)),
        compiler_params=pltpu.CompilerParams(
            dimension_semantics=("parallel",)),
    )(x, *weights, kp["out_b"])
    return out.reshape(B, T)                 # == reconstructed.squeeze(-1)


def transformer_decoder_forward(x, kernel_params, fold_batch=None):
    if fold_batch is None:
        # Single-TC chips (v5e/v6e): fold the whole batch into one grid step.
        # Dual-TC v7x (and anything unknown): keep the batch-parallel grid.
        fold_batch = _single_tensorcore_chip()
    return _decoder_call(x, kernel_params, fold_batch=fold_batch)


# ---------------------------------------------------------------------------
# Deterministic synthetic parameters (PyTorch Linear convention: (out, in)).
# ---------------------------------------------------------------------------
def init_params(key):
    D, T, FF, L = LATENT_DIM, INPUT_DIM, DIM_FF, NUM_LAYERS
    ks = iter(jax.random.split(key, 20))

    def rnd(shape, scale=0.05):
        return jax.random.normal(next(ks), shape, jnp.float32) * scale

    return dict(
        emb_w=rnd((D, D)), emb_b=rnd((1, D)),
        pos=rnd((T, D)),                # positional_encoding (synthetic, nonzero)
        sa_inw=rnd((L, 3 * D, D)), sa_inb=rnd((L, 1, 3 * D)),
        sa_ow=rnd((L, D, D)), sa_ob=rnd((L, 1, D)),
        ca_inw=rnd((L, 3 * D, D)), ca_inb=rnd((L, 1, 3 * D)),
        ca_ow=rnd((L, D, D)), ca_ob=rnd((L, 1, D)),
        ff1_w=rnd((L, FF, D)), ff1_b=rnd((L, 1, FF)),
        ff2_w=rnd((L, D, FF)), ff2_b=rnd((L, 1, D)),
        ln_g=jnp.ones((L, 3, D), jnp.float32),
        ln_b=jnp.zeros((L, 3, D), jnp.float32),
        out_w=rnd((1, D)), out_b=jnp.zeros((1, 1), jnp.float32),
    )


# ---------------------------------------------------------------------------
# Pure-JAX reference (same math as nn.TransformerDecoder, eval mode).
# ---------------------------------------------------------------------------
def reference_forward(x, p):
    D, H, hd = LATENT_DIM, NUM_HEADS, HEAD_DIM
    mem = x @ p["emb_w"].T + p["emb_b"][0]
    tgt = jnp.broadcast_to(p["pos"][None], (x.shape[0],) + p["pos"].shape)

    def ln(h, g, b):
        mu = h.mean(-1, keepdims=True)
        var = ((h - mu) ** 2).mean(-1, keepdims=True)
        return (h - mu) / jnp.sqrt(var + LN_EPS) * g + b

    def mha(q_in, kv_in, inw, inb, ow, ob):
        q = q_in @ inw[:D].T + inb[:D]
        k = kv_in @ inw[D:2 * D].T + inb[D:2 * D]
        v = kv_in @ inw[2 * D:].T + inb[2 * D:]
        B, Tq, _ = q.shape
        Tk = k.shape[1]
        q = q.reshape(B, Tq, H, hd).transpose(0, 2, 1, 3) / jnp.sqrt(jnp.float32(hd))
        k = k.reshape(B, Tk, H, hd).transpose(0, 2, 1, 3)
        v = v.reshape(B, Tk, H, hd).transpose(0, 2, 1, 3)
        att = jax.nn.softmax(q @ k.transpose(0, 1, 3, 2), axis=-1)
        o = (att @ v).transpose(0, 2, 1, 3).reshape(B, Tq, D)
        return o @ ow.T + ob

    for l in range(NUM_LAYERS):
        tgt = ln(tgt + mha(tgt, tgt, p["sa_inw"][l], p["sa_inb"][l, 0],
                           p["sa_ow"][l], p["sa_ob"][l, 0]),
                 p["ln_g"][l, 0], p["ln_b"][l, 0])
        tgt = ln(tgt + mha(tgt, mem, p["ca_inw"][l], p["ca_inb"][l, 0],
                           p["ca_ow"][l], p["ca_ob"][l, 0]),
                 p["ln_g"][l, 1], p["ln_b"][l, 1])
        ff = (jax.nn.relu(tgt @ p["ff1_w"][l].T + p["ff1_b"][l, 0])
              @ p["ff2_w"][l].T + p["ff2_b"][l, 0])
        tgt = ln(tgt + ff, p["ln_g"][l, 2], p["ln_b"][l, 2])

    out = tgt @ p["out_w"].T + p["out_b"][0]
    return out[..., 0]


if __name__ == "__main__":
    key = jax.random.PRNGKey(0)
    pkey, xkey = jax.random.split(key)
    params = init_params(pkey)
    # selected_bands: (batch, num_selected_bands, latent_dim)
    x = jax.random.normal(xkey, (BATCH, NUM_SELECTED, LATENT_DIM), jnp.float32)

    # One-time weight preparation, hoisted out of the forward path and cached.
    kernel_params = prepare_kernel_params(params)
    kernel_params = jax.tree_util.tree_map(jax.block_until_ready, kernel_params)

    out = jax.block_until_ready(transformer_decoder_forward(x, kernel_params))
    assert out.shape == (BATCH, INPUT_DIM), out.shape

    ref = reference_forward(x, params)
    np.testing.assert_allclose(np.asarray(out), np.asarray(ref),
                               rtol=2e-3, atol=2e-3)
    print("KERNEL_OK")
</pallas_src>

<mosaic_0001>
module attributes {stable_mosaic.version = 11 : i64} {
  func.func @decoder_kernel(%arg0: i32, %arg1: memref<1x8x32xf32, #tpu.memory_space<vmem>>, %arg2: memref<32x32xf32, #tpu.memory_space<vmem>>, %arg3: memref<32x32x8xf32, #tpu.memory_space<vmem>>, %arg4: memref<32x1x8xf32, #tpu.memory_space<vmem>>, %arg5: memref<16x32x32xf32, #tpu.memory_space<vmem>>, %arg6: memref<16x1x32xf32, #tpu.memory_space<vmem>>, %arg7: memref<2x32x64xf32, #tpu.memory_space<vmem>>, %arg8: memref<2x1x64xf32, #tpu.memory_space<vmem>>, %arg9: memref<2x64x32xf32, #tpu.memory_space<vmem>>, %arg10: memref<19x1x32xf32, #tpu.memory_space<vmem>>, %arg11: memref<1xf32, #tpu.memory_space<smem>>, %arg12: memref<32x1xf32, #tpu.memory_space<vmem>>) attributes {dimension_semantics = [#tpu.dimension_semantics<parallel>], iteration_bounds = array<i64: 2>, scalar_prefetch = 0 : i64, scratch_operands = 0 : i64, tpu.core_type = #tpu.core_type<tc>, window_params = [{transform_indices = @transform_0, window_bounds = array<i64: 1, 8, 32>}, {pipeline_mode = #tpu.pipeline_mode<synchronous>, transform_indices = @transform_1, window_bounds = array<i64: 32, 32>}, {pipeline_mode = #tpu.pipeline_mode<synchronous>, transform_indices = @transform_2, window_bounds = array<i64: 32, 32, 8>}, {pipeline_mode = #tpu.pipeline_mode<synchronous>, transform_indices = @transform_3, window_bounds = array<i64: 32, 1, 8>}, {pipeline_mode = #tpu.pipeline_mode<synchronous>, transform_indices = @transform_4, window_bounds = array<i64: 16, 32, 32>}, {pipeline_mode = #tpu.pipeline_mode<synchronous>, transform_indices = @transform_5, window_bounds = array<i64: 16, 1, 32>}, {pipeline_mode = #tpu.pipeline_mode<synchronous>, transform_indices = @transform_6, window_bounds = array<i64: 2, 32, 64>}, {pipeline_mode = #tpu.pipeline_mode<synchronous>, transform_indices = @transform_7, window_bounds = array<i64: 2, 1, 64>}, {pipeline_mode = #tpu.pipeline_mode<synchronous>, transform_indices = @transform_8, window_bounds = array<i64: 2, 64, 32>}, {pipeline_mode = #tpu.pipeline_mode<synchronous>, transform_indices = @transform_9, window_bounds = array<i64: 19, 1, 32>}, {transform_indices = @transform_10, window_bounds = array<i64: 1>}, {transform_indices = @transform_11, window_bounds = array<i64: 32, 1>}]} {
    %c0 = arith.constant 0 : index
    %c0_0 = arith.constant 0 : index
    %c0_1 = arith.constant 0 : index
    %0 = vector.load %arg1[%c0, %c0_0, %c0_1] : memref<1x8x32xf32, #tpu.memory_space<vmem>>, vector<1x8x32xf32>
    %1 = vector.shape_cast %0 : vector<1x8x32xf32> to vector<8x32xf32>
    %c0_2 = arith.constant 0 : index
    %c0_3 = arith.constant 0 : index
    %2 = vector.load %arg2[%c0_2, %c0_3] : memref<32x32xf32, #tpu.memory_space<vmem>>, vector<32x32xf32>
    %c0_4 = arith.constant 0 : index
    %c0_5 = arith.constant 0 : index
    %c0_6 = arith.constant 0 : index
    %3 = vector.load %arg10[%c0_4, %c0_5, %c0_6] : memref<19x1x32xf32, #tpu.memory_space<vmem>>, vector<1x1x32xf32>
    %4 = vector.shape_cast %3 : vector<1x1x32xf32> to vector<1x32xf32>
    %c0_7 = arith.constant 0 : index
    %c0_8 = arith.constant 0 : index
    %c0_9 = arith.constant 0 : index
    %5 = vector.load %arg3[%c0_7, %c0_8, %c0_9] : memref<32x32x8xf32, #tpu.memory_space<vmem>>, vector<1x32x8xf32>
    %6 = vector.shape_cast %5 : vector<1x32x8xf32> to vector<32x8xf32>
    %cst = arith.constant dense<0.000000e+00> : vector<32x8xf32>
    %7 = tpu.matmul %2, %6, %cst {dimension_numbers = #tpu.dot_dimension_numbers<[1], [0], [0], [1], [0, 0, 1, 1], [], []>} : vector<32x32xf32>, vector<32x8xf32>, vector<32x8xf32> -> vector<32x8xf32>
    %c0_10 = arith.constant 0 : index
    %c0_11 = arith.constant 0 : index
    %c0_12 = arith.constant 0 : index
    %8 = vector.load %arg4[%c0_10, %c0_11, %c0_12] : memref<32x1x8xf32, #tpu.memory_space<vmem>>, vector<1x1x8xf32>
    %9 = vector.shape_cast %8 : vector<1x1x8xf32> to vector<1x8xf32>
    %10 = vector.broadcast %9 : vector<1x8xf32> to vector<32x8xf32>
    %11 = arith.addf %7, %10 : vector<32x8xf32>
    %c4 = arith.constant 4 : index
    %c0_13 = arith.constant 0 : index
    %c0_14 = arith.constant 0 : index
    %12 = vector.load %arg3[%c4, %c0_13, %c0_14] : memref<32x32x8xf32, #tpu.memory_space<vmem>>, vector<1x32x8xf32>
    %13 = vector.shape_cast %12 : vector<1x32x8xf32> to vector<32x8xf32>
    %cst_15 = arith.constant dense<0.000000e+00> : vector<32x8xf32>
    %14 = tpu.matmul %2, %13, %cst_15 {dimension_numbers = #tpu.dot_dimension_numbers<[1], [0], [0], [1], [0, 0, 1, 1], [], []>} : vector<32x32xf32>, vector<32x8xf32>, vector<32x8xf32> -> vector<32x8xf32>
    %c4_16 = arith.constant 4 : index
    %c0_17 = arith.constant 0 : index
    %c0_18 = arith.constant 0 : index
    %15 = vector.load %arg4[%c4_16, %c0_17, %c0_18] : memref<32x1x8xf32, #tpu.memory_space<vmem>>, vector<1x1x8xf32>
    %16 = vector.shape_cast %15 : vector<1x1x8xf32> to vector<1x8xf32>
    %17 = vector.broadcast %16 : vector<1x8xf32> to vector<32x8xf32>
    %18 = arith.addf %14, %17 : vector<32x8xf32>
    %c0_19 = arith.constant 0 : index
    %c0_20 = arith.constant 0 : index
    %c0_21 = arith.constant 0 : index
    %19 = vector.load %arg5[%c0_19, %c0_20, %c0_21] : memref<16x32x32xf32, #tpu.memory_space<vmem>>, vector<1x32x32xf32>
    %20 = vector.shape_cast %19 : vector<1x32x32xf32> to vector<32x32xf32>
    %cst_22 = arith.constant dense<0.000000e+00> : vector<32x32xf32>
    %21 = tpu.matmul %2, %20, %cst_22 {dimension_numbers = #tpu.dot_dimension_numbers<[1], [0], [0], [1], [0, 0, 1, 1], [], []>} : vector<32x32xf32>, vector<32x32xf32>, vector<32x32xf32> -> vector<32x32xf32>
    %c0_23 = arith.constant 0 : index
    %c0_24 = arith.constant 0 : index
    %c0_25 = arith.constant 0 : index
    %22 = vector.load %arg6[%c0_23, %c0_24, %c0_25] : memref<16x1x32xf32, #tpu.memory_space<vmem>>, vector<1x1x32xf32>
    %23 = vector.shape_cast %22 : vector<1x1x32xf32> to vector<1x32xf32>
    %24 = vector.broadcast %23 : vector<1x32xf32> to vector<32x32xf32>
    %25 = arith.addf %21, %24 : vector<32x32xf32>
    %c1 = arith.constant 1 : index
    %c0_26 = arith.constant 0 : index
    %c0_27 = arith.constant 0 : index
    %26 = vector.load %arg3[%c1, %c0_26, %c0_27] : memref<32x32x8xf32, #tpu.memory_space<vmem>>, vector<1x32x8xf32>
    %27 = vector.shape_cast %26 : vector<1x32x8xf32> to vector<32x8xf32>
    %cst_28 = arith.constant dense<0.000000e+00> : vector<32x8xf32>
    %28 = tpu.matmul %2, %27, %cst_28 {dimension_numbers = #tpu.dot_dimension_numbers<[1], [0], [0], [1], [0, 0, 1, 1], [], []>} : vector<32x32xf32>, vector<32x8xf32>, vector<32x8xf32> -> vector<32x8xf32>
    %c1_29 = arith.constant 1 : index
    %c0_30 = arith.constant 0 : index
    %c0_31 = arith.constant 0 : index
    %29 = vector.load %arg4[%c1_29, %c0_30, %c0_31] : memref<32x1x8xf32, #tpu.memory_space<vmem>>, vector<1x1x8xf32>
    %30 = vector.shape_cast %29 : vector<1x1x8xf32> to vector<1x8xf32>
    %31 = vector.broadcast %30 : vector<1x8xf32> to vector<32x8xf32>
    %32 = arith.addf %28, %31 : vector<32x8xf32>
    %c5 = arith.constant 5 : index
    %c0_32 = arith.constant 0 : index
    %c0_33 = arith.constant 0 : index
    %33 = vector.load %arg3[%c5, %c0_32, %c0_33] : memref<32x32x8xf32, #tpu.memory_space<vmem>>, vector<1x32x8xf32>
    %34 = vector.shape_cast %33 : vector<1x32x8xf32> to vector<32x8xf32>
    %cst_34 = arith.constant dense<0.000000e+00> : vector<32x8xf32>
    %35 = tpu.matmul %2, %34, %cst_34 {dimension_numbers = #tpu.dot_dimension_numbers<[1], [0], [0], [1], [0, 0, 1, 1], [], []>} : vector<32x32xf32>, vector<32x8xf32>, vector<32x8xf32> -> vector<32x8xf32>
    %c5_35 = arith.constant 5 : index
    %c0_36 = arith.constant 0 : index
    %c0_37 = arith.constant 0 : index
    %36 = vector.load %arg4[%c5_35, %c0_36, %c0_37] : memref<32x1x8xf32, #tpu.memory_space<vmem>>, vector<1x1x8xf32>
    %37 = vector.shape_cast %36 : vector<1x1x8xf32> to vector<1x8xf32>
    %38 = vector.broadcast %37 : vector<1x8xf32> to vector<32x8xf32>
    %39 = arith.addf %35, %38 : vector<32x8xf32>
    %c1_38 = arith.constant 1 : index
    %c0_39 = arith.constant 0 : index
    %c0_40 = arith.constant 0 : index
    %40 = vector.load %arg5[%c1_38, %c0_39, %c0_40] : memref<16x32x32xf32, #tpu.memory_space<vmem>>, vector<1x32x32xf32>
    %41 = vector.shape_cast %40 : vector<1x32x32xf32> to vector<32x32xf32>
    %cst_41 = arith.constant dense<0.000000e+00> : vector<32x32xf32>
    %42 = tpu.matmul %2, %41, %cst_41 {dimension_numbers = #tpu.dot_dimension_numbers<[1], [0], [0], [1], [0, 0, 1, 1], [], []>} : vector<32x32xf32>, vector<32x32xf32>, vector<32x32xf32> -> vector<32x32xf32>
    %c1_42 = arith.constant 1 : index
    %c0_43 = arith.constant 0 : index
    %c0_44 = arith.constant 0 : index
    %43 = vector.load %arg6[%c1_42, %c0_43, %c0_44] : memref<16x1x32xf32, #tpu.memory_space<vmem>>, vector<1x1x32xf32>
    %44 = vector.shape_cast %43 : vector<1x1x32xf32> to vector<1x32xf32>
    %45 = vector.broadcast %44 : vector<1x32xf32> to vector<32x32xf32>
    %46 = arith.addf %42, %45 : vector<32x32xf32>
    %c2 = arith.constant 2 : index
    %c0_45 = arith.constant 0 : index
    %c0_46 = arith.constant 0 : index
    %47 = vector.load %arg3[%c2, %c0_45, %c0_46] : memref<32x32x8xf32, #tpu.memory_space<vmem>>, vector<1x32x8xf32>
    %48 = vector.shape_cast %47 : vector<1x32x8xf32> to vector<32x8xf32>
    %cst_47 = arith.constant dense<0.000000e+00> : vector<32x8xf32>
    %49 = tpu.matmul %2, %48, %cst_47 {dimension_numbers = #tpu.dot_dimension_numbers<[1], [0], [0], [1], [0, 0, 1, 1], [], []>} : vector<32x32xf32>, vector<32x8xf32>, vector<32x8xf32> -> vector<32x8xf32>
    %c2_48 = arith.constant 2 : index
    %c0_49 = arith.constant 0 : index
    %c0_50 = arith.constant 0 : index
    %50 = vector.load %arg4[%c2_48, %c0_49, %c0_50] : memref<32x1x8xf32, #tpu.memory_space<vmem>>, vector<1x1x8xf32>
    %51 = vector.shape_cast %50 : vector<1x1x8xf32> to vector<1x8xf32>
    %52 = vector.broadcast %51 : vector<1x8xf32> to vector<32x8xf32>
    %53 = arith.addf %49, %52 : vector<32x8xf32>
    %c6 = arith.constant 6 : index
    %c0_51 = arith.constant 0 : index
    %c0_52 = arith.constant 0 : index
    %54 = vector.load %arg3[%c6, %c0_51, %c0_52] : memref<32x32x8xf32, #tpu.memory_space<vmem>>, vector<1x32x8xf32>
    %55 = vector.shape_cast %54 : vector<1x32x8xf32> to vector<32x8xf32>
    %cst_53 = arith.constant dense<0.000000e+00> : vector<32x8xf32>
    %56 = tpu.matmul %2, %55, %cst_53 {dimension_numbers = #tpu.dot_dimension_numbers<[1], [0], [0], [1], [0, 0, 1, 1], [], []>} : vector<32x32xf32>, vector<32x8xf32>, vector<32x8xf32> -> vector<32x8xf32>
    %c6_54 = arith.constant 6 : index
    %c0_55 = arith.constant 0 : index
    %c0_56 = arith.constant 0 : index
    %57 = vector.load %arg4[%c6_54, %c0_55, %c0_56] : memref<32x1x8xf32, #tpu.memory_space<vmem>>, vector<1x1x8xf32>
    %58 = vector.shape_cast %57 : vector<1x1x8xf32> to vector<1x8xf32>
    %59 = vector.broadcast %58 : vector<1x8xf32> to vector<32x8xf32>
    %60 = arith.addf %56, %59 : vector<32x8xf32>
    %c2_57 = arith.constant 2 : index
    %c0_58 = arith.constant 0 : index
    %c0_59 = arith.constant 0 : index
    %61 = vector.load %arg5[%c2_57, %c0_58, %c0_59] : memref<16x32x32xf32, #tpu.memory_space<vmem>>, vector<1x32x32xf32>
    %62 = vector.shape_cast %61 : vector<1x32x32xf32> to vector<32x32xf32>
    %cst_60 = arith.constant dense<0.000000e+00> : vector<32x32xf32>
    %63 = tpu.matmul %2, %62, %cst_60 {dimension_numbers = #tpu.dot_dimension_numbers<[1], [0], [0], [1], [0, 0, 1, 1], [], []>} : vector<32x32xf32>, vector<32x32xf32>, vector<32x32xf32> -> vector<32x32xf32>
    %c2_61 = arith.constant 2 : index
    %c0_62 = arith.constant 0 : index
    %c0_63 = arith.constant 0 : index
    %64 = vector.load %arg6[%c2_61, %c0_62, %c0_63] : memref<16x1x32xf32, #tpu.memory_space<vmem>>, vector<1x1x32xf32>
    %65 = vector.shape_cast %64 : vector<1x1x32xf32> to vector<1x32xf32>
    %66 = vector.broadcast %65 : vector<1x32xf32> to vector<32x32xf32>
    %67 = arith.addf %63, %66 : vector<32x32xf32>
    %c3 = arith.constant 3 : index
    %c0_64 = arith.constant 0 : index
    %c0_65 = arith.constant 0 : index
    %68 = vector.load %arg3[%c3, %c0_64, %c0_65] : memref<32x32x8xf32, #tpu.memory_space<vmem>>, vector<1x32x8xf32>
    %69 = vector.shape_cast %68 : vector<1x32x8xf32> to vector<32x8xf32>
    %cst_66 = arith.constant dense<0.000000e+00> : vector<32x8xf32>
    %70 = tpu.matmul %2, %69, %cst_66 {dimension_numbers = #tpu.dot_dimension_numbers<[1], [0], [0], [1], [0, 0, 1, 1], [], []>} : vector<32x32xf32>, vector<32x8xf32>, vector<32x8xf32> -> vector<32x8xf32>
    %c3_67 = arith.constant 3 : index
    %c0_68 = arith.constant 0 : index
    %c0_69 = arith.constant 0 : index
    %71 = vector.load %arg4[%c3_67, %c0_68, %c0_69] : memref<32x1x8xf32, #tpu.memory_space<vmem>>, vector<1x1x8xf32>
    %72 = vector.shape_cast %71 : vector<1x1x8xf32> to vector<1x8xf32>
    %73 = vector.broadcast %72 : vector<1x8xf32> to vector<32x8xf32>
    %74 = arith.addf %70, %73 : vector<32x8xf32>
    %c7 = arith.constant 7 : index
    %c0_70 = arith.constant 0 : index
    %c0_71 = arith.constant 0 : index
    %75 = vector.load %arg3[%c7, %c0_70, %c0_71] : memref<32x32x8xf32, #tpu.memory_space<vmem>>, vector<1x32x8xf32>
    %76 = vector.shape_cast %75 : vector<1x32x8xf32> to vector<32x8xf32>
    %cst_72 = arith.constant dense<0.000000e+00> : vector<32x8xf32>
    %77 = tpu.matmul %2, %76, %cst_72 {dimension_numbers = #tpu.dot_dimension_numbers<[1], [0], [0], [1], [0, 0, 1, 1], [], []>} : vector<32x32xf32>, vector<32x8xf32>, vector<32x8xf32> -> vector<32x8xf32>
    %c7_73 = arith.constant 7 : index
    %c0_74 = arith.constant 0 : index
    %c0_75 = arith.constant 0 : index
    %78 = vector.load %arg4[%c7_73, %c0_74, %c0_75] : memref<32x1x8xf32, #tpu.memory_space<vmem>>, vector<1x1x8xf32>
    %79 = vector.shape_cast %78 : vector<1x1x8xf32> to vector<1x8xf32>
    %80 = vector.broadcast %79 : vector<1x8xf32> to vector<32x8xf32>
    %81 = arith.addf %77, %80 : vector<32x8xf32>
    %c3_76 = arith.constant 3 : index
    %c0_77 = arith.constant 0 : index
    %c0_78 = arith.constant 0 : index
    %82 = vector.load %arg5[%c3_76, %c0_77, %c0_78] : memref<16x32x32xf32, #tpu.memory_space<vmem>>, vector<1x32x32xf32>
    %83 = vector.shape_cast %82 : vector<1x32x32xf32> to vector<32x32xf32>
    %cst_79 = arith.constant dense<0.000000e+00> : vector<32x32xf32>
    %84 = tpu.matmul %2, %83, %cst_79 {dimension_numbers = #tpu.dot_dimension_numbers<[1], [0], [0], [1], [0, 0, 1, 1], [], []>} : vector<32x32xf32>, vector<32x32xf32>, vector<32x32xf32> -> vector<32x32xf32>
    %c3_80 = arith.constant 3 : index
    %c0_81 = arith.constant 0 : index
    %c0_82 = arith.constant 0 : index
    %85 = vector.load %arg6[%c3_80, %c0_81, %c0_82] : memref<16x1x32xf32, #tpu.memory_space<vmem>>, vector<1x1x32xf32>
    %86 = vector.shape_cast %85 : vector<1x1x32xf32> to vector<1x32xf32>
    %87 = vector.broadcast %86 : vector<1x32xf32> to vector<32x32xf32>
    %88 = arith.addf %84, %87 : vector<32x32xf32>
    %cst_83 = arith.constant dense<0.000000e+00> : vector<32x32xf32>
    %89 = tpu.matmul %11, %18, %cst_83 {dimension_numbers = #tpu.dot_dimension_numbers<[1], [1], [0], [0], [0, 0, 1, 0], [], []>} : vector<32x8xf32>, vector<32x8xf32>, vector<32x32xf32> -> vector<32x32xf32>
    %cst_84 = arith.constant dense<0xFF800000> : vector<32xf32>
    %90 = vector.multi_reduction <maximumf>, %89, %cst_84 [1] : vector<32x32xf32> to vector<32xf32>
    %91 = vector.shape_cast %90 : vector<32xf32> to vector<32x1xf32>
    %92 = vector.broadcast %91 : vector<32x1xf32> to vector<32x32xf32>
    %93 = arith.subf %89, %92 : vector<32x32xf32>
    %94 = math.exp %93 : vector<32x32xf32>
    %cst_85 = arith.constant dense<0.000000e+00> : vector<32xf32>
    %95 = vector.multi_reduction <add>, %94, %cst_85 [1] : vector<32x32xf32> to vector<32xf32>
    %96 = vector.shape_cast %95 : vector<32xf32> to vector<32x1xf32>
    %97 = tpu.reciprocal %96 {approx = true} : vector<32x1xf32> -> vector<32x1xf32>
    %98 = vector.broadcast %97 : vector<32x1xf32> to vector<32x32xf32>
    %99 = arith.mulf %94, %98 : vector<32x32xf32>
    %cst_86 = arith.constant dense<0.000000e+00> : vector<32x32xf32>
    %100 = tpu.matmul %99, %25, %cst_86 {dimension_numbers = #tpu.dot_dimension_numbers<[1], [0], [0], [1], [0, 0, 1, 1], [], []>} : vector<32x32xf32>, vector<32x32xf32>, vector<32x32xf32> -> vector<32x32xf32>
    %cst_87 = arith.constant dense<0.000000e+00> : vector<32x32xf32>
    %101 = tpu.matmul %32, %39, %cst_87 {dimension_numbers = #tpu.dot_dimension_numbers<[1], [1], [0], [0], [0, 0, 1, 0], [], []>} : vector<32x8xf32>, vector<32x8xf32>, vector<32x32xf32> -> vector<32x32xf32>
    %cst_88 = arith.constant dense<0xFF800000> : vector<32xf32>
    %102 = vector.multi_reduction <maximumf>, %101, %cst_88 [1] : vector<32x32xf32> to vector<32xf32>
    %103 = vector.shape_cast %102 : vector<32xf32> to vector<32x1xf32>
    %104 = vector.broadcast %103 : vector<32x1xf32> to vector<32x32xf32>
    %105 = arith.subf %101, %104 : vector<32x32xf32>
    %106 = math.exp %105 : vector<32x32xf32>
    %cst_89 = arith.constant dense<0.000000e+00> : vector<32xf32>
    %107 = vector.multi_reduction <add>, %106, %cst_89 [1] : vector<32x32xf32> to vector<32xf32>
    %108 = vector.shape_cast %107 : vector<32xf32> to vector<32x1xf32>
    %109 = tpu.reciprocal %108 {approx = true} : vector<32x1xf32> -> vector<32x1xf32>
    %110 = vector.broadcast %109 : vector<32x1xf32> to vector<32x32xf32>
    %111 = arith.mulf %106, %110 : vector<32x32xf32>
    %cst_90 = arith.constant dense<0.000000e+00> : vector<32x32xf32>
    %112 = tpu.matmul %111, %46, %cst_90 {dimension_numbers = #tpu.dot_dimension_numbers<[1], [0], [0], [1], [0, 0, 1, 1], [], []>} : vector<32x32xf32>, vector<32x32xf32>, vector<32x32xf32> -> vector<32x32xf32>
    %113 = arith.addf %100, %112 : vector<32x32xf32>
    %cst_91 = arith.constant dense<0.000000e+00> : vector<32x32xf32>
    %114 = tpu.matmul %53, %60, %cst_91 {dimension_numbers = #tpu.dot_dimension_numbers<[1], [1], [0], [0], [0, 0, 1, 0], [], []>} : vector<32x8xf32>, vector<32x8xf32>, vector<32x32xf32> -> vector<32x32xf32>
    %cst_92 = arith.constant dense<0xFF800000> : vector<32xf32>
    %115 = vector.multi_reduction <maximumf>, %114, %cst_92 [1] : vector<32x32xf32> to vector<32xf32>
    %116 = vector.shape_cast %115 : vector<32xf32> to vector<32x1xf32>
    %117 = vector.broadcast %116 : vector<32x1xf32> to vector<32x32xf32>
    %118 = arith.subf %114, %117 : vector<32x32xf32>
    %119 = math.exp %118 : vector<32x32xf32>
    %cst_93 = arith.constant dense<0.000000e+00> : vector<32xf32>
    %120 = vector.multi_reduction <add>, %119, %cst_93 [1] : vector<32x32xf32> to vector<32xf32>
    %121 = vector.shape_cast %120 : vector<32xf32> to vector<32x1xf32>
    %122 = tpu.reciprocal %121 {approx = true} : vector<32x1xf32> -> vector<32x1xf32>
    %123 = vector.broadcast %122 : vector<32x1xf32> to vector<32x32xf32>
    %124 = arith.mulf %119, %123 : vector<32x32xf32>
    %cst_94 = arith.constant dense<0.000000e+00> : vector<32x32xf32>
    %125 = tpu.matmul %124, %67, %cst_94 {dimension_numbers = #tpu.dot_dimension_numbers<[1], [0], [0], [1], [0, 0, 1, 1], [], []>} : vector<32x32xf32>, vector<32x32xf32>, vector<32x32xf32> -> vector<32x32xf32>
    %126 = arith.addf %113, %125 : vector<32x32xf32>
    %cst_95 = arith.constant dense<0.000000e+00> : vector<32x32xf32>
    %127 = tpu.matmul %74, %81, %cst_95 {dimension_numbers = #tpu.dot_dimension_numbers<[1], [1], [0], [0], [0, 0, 1, 0], [], []>} : vector<32x8xf32>, vector<32x8xf32>, vector<32x32xf32> -> vector<32x32xf32>
    %cst_96 = arith.constant dense<0xFF800000> : vector<32xf32>
    %128 = vector.multi_reduction <maximumf>, %127, %cst_96 [1] : vector<32x32xf32> to vector<32xf32>
    %129 = vector.shape_cast %128 : vector<32xf32> to vector<32x1xf32>
    %130 = vector.broadcast %129 : vector<32x1xf32> to vector<32x32xf32>
    %131 = arith.subf %127, %130 : vector<32x32xf32>
    %132 = math.exp %131 : vector<32x32xf32>
    %cst_97 = arith.constant dense<0.000000e+00> : vector<32xf32>
    %133 = vector.multi_reduction <add>, %132, %cst_97 [1] : vector<32x32xf32> to vector<32xf32>
    %134 = vector.shape_cast %133 : vector<32xf32> to vector<32x1xf32>
    %135 = tpu.reciprocal %134 {approx = true} : vector<32x1xf32> -> vector<32x1xf32>
    %136 = vector.broadcast %135 : vector<32x1xf32> to vector<32x32xf32>
    %137 = arith.mulf %132, %136 : vector<32x32xf32>
    %cst_98 = arith.constant dense<0.000000e+00> : vector<32x32xf32>
    %138 = tpu.matmul %137, %88, %cst_98 {dimension_numbers = #tpu.dot_dimension_numbers<[1], [0], [0], [1], [0, 0, 1, 1], [], []>} : vector<32x32xf32>, vector<32x32xf32>, vector<32x32xf32> -> vector<32x32xf32>
    %139 = arith.addf %126, %138 : vector<32x32xf32>
    %140 = vector.broadcast %4 : vector<1x32xf32> to vector<32x32xf32>
    %141 = arith.addf %139, %140 : vector<32x32xf32>
    %142 = arith.addf %2, %141 : vector<32x32xf32>
    %c3_99 = arith.constant 3 : index
    %c0_100 = arith.constant 0 : index
    %c0_101 = arith.constant 0 : index
    %143 = vector.load %arg10[%c3_99, %c0_100, %c0_101] : memref<19x1x32xf32, #tpu.memory_space<vmem>>, vector<1x1x32xf32>
    %144 = vector.shape_cast %143 : vector<1x1x32xf32> to vector<1x32xf32>
    %c6_102 = arith.constant 6 : index
    %c0_103 = arith.constant 0 : index
    %c0_104 = arith.constant 0 : index
    %145 = vector.load %arg10[%c6_102, %c0_103, %c0_104] : memref<19x1x32xf32, #tpu.memory_space<vmem>>, vector<1x1x32xf32>
    %146 = vector.shape_cast %145 : vector<1x1x32xf32> to vector<1x32xf32>
    %cst_105 = arith.constant dense<0.000000e+00> : vector<32xf32>
    %147 = vector.multi_reduction <add>, %142, %cst_105 [1] : vector<32x32xf32> to vector<32xf32>
    %148 = vector.shape_cast %147 : vector<32xf32> to vector<32x1xf32>
    %cst_106 = arith.constant 3.200000e+01 : f32
    %149 = vector.broadcast %cst_106 : f32 to vector<32x1xf32>
    %150 = arith.divf %148, %149 : vector<32x1xf32>
    %151 = vector.broadcast %150 : vector<32x1xf32> to vector<32x32xf32>
    %152 = arith.subf %142, %151 : vector<32x32xf32>
    %153 = arith.mulf %152, %152 : vector<32x32xf32>
    %cst_107 = arith.constant dense<0.000000e+00> : vector<32xf32>
    %154 = vector.multi_reduction <add>, %153, %cst_107 [1] : vector<32x32xf32> to vector<32xf32>
    %155 = vector.shape_cast %154 : vector<32xf32> to vector<32x1xf32>
    %cst_108 = arith.constant 3.200000e+01 : f32
    %156 = vector.broadcast %cst_108 : f32 to vector<32x1xf32>
    %157 = arith.divf %155, %156 : vector<32x1xf32>
    %158 = vector.broadcast %150 : vector<32x1xf32> to vector<32x32xf32>
    %159 = arith.subf %142, %158 : vector<32x32xf32>
    %cst_109 = arith.constant 9.99999974E-6 : f32
    %160 = vector.broadcast %cst_109 : f32 to vector<32x1xf32>
    %161 = arith.addf %157, %160 : vector<32x1xf32>
    %162 = math.rsqrt %161 : vector<32x1xf32>
    %163 = vector.broadcast %162 : vector<32x1xf32> to vector<32x32xf32>
    %164 = arith.mulf %159, %163 : vector<32x32xf32>
    %165 = vector.broadcast %144 : vector<1x32xf32> to vector<32x32xf32>
    %166 = arith.mulf %164, %165 : vector<32x32xf32>
    %167 = vector.broadcast %146 : vector<1x32xf32> to vector<32x32xf32>
    %168 = arith.addf %166, %167 : vector<32x32xf32>
    %c1_110 = arith.constant 1 : index
    %c0_111 = arith.constant 0 : index
    %c0_112 = arith.constant 0 : index
    %169 = vector.load %arg10[%c1_110, %c0_111, %c0_112] : memref<19x1x32xf32, #tpu.memory_space<vmem>>, vector<1x1x32xf32>
    %170 = vector.shape_cast %169 : vector<1x1x32xf32> to vector<1x32xf32>
    %c8 = arith.constant 8 : index
    %c0_113 = arith.constant 0 : index
    %c0_114 = arith.constant 0 : index
    %171 = vector.load %arg3[%c8, %c0_113, %c0_114] : memref<32x32x8xf32, #tpu.memory_space<vmem>>, vector<1x32x8xf32>
    %172 = vector.shape_cast %171 : vector<1x32x8xf32> to vector<32x8xf32>
    %cst_115 = arith.constant dense<0.000000e+00> : vector<32x8xf32>
    %173 = tpu.matmul %168, %172, %cst_115 {dimension_numbers = #tpu.dot_dimension_numbers<[1], [0], [0], [1], [0, 0, 1, 1], [], []>} : vector<32x32xf32>, vector<32x8xf32>, vector<32x8xf32> -> vector<32x8xf32>
    %c8_116 = arith.constant 8 : index
    %c0_117 = arith.constant 0 : index
    %c0_118 = arith.constant 0 : index
    %174 = vector.load %arg4[%c8_116, %c0_117, %c0_118] : memref<32x1x8xf32, #tpu.memory_space<vmem>>, vector<1x1x8xf32>
    %175 = vector.shape_cast %174 : vector<1x1x8xf32> to vector<1x8xf32>
    %176 = vector.broadcast %175 : vector<1x8xf32> to vector<32x8xf32>
    %177 = arith.addf %173, %176 : vector<32x8xf32>
    %c12 = arith.constant 12 : index
    %c0_119 = arith.constant 0 : index
    %c0_120 = arith.constant 0 : index
    %178 = vector.load %arg3[%c12, %c0_119, %c0_120] : memref<32x32x8xf32, #tpu.memory_space<vmem>>, vector<1x32x8xf32>
    %179 = vector.shape_cast %178 : vector<1x32x8xf32> to vector<32x8xf32>
    %cst_121 = arith.constant dense<0.000000e+00> : vector<8x8xf32>
    %180 = tpu.matmul %1, %179, %cst_121 {dimension_numbers = #tpu.dot_dimension_numbers<[1], [0], [0], [1], [0, 0, 1, 1], [], []>} : vector<8x32xf32>, vector<32x8xf32>, vector<8x8xf32> -> vector<8x8xf32>
    %c12_122 = arith.constant 12 : index
    %c0_123 = arith.constant 0 : index
    %c0_124 = arith.constant 0 : index
    %181 = vector.load %arg4[%c12_122, %c0_123, %c0_124] : memref<32x1x8xf32, #tpu.memory_space<vmem>>, vector<1x1x8xf32>
    %182 = vector.shape_cast %181 : vector<1x1x8xf32> to vector<1x8xf32>
    %183 = vector.broadcast %182 : vector<1x8xf32> to vector<8x8xf32>
    %184 = arith.addf %180, %183 : vector<8x8xf32>
    %c4_125 = arith.constant 4 : index
    %c0_126 = arith.constant 0 : index
    %c0_127 = arith.constant 0 : index
    %185 = vector.load %arg5[%c4_125, %c0_126, %c0_127] : memref<16x32x32xf32, #tpu.memory_space<vmem>>, vector<1x32x32xf32>
    %186 = vector.shape_cast %185 : vector<1x32x32xf32> to vector<32x32xf32>
    %cst_128 = arith.constant dense<0.000000e+00> : vector<8x32xf32>
    %187 = tpu.matmul %1, %186, %cst_128 {dimension_numbers = #tpu.dot_dimension_numbers<[1], [0], [0], [1], [0, 0, 1, 1], [], []>} : vector<8x32xf32>, vector<32x32xf32>, vector<8x32xf32> -> vector<8x32xf32>
    %c4_129 = arith.constant 4 : index
    %c0_130 = arith.constant 0 : index
    %c0_131 = arith.constant 0 : index
    %188 = vector.load %arg6[%c4_129, %c0_130, %c0_131] : memref<16x1x32xf32, #tpu.memory_space<vmem>>, vector<1x1x32xf32>
    %189 = vector.shape_cast %188 : vector<1x1x32xf32> to vector<1x32xf32>
    %190 = vector.broadcast %189 : vector<1x32xf32> to vector<8x32xf32>
    %191 = arith.addf %187, %190 : vector<8x32xf32>
    %c9 = arith.constant 9 : index
    %c0_132 = arith.constant 0 : index
    %c0_133 = arith.constant 0 : index
    %192 = vector.load %arg3[%c9, %c0_132, %c0_133] : memref<32x32x8xf32, #tpu.memory_space<vmem>>, vector<1x32x8xf32>
    %193 = vector.shape_cast %192 : vector<1x32x8xf32> to vector<32x8xf32>
    %cst_134 = arith.constant dense<0.000000e+00> : vector<32x8xf32>
    %194 = tpu.matmul %168, %193, %cst_134 {dimension_numbers = #tpu.dot_dimension_numbers<[1], [0], [0], [1], [0, 0, 1, 1], [], []>} : vector<32x32xf32>, vector<32x8xf32>, vector<32x8xf32> -> vector<32x8xf32>
    %c9_135 = arith.constant 9 : index
    %c0_136 = arith.constant 0 : index
    %c0_137 = arith.constant 0 : index
    %195 = vector.load %arg4[%c9_135, %c0_136, %c0_137] : memref<32x1x8xf32, #tpu.memory_space<vmem>>, vector<1x1x8xf32>
    %196 = vector.shape_cast %195 : vector<1x1x8xf32> to vector<1x8xf32>
    %197 = vector.broadcast %196 : vector<1x8xf32> to vector<32x8xf32>
    %198 = arith.addf %194, %197 : vector<32x8xf32>
    %c13 = arith.constant 13 : index
    %c0_138 = arith.constant 0 : index
    %c0_139 = arith.constant 0 : index
    %199 = vector.load %arg3[%c13, %c0_138, %c0_139] : memref<32x32x8xf32, #tpu.memory_space<vmem>>, vector<1x32x8xf32>
    %200 = vector.shape_cast %199 : vector<1x32x8xf32> to vector<32x8xf32>
    %cst_140 = arith.constant dense<0.000000e+00> : vector<8x8xf32>
    %201 = tpu.matmul %1, %200, %cst_140 {dimension_numbers = #tpu.dot_dimension_numbers<[1], [0], [0], [1], [0, 0, 1, 1], [], []>} : vector<8x32xf32>, vector<32x8xf32>, vector<8x8xf32> -> vector<8x8xf32>
    %c13_141 = arith.constant 13 : index
    %c0_142 = arith.constant 0 : index
    %c0_143 = arith.constant 0 : index
    %202 = vector.load %arg4[%c13_141, %c0_142, %c0_143] : memref<32x1x8xf32, #tpu.memory_space<vmem>>, vector<1x1x8xf32>
    %203 = vector.shape_cast %202 : vector<1x1x8xf32> to vector<1x8xf32>
    %204 = vector.broadcast %203 : vector<1x8xf32> to vector<8x8xf32>
    %205 = arith.addf %201, %204 : vector<8x8xf32>
    %c5_144 = arith.constant 5 : index
    %c0_145 = arith.constant 0 : index
    %c0_146 = arith.constant 0 : index
    %206 = vector.load %arg5[%c5_144, %c0_145, %c0_146] : memref<16x32x32xf32, #tpu.memory_space<vmem>>, vector<1x32x32xf32>
    %207 = vector.shape_cast %206 : vector<1x32x32xf32> to vector<32x32xf32>
    %cst_147 = arith.constant dense<0.000000e+00> : vector<8x32xf32>
    %208 = tpu.matmul %1, %207, %cst_147 {dimension_numbers = #tpu.dot_dimension_numbers<[1], [0], [0], [1], [0, 0, 1, 1], [], []>} : vector<8x32xf32>, vector<32x32xf32>, vector<8x32xf32> -> vector<8x32xf32>
    %c5_148 = arith.constant 5 : index
    %c0_149 = arith.constant 0 : index
    %c0_150 = arith.constant 0 : index
    %209 = vector.load %arg6[%c5_148, %c0_149, %c0_150] : memref<16x1x32xf32, #tpu.memory_space<vmem>>, vector<1x1x32xf32>
    %210 = vector.shape_cast %209 : vector<1x1x32xf32> to vector<1x32xf32>
    %211 = vector.broadcast %210 : vector<1x32xf32> to vector<8x32xf32>
    %212 = arith.addf %208, %211 : vector<8x32xf32>
    %c10 = arith.constant 10 : index
    %c0_151 = arith.constant 0 : index
    %c0_152 = arith.constant 0 : index
    %213 = vector.load %arg3[%c10, %c0_151, %c0_152] : memref<32x32x8xf32, #tpu.memory_space<vmem>>, vector<1x32x8xf32>
    %214 = vector.shape_cast %213 : vector<1x32x8xf32> to vector<32x8xf32>
    %cst_153 = arith.constant dense<0.000000e+00> : vector<32x8xf32>
    %215 = tpu.matmul %168, %214, %cst_153 {dimension_numbers = #tpu.dot_dimension_numbers<[1], [0], [0], [1], [0, 0, 1, 1], [], []>} : vector<32x32xf32>, vector<32x8xf32>, vector<32x8xf32> -> vector<32x8xf32>
    %c10_154 = arith.constant 10 : index
    %c0_155 = arith.constant 0 : index
    %c0_156 = arith.constant 0 : index
    %216 = vector.load %arg4[%c10_154, %c0_155, %c0_156] : memref<32x1x8xf32, #tpu.memory_space<vmem>>, vector<1x1x8xf32>
    %217 = vector.shape_cast %216 : vector<1x1x8xf32> to vector<1x8xf32>
    %218 = vector.broadcast %217 : vector<1x8xf32> to vector<32x8xf32>
    %219 = arith.addf %215, %218 : vector<32x8xf32>
    %c14 = arith.constant 14 : index
    %c0_157 = arith.constant 0 : index
    %c0_158 = arith.constant 0 : index
    %220 = vector.load %arg3[%c14, %c0_157, %c0_158] : memref<32x32x8xf32, #tpu.memory_space<vmem>>, vector<1x32x8xf32>
    %221 = vector.shape_cast %220 : vector<1x32x8xf32> to vector<32x8xf32>
    %cst_159 = arith.constant dense<0.000000e+00> : vector<8x8xf32>
    %222 = tpu.matmul %1, %221, %cst_159 {dimension_numbers = #tpu.dot_dimension_numbers<[1], [0], [0], [1], [0, 0, 1, 1], [], []>} : vector<8x32xf32>, vector<32x8xf32>, vector<8x8xf32> -> vector<8x8xf32>
    %c14_160 = arith.constant 14 : index
    %c0_161 = arith.constant 0 : index
    %c0_162 = arith.constant 0 : index
    %223 = vector.load %arg4[%c14_160, %c0_161, %c0_162] : memref<32x1x8xf32, #tpu.memory_space<vmem>>, vector<1x1x8xf32>
    %224 = vector.shape_cast %223 : vector<1x1x8xf32> to vector<1x8xf32>
    %225 = vector.broadcast %224 : vector<1x8xf32> to vector<8x8xf32>
    %226 = arith.addf %222, %225 : vector<8x8xf32>
    %c6_163 = arith.constant 6 : index
    %c0_164 = arith.constant 0 : index
    %c0_165 = arith.constant 0 : index
    %227 = vector.load %arg5[%c6_163, %c0_164, %c0_165] : memref<16x32x32xf32, #tpu.memory_space<vmem>>, vector<1x32x32xf32>
    %228 = vector.shape_cast %227 : vector<1x32x32xf32> to vector<32x32xf32>
    %cst_166 = arith.constant dense<0.000000e+00> : vector<8x32xf32>
    %229 = tpu.matmul %1, %228, %cst_166 {dimension_numbers = #tpu.dot_dimension_numbers<[1], [0], [0], [1], [0, 0, 1, 1], [], []>} : vector<8x32xf32>, vector<32x32xf32>, vector<8x32xf32> -> vector<8x32xf32>
    %c6_167 = arith.constant 6 : index
    %c0_168 = arith.constant 0 : index
    %c0_169 = arith.constant 0 : index
    %230 = vector.load %arg6[%c6_167, %c0_168, %c0_169] : memref<16x1x32xf32, #tpu.memory_space<vmem>>, vector<1x1x32xf32>
    %231 = vector.shape_cast %230 : vector<1x1x32xf32> to vector<1x32xf32>
    %232 = vector.broadcast %231 : vector<1x32xf32> to vector<8x32xf32>
    %233 = arith.addf %229, %232 : vector<8x32xf32>
    %c11 = arith.constant 11 : index
    %c0_170 = arith.constant 0 : index
    %c0_171 = arith.constant 0 : index
    %234 = vector.load %arg3[%c11, %c0_170, %c0_171] : memref<32x32x8xf32, #tpu.memory_space<vmem>>, vector<1x32x8xf32>
    %235 = vector.shape_cast %234 : vector<1x32x8xf32> to vector<32x8xf32>
    %cst_172 = arith.constant dense<0.000000e+00> : vector<32x8xf32>
    %236 = tpu.matmul %168, %235, %cst_172 {dimension_numbers = #tpu.dot_dimension_numbers<[1], [0], [0], [1], [0, 0, 1, 1], [], []>} : vector<32x32xf32>, vector<32x8xf32>, vector<32x8xf32> -> vector<32x8xf32>
    %c11_173 = arith.constant 11 : index
    %c0_174 = arith.constant 0 : index
    %c0_175 = arith.constant 0 : index
    %237 = vector.load %arg4[%c11_173, %c0_174, %c0_175] : memref<32x1x8xf32, #tpu.memory_space<vmem>>, vector<1x1x8xf32>
    %238 = vector.shape_cast %237 : vector<1x1x8xf32> to vector<1x8xf32>
    %239 = vector.broadcast %238 : vector<1x8xf32> to vector<32x8xf32>
    %240 = arith.addf %236, %239 : vector<32x8xf32>
    %c15 = arith.constant 15 : index
    %c0_176 = arith.constant 0 : index
    %c0_177 = arith.constant 0 : index
    %241 = vector.load %arg3[%c15, %c0_176, %c0_177] : memref<32x32x8xf32, #tpu.memory_space<vmem>>, vector<1x32x8xf32>
    %242 = vector.shape_cast %241 : vector<1x32x8xf32> to vector<32x8xf32>
    %cst_178 = arith.constant dense<0.000000e+00> : vector<8x8xf32>
    %243 = tpu.matmul %1, %242, %cst_178 {dimension_numbers = #tpu.dot_dimension_numbers<[1], [0], [0], [1], [0, 0, 1, 1], [], []>} : vector<8x32xf32>, vector<32x8xf32>, vector<8x8xf32> -> vector<8x8xf32>
    %c15_179 = arith.constant 15 : index
    %c0_180 = arith.constant 0 : index
    %c0_181 = arith.constant 0 : index
    %244 = vector.load %arg4[%c15_179, %c0_180, %c0_181] : memref<32x1x8xf32, #tpu.memory_space<vmem>>, vector<1x1x8xf32>
    %245 = vector.shape_cast %244 : vector<1x1x8xf32> to vector<1x8xf32>
    %246 = vector.broadcast %245 : vector<1x8xf32> to vector<8x8xf32>
    %247 = arith.addf %243, %246 : vector<8x8xf32>
    %c7_182 = arith.constant 7 : index
    %c0_183 = arith.constant 0 : index
    %c0_184 = arith.constant 0 : index
    %248 = vector.load %arg5[%c7_182, %c0_183, %c0_184] : memref<16x32x32xf32, #tpu.memory_space<vmem>>, vector<1x32x32xf32>
    %249 = vector.shape_cast %248 : vector<1x32x32xf32> to vector<32x32xf32>
    %cst_185 = arith.constant dense<0.000000e+00> : vector<8x32xf32>
    %250 = tpu.matmul %1, %249, %cst_185 {dimension_numbers = #tpu.dot_dimension_numbers<[1], [0], [0], [1], [0, 0, 1, 1], [], []>} : vector<8x32xf32>, vector<32x32xf32>, vector<8x32xf32> -> vector<8x32xf32>
    %c7_186 = arith.constant 7 : index
    %c0_187 = arith.constant 0 : index
    %c0_188 = arith.constant 0 : index
    %251 = vector.load %arg6[%c7_186, %c0_187, %c0_188] : memref<16x1x32xf32, #tpu.memory_space<vmem>>, vector<1x1x32xf32>
    %252 = vector.shape_cast %251 : vector<1x1x32xf32> to vector<1x32xf32>
    %253 = vector.broadcast %252 : vector<1x32xf32> to vector<8x32xf32>
    %254 = arith.addf %250, %253 : vector<8x32xf32>
    %cst_189 = arith.constant dense<0.000000e+00> : vector<32x8xf32>
    %255 = tpu.matmul %177, %184, %cst_189 {dimension_numbers = #tpu.dot_dimension_numbers<[1], [1], [0], [0], [0, 0, 1, 0], [], []>} : vector<32x8xf32>, vector<8x8xf32>, vector<32x8xf32> -> vector<32x8xf32>
    %cst_190 = arith.constant dense<0xFF800000> : vector<32xf32>
    %256 = vector.multi_reduction <maximumf>, %255, %cst_190 [1] : vector<32x8xf32> to vector<32xf32>
    %257 = vector.shape_cast %256 : vector<32xf32> to vector<32x1xf32>
    %258 = vector.broadcast %257 : vector<32x1xf32> to vector<32x8xf32>
    %259 = arith.subf %255, %258 : vector<32x8xf32>
    %260 = math.exp %259 : vector<32x8xf32>
    %cst_191 = arith.constant dense<0.000000e+00> : vector<32xf32>
    %261 = vector.multi_reduction <add>, %260, %cst_191 [1] : vector<32x8xf32> to vector<32xf32>
    %262 = vector.shape_cast %261 : vector<32xf32> to vector<32x1xf32>
    %263 = tpu.reciprocal %262 {approx = true} : vector<32x1xf32> -> vector<32x1xf32>
    %264 = vector.broadcast %263 : vector<32x1xf32> to vector<32x8xf32>
    %265 = arith.mulf %260, %264 : vector<32x8xf32>
    %cst_192 = arith.constant dense<0.000000e+00> : vector<32x32xf32>
    %266 = tpu.matmul %265, %191, %cst_192 {dimension_numbers = #tpu.dot_dimension_numbers<[1], [0], [0], [1], [0, 0, 1, 1], [], []>} : vector<32x8xf32>, vector<8x32xf32>, vector<32x32xf32> -> vector<32x32xf32>
    %cst_193 = arith.constant dense<0.000000e+00> : vector<32x8xf32>
    %267 = tpu.matmul %198, %205, %cst_193 {dimension_numbers = #tpu.dot_dimension_numbers<[1], [1], [0], [0], [0, 0, 1, 0], [], []>} : vector<32x8xf32>, vector<8x8xf32>, vector<32x8xf32> -> vector<32x8xf32>
    %cst_194 = arith.constant dense<0xFF800000> : vector<32xf32>
    %268 = vector.multi_reduction <maximumf>, %267, %cst_194 [1] : vector<32x8xf32> to vector<32xf32>
    %269 = vector.shape_cast %268 : vector<32xf32> to vector<32x1xf32>
    %270 = vector.broadcast %269 : vector<32x1xf32> to vector<32x8xf32>
    %271 = arith.subf %267, %270 : vector<32x8xf32>
    %272 = math.exp %271 : vector<32x8xf32>
    %cst_195 = arith.constant dense<0.000000e+00> : vector<32xf32>
    %273 = vector.multi_reduction <add>, %272, %cst_195 [1] : vector<32x8xf32> to vector<32xf32>
    %274 = vector.shape_cast %273 : vector<32xf32> to vector<32x1xf32>
    %275 = tpu.reciprocal %274 {approx = true} : vector<32x1xf32> -> vector<32x1xf32>
    %276 = vector.broadcast %275 : vector<32x1xf32> to vector<32x8xf32>
    %277 = arith.mulf %272, %276 : vector<32x8xf32>
    %cst_196 = arith.constant dense<0.000000e+00> : vector<32x32xf32>
    %278 = tpu.matmul %277, %212, %cst_196 {dimension_numbers = #tpu.dot_dimension_numbers<[1], [0], [0], [1], [0, 0, 1, 1], [], []>} : vector<32x8xf32>, vector<8x32xf32>, vector<32x32xf32> -> vector<32x32xf32>
    %279 = arith.addf %266, %278 : vector<32x32xf32>
    %cst_197 = arith.constant dense<0.000000e+00> : vector<32x8xf32>
    %280 = tpu.matmul %219, %226, %cst_197 {dimension_numbers = #tpu.dot_dimension_numbers<[1], [1], [0], [0], [0, 0, 1, 0], [], []>} : vector<32x8xf32>, vector<8x8xf32>, vector<32x8xf32> -> vector<32x8xf32>
    %cst_198 = arith.constant dense<0xFF800000> : vector<32xf32>
    %281 = vector.multi_reduction <maximumf>, %280, %cst_198 [1] : vector<32x8xf32> to vector<32xf32>
    %282 = vector.shape_cast %281 : vector<32xf32> to vector<32x1xf32>
    %283 = vector.broadcast %282 : vector<32x1xf32> to vector<32x8xf32>
    %284 = arith.subf %280, %283 : vector<32x8xf32>
    %285 = math.exp %284 : vector<32x8xf32>
    %cst_199 = arith.constant dense<0.000000e+00> : vector<32xf32>
    %286 = vector.multi_reduction <add>, %285, %cst_199 [1] : vector<32x8xf32> to vector<32xf32>
    %287 = vector.shape_cast %286 : vector<32xf32> to vector<32x1xf32>
    %288 = tpu.reciprocal %287 {approx = true} : vector<32x1xf32> -> vector<32x1xf32>
    %289 = vector.broadcast %288 : vector<32x1xf32> to vector<32x8xf32>
    %290 = arith.mulf %285, %289 : vector<32x8xf32>
    %cst_200 = arith.constant dense<0.000000e+00> : vector<32x32xf32>
    %291 = tpu.matmul %290, %233, %cst_200 {dimension_numbers = #tpu.dot_dimension_numbers<[1], [0], [0], [1], [0, 0, 1, 1], [], []>} : vector<32x8xf32>, vector<8x32xf32>, vector<32x32xf32> -> vector<32x32xf32>
    %292 = arith.addf %279, %291 : vector<32x32xf32>
    %cst_201 = arith.constant dense<0.000000e+00> : vector<32x8xf32>
    %293 = tpu.matmul %240, %247, %cst_201 {dimension_numbers = #tpu.dot_dimension_numbers<[1], [1], [0], [0], [0, 0, 1, 0], [], []>} : vector<32x8xf32>, vector<8x8xf32>, vector<32x8xf32> -> vector<32x8xf32>
    %cst_202 = arith.constant dense<0xFF800000> : vector<32xf32>
    %294 = vector.multi_reduction <maximumf>, %293, %cst_202 [1] : vector<32x8xf32> to vector<32xf32>
    %295 = vector.shape_cast %294 : vector<32xf32> to vector<32x1xf32>
    %296 = vector.broadcast %295 : vector<32x1xf32> to vector<32x8xf32>
    %297 = arith.subf %293, %296 : vector<32x8xf32>
    %298 = math.exp %297 : vector<32x8xf32>
    %cst_203 = arith.constant dense<0.000000e+00> : vector<32xf32>
    %299 = vector.multi_reduction <add>, %298, %cst_203 [1] : vector<32x8xf32> to vector<32xf32>
    %300 = vector.shape_cast %299 : vector<32xf32> to vector<32x1xf32>
    %301 = tpu.reciprocal %300 {approx = true} : vector<32x1xf32> -> vector<32x1xf32>
    %302 = vector.broadcast %301 : vector<32x1xf32> to vector<32x8xf32>
    %303 = arith.mulf %298, %302 : vector<32x8xf32>
    %cst_204 = arith.constant dense<0.000000e+00> : vector<32x32xf32>
    %304 = tpu.matmul %303, %254, %cst_204 {dimension_numbers = #tpu.dot_dimension_numbers<[1], [0], [0], [1], [0, 0, 1, 1], [], []>} : vector<32x8xf32>, vector<8x32xf32>, vector<32x32xf32> -> vector<32x32xf32>
    %305 = arith.addf %292, %304 : vector<32x32xf32>
    %306 = vector.broadcast %170 : vector<1x32xf32> to vector<32x32xf32>
    %307 = arith.addf %305, %306 : vector<32x32xf32>
    %308 = arith.addf %168, %307 : vector<32x32xf32>
    %c4_205 = arith.constant 4 : index
    %c0_206 = arith.constant 0 : index
    %c0_207 = arith.constant 0 : index
    %309 = vector.load %arg10[%c4_205, %c0_206, %c0_207] : memref<19x1x32xf32, #tpu.memory_space<vmem>>, vector<1x1x32xf32>
    %310 = vector.shape_cast %309 : vector<1x1x32xf32> to vector<1x32xf32>
    %c7_208 = arith.constant 7 : index
    %c0_209 = arith.constant 0 : index
    %c0_210 = arith.constant 0 : index
    %311 = vector.load %arg10[%c7_208, %c0_209, %c0_210] : memref<19x1x32xf32, #tpu.memory_space<vmem>>, vector<1x1x32xf32>
    %312 = vector.shape_cast %311 : vector<1x1x32xf32> to vector<1x32xf32>
    %cst_211 = arith.constant dense<0.000000e+00> : vector<32xf32>
    %313 = vector.multi_reduction <add>, %308, %cst_211 [1] : vector<32x32xf32> to vector<32xf32>
    %314 = vector.shape_cast %313 : vector<32xf32> to vector<32x1xf32>
    %cst_212 = arith.constant 3.200000e+01 : f32
    %315 = vector.broadcast %cst_212 : f32 to vector<32x1xf32>
    %316 = arith.divf %314, %315 : vector<32x1xf32>
    %317 = vector.broadcast %316 : vector<32x1xf32> to vector<32x32xf32>
    %318 = arith.subf %308, %317 : vector<32x32xf32>
    %319 = arith.mulf %318, %318 : vector<32x32xf32>
    %cst_213 = arith.constant dense<0.000000e+00> : vector<32xf32>
    %320 = vector.multi_reduction <add>, %319, %cst_213 [1] : vector<32x32xf32> to vector<32xf32>
    %321 = vector.shape_cast %320 : vector<32xf32> to vector<32x1xf32>
    %cst_214 = arith.constant 3.200000e+01 : f32
    %322 = vector.broadcast %cst_214 : f32 to vector<32x1xf32>
    %323 = arith.divf %321, %322 : vector<32x1xf32>
    %324 = vector.broadcast %316 : vector<32x1xf32> to vector<32x32xf32>
    %325 = arith.subf %308, %324 : vector<32x32xf32>
    %cst_215 = arith.constant 9.99999974E-6 : f32
    %326 = vector.broadcast %cst_215 : f32 to vector<32x1xf32>
    %327 = arith.addf %323, %326 : vector<32x1xf32>
    %328 = math.rsqrt %327 : vector<32x1xf32>
    %329 = vector.broadcast %328 : vector<32x1xf32> to vector<32x32xf32>
    %330 = arith.mulf %325, %329 : vector<32x32xf32>
    %331 = vector.broadcast %310 : vector<1x32xf32> to vector<32x32xf32>
    %332 = arith.mulf %330, %331 : vector<32x32xf32>
    %333 = vector.broadcast %312 : vector<1x32xf32> to vector<32x32xf32>
    %334 = arith.addf %332, %333 : vector<32x32xf32>
    %c0_216 = arith.constant 0 : index
    %c0_217 = arith.constant 0 : index
    %c0_218 = arith.constant 0 : index
    %335 = vector.load %arg7[%c0_216, %c0_217, %c0_218] : memref<2x32x64xf32, #tpu.memory_space<vmem>>, vector<1x32x64xf32>
    %336 = vector.shape_cast %335 : vector<1x32x64xf32> to vector<32x64xf32>
    %cst_219 = arith.constant dense<0.000000e+00> : vector<32x64xf32>
    %337 = tpu.matmul %334, %336, %cst_219 {dimension_numbers = #tpu.dot_dimension_numbers<[1], [0], [0], [1], [0, 0, 1, 1], [], []>} : vector<32x32xf32>, vector<32x64xf32>, vector<32x64xf32> -> vector<32x64xf32>
    %c0_220 = arith.constant 0 : index
    %c0_221 = arith.constant 0 : index
    %c0_222 = arith.constant 0 : index
    %338 = vector.load %arg8[%c0_220, %c0_221, %c0_222] : memref<2x1x64xf32, #tpu.memory_space<vmem>>, vector<1x1x64xf32>
    %339 = vector.shape_cast %338 : vector<1x1x64xf32> to vector<1x64xf32>
    %340 = vector.broadcast %339 : vector<1x64xf32> to vector<32x64xf32>
    %341 = arith.addf %337, %340 : vector<32x64xf32>
    %cst_223 = arith.constant 0.000000e+00 : f32
    %342 = vector.broadcast %cst_223 : f32 to vector<32x64xf32>
    %343 = arith.maximumf %341, %342 : vector<32x64xf32>
    %c0_224 = arith.constant 0 : index
    %c0_225 = arith.constant 0 : index
    %c0_226 = arith.constant 0 : index
    %344 = vector.load %arg9[%c0_224, %c0_225, %c0_226] : memref<2x64x32xf32, #tpu.memory_space<vmem>>, vector<1x64x32xf32>
    %345 = vector.shape_cast %344 : vector<1x64x32xf32> to vector<64x32xf32>
    %cst_227 = arith.constant dense<0.000000e+00> : vector<32x32xf32>
    %346 = tpu.matmul %343, %345, %cst_227 {dimension_numbers = #tpu.dot_dimension_numbers<[1], [0], [0], [1], [0, 0, 1, 1], [], []>} : vector<32x64xf32>, vector<64x32xf32>, vector<32x32xf32> -> vector<32x32xf32>
    %c2_228 = arith.constant 2 : index
    %c0_229 = arith.constant 0 : index
    %c0_230 = arith.constant 0 : index
    %347 = vector.load %arg10[%c2_228, %c0_229, %c0_230] : memref<19x1x32xf32, #tpu.memory_space<vmem>>, vector<1x1x32xf32>
    %348 = vector.shape_cast %347 : vector<1x1x32xf32> to vector<1x32xf32>
    %349 = vector.broadcast %348 : vector<1x32xf32> to vector<32x32xf32>
    %350 = arith.addf %346, %349 : vector<32x32xf32>
    %351 = arith.addf %334, %350 : vector<32x32xf32>
    %c5_231 = arith.constant 5 : index
    %c0_232 = arith.constant 0 : index
    %c0_233 = arith.constant 0 : index
    %352 = vector.load %arg10[%c5_231, %c0_232, %c0_233] : memref<19x1x32xf32, #tpu.memory_space<vmem>>, vector<1x1x32xf32>
    %353 = vector.shape_cast %352 : vector<1x1x32xf32> to vector<1x32xf32>
    %c8_234 = arith.constant 8 : index
    %c0_235 = arith.constant 0 : index
    %c0_236 = arith.constant 0 : index
    %354 = vector.load %arg10[%c8_234, %c0_235, %c0_236] : memref<19x1x32xf32, #tpu.memory_space<vmem>>, vector<1x1x32xf32>
    %355 = vector.shape_cast %354 : vector<1x1x32xf32> to vector<1x32xf32>
    %cst_237 = arith.constant dense<0.000000e+00> : vector<32xf32>
    %356 = vector.multi_reduction <add>, %351, %cst_237 [1] : vector<32x32xf32> to vector<32xf32>
    %357 = vector.shape_cast %356 : vector<32xf32> to vector<32x1xf32>
    %cst_238 = arith.constant 3.200000e+01 : f32
    %358 = vector.broadcast %cst_238 : f32 to vector<32x1xf32>
    %359 = arith.divf %357, %358 : vector<32x1xf32>
    %360 = vector.broadcast %359 : vector<32x1xf32> to vector<32x32xf32>
    %361 = arith.subf %351, %360 : vector<32x32xf32>
    %362 = arith.mulf %361, %361 : vector<32x32xf32>
    %cst_239 = arith.constant dense<0.000000e+00> : vector<32xf32>
    %363 = vector.multi_reduction <add>, %362, %cst_239 [1] : vector<32x32xf32> to vector<32xf32>
    %364 = vector.shape_cast %363 : vector<32xf32> to vector<32x1xf32>
    %cst_240 = arith.constant 3.200000e+01 : f32
    %365 = vector.broadcast %cst_240 : f32 to vector<32x1xf32>
    %366 = arith.divf %364, %365 : vector<32x1xf32>
    %367 = vector.broadcast %359 : vector<32x1xf32> to vector<32x32xf32>
    %368 = arith.subf %351, %367 : vector<32x32xf32>
    %cst_241 = arith.constant 9.99999974E-6 : f32
    %369 = vector.broadcast %cst_241 : f32 to vector<32x1xf32>
    %370 = arith.addf %366, %369 : vector<32x1xf32>
    %371 = math.rsqrt %370 : vector<32x1xf32>
    %372 = vector.broadcast %371 : vector<32x1xf32> to vector<32x32xf32>
    %373 = arith.mulf %368, %372 : vector<32x32xf32>
    %374 = vector.broadcast %353 : vector<1x32xf32> to vector<32x32xf32>
    %375 = arith.mulf %373, %374 : vector<32x32xf32>
    %376 = vector.broadcast %355 : vector<1x32xf32> to vector<32x32xf32>
    %377 = arith.addf %375, %376 : vector<32x32xf32>
    %c9_242 = arith.constant 9 : index
    %c0_243 = arith.constant 0 : index
    %c0_244 = arith.constant 0 : index
    %378 = vector.load %arg10[%c9_242, %c0_243, %c0_244] : memref<19x1x32xf32, #tpu.memory_space<vmem>>, vector<1x1x32xf32>
    %379 = vector.shape_cast %378 : vector<1x1x32xf32> to vector<1x32xf32>
    %c16 = arith.constant 16 : index
    %c0_245 = arith.constant 0 : index
    %c0_246 = arith.constant 0 : index
    %380 = vector.load %arg3[%c16, %c0_245, %c0_246] : memref<32x32x8xf32, #tpu.memory_space<vmem>>, vector<1x32x8xf32>
    %381 = vector.shape_cast %380 : vector<1x32x8xf32> to vector<32x8xf32>
    %cst_247 = arith.constant dense<0.000000e+00> : vector<32x8xf32>
    %382 = tpu.matmul %377, %381, %cst_247 {dimension_numbers = #tpu.dot_dimension_numbers<[1], [0], [0], [1], [0, 0, 1, 1], [], []>} : vector<32x32xf32>, vector<32x8xf32>, vector<32x8xf32> -> vector<32x8xf32>
    %c16_248 = arith.constant 16 : index
    %c0_249 = arith.constant 0 : index
    %c0_250 = arith.constant 0 : index
    %383 = vector.load %arg4[%c16_248, %c0_249, %c0_250] : memref<32x1x8xf32, #tpu.memory_space<vmem>>, vector<1x1x8xf32>
    %384 = vector.shape_cast %383 : vector<1x1x8xf32> to vector<1x8xf32>
    %385 = vector.broadcast %384 : vector<1x8xf32> to vector<32x8xf32>
    %386 = arith.addf %382, %385 : vector<32x8xf32>
    %c20 = arith.constant 20 : index
    %c0_251 = arith.constant 0 : index
    %c0_252 = arith.constant 0 : index
    %387 = vector.load %arg3[%c20, %c0_251, %c0_252] : memref<32x32x8xf32, #tpu.memory_space<vmem>>, vector<1x32x8xf32>
    %388 = vector.shape_cast %387 : vector<1x32x8xf32> to vector<32x8xf32>
    %cst_253 = arith.constant dense<0.000000e+00> : vector<32x8xf32>
    %389 = tpu.matmul %377, %388, %cst_253 {dimension_numbers = #tpu.dot_dimension_numbers<[1], [0], [0], [1], [0, 0, 1, 1], [], []>} : vector<32x32xf32>, vector<32x8xf32>, vector<32x8xf32> -> vector<32x8xf32>
    %c20_254 = arith.constant 20 : index
    %c0_255 = arith.constant 0 : index
    %c0_256 = arith.constant 0 : index
    %390 = vector.load %arg4[%c20_254, %c0_255, %c0_256] : memref<32x1x8xf32, #tpu.memory_space<vmem>>, vector<1x1x8xf32>
    %391 = vector.shape_cast %390 : vector<1x1x8xf32> to vector<1x8xf32>
    %392 = vector.broadcast %391 : vector<1x8xf32> to vector<32x8xf32>
    %393 = arith.addf %389, %392 : vector<32x8xf32>
    %c8_257 = arith.constant 8 : index
    %c0_258 = arith.constant 0 : index
    %c0_259 = arith.constant 0 : index
    %394 = vector.load %arg5[%c8_257, %c0_258, %c0_259] : memref<16x32x32xf32, #tpu.memory_space<vmem>>, vector<1x32x32xf32>
    %395 = vector.shape_cast %394 : vector<1x32x32xf32> to vector<32x32xf32>
    %cst_260 = arith.constant dense<0.000000e+00> : vector<32x32xf32>
    %396 = tpu.matmul %377, %395, %cst_260 {dimension_numbers = #tpu.dot_dimension_numbers<[1], [0], [0], [1], [0, 0, 1, 1], [], []>} : vector<32x32xf32>, vector<32x32xf32>, vector<32x32xf32> -> vector<32x32xf32>
    %c8_261 = arith.constant 8 : index
    %c0_262 = arith.constant 0 : index
    %c0_263 = arith.constant 0 : index
    %397 = vector.load %arg6[%c8_261, %c0_262, %c0_263] : memref<16x1x32xf32, #tpu.memory_space<vmem>>, vector<1x1x32xf32>
    %398 = vector.shape_cast %397 : vector<1x1x32xf32> to vector<1x32xf32>
    %399 = vector.broadcast %398 : vector<1x32xf32> to vector<32x32xf32>
    %400 = arith.addf %396, %399 : vector<32x32xf32>
    %c17 = arith.constant 17 : index
    %c0_264 = arith.constant 0 : index
    %c0_265 = arith.constant 0 : index
    %401 = vector.load %arg3[%c17, %c0_264, %c0_265] : memref<32x32x8xf32, #tpu.memory_space<vmem>>, vector<1x32x8xf32>
    %402 = vector.shape_cast %401 : vector<1x32x8xf32> to vector<32x8xf32>
    %cst_266 = arith.constant dense<0.000000e+00> : vector<32x8xf32>
    %403 = tpu.matmul %377, %402, %cst_266 {dimension_numbers = #tpu.dot_dimension_numbers<[1], [0], [0], [1], [0, 0, 1, 1], [], []>} : vector<32x32xf32>, vector<32x8xf32>, vector<32x8xf32> -> vector<32x8xf32>
    %c17_267 = arith.constant 17 : index
    %c0_268 = arith.constant 0 : index
    %c0_269 = arith.constant 0 : index
    %404 = vector.load %arg4[%c17_267, %c0_268, %c0_269] : memref<32x1x8xf32, #tpu.memory_space<vmem>>, vector<1x1x8xf32>
    %405 = vector.shape_cast %404 : vector<1x1x8xf32> to vector<1x8xf32>
    %406 = vector.broadcast %405 : vector<1x8xf32> to vector<32x8xf32>
    %407 = arith.addf %403, %406 : vector<32x8xf32>
    %c21 = arith.constant 21 : index
    %c0_270 = arith.constant 0 : index
    %c0_271 = arith.constant 0 : index
    %408 = vector.load %arg3[%c21, %c0_270, %c0_271] : memref<32x32x8xf32, #tpu.memory_space<vmem>>, vector<1x32x8xf32>
    %409 = vector.shape_cast %408 : vector<1x32x8xf32> to vector<32x8xf32>
    %cst_272 = arith.constant dense<0.000000e+00> : vector<32x8xf32>
    %410 = tpu.matmul %377, %409, %cst_272 {dimension_numbers = #tpu.dot_dimension_numbers<[1], [0], [0], [1], [0, 0, 1, 1], [], []>} : vector<32x32xf32>, vector<32x8xf32>, vector<32x8xf32> -> vector<32x8xf32>
    %c21_273 = arith.constant 21 : index
    %c0_274 = arith.constant 0 : index
    %c0_275 = arith.constant 0 : index
    %411 = vector.load %arg4[%c21_273, %c0_274, %c0_275] : memref<32x1x8xf32, #tpu.memory_space<vmem>>, vector<1x1x8xf32>
    %412 = vector.shape_cast %411 : vector<1x1x8xf32> to vector<1x8xf32>
    %413 = vector.broadcast %412 : vector<1x8xf32> to vector<32x8xf32>
    %414 = arith.addf %410, %413 : vector<32x8xf32>
    %c9_276 = arith.constant 9 : index
    %c0_277 = arith.constant 0 : index
    %c0_278 = arith.constant 0 : index
    %415 = vector.load %arg5[%c9_276, %c0_277, %c0_278] : memref<16x32x32xf32, #tpu.memory_space<vmem>>, vector<1x32x32xf32>
    %416 = vector.shape_cast %415 : vector<1x32x32xf32> to vector<32x32xf32>
    %cst_279 = arith.constant dense<0.000000e+00> : vector<32x32xf32>
    %417 = tpu.matmul %377, %416, %cst_279 {dimension_numbers = #tpu.dot_dimension_numbers<[1], [0], [0], [1], [0, 0, 1, 1], [], []>} : vector<32x32xf32>, vector<32x32xf32>, vector<32x32xf32> -> vector<32x32xf32>
    %c9_280 = arith.constant 9 : index
    %c0_281 = arith.constant 0 : index
    %c0_282 = arith.constant 0 : index
    %418 = vector.load %arg6[%c9_280, %c0_281, %c0_282] : memref<16x1x32xf32, #tpu.memory_space<vmem>>, vector<1x1x32xf32>
    %419 = vector.shape_cast %418 : vector<1x1x32xf32> to vector<1x32xf32>
    %420 = vector.broadcast %419 : vector<1x32xf32> to vector<32x32xf32>
    %421 = arith.addf %417, %420 : vector<32x32xf32>
    %c18 = arith.constant 18 : index
    %c0_283 = arith.constant 0 : index
    %c0_284 = arith.constant 0 : index
    %422 = vector.load %arg3[%c18, %c0_283, %c0_284] : memref<32x32x8xf32, #tpu.memory_space<vmem>>, vector<1x32x8xf32>
    %423 = vector.shape_cast %422 : vector<1x32x8xf32> to vector<32x8xf32>
    %cst_285 = arith.constant dense<0.000000e+00> : vector<32x8xf32>
    %424 = tpu.matmul %377, %423, %cst_285 {dimension_numbers = #tpu.dot_dimension_numbers<[1], [0], [0], [1], [0, 0, 1, 1], [], []>} : vector<32x32xf32>, vector<32x8xf32>, vector<32x8xf32> -> vector<32x8xf32>
    %c18_286 = arith.constant 18 : index
    %c0_287 = arith.constant 0 : index
    %c0_288 = arith.constant 0 : index
    %425 = vector.load %arg4[%c18_286, %c0_287, %c0_288] : memref<32x1x8xf32, #tpu.memory_space<vmem>>, vector<1x1x8xf32>
    %426 = vector.shape_cast %425 : vector<1x1x8xf32> to vector<1x8xf32>
    %427 = vector.broadcast %426 : vector<1x8xf32> to vector<32x8xf32>
    %428 = arith.addf %424, %427 : vector<32x8xf32>
    %c22 = arith.constant 22 : index
    %c0_289 = arith.constant 0 : index
    %c0_290 = arith.constant 0 : index
    %429 = vector.load %arg3[%c22, %c0_289, %c0_290] : memref<32x32x8xf32, #tpu.memory_space<vmem>>, vector<1x32x8xf32>
    %430 = vector.shape_cast %429 : vector<1x32x8xf32> to vector<32x8xf32>
    %cst_291 = arith.constant dense<0.000000e+00> : vector<32x8xf32>
    %431 = tpu.matmul %377, %430, %cst_291 {dimension_numbers = #tpu.dot_dimension_numbers<[1], [0], [0], [1], [0, 0, 1, 1], [], []>} : vector<32x32xf32>, vector<32x8xf32>, vector<32x8xf32> -> vector<32x8xf32>
    %c22_292 = arith.constant 22 : index
    %c0_293 = arith.constant 0 : index
    %c0_294 = arith.constant 0 : index
    %432 = vector.load %arg4[%c22_292, %c0_293, %c0_294] : memref<32x1x8xf32, #tpu.memory_space<vmem>>, vector<1x1x8xf32>
    %433 = vector.shape_cast %432 : vector<1x1x8xf32> to vector<1x8xf32>
    %434 = vector.broadcast %433 : vector<1x8xf32> to vector<32x8xf32>
    %435 = arith.addf %431, %434 : vector<32x8xf32>
    %c10_295 = arith.constant 10 : index
    %c0_296 = arith.constant 0 : index
    %c0_297 = arith.constant 0 : index
    %436 = vector.load %arg5[%c10_295, %c0_296, %c0_297] : memref<16x32x32xf32, #tpu.memory_space<vmem>>, vector<1x32x32xf32>
    %437 = vector.shape_cast %436 : vector<1x32x32xf32> to vector<32x32xf32>
    %cst_298 = arith.constant dense<0.000000e+00> : vector<32x32xf32>
    %438 = tpu.matmul %377, %437, %cst_298 {dimension_numbers = #tpu.dot_dimension_numbers<[1], [0], [0], [1], [0, 0, 1, 1], [], []>} : vector<32x32xf32>, vector<32x32xf32>, vector<32x32xf32> -> vector<32x32xf32>
    %c10_299 = arith.constant 10 : index
    %c0_300 = arith.constant 0 : index
    %c0_301 = arith.constant 0 : index
    %439 = vector.load %arg6[%c10_299, %c0_300, %c0_301] : memref<16x1x32xf32, #tpu.memory_space<vmem>>, vector<1x1x32xf32>
    %440 = vector.shape_cast %439 : vector<1x1x32xf32> to vector<1x32xf32>
    %441 = vector.broadcast %440 : vector<1x32xf32> to vector<32x32xf32>
    %442 = arith.addf %438, %441 : vector<32x32xf32>
    %c19 = arith.constant 19 : index
    %c0_302 = arith.constant 0 : index
    %c0_303 = arith.constant 0 : index
    %443 = vector.load %arg3[%c19, %c0_302, %c0_303] : memref<32x32x8xf32, #tpu.memory_space<vmem>>, vector<1x32x8xf32>
    %444 = vector.shape_cast %443 : vector<1x32x8xf32> to vector<32x8xf32>
    %cst_304 = arith.constant dense<0.000000e+00> : vector<32x8xf32>
    %445 = tpu.matmul %377, %444, %cst_304 {dimension_numbers = #tpu.dot_dimension_numbers<[1], [0], [0], [1], [0, 0, 1, 1], [], []>} : vector<32x32xf32>, vector<32x8xf32>, vector<32x8xf32> -> vector<32x8xf32>
    %c19_305 = arith.constant 19 : index
    %c0_306 = arith.constant 0 : index
    %c0_307 = arith.constant 0 : index
    %446 = vector.load %arg4[%c19_305, %c0_306, %c0_307] : memref<32x1x8xf32, #tpu.memory_space<vmem>>, vector<1x1x8xf32>
    %447 = vector.shape_cast %446 : vector<1x1x8xf32> to vector<1x8xf32>
    %448 = vector.broadcast %447 : vector<1x8xf32> to vector<32x8xf32>
    %449 = arith.addf %445, %448 : vector<32x8xf32>
    %c23 = arith.constant 23 : index
    %c0_308 = arith.constant 0 : index
    %c0_309 = arith.constant 0 : index
    %450 = vector.load %arg3[%c23, %c0_308, %c0_309] : memref<32x32x8xf32, #tpu.memory_space<vmem>>, vector<1x32x8xf32>
    %451 = vector.shape_cast %450 : vector<1x32x8xf32> to vector<32x8xf32>
    %cst_310 = arith.constant dense<0.000000e+00> : vector<32x8xf32>
    %452 = tpu.matmul %377, %451, %cst_310 {dimension_numbers = #tpu.dot_dimension_numbers<[1], [0], [0], [1], [0, 0, 1, 1], [], []>} : vector<32x32xf32>, vector<32x8xf32>, vector<32x8xf32> -> vector<32x8xf32>
    %c23_311 = arith.constant 23 : index
    %c0_312 = arith.constant 0 : index
    %c0_313 = arith.constant 0 : index
    %453 = vector.load %arg4[%c23_311, %c0_312, %c0_313] : memref<32x1x8xf32, #tpu.memory_space<vmem>>, vector<1x1x8xf32>
    %454 = vector.shape_cast %453 : vector<1x1x8xf32> to vector<1x8xf32>
    %455 = vector.broadcast %454 : vector<1x8xf32> to vector<32x8xf32>
    %456 = arith.addf %452, %455 : vector<32x8xf32>
    %c11_314 = arith.constant 11 : index
    %c0_315 = arith.constant 0 : index
    %c0_316 = arith.constant 0 : index
    %457 = vector.load %arg5[%c11_314, %c0_315, %c0_316] : memref<16x32x32xf32, #tpu.memory_space<vmem>>, vector<1x32x32xf32>
    %458 = vector.shape_cast %457 : vector<1x32x32xf32> to vector<32x32xf32>
    %cst_317 = arith.constant dense<0.000000e+00> : vector<32x32xf32>
    %459 = tpu.matmul %377, %458, %cst_317 {dimension_numbers = #tpu.dot_dimension_numbers<[1], [0], [0], [1], [0, 0, 1, 1], [], []>} : vector<32x32xf32>, vector<32x32xf32>, vector<32x32xf32> -> vector<32x32xf32>
    %c11_318 = arith.constant 11 : index
    %c0_319 = arith.constant 0 : index
    %c0_320 = arith.constant 0 : index
    %460 = vector.load %arg6[%c11_318, %c0_319, %c0_320] : memref<16x1x32xf32, #tpu.memory_space<vmem>>, vector<1x1x32xf32>
    %461 = vector.shape_cast %460 : vector<1x1x32xf32> to vector<1x32xf32>
    %462 = vector.broadcast %461 : vector<1x32xf32> to vector<32x32xf32>
    %463 = arith.addf %459, %462 : vector<32x32xf32>
    %cst_321 = arith.constant dense<0.000000e+00> : vector<32x32xf32>
    %464 = tpu.matmul %386, %393, %cst_321 {dimension_numbers = #tpu.dot_dimension_numbers<[1], [1], [0], [0], [0, 0, 1, 0], [], []>} : vector<32x8xf32>, vector<32x8xf32>, vector<32x32xf32> -> vector<32x32xf32>
    %cst_322 = arith.constant dense<0xFF800000> : vector<32xf32>
    %465 = vector.multi_reduction <maximumf>, %464, %cst_322 [1] : vector<32x32xf32> to vector<32xf32>
    %466 = vector.shape_cast %465 : vector<32xf32> to vector<32x1xf32>
    %467 = vector.broadcast %466 : vector<32x1xf32> to vector<32x32xf32>
    %468 = arith.subf %464, %467 : vector<32x32xf32>
    %469 = math.exp %468 : vector<32x32xf32>
    %cst_323 = arith.constant dense<0.000000e+00> : vector<32xf32>
    %470 = vector.multi_reduction <add>, %469, %cst_323 [1] : vector<32x32xf32> to vector<32xf32>
    %471 = vector.shape_cast %470 : vector<32xf32> to vector<32x1xf32>
    %472 = tpu.reciprocal %471 {approx = true} : vector<32x1xf32> -> vector<32x1xf32>
    %473 = vector.broadcast %472 : vector<32x1xf32> to vector<32x32xf32>
    %474 = arith.mulf %469, %473 : vector<32x32xf32>
    %cst_324 = arith.constant dense<0.000000e+00> : vector<32x32xf32>
    %475 = tpu.matmul %474, %400, %cst_324 {dimension_numbers = #tpu.dot_dimension_numbers<[1], [0], [0], [1], [0, 0, 1, 1], [], []>} : vector<32x32xf32>, vector<32x32xf32>, vector<32x32xf32> -> vector<32x32xf32>
    %cst_325 = arith.constant dense<0.000000e+00> : vector<32x32xf32>
    %476 = tpu.matmul %407, %414, %cst_325 {dimension_numbers = #tpu.dot_dimension_numbers<[1], [1], [0], [0], [0, 0, 1, 0], [], []>} : vector<32x8xf32>, vector<32x8xf32>, vector<32x32xf32> -> vector<32x32xf32>
    %cst_326 = arith.constant dense<0xFF800000> : vector<32xf32>
    %477 = vector.multi_reduction <maximumf>, %476, %cst_326 [1] : vector<32x32xf32> to vector<32xf32>
    %478 = vector.shape_cast %477 : vector<32xf32> to vector<32x1xf32>
    %479 = vector.broadcast %478 : vector<32x1xf32> to vector<32x32xf32>
    %480 = arith.subf %476, %479 : vector<32x32xf32>
    %481 = math.exp %480 : vector<32x32xf32>
    %cst_327 = arith.constant dense<0.000000e+00> : vector<32xf32>
    %482 = vector.multi_reduction <add>, %481, %cst_327 [1] : vector<32x32xf32> to vector<32xf32>
    %483 = vector.shape_cast %482 : vector<32xf32> to vector<32x1xf32>
    %484 = tpu.reciprocal %483 {approx = true} : vector<32x1xf32> -> vector<32x1xf32>
    %485 = vector.broadcast %484 : vector<32x1xf32> to vector<32x32xf32>
    %486 = arith.mulf %481, %485 : vector<32x32xf32>
    %cst_328 = arith.constant dense<0.000000e+00> : vector<32x32xf32>
    %487 = tpu.matmul %486, %421, %cst_328 {dimension_numbers = #tpu.dot_dimension_numbers<[1], [0], [0], [1], [0, 0, 1, 1], [], []>} : vector<32x32xf32>, vector<32x32xf32>, vector<32x32xf32> -> vector<32x32xf32>
    %488 = arith.addf %475, %487 : vector<32x32xf32>
    %cst_329 = arith.constant dense<0.000000e+00> : vector<32x32xf32>
    %489 = tpu.matmul %428, %435, %cst_329 {dimension_numbers = #tpu.dot_dimension_numbers<[1], [1], [0], [0], [0, 0, 1, 0], [], []>} : vector<32x8xf32>, vector<32x8xf32>, vector<32x32xf32> -> vector<32x32xf32>
    %cst_330 = arith.constant dense<0xFF800000> : vector<32xf32>
    %490 = vector.multi_reduction <maximumf>, %489, %cst_330 [1] : vector<32x32xf32> to vector<32xf32>
    %491 = vector.shape_cast %490 : vector<32xf32> to vector<32x1xf32>
    %492 = vector.broadcast %491 : vector<32x1xf32> to vector<32x32xf32>
    %493 = arith.subf %489, %492 : vector<32x32xf32>
    %494 = math.exp %493 : vector<32x32xf32>
    %cst_331 = arith.constant dense<0.000000e+00> : vector<32xf32>
    %495 = vector.multi_reduction <add>, %494, %cst_331 [1] : vector<32x32xf32> to vector<32xf32>
    %496 = vector.shape_cast %495 : vector<32xf32> to vector<32x1xf32>
    %497 = tpu.reciprocal %496 {approx = true} : vector<32x1xf32> -> vector<32x1xf32>
    %498 = vector.broadcast %497 : vector<32x1xf32> to vector<32x32xf32>
    %499 = arith.mulf %494, %498 : vector<32x32xf32>
    %cst_332 = arith.constant dense<0.000000e+00> : vector<32x32xf32>
    %500 = tpu.matmul %499, %442, %cst_332 {dimension_numbers = #tpu.dot_dimension_numbers<[1], [0], [0], [1], [0, 0, 1, 1], [], []>} : vector<32x32xf32>, vector<32x32xf32>, vector<32x32xf32> -> vector<32x32xf32>
    %501 = arith.addf %488, %500 : vector<32x32xf32>
    %cst_333 = arith.constant dense<0.000000e+00> : vector<32x32xf32>
    %502 = tpu.matmul %449, %456, %cst_333 {dimension_numbers = #tpu.dot_dimension_numbers<[1], [1], [0], [0], [0, 0, 1, 0], [], []>} : vector<32x8xf32>, vector<32x8xf32>, vector<32x32xf32> -> vector<32x32xf32>
    %cst_334 = arith.constant dense<0xFF800000> : vector<32xf32>
    %503 = vector.multi_reduction <maximumf>, %502, %cst_334 [1] : vector<32x32xf32> to vector<32xf32>
    %504 = vector.shape_cast %503 : vector<32xf32> to vector<32x1xf32>
    %505 = vector.broadcast %504 : vector<32x1xf32> to vector<32x32xf32>
    %506 = arith.subf %502, %505 : vector<32x32xf32>
    %507 = math.exp %506 : vector<32x32xf32>
    %cst_335 = arith.constant dense<0.000000e+00> : vector<32xf32>
    %508 = vector.multi_reduction <add>, %507, %cst_335 [1] : vector<32x32xf32> to vector<32xf32>
    %509 = vector.shape_cast %508 : vector<32xf32> to vector<32x1xf32>
    %510 = tpu.reciprocal %509 {approx = true} : vector<32x1xf32> -> vector<32x1xf32>
    %511 = vector.broadcast %510 : vector<32x1xf32> to vector<32x32xf32>
    %512 = arith.mulf %507, %511 : vector<32x32xf32>
    %cst_336 = arith.constant dense<0.000000e+00> : vector<32x32xf32>
    %513 = tpu.matmul %512, %463, %cst_336 {dimension_numbers = #tpu.dot_dimension_numbers<[1], [0], [0], [1], [0, 0, 1, 1], [], []>} : vector<32x32xf32>, vector<32x32xf32>, vector<32x32xf32> -> vector<32x32xf32>
    %514 = arith.addf %501, %513 : vector<32x32xf32>
    %515 = vector.broadcast %379 : vector<1x32xf32> to vector<32x32xf32>
    %516 = arith.addf %514, %515 : vector<32x32xf32>
    %517 = arith.addf %377, %516 : vector<32x32xf32>
    %c12_337 = arith.constant 12 : index
    %c0_338 = arith.constant 0 : index
    %c0_339 = arith.constant 0 : index
    %518 = vector.load %arg10[%c12_337, %c0_338, %c0_339] : memref<19x1x32xf32, #tpu.memory_space<vmem>>, vector<1x1x32xf32>
    %519 = vector.shape_cast %518 : vector<1x1x32xf32> to vector<1x32xf32>
    %c15_340 = arith.constant 15 : index
    %c0_341 = arith.constant 0 : index
    %c0_342 = arith.constant 0 : index
    %520 = vector.load %arg10[%c15_340, %c0_341, %c0_342] : memref<19x1x32xf32, #tpu.memory_space<vmem>>, vector<1x1x32xf32>
    %521 = vector.shape_cast %520 : vector<1x1x32xf32> to vector<1x32xf32>
    %cst_343 = arith.constant dense<0.000000e+00> : vector<32xf32>
    %522 = vector.multi_reduction <add>, %517, %cst_343 [1] : vector<32x32xf32> to vector<32xf32>
    %523 = vector.shape_cast %522 : vector<32xf32> to vector<32x1xf32>
    %cst_344 = arith.constant 3.200000e+01 : f32
    %524 = vector.broadcast %cst_344 : f32 to vector<32x1xf32>
    %525 = arith.divf %523, %524 : vector<32x1xf32>
    %526 = vector.broadcast %525 : vector<32x1xf32> to vector<32x32xf32>
    %527 = arith.subf %517, %526 : vector<32x32xf32>
    %528 = arith.mulf %527, %527 : vector<32x32xf32>
    %cst_345 = arith.constant dense<0.000000e+00> : vector<32xf32>
    %529 = vector.multi_reduction <add>, %528, %cst_345 [1] : vector<32x32xf32> to vector<32xf32>
    %530 = vector.shape_cast %529 : vector<32xf32> to vector<32x1xf32>
    %cst_346 = arith.constant 3.200000e+01 : f32
    %531 = vector.broadcast %cst_346 : f32 to vector<32x1xf32>
    %532 = arith.divf %530, %531 : vector<32x1xf32>
    %533 = vector.broadcast %525 : vector<32x1xf32> to vector<32x32xf32>
    %534 = arith.subf %517, %533 : vector<32x32xf32>
    %cst_347 = arith.constant 9.99999974E-6 : f32
    %535 = vector.broadcast %cst_347 : f32 to vector<32x1xf32>
    %536 = arith.addf %532, %535 : vector<32x1xf32>
    %537 = math.rsqrt %536 : vector<32x1xf32>
    %538 = vector.broadcast %537 : vector<32x1xf32> to vector<32x32xf32>
    %539 = arith.mulf %534, %538 : vector<32x32xf32>
    %540 = vector.broadcast %519 : vector<1x32xf32> to vector<32x32xf32>
    %541 = arith.mulf %539, %540 : vector<32x32xf32>
    %542 = vector.broadcast %521 : vector<1x32xf32> to vector<32x32xf32>
    %543 = arith.addf %541, %542 : vector<32x32xf32>
    %c10_348 = arith.constant 10 : index
    %c0_349 = arith.constant 0 : index
    %c0_350 = arith.constant 0 : index
    %544 = vector.load %arg10[%c10_348, %c0_349, %c0_350] : memref<19x1x32xf32, #tpu.memory_space<vmem>>, vector<1x1x32xf32>
    %545 = vector.shape_cast %544 : vector<1x1x32xf32> to vector<1x32xf32>
    %c24 = arith.constant 24 : index
    %c0_351 = arith.constant 0 : index
    %c0_352 = arith.constant 0 : index
    %546 = vector.load %arg3[%c24, %c0_351, %c0_352] : memref<32x32x8xf32, #tpu.memory_space<vmem>>, vector<1x32x8xf32>
    %547 = vector.shape_cast %546 : vector<1x32x8xf32> to vector<32x8xf32>
    %cst_353 = arith.constant dense<0.000000e+00> : vector<32x8xf32>
    %548 = tpu.matmul %543, %547, %cst_353 {dimension_numbers = #tpu.dot_dimension_numbers<[1], [0], [0], [1], [0, 0, 1, 1], [], []>} : vector<32x32xf32>, vector<32x8xf32>, vector<32x8xf32> -> vector<32x8xf32>
    %c24_354 = arith.constant 24 : index
    %c0_355 = arith.constant 0 : index
    %c0_356 = arith.constant 0 : index
    %549 = vector.load %arg4[%c24_354, %c0_355, %c0_356] : memref<32x1x8xf32, #tpu.memory_space<vmem>>, vector<1x1x8xf32>
    %550 = vector.shape_cast %549 : vector<1x1x8xf32> to vector<1x8xf32>
    %551 = vector.broadcast %550 : vector<1x8xf32> to vector<32x8xf32>
    %552 = arith.addf %548, %551 : vector<32x8xf32>
    %c28 = arith.constant 28 : index
    %c0_357 = arith.constant 0 : index
    %c0_358 = arith.constant 0 : index
    %553 = vector.load %arg3[%c28, %c0_357, %c0_358] : memref<32x32x8xf32, #tpu.memory_space<vmem>>, vector<1x32x8xf32>
    %554 = vector.shape_cast %553 : vector<1x32x8xf32> to vector<32x8xf32>
    %cst_359 = arith.constant dense<0.000000e+00> : vector<8x8xf32>
    %555 = tpu.matmul %1, %554, %cst_359 {dimension_numbers = #tpu.dot_dimension_numbers<[1], [0], [0], [1], [0, 0, 1, 1], [], []>} : vector<8x32xf32>, vector<32x8xf32>, vector<8x8xf32> -> vector<8x8xf32>
    %c28_360 = arith.constant 28 : index
    %c0_361 = arith.constant 0 : index
    %c0_362 = arith.constant 0 : index
    %556 = vector.load %arg4[%c28_360, %c0_361, %c0_362] : memref<32x1x8xf32, #tpu.memory_space<vmem>>, vector<1x1x8xf32>
    %557 = vector.shape_cast %556 : vector<1x1x8xf32> to vector<1x8xf32>
    %558 = vector.broadcast %557 : vector<1x8xf32> to vector<8x8xf32>
    %559 = arith.addf %555, %558 : vector<8x8xf32>
    %c12_363 = arith.constant 12 : index
    %c0_364 = arith.constant 0 : index
    %c0_365 = arith.constant 0 : index
    %560 = vector.load %arg5[%c12_363, %c0_364, %c0_365] : memref<16x32x32xf32, #tpu.memory_space<vmem>>, vector<1x32x32xf32>
    %561 = vector.shape_cast %560 : vector<1x32x32xf32> to vector<32x32xf32>
    %cst_366 = arith.constant dense<0.000000e+00> : vector<8x32xf32>
    %562 = tpu.matmul %1, %561, %cst_366 {dimension_numbers = #tpu.dot_dimension_numbers<[1], [0], [0], [1], [0, 0, 1, 1], [], []>} : vector<8x32xf32>, vector<32x32xf32>, vector<8x32xf32> -> vector<8x32xf32>
    %c12_367 = arith.constant 12 : index
    %c0_368 = arith.constant 0 : index
    %c0_369 = arith.constant 0 : index
    %563 = vector.load %arg6[%c12_367, %c0_368, %c0_369] : memref<16x1x32xf32, #tpu.memory_space<vmem>>, vector<1x1x32xf32>
    %564 = vector.shape_cast %563 : vector<1x1x32xf32> to vector<1x32xf32>
    %565 = vector.broadcast %564 : vector<1x32xf32> to vector<8x32xf32>
    %566 = arith.addf %562, %565 : vector<8x32xf32>
    %c25 = arith.constant 25 : index
    %c0_370 = arith.constant 0 : index
    %c0_371 = arith.constant 0 : index
    %567 = vector.load %arg3[%c25, %c0_370, %c0_371] : memref<32x32x8xf32, #tpu.memory_space<vmem>>, vector<1x32x8xf32>
    %568 = vector.shape_cast %567 : vector<1x32x8xf32> to vector<32x8xf32>
    %cst_372 = arith.constant dense<0.000000e+00> : vector<32x8xf32>
    %569 = tpu.matmul %543, %568, %cst_372 {dimension_numbers = #tpu.dot_dimension_numbers<[1], [0], [0], [1], [0, 0, 1, 1], [], []>} : vector<32x32xf32>, vector<32x8xf32>, vector<32x8xf32> -> vector<32x8xf32>
    %c25_373 = arith.constant 25 : index
    %c0_374 = arith.constant 0 : index
    %c0_375 = arith.constant 0 : index
    %570 = vector.load %arg4[%c25_373, %c0_374, %c0_375] : memref<32x1x8xf32, #tpu.memory_space<vmem>>, vector<1x1x8xf32>
    %571 = vector.shape_cast %570 : vector<1x1x8xf32> to vector<1x8xf32>
    %572 = vector.broadcast %571 : vector<1x8xf32> to vector<32x8xf32>
    %573 = arith.addf %569, %572 : vector<32x8xf32>
    %c29 = arith.constant 29 : index
    %c0_376 = arith.constant 0 : index
    %c0_377 = arith.constant 0 : index
    %574 = vector.load %arg3[%c29, %c0_376, %c0_377] : memref<32x32x8xf32, #tpu.memory_space<vmem>>, vector<1x32x8xf32>
    %575 = vector.shape_cast %574 : vector<1x32x8xf32> to vector<32x8xf32>
    %cst_378 = arith.constant dense<0.000000e+00> : vector<8x8xf32>
    %576 = tpu.matmul %1, %575, %cst_378 {dimension_numbers = #tpu.dot_dimension_numbers<[1], [0], [0], [1], [0, 0, 1, 1], [], []>} : vector<8x32xf32>, vector<32x8xf32>, vector<8x8xf32> -> vector<8x8xf32>
    %c29_379 = arith.constant 29 : index
    %c0_380 = arith.constant 0 : index
    %c0_381 = arith.constant 0 : index
    %577 = vector.load %arg4[%c29_379, %c0_380, %c0_381] : memref<32x1x8xf32, #tpu.memory_space<vmem>>, vector<1x1x8xf32>
    %578 = vector.shape_cast %577 : vector<1x1x8xf32> to vector<1x8xf32>
    %579 = vector.broadcast %578 : vector<1x8xf32> to vector<8x8xf32>
    %580 = arith.addf %576, %579 : vector<8x8xf32>
    %c13_382 = arith.constant 13 : index
    %c0_383 = arith.constant 0 : index
    %c0_384 = arith.constant 0 : index
    %581 = vector.load %arg5[%c13_382, %c0_383, %c0_384] : memref<16x32x32xf32, #tpu.memory_space<vmem>>, vector<1x32x32xf32>
    %582 = vector.shape_cast %581 : vector<1x32x32xf32> to vector<32x32xf32>
    %cst_385 = arith.constant dense<0.000000e+00> : vector<8x32xf32>
    %583 = tpu.matmul %1, %582, %cst_385 {dimension_numbers = #tpu.dot_dimension_numbers<[1], [0], [0], [1], [0, 0, 1, 1], [], []>} : vector<8x32xf32>, vector<32x32xf32>, vector<8x32xf32> -> vector<8x32xf32>
    %c13_386 = arith.constant 13 : index
    %c0_387 = arith.constant 0 : index
    %c0_388 = arith.constant 0 : index
    %584 = vector.load %arg6[%c13_386, %c0_387, %c0_388] : memref<16x1x32xf32, #tpu.memory_space<vmem>>, vector<1x1x32xf32>
    %585 = vector.shape_cast %584 : vector<1x1x32xf32> to vector<1x32xf32>
    %586 = vector.broadcast %585 : vector<1x32xf32> to vector<8x32xf32>
    %587 = arith.addf %583, %586 : vector<8x32xf32>
    %c26 = arith.constant 26 : index
    %c0_389 = arith.constant 0 : index
    %c0_390 = arith.constant 0 : index
    %588 = vector.load %arg3[%c26, %c0_389, %c0_390] : memref<32x32x8xf32, #tpu.memory_space<vmem>>, vector<1x32x8xf32>
    %589 = vector.shape_cast %588 : vector<1x32x8xf32> to vector<32x8xf32>
    %cst_391 = arith.constant dense<0.000000e+00> : vector<32x8xf32>
    %590 = tpu.matmul %543, %589, %cst_391 {dimension_numbers = #tpu.dot_dimension_numbers<[1], [0], [0], [1], [0, 0, 1, 1], [], []>} : vector<32x32xf32>, vector<32x8xf32>, vector<32x8xf32> -> vector<32x8xf32>
    %c26_392 = arith.constant 26 : index
    %c0_393 = arith.constant 0 : index
    %c0_394 = arith.constant 0 : index
    %591 = vector.load %arg4[%c26_392, %c0_393, %c0_394] : memref<32x1x8xf32, #tpu.memory_space<vmem>>, vector<1x1x8xf32>
    %592 = vector.shape_cast %591 : vector<1x1x8xf32> to vector<1x8xf32>
    %593 = vector.broadcast %592 : vector<1x8xf32> to vector<32x8xf32>
    %594 = arith.addf %590, %593 : vector<32x8xf32>
    %c30 = arith.constant 30 : index
    %c0_395 = arith.constant 0 : index
    %c0_396 = arith.constant 0 : index
    %595 = vector.load %arg3[%c30, %c0_395, %c0_396] : memref<32x32x8xf32, #tpu.memory_space<vmem>>, vector<1x32x8xf32>
    %596 = vector.shape_cast %595 : vector<1x32x8xf32> to vector<32x8xf32>
    %cst_397 = arith.constant dense<0.000000e+00> : vector<8x8xf32>
    %597 = tpu.matmul %1, %596, %cst_397 {dimension_numbers = #tpu.dot_dimension_numbers<[1], [0], [0], [1], [0, 0, 1, 1], [], []>} : vector<8x32xf32>, vector<32x8xf32>, vector<8x8xf32> -> vector<8x8xf32>
    %c30_398 = arith.constant 30 : index
    %c0_399 = arith.constant 0 : index
    %c0_400 = arith.constant 0 : index
    %598 = vector.load %arg4[%c30_398, %c0_399, %c0_400] : memref<32x1x8xf32, #tpu.memory_space<vmem>>, vector<1x1x8xf32>
    %599 = vector.shape_cast %598 : vector<1x1x8xf32> to vector<1x8xf32>
    %600 = vector.broadcast %599 : vector<1x8xf32> to vector<8x8xf32>
    %601 = arith.addf %597, %600 : vector<8x8xf32>
    %c14_401 = arith.constant 14 : index
    %c0_402 = arith.constant 0 : index
    %c0_403 = arith.constant 0 : index
    %602 = vector.load %arg5[%c14_401, %c0_402, %c0_403] : memref<16x32x32xf32, #tpu.memory_space<vmem>>, vector<1x32x32xf32>
    %603 = vector.shape_cast %602 : vector<1x32x32xf32> to vector<32x32xf32>
    %cst_404 = arith.constant dense<0.000000e+00> : vector<8x32xf32>
    %604 = tpu.matmul %1, %603, %cst_404 {dimension_numbers = #tpu.dot_dimension_numbers<[1], [0], [0], [1], [0, 0, 1, 1], [], []>} : vector<8x32xf32>, vector<32x32xf32>, vector<8x32xf32> -> vector<8x32xf32>
    %c14_405 = arith.constant 14 : index
    %c0_406 = arith.constant 0 : index
    %c0_407 = arith.constant 0 : index
    %605 = vector.load %arg6[%c14_405, %c0_406, %c0_407] : memref<16x1x32xf32, #tpu.memory_space<vmem>>, vector<1x1x32xf32>
    %606 = vector.shape_cast %605 : vector<1x1x32xf32> to vector<1x32xf32>
    %607 = vector.broadcast %606 : vector<1x32xf32> to vector<8x32xf32>
    %608 = arith.addf %604, %607 : vector<8x32xf32>
    %c27 = arith.constant 27 : index
    %c0_408 = arith.constant 0 : index
    %c0_409 = arith.constant 0 : index
    %609 = vector.load %arg3[%c27, %c0_408, %c0_409] : memref<32x32x8xf32, #tpu.memory_space<vmem>>, vector<1x32x8xf32>
    %610 = vector.shape_cast %609 : vector<1x32x8xf32> to vector<32x8xf32>
    %cst_410 = arith.constant dense<0.000000e+00> : vector<32x8xf32>
    %611 = tpu.matmul %543, %610, %cst_410 {dimension_numbers = #tpu.dot_dimension_numbers<[1], [0], [0], [1], [0, 0, 1, 1], [], []>} : vector<32x32xf32>, vector<32x8xf32>, vector<32x8xf32> -> vector<32x8xf32>
    %c27_411 = arith.constant 27 : index
    %c0_412 = arith.constant 0 : index
    %c0_413 = arith.constant 0 : index
    %612 = vector.load %arg4[%c27_411, %c0_412, %c0_413] : memref<32x1x8xf32, #tpu.memory_space<vmem>>, vector<1x1x8xf32>
    %613 = vector.shape_cast %612 : vector<1x1x8xf32> to vector<1x8xf32>
    %614 = vector.broadcast %613 : vector<1x8xf32> to vector<32x8xf32>
    %615 = arith.addf %611, %614 : vector<32x8xf32>
    %c31 = arith.constant 31 : index
    %c0_414 = arith.constant 0 : index
    %c0_415 = arith.constant 0 : index
    %616 = vector.load %arg3[%c31, %c0_414, %c0_415] : memref<32x32x8xf32, #tpu.memory_space<vmem>>, vector<1x32x8xf32>
    %617 = vector.shape_cast %616 : vector<1x32x8xf32> to vector<32x8xf32>
    %cst_416 = arith.constant dense<0.000000e+00> : vector<8x8xf32>
    %618 = tpu.matmul %1, %617, %cst_416 {dimension_numbers = #tpu.dot_dimension_numbers<[1], [0], [0], [1], [0, 0, 1, 1], [], []>} : vector<8x32xf32>, vector<32x8xf32>, vector<8x8xf32> -> vector<8x8xf32>
    %c31_417 = arith.constant 31 : index
    %c0_418 = arith.constant 0 : index
    %c0_419 = arith.constant 0 : index
    %619 = vector.load %arg4[%c31_417, %c0_418, %c0_419] : memref<32x1x8xf32, #tpu.memory_space<vmem>>, vector<1x1x8xf32>
    %620 = vector.shape_cast %619 : vector<1x1x8xf32> to vector<1x8xf32>
    %621 = vector.broadcast %620 : vector<1x8xf32> to vector<8x8xf32>
    %622 = arith.addf %618, %621 : vector<8x8xf32>
    %c15_420 = arith.constant 15 : index
    %c0_421 = arith.constant 0 : index
    %c0_422 = arith.constant 0 : index
    %623 = vector.load %arg5[%c15_420, %c0_421, %c0_422] : memref<16x32x32xf32, #tpu.memory_space<vmem>>, vector<1x32x32xf32>
    %624 = vector.shape_cast %623 : vector<1x32x32xf32> to vector<32x32xf32>
    %cst_423 = arith.constant dense<0.000000e+00> : vector<8x32xf32>
    %625 = tpu.matmul %1, %624, %cst_423 {dimension_numbers = #tpu.dot_dimension_numbers<[1], [0], [0], [1], [0, 0, 1, 1], [], []>} : vector<8x32xf32>, vector<32x32xf32>, vector<8x32xf32> -> vector<8x32xf32>
    %c15_424 = arith.constant 15 : index
    %c0_425 = arith.constant 0 : index
    %c0_426 = arith.constant 0 : index
    %626 = vector.load %arg6[%c15_424, %c0_425, %c0_426] : memref<16x1x32xf32, #tpu.memory_space<vmem>>, vector<1x1x32xf32>
    %627 = vector.shape_cast %626 : vector<1x1x32xf32> to vector<1x32xf32>
    %628 = vector.broadcast %627 : vector<1x32xf32> to vector<8x32xf32>
    %629 = arith.addf %625, %628 : vector<8x32xf32>
    %cst_427 = arith.constant dense<0.000000e+00> : vector<32x8xf32>
    %630 = tpu.matmul %552, %559, %cst_427 {dimension_numbers = #tpu.dot_dimension_numbers<[1], [1], [0], [0], [0, 0, 1, 0], [], []>} : vector<32x8xf32>, vector<8x8xf32>, vector<32x8xf32> -> vector<32x8xf32>
    %cst_428 = arith.constant dense<0xFF800000> : vector<32xf32>
    %631 = vector.multi_reduction <maximumf>, %630, %cst_428 [1] : vector<32x8xf32> to vector<32xf32>
    %632 = vector.shape_cast %631 : vector<32xf32> to vector<32x1xf32>
    %633 = vector.broadcast %632 : vector<32x1xf32> to vector<32x8xf32>
    %634 = arith.subf %630, %633 : vector<32x8xf32>
    %635 = math.exp %634 : vector<32x8xf32>
    %cst_429 = arith.constant dense<0.000000e+00> : vector<32xf32>
    %636 = vector.multi_reduction <add>, %635, %cst_429 [1] : vector<32x8xf32> to vector<32xf32>
    %637 = vector.shape_cast %636 : vector<32xf32> to vector<32x1xf32>
    %638 = tpu.reciprocal %637 {approx = true} : vector<32x1xf32> -> vector<32x1xf32>
    %639 = vector.broadcast %638 : vector<32x1xf32> to vector<32x8xf32>
    %640 = arith.mulf %635, %639 : vector<32x8xf32>
    %cst_430 = arith.constant dense<0.000000e+00> : vector<32x32xf32>
    %641 = tpu.matmul %640, %566, %cst_430 {dimension_numbers = #tpu.dot_dimension_numbers<[1], [0], [0], [1], [0, 0, 1, 1], [], []>} : vector<32x8xf32>, vector<8x32xf32>, vector<32x32xf32> -> vector<32x32xf32>
    %cst_431 = arith.constant dense<0.000000e+00> : vector<32x8xf32>
    %642 = tpu.matmul %573, %580, %cst_431 {dimension_numbers = #tpu.dot_dimension_numbers<[1], [1], [0], [0], [0, 0, 1, 0], [], []>} : vector<32x8xf32>, vector<8x8xf32>, vector<32x8xf32> -> vector<32x8xf32>
    %cst_432 = arith.constant dense<0xFF800000> : vector<32xf32>
    %643 = vector.multi_reduction <maximumf>, %642, %cst_432 [1] : vector<32x8xf32> to vector<32xf32>
    %644 = vector.shape_cast %643 : vector<32xf32> to vector<32x1xf32>
    %645 = vector.broadcast %644 : vector<32x1xf32> to vector<32x8xf32>
    %646 = arith.subf %642, %645 : vector<32x8xf32>
    %647 = math.exp %646 : vector<32x8xf32>
    %cst_433 = arith.constant dense<0.000000e+00> : vector<32xf32>
    %648 = vector.multi_reduction <add>, %647, %cst_433 [1] : vector<32x8xf32> to vector<32xf32>
    %649 = vector.shape_cast %648 : vector<32xf32> to vector<32x1xf32>
    %650 = tpu.reciprocal %649 {approx = true} : vector<32x1xf32> -> vector<32x1xf32>
    %651 = vector.broadcast %650 : vector<32x1xf32> to vector<32x8xf32>
    %652 = arith.mulf %647, %651 : vector<32x8xf32>
    %cst_434 = arith.constant dense<0.000000e+00> : vector<32x32xf32>
    %653 = tpu.matmul %652, %587, %cst_434 {dimension_numbers = #tpu.dot_dimension_numbers<[1], [0], [0], [1], [0, 0, 1, 1], [], []>} : vector<32x8xf32>, vector<8x32xf32>, vector<32x32xf32> -> vector<32x32xf32>
    %654 = arith.addf %641, %653 : vector<32x32xf32>
    %cst_435 = arith.constant dense<0.000000e+00> : vector<32x8xf32>
    %655 = tpu.matmul %594, %601, %cst_435 {dimension_numbers = #tpu.dot_dimension_numbers<[1], [1], [0], [0], [0, 0, 1, 0], [], []>} : vector<32x8xf32>, vector<8x8xf32>, vector<32x8xf32> -> vector<32x8xf32>
    %cst_436 = arith.constant dense<0xFF800000> : vector<32xf32>
    %656 = vector.multi_reduction <maximumf>, %655, %cst_436 [1] : vector<32x8xf32> to vector<32xf32>
    %657 = vector.shape_cast %656 : vector<32xf32> to vector<32x1xf32>
    %658 = vector.broadcast %657 : vector<32x1xf32> to vector<32x8xf32>
    %659 = arith.subf %655, %658 : vector<32x8xf32>
    %660 = math.exp %659 : vector<32x8xf32>
    %cst_437 = arith.constant dense<0.000000e+00> : vector<32xf32>
    %661 = vector.multi_reduction <add>, %660, %cst_437 [1] : vector<32x8xf32> to vector<32xf32>
    %662 = vector.shape_cast %661 : vector<32xf32> to vector<32x1xf32>
    %663 = tpu.reciprocal %662 {approx = true} : vector<32x1xf32> -> vector<32x1xf32>
    %664 = vector.broadcast %663 : vector<32x1xf32> to vector<32x8xf32>
    %665 = arith.mulf %660, %664 : vector<32x8xf32>
    %cst_438 = arith.constant dense<0.000000e+00> : vector<32x32xf32>
    %666 = tpu.matmul %665, %608, %cst_438 {dimension_numbers = #tpu.dot_dimension_numbers<[1], [0], [0], [1], [0, 0, 1, 1], [], []>} : vector<32x8xf32>, vector<8x32xf32>, vector<32x32xf32> -> vector<32x32xf32>
    %667 = arith.addf %654, %666 : vector<32x32xf32>
    %cst_439 = arith.constant dense<0.000000e+00> : vector<32x8xf32>
    %668 = tpu.matmul %615, %622, %cst_439 {dimension_numbers = #tpu.dot_dimension_numbers<[1], [1], [0], [0], [0, 0, 1, 0], [], []>} : vector<32x8xf32>, vector<8x8xf32>, vector<32x8xf32> -> vector<32x8xf32>
    %cst_440 = arith.constant dense<0xFF800000> : vector<32xf32>
    %669 = vector.multi_reduction <maximumf>, %668, %cst_440 [1] : vector<32x8xf32> to vector<32xf32>
    %670 = vector.shape_cast %669 : vector<32xf32> to vector<32x1xf32>
    %671 = vector.broadcast %670 : vector<32x1xf32> to vector<32x8xf32>
    %672 = arith.subf %668, %671 : vector<32x8xf32>
    %673 = math.exp %672 : vector<32x8xf32>
    %cst_441 = arith.constant dense<0.000000e+00> : vector<32xf32>
    %674 = vector.multi_reduction <add>, %673, %cst_441 [1] : vector<32x8xf32> to vector<32xf32>
    %675 = vector.shape_cast %674 : vector<32xf32> to vector<32x1xf32>
    %676 = tpu.reciprocal %675 {approx = true} : vector<32x1xf32> -> vector<32x1xf32>
    %677 = vector.broadcast %676 : vector<32x1xf32> to vector<32x8xf32>
    %678 = arith.mulf %673, %677 : vector<32x8xf32>
    %cst_442 = arith.constant dense<0.000000e+00> : vector<32x32xf32>
    %679 = tpu.matmul %678, %629, %cst_442 {dimension_numbers = #tpu.dot_dimension_numbers<[1], [0], [0], [1], [0, 0, 1, 1], [], []>} : vector<32x8xf32>, vector<8x32xf32>, vector<32x32xf32> -> vector<32x32xf32>
    %680 = arith.addf %667, %679 : vector<32x32xf32>
    %681 = vector.broadcast %545 : vector<1x32xf32> to vector<32x32xf32>
    %682 = arith.addf %680, %681 : vector<32x32xf32>
    %683 = arith.addf %543, %682 : vector<32x32xf32>
    %c13_443 = arith.constant 13 : index
    %c0_444 = arith.constant 0 : index
    %c0_445 = arith.constant 0 : index
    %684 = vector.load %arg10[%c13_443, %c0_444, %c0_445] : memref<19x1x32xf32, #tpu.memory_space<vmem>>, vector<1x1x32xf32>
    %685 = vector.shape_cast %684 : vector<1x1x32xf32> to vector<1x32xf32>
    %c16_446 = arith.constant 16 : index
    %c0_447 = arith.constant 0 : index
    %c0_448 = arith.constant 0 : index
    %686 = vector.load %arg10[%c16_446, %c0_447, %c0_448] : memref<19x1x32xf32, #tpu.memory_space<vmem>>, vector<1x1x32xf32>
    %687 = vector.shape_cast %686 : vector<1x1x32xf32> to vector<1x32xf32>
    %cst_449 = arith.constant dense<0.000000e+00> : vector<32xf32>
    %688 = vector.multi_reduction <add>, %683, %cst_449 [1] : vector<32x32xf32> to vector<32xf32>
    %689 = vector.shape_cast %688 : vector<32xf32> to vector<32x1xf32>
    %cst_450 = arith.constant 3.200000e+01 : f32
    %690 = vector.broadcast %cst_450 : f32 to vector<32x1xf32>
    %691 = arith.divf %689, %690 : vector<32x1xf32>
    %692 = vector.broadcast %691 : vector<32x1xf32> to vector<32x32xf32>
    %693 = arith.subf %683, %692 : vector<32x32xf32>
    %694 = arith.mulf %693, %693 : vector<32x32xf32>
    %cst_451 = arith.constant dense<0.000000e+00> : vector<32xf32>
    %695 = vector.multi_reduction <add>, %694, %cst_451 [1] : vector<32x32xf32> to vector<32xf32>
    %696 = vector.shape_cast %695 : vector<32xf32> to vector<32x1xf32>
    %cst_452 = arith.constant 3.200000e+01 : f32
    %697 = vector.broadcast %cst_452 : f32 to vector<32x1xf32>
    %698 = arith.divf %696, %697 : vector<32x1xf32>
    %699 = vector.broadcast %691 : vector<32x1xf32> to vector<32x32xf32>
    %700 = arith.subf %683, %699 : vector<32x32xf32>
    %cst_453 = arith.constant 9.99999974E-6 : f32
    %701 = vector.broadcast %cst_453 : f32 to vector<32x1xf32>
    %702 = arith.addf %698, %701 : vector<32x1xf32>
    %703 = math.rsqrt %702 : vector<32x1xf32>
    %704 = vector.broadcast %703 : vector<32x1xf32> to vector<32x32xf32>
    %705 = arith.mulf %700, %704 : vector<32x32xf32>
    %706 = vector.broadcast %685 : vector<1x32xf32> to vector<32x32xf32>
    %707 = arith.mulf %705, %706 : vector<32x32xf32>
    %708 = vector.broadcast %687 : vector<1x32xf32> to vector<32x32xf32>
    %709 = arith.addf %707, %708 : vector<32x32xf32>
    %c1_454 = arith.constant 1 : index
    %c0_455 = arith.constant 0 : index
    %c0_456 = arith.constant 0 : index
    %710 = vector.load %arg7[%c1_454, %c0_455, %c0_456] : memref<2x32x64xf32, #tpu.memory_space<vmem>>, vector<1x32x64xf32>
    %711 = vector.shape_cast %710 : vector<1x32x64xf32> to vector<32x64xf32>
    %cst_457 = arith.constant dense<0.000000e+00> : vector<32x64xf32>
    %712 = tpu.matmul %709, %711, %cst_457 {dimension_numbers = #tpu.dot_dimension_numbers<[1], [0], [0], [1], [0, 0, 1, 1], [], []>} : vector<32x32xf32>, vector<32x64xf32>, vector<32x64xf32> -> vector<32x64xf32>
    %c1_458 = arith.constant 1 : index
    %c0_459 = arith.constant 0 : index
    %c0_460 = arith.constant 0 : index
    %713 = vector.load %arg8[%c1_458, %c0_459, %c0_460] : memref<2x1x64xf32, #tpu.memory_space<vmem>>, vector<1x1x64xf32>
    %714 = vector.shape_cast %713 : vector<1x1x64xf32> to vector<1x64xf32>
    %715 = vector.broadcast %714 : vector<1x64xf32> to vector<32x64xf32>
    %716 = arith.addf %712, %715 : vector<32x64xf32>
    %cst_461 = arith.constant 0.000000e+00 : f32
    %717 = vector.broadcast %cst_461 : f32 to vector<32x64xf32>
    %718 = arith.maximumf %716, %717 : vector<32x64xf32>
    %c1_462 = arith.constant 1 : index
    %c0_463 = arith.constant 0 : index
    %c0_464 = arith.constant 0 : index
    %719 = vector.load %arg9[%c1_462, %c0_463, %c0_464] : memref<2x64x32xf32, #tpu.memory_space<vmem>>, vector<1x64x32xf32>
    %720 = vector.shape_cast %719 : vector<1x64x32xf32> to vector<64x32xf32>
    %cst_465 = arith.constant dense<0.000000e+00> : vector<32x32xf32>
    %721 = tpu.matmul %718, %720, %cst_465 {dimension_numbers = #tpu.dot_dimension_numbers<[1], [0], [0], [1], [0, 0, 1, 1], [], []>} : vector<32x64xf32>, vector<64x32xf32>, vector<32x32xf32> -> vector<32x32xf32>
    %c11_466 = arith.constant 11 : index
    %c0_467 = arith.constant 0 : index
    %c0_468 = arith.constant 0 : index
    %722 = vector.load %arg10[%c11_466, %c0_467, %c0_468] : memref<19x1x32xf32, #tpu.memory_space<vmem>>, vector<1x1x32xf32>
    %723 = vector.shape_cast %722 : vector<1x1x32xf32> to vector<1x32xf32>
    %724 = vector.broadcast %723 : vector<1x32xf32> to vector<32x32xf32>
    %725 = arith.addf %721, %724 : vector<32x32xf32>
    %726 = arith.addf %709, %725 : vector<32x32xf32>
    %c14_469 = arith.constant 14 : index
    %c0_470 = arith.constant 0 : index
    %c0_471 = arith.constant 0 : index
    %727 = vector.load %arg10[%c14_469, %c0_470, %c0_471] : memref<19x1x32xf32, #tpu.memory_space<vmem>>, vector<1x1x32xf32>
    %728 = vector.shape_cast %727 : vector<1x1x32xf32> to vector<1x32xf32>
    %c17_472 = arith.constant 17 : index
    %c0_473 = arith.constant 0 : index
    %c0_474 = arith.constant 0 : index
    %729 = vector.load %arg10[%c17_472, %c0_473, %c0_474] : memref<19x1x32xf32, #tpu.memory_space<vmem>>, vector<1x1x32xf32>
    %730 = vector.shape_cast %729 : vector<1x1x32xf32> to vector<1x32xf32>
    %cst_475 = arith.constant dense<0.000000e+00> : vector<32xf32>
    %731 = vector.multi_reduction <add>, %726, %cst_475 [1] : vector<32x32xf32> to vector<32xf32>
    %732 = vector.shape_cast %731 : vector<32xf32> to vector<32x1xf32>
    %cst_476 = arith.constant 3.200000e+01 : f32
    %733 = vector.broadcast %cst_476 : f32 to vector<32x1xf32>
    %734 = arith.divf %732, %733 : vector<32x1xf32>
    %735 = vector.broadcast %734 : vector<32x1xf32> to vector<32x32xf32>
    %736 = arith.subf %726, %735 : vector<32x32xf32>
    %737 = arith.mulf %736, %736 : vector<32x32xf32>
    %cst_477 = arith.constant dense<0.000000e+00> : vector<32xf32>
    %738 = vector.multi_reduction <add>, %737, %cst_477 [1] : vector<32x32xf32> to vector<32xf32>
    %739 = vector.shape_cast %738 : vector<32xf32> to vector<32x1xf32>
    %cst_478 = arith.constant 3.200000e+01 : f32
    %740 = vector.broadcast %cst_478 : f32 to vector<32x1xf32>
    %741 = arith.divf %739, %740 : vector<32x1xf32>
    %742 = vector.broadcast %734 : vector<32x1xf32> to vector<32x32xf32>
    %743 = arith.subf %726, %742 : vector<32x32xf32>
    %cst_479 = arith.constant 9.99999974E-6 : f32
    %744 = vector.broadcast %cst_479 : f32 to vector<32x1xf32>
    %745 = arith.addf %741, %744 : vector<32x1xf32>
    %746 = math.rsqrt %745 : vector<32x1xf32>
    %747 = vector.broadcast %746 : vector<32x1xf32> to vector<32x32xf32>
    %748 = arith.mulf %743, %747 : vector<32x32xf32>
    %749 = vector.broadcast %728 : vector<1x32xf32> to vector<32x32xf32>
    %750 = arith.mulf %748, %749 : vector<32x32xf32>
    %751 = vector.broadcast %730 : vector<1x32xf32> to vector<32x32xf32>
    %752 = arith.addf %750, %751 : vector<32x32xf32>
    %c18_480 = arith.constant 18 : index
    %c0_481 = arith.constant 0 : index
    %c0_482 = arith.constant 0 : index
    %753 = vector.load %arg10[%c18_480, %c0_481, %c0_482] : memref<19x1x32xf32, #tpu.memory_space<vmem>>, vector<1x1x32xf32>
    %754 = vector.shape_cast %753 : vector<1x1x32xf32> to vector<1x32xf32>
    %755 = vector.broadcast %754 : vector<1x32xf32> to vector<32x32xf32>
    %756 = arith.mulf %752, %755 : vector<32x32xf32>
    %cst_483 = arith.constant dense<0.000000e+00> : vector<32xf32>
    %757 = vector.multi_reduction <add>, %756, %cst_483 [1] : vector<32x32xf32> to vector<32xf32>
    %758 = vector.shape_cast %757 : vector<32xf32> to vector<32x1xf32>
    %c0_484 = arith.constant 0 : index
    %759 = memref.load %arg11[%c0_484] : memref<1xf32, #tpu.memory_space<smem>>
    %760 = vector.broadcast %759 : f32 to vector<32x1xf32>
    %761 = arith.addf %758, %760 : vector<32x1xf32>
    %c0_485 = arith.constant 0 : index
    %c0_486 = arith.constant 0 : index
    %762 = vector.load %arg12[%c0_485, %c0_486] : memref<32x1xf32, #tpu.memory_space<vmem>>, vector<32x1xf32>
    tpu.vector_store %arg12[%c0_485, %c0_486], %761 {strides = array<i32>} : memref<32x1xf32, #tpu.memory_space<vmem>>, vector<32x1xf32>,
    return
  }
  func.func @transform_0(%arg0: i32) -> (i32, i32, i32) {
    %c0_i32 = arith.constant 0 : i32
    %c0_i32_0 = arith.constant 0 : i32
    %c0_i32_1 = arith.constant 0 : i32
    return %arg0, %c0_i32, %c0_i32_0 : i32, i32, i32
  }
  func.func @transform_1(%arg0: i32) -> (i32, i32) {
    %c0_i32 = arith.constant 0 : i32
    %c0_i32_0 = arith.constant 0 : i32
    %c0_i32_1 = arith.constant 0 : i32
    return %c0_i32, %c0_i32_0 : i32, i32
  }
  func.func @transform_2(%arg0: i32) -> (i32, i32, i32) {
    %c0_i32 = arith.constant 0 : i32
    %c0_i32_0 = arith.constant 0 : i32
    %c0_i32_1 = arith.constant 0 : i32
    %c0_i32_2 = arith.constant 0 : i32
    return %c0_i32, %c0_i32_0, %c0_i32_1 : i32, i32, i32
  }
  func.func @transform_3(%arg0: i32) -> (i32, i32, i32) {
    %c0_i32 = arith.constant 0 : i32
    %c0_i32_0 = arith.constant 0 : i32
    %c0_i32_1 = arith.constant 0 : i32
    %c0_i32_2 = arith.constant 0 : i32
    return %c0_i32, %c0_i32_0, %c0_i32_1 : i32, i32, i32
  }
  func.func @transform_4(%arg0: i32) -> (i32, i32, i32) {
    %c0_i32 = arith.constant 0 : i32
    %c0_i32_0 = arith.constant 0 : i32
    %c0_i32_1 = arith.constant 0 : i32
    %c0_i32_2 = arith.constant 0 : i32
    return %c0_i32, %c0_i32_0, %c0_i32_1 : i32, i32, i32
  }
  func.func @transform_5(%arg0: i32) -> (i32, i32, i32) {
    %c0_i32 = arith.constant 0 : i32
    %c0_i32_0 = arith.constant 0 : i32
    %c0_i32_1 = arith.constant 0 : i32
    %c0_i32_2 = arith.constant 0 : i32
    return %c0_i32, %c0_i32_0, %c0_i32_1 : i32, i32, i32
  }
  func.func @transform_6(%arg0: i32) -> (i32, i32, i32) {
    %c0_i32 = arith.constant 0 : i32
    %c0_i32_0 = arith.constant 0 : i32
    %c0_i32_1 = arith.constant 0 : i32
    %c0_i32_2 = arith.constant 0 : i32
    return %c0_i32, %c0_i32_0, %c0_i32_1 : i32, i32, i32
  }
  func.func @transform_7(%arg0: i32) -> (i32, i32, i32) {
    %c0_i32 = arith.constant 0 : i32
    %c0_i32_0 = arith.constant 0 : i32
    %c0_i32_1 = arith.constant 0 : i32
    %c0_i32_2 = arith.constant 0 : i32
    return %c0_i32, %c0_i32_0, %c0_i32_1 : i32, i32, i32
  }
  func.func @transform_8(%arg0: i32) -> (i32, i32, i32) {
    %c0_i32 = arith.constant 0 : i32
    %c0_i32_0 = arith.constant 0 : i32
    %c0_i32_1 = arith.constant 0 : i32
    %c0_i32_2 = arith.constant 0 : i32
    return %c0_i32, %c0_i32_0, %c0_i32_1 : i32, i32, i32
  }
  func.func @transform_9(%arg0: i32) -> (i32, i32, i32) {
    %c0_i32 = arith.constant 0 : i32
    %c0_i32_0 = arith.constant 0 : i32
    %c0_i32_1 = arith.constant 0 : i32
    %c0_i32_2 = arith.constant 0 : i32
    return %c0_i32, %c0_i32_0, %c0_i32_1 : i32, i32, i32
  }
  func.func @transform_10(%arg0: i32) -> i32 {
    %c0_i32 = arith.constant 0 : i32
    %c0_i32_0 = arith.constant 0 : i32
    return %c0_i32 : i32
  }
  func.func @transform_11(%arg0: i32) -> (i32, i32) {
    %c0_i32 = arith.constant 0 : i32
    %c0_i32_0 = arith.constant 0 : i32
    return %arg0, %c0_i32 : i32, i32
  }
}

</mosaic_0001>

<bundles_post_ra>
// kernel: _decoder_call.1
= control target key start
LH: loop header
LB: loop body
LE: loop exit
PB: predicated region body
PF: predicated region fallthrough
CT: control target
= control target key end

     0   :  { %s6412_s19 = smov 0   ;;  %s8586_s0 = inlined_call_operand.vmem [shape: f32[2,8,32], index: 0, kind: input, shape index: {}]   ;;  %s8587_s1 = inlined_call_operand.vmem [shape: f32[32,32], index: 1, kind: input, shape index: {}]   ;;  %s8588_s2 = inlined_call_operand.vmem [shape: f32[32,32,8], index: 2, kind: input, shape index: {}]   ;;  %s8589_s3 = inlined_call_operand.vmem [shape: f32[32,1,8], index: 3, kind: input, shape index: {}]   ;;  %s8590_s4 = inlined_call_operand.vmem [shape: f32[16,32,32], index: 4, kind: input, shape index: {}]   ;;  %s8591_s5 = inlined_call_operand.vmem [shape: f32[16,1,32], index: 5, kind: input, shape index: {}]   ;;  %s8592_s6 = inlined_call_operand.vmem [shape: f32[2,32,64], index: 6, kind: input, shape index: {}]   ;;  %s8593_s7 = inlined_call_operand.vmem [shape: f32[2,1,64], index: 7, kind: input, shape index: {}]   ;;  %s8594_s8 = inlined_call_operand.vmem [shape: f32[2,64,32], index: 8, kind: input, shape index: {}]   ;;  %s8595_s9 = inlined_call_operand.vmem [shape: f32[19,1,32], index: 9, kind: input, shape index: {}]   ;;  %s8596_s10 = inlined_call_operand.<no memory space> [shape: f32[1], index: 10, kind: input, shape index: {}]   ;;  %s8597_s11 = inlined_call_operand.vmem [shape: f32[64,1], index: 11, kind: output, shape index: {}]  }
   0x1   :  { %16 = sst [smem:[#allocation2]] %s8596_s10 }
   0x2 LB: > { %s6418_s20 = sadd.s32 4294967295, %s6346_s19   ;;  %p5348_p0 = scmp.ge.s32.totalorder %s6346_s19, 1  ;;  %s6346_s19 = sphi %s6412_s19, %s22_s19  }
   0x3   : > { %p337_p1 = scmp.lt.s32.totalorder %s6346_s19, 3 }
   0x5   : > { %p338_p2 = pnand %p5348_p0, %p337_p1 }
   0x6   : > { %p376_p3 = scmp.lt.s32.totalorder (!%p338_p2), %s6418_s20, 1  ;;  %s5350_s14 = sshll.u32 (!%p338_p2), %s6418_s20, 2 }
   0x7   : > { %341 = sbr.rel (%p338_p2) target bundleno = 6700 (0x1a2c), region = 64  ;;  %p381_p4 = scmp.lt.s32.totalorder (!%p338_p2), %s5350_s14, 7 }
   0x8   : > { %s5277_s15 = sld [smem:[#allocation2]] (!%p338_p2) }
   0xc   : > { %v395_v0 = vld [vmem:[%s8588_s2 + $0x18] sm:$0xff]  ;;  %v394_v1 = vld [vmem:[%s8588_s2 + $0x10] sm:$0xff]  ;;  %v393_v2 = vld [vmem:[%s8588_s2 + $0x8] sm:$0xff]  ;;  %vm400_vm0 = vcmask 261120   ;;  %vm869_vm1 = vcmask 64512   ;;  %s377_s13 = scalar_select %p376_p3, %s6418_s20, 1 }
   0xd   : > { %425 = vmatpush.msra.mxu0 %v395_v0  ;;  %5943 = vmatpush.msra.mxu1 %v395_v0  ;;  %v392_v3 = vld [vmem:[%s8588_s2] sm:$0xff]  ;;  %v6442_v5 = vld [vmem:[%s8587_s1 + $0x10] sm:$0xff]  ;;  %v5359_v6 = vld [vmem:[%s8588_s2 + $0x98] sm:$0xff]  ;;  %s8599_s14 = smov (!%p381_p4, %s5350_s14), 7 }
   0xe   : > { %v6437_v4 = vld [vmem:[%s8587_s1] sm:$0xff]  ;;  %v5381_v7 = vld [vmem:[%s8588_s2 + $0xb8] sm:$0xff]  ;;  %v5358_v8 = vld [vmem:[%s8588_s2 + $0x90] sm:$0xff]  ;;  %s5349_s16 = sshll.u32 %s377_s13, 3 }
   0xf   : > { %426 = vmatpush.msra.mxu0 %v394_v1  ;;  %5944 = vmatpush.msra.mxu1 %v394_v1  ;;  %v5380_v9 = vld [vmem:[%s8588_s2 + $0xb0] sm:$0xff]  ;;  %v5357_v10 = vld [vmem:[%s8588_s2 + $0x88] sm:$0xff]  ;;  %v484_v12 = vld [vmem:[%s8590_s4 + $0x18] sm:$0xff]  ;;  %s6967_s24 = scalar_lea.vmem %s8586_s0, %s5349_s16  ;;  %s5351_s16 = sshll.u32 %s8599_s14, 3 }
  0x10   : > { %v5379_v11 = vld [vmem:[%s8588_s2 + $0xa8] sm:$0xff]  ;;  %v483_v13 = vld [vmem:[%s8590_s4 + $0x10] sm:$0xff]  ;;  %v5356_v15 = vld [vmem:[%s8588_s2 + $0x80] sm:$0xff]  ;;  %5947 = vmatpush.msra.mxu3 %v484_v12  ;;  %501 = vmatpush.msra.mxu2 %v484_v12  ;;  %s384_s21 = scalar_lea.vmem %s8597_s11, %s5351_s16 }
  0x11   : > { %427 = vmatpush.msra.mxu0 %v393_v2  ;;  %5945 = vmatpush.msra.mxu1 %v393_v2  ;;  %v482_v14 = vld [vmem:[%s8590_s4 + $0x8] sm:$0xff]  ;;  %v5378_v16 = vld [vmem:[%s8588_s2 + $0xa0] sm:$0xff]  ;;  %v6489_v18 = vld [vmem:[%s8587_s1 + $0x18] sm:$0xff] }
  0x12   : > { %v6484_v17 = vld [vmem:[%s8587_s1 + $0x8] sm:$0xff]  ;;  %5948 = vmatpush.msra.mxu3 %v483_v13  ;;  %502 = vmatpush.msra.mxu2 %v483_v13  ;;  %v481_v19 = vld [vmem:[%s8590_s4] sm:$0xff]  ;;  %v5372_v20 = vld [vmem:[%s8588_s2 + $0x38] sm:$0xff] }
  0x13   : > { %428 = vmatpush.msra.mxu0 %v392_v3  ;;  %5946 = vmatpush.msra.mxu1 %v392_v3  ;;  %v5371_v21 = vld [vmem:[%s8588_s2 + $0x30] sm:$0xff]  ;;  %v5370_v22 = vld [vmem:[%s8588_s2 + $0x28] sm:$0xff]  ;;  %v5390_v23 = vld [vmem:[%s8590_s4 + $0x38] sm:$0xff] }
  0x14   : > { %5352 = vmatmul.msk.f32.vlgmr.msra.gmra.mxu0 %vm400_vm0, %v6437_v4  ;;  %5354 = vmatmul.msk.f32.vlgmr.msra.gmra.mxu1 %vm400_vm0, %v6442_v5  ;;  %v5389_v24 = vld [vmem:[%s8590_s4 + $0x30] sm:$0xff]  ;;  %v5388_v25 = vld [vmem:[%s8590_s4 + $0x28] sm:$0xff]  ;;  %v5369_v26 = vld [vmem:[%s8588_s2 + $0x20] sm:$0xff] }
  0x15   : > { %464 = vmatpush.msrb.mxu1 %v5359_v6  ;;  %579 = vmatpush.msrb.mxu0 %v5381_v7  ;;  %v5387_v27 = vld [vmem:[%s8590_s4 + $0x20] sm:$0xff]  ;;  %v5426_v28 = vld [vmem:[%s8588_s2 + $0x78] sm:$0xff]  ;;  %v5425_v30 = vld [vmem:[%s8588_s2 + $0x70] sm:$0xff] }
  0x16   : > { %5949 = vmatpush.msra.mxu3 %v482_v14  ;;  %503 = vmatpush.msra.mxu2 %v482_v14  ;;  %v5417_v29 = vld [vmem:[%s8590_s4 + $0x58] sm:$0xff]  ;;  %v5416_v31 = vld [vmem:[%s8590_s4 + $0x50] sm:$0xff]  ;;  %v5424_v32 = vld [vmem:[%s8588_s2 + $0x68] sm:$0xff] }
  0x17   : > { %465 = vmatpush.msrb.mxu1 %v5358_v8  ;;  %580 = vmatpush.msrb.mxu0 %v5380_v9  ;;  %v5415_v33 = vld [vmem:[%s8590_s4 + $0x48] sm:$0xff]  ;;  %v5414_v34 = vld [vmem:[%s8590_s4 + $0x40] sm:$0xff]  ;;  %v5408_v38 = vld [vmem:[%s8588_s2 + $0xd8] sm:$0xff] }
  0x18   : > { %5950 = vmatpush.msra.mxu3 %v481_v19  ;;  %504 = vmatpush.msra.mxu2 %v481_v19  ;;  %v5423_v35 = vld [vmem:[%s8588_s2 + $0x60] sm:$0xff]  ;;  %v5407_v39 = vld [vmem:[%s8588_s2 + $0xd0] sm:$0xff]  ;;  %v5406_v40 = vld [vmem:[%s8588_s2 + $0xc8] sm:$0xff] }
  0x19   : > { %466 = vmatpush.msrb.mxu1 %v5357_v10  ;;  %581 = vmatpush.msrb.mxu0 %v5379_v11  ;;  %v5405_v43 = vld [vmem:[%s8588_s2 + $0xc0] sm:$0xff]  ;;  %v5444_v44 = vld [vmem:[%s8590_s4 + $0x78] sm:$0xff]  ;;  %v5443_v45 = vld [vmem:[%s8590_s4 + $0x70] sm:$0xff] }
  0x1a   : > { %5368 = vmatmul.msk.f32.vlgmr.msra.gmra.mxu3 %vm400_vm0, %v6489_v18  ;;  %5365 = vmatmul.msk.f32.vlgmr.msra.gmra.mxu2 %vm400_vm0, %v6437_v4  ;;  %v5442_v46 = vld [vmem:[%s8590_s4 + $0x68] sm:$0xff]  ;;  %v6632_v47 = vld [vmem:[%s8591_s5] ss:$0 sm:$0xff]  ;;  %v5961_v57 = vld [vmem:[%s8589_s3 + $0x4] ss:$0 sm:$0xff] }
  0x1b   : > { %467 = vmatpush.msrb.mxu1 %v5356_v15  ;;  %582 = vmatpush.msrb.mxu0 %v5378_v16  ;;  %v5441_v48 = vld [vmem:[%s8590_s4 + $0x60] sm:$0xff]  ;;  %v5399_v8 = vld [vmem:[%s8588_s2 + $0x58] sm:$0xff]  ;;  %v5398_v10 = vld [vmem:[%s8588_s2 + $0x50] sm:$0xff] }
  0x1c   : > { %5353 = vmatmul.msk.f32.gmra.mxu0 %vm400_vm0, %v6484_v17  ;;  %5355 = vmatmul.msk.f32.gmra.mxu1 %vm400_vm0, %v6489_v18  ;;  %v5962_v58 = vld [vmem:[%s8589_s3 + $0x5] ss:$0 sm:$0xff]  ;;  %v5964_v6 = vld [vmem:[%s8589_s3 + $0x1] ss:$0 sm:$0xff]  ;;  %v5960_v11 = vld [vmem:[%s8589_s3] ss:$0 sm:$0xff] }
  0x1d   : > { %540 = vmatpush.msrb.mxu3 %v5372_v20  ;;  %618 = vmatpush.msra.mxu1 %v5390_v23  ;;  %v5397_v13 = vld [vmem:[%s8588_s2 + $0x48] sm:$0xff]  ;;  %v5396_v19 = vld [vmem:[%s8588_s2 + $0x40] sm:$0xff]  ;;  %v5435_v20 = vld [vmem:[%s8588_s2 + $0xf8] sm:$0xff] }
  0x1e   : > { %735 = vmatpush.msra.mxu0 %v5417_v29  ;;  %657 = vmatpush.msrb.mxu2 %v5399_v8  ;;  %v5433_v23 = vld [vmem:[%s8588_s2 + $0xe8] sm:$0xff] }
  0x1f   : > { %541 = vmatpush.msrb.mxu3 %v5371_v21  ;;  %619 = vmatpush.msra.mxu1 %v5389_v24 }
  0x20   : > { %736 = vmatpush.msra.mxu0 %v5416_v31  ;;  %658 = vmatpush.msrb.mxu2 %v5398_v10  ;;  %v5965_v31 = vld [vmem:[%s8591_s5 + $0x1] ss:$0 sm:$0xff] }
  0x21   : > { %542 = vmatpush.msrb.mxu3 %v5370_v22  ;;  %620 = vmatpush.msra.mxu1 %v5388_v25  ;;  %v5434_v22 = vld [vmem:[%s8588_s2 + $0xf0] sm:$0xff] }
  0x22   : > { %5366 = vmatmul.msk.f32.gmra.mxu2 %vm400_vm0, %v6484_v17  ;;  %737 = vmatpush.msra.mxu0 %v5415_v33 }
  0x23   : > { %543 = vmatpush.msrb.mxu3 %v5369_v26  ;;  %621 = vmatpush.msra.mxu1 %v5387_v27  ;;  %v5432_v26 = vld [vmem:[%s8588_s2 + $0xe0] sm:$0xff] }
  0x24   : > { %5361 = vmatmul.msk.f32.vlgmr.msrb.gmra.mxu1 %vm400_vm0, %v6437_v4  ;;  %5383 = vmatmul.msk.f32.vlgmr.msrb.gmra.mxu0 %vm400_vm0, %v6437_v4 }
  0x25   : > { %5374 = vmatmul.msk.f32.vlgmr.msrb.gmra.mxu3 %vm400_vm0, %v6437_v4  ;;  %774 = vmatpush.msrb.mxu1 %v5426_v28 }
  0x26   : > { %738 = vmatpush.msra.mxu0 %v5414_v34  ;;  %696 = vmatpush.msra.mxu3 %v5408_v38 }
  0x27   : > { %775 = vmatpush.msrb.mxu1 %v5425_v30  ;;  %659 = vmatpush.msrb.mxu2 %v5397_v13 }
  0x28   : > { %697 = vmatpush.msra.mxu3 %v5407_v39 }
  0x29   : > { %776 = vmatpush.msrb.mxu1 %v5424_v32  ;;  %660 = vmatpush.msrb.mxu2 %v5396_v19 }
  0x2a   : > { %5367 = vmatmul.msk.f32.gmra.mxu2 %vm400_vm0, %v6442_v5  ;;  %698 = vmatpush.msra.mxu3 %v5406_v40 }
  0x2b   : > { %777 = vmatpush.msrb.mxu1 %v5423_v35  ;;  %813 = vmatpush.msra.mxu2 %v5435_v20 }
  0x2c   : > { %5362 = vmatmul.msk.f32.gmra.mxu1 %vm400_vm0, %v6484_v17  ;;  %5384 = vmatmul.msk.f32.gmra.mxu0 %vm400_vm0, %v6484_v17 }
  0x2d   : > { %5375 = vmatmul.msk.f32.gmra.mxu3 %vm400_vm0, %v6484_v17  ;;  %814 = vmatpush.msra.mxu2 %v5434_v22 }
  0x2e   : > { %699 = vmatpush.msra.mxu3 %v5405_v43  ;;  %v5966_v43 = vld [vmem:[%s8591_s5 + $0x2] ss:$0 sm:$0xff] }
  0x2f   : > { %815 = vmatpush.msra.mxu2 %v5433_v23 }
  0x30   : > { %852 = vmatpush.msrb.mxu3 %v5444_v44 }
  0x31   : > { %816 = vmatpush.msra.mxu2 %v5432_v26 }
  0x32   : > { %853 = vmatpush.msrb.mxu3 %v5443_v45  ;;  %5401 = vmatmul.msk.f32.vlgmr.msrb.gmra.mxu2 %vm400_vm0, %v6437_v4 }
  0x34   : > { %5363 = vmatmul.msk.f32.gmra.mxu1 %vm400_vm0, %v6442_v5  ;;  %5385 = vmatmul.msk.f32.gmra.mxu0 %vm400_vm0, %v6442_v5 }
  0x35   : > { %5376 = vmatmul.msk.f32.gmra.mxu3 %vm400_vm0, %v6442_v5 }
  0x36   : > { %854 = vmatpush.msrb.mxu3 %v5442_v46 }
  0x38   : > { %855 = vmatpush.msrb.mxu3 %v5441_v48 }
  0x3a   : > { %5402 = vmatmul.msk.f32.gmra.mxu2 %vm400_vm0, %v6484_v17 }
  0x3c   : > { %5364 = vmatmul.msk.f32.gmra.mxu1 %vm400_vm0, %v6489_v18  ;;  %5386 = vmatmul.msk.f32.gmra.mxu0 %vm400_vm0, %v6489_v18 }
  0x3d   : > { %5377 = vmatmul.msk.f32.gmra.mxu3 %vm400_vm0, %v6489_v18 }
  0x42   : > { %5403 = vmatmul.msk.f32.gmra.mxu2 %vm400_vm0, %v6442_v5 }
  0x44   : > { %5392 = vmatmul.msk.f32.vlgmr.msra.gmra.mxu1 %vm400_vm0, %v6437_v4  ;;  %5419 = vmatmul.msk.f32.vlgmr.msra.gmra.mxu0 %vm400_vm0, %v6437_v4 }
  0x45   : > { %5410 = vmatmul.msk.f32.vlgmr.msra.gmra.mxu3 %vm400_vm0, %v6437_v4 }
  0x4a   : > { %5404 = vmatmul.msk.f32.gmra.mxu2 %vm400_vm0, %v6489_v18 }
  0x4c   : > { %5393 = vmatmul.msk.f32.gmra.mxu1 %vm400_vm0, %v6484_v17  ;;  %5420 = vmatmul.msk.f32.gmra.mxu0 %vm400_vm0, %v6484_v17 }
  0x4d   : > { %5411 = vmatmul.msk.f32.gmra.mxu3 %vm400_vm0, %v6484_v17 }
  0x52   : > { %5437 = vmatmul.msk.f32.vlgmr.msra.gmra.mxu2 %vm400_vm0, %v6437_v4 }
  0x54   : > { %5394 = vmatmul.msk.f32.gmra.mxu1 %vm400_vm0, %v6442_v5  ;;  %5421 = vmatmul.msk.f32.gmra.mxu0 %vm400_vm0, %v6442_v5 }
  0x55   : > { %5412 = vmatmul.msk.f32.gmra.mxu3 %vm400_vm0, %v6442_v5 }
  0x5a   : > { %5438 = vmatmul.msk.f32.gmra.mxu2 %vm400_vm0, %v6484_v17 }
  0x5c   : > { %5395 = vmatmul.msk.f32.gmra.mxu1 %vm400_vm0, %v6489_v18  ;;  %5422 = vmatmul.msk.f32.gmra.mxu0 %vm400_vm0, %v6489_v18 }
  0x5d   : > { %5413 = vmatmul.msk.f32.gmra.mxu3 %vm400_vm0, %v6489_v18 }
  0x62   : > { %5439 = vmatmul.msk.f32.gmra.mxu2 %vm400_vm0, %v6442_v5 }
  0x64   : > { %5428 = vmatmul.msk.f32.vlgmr.msrb.gmra.mxu1 %vm400_vm0, %v6437_v4 }
  0x65   : > { %5446 = vmatmul.msk.f32.vlgmr.msrb.gmra.mxu3 %vm400_vm0, %v6437_v4 }
  0x6a   : > { %5440 = vmatmul.msk.f32.gmra.mxu2 %vm400_vm0, %v6489_v18 }
  0x6c   : > { %5429 = vmatmul.msk.f32.gmra.mxu1 %vm400_vm0, %v6484_v17 }
  0x6d   : > { %5447 = vmatmul.msk.f32.gmra.mxu3 %vm400_vm0, %v6484_v17 }
  0x74   : > { %5430 = vmatmul.msk.f32.gmra.mxu1 %vm400_vm0, %v6442_v5 }
  0x75   : > { %5448 = vmatmul.msk.f32.gmra.mxu3 %vm400_vm0, %v6442_v5 }
  0x7c   : > { %5431 = vmatmul.msk.f32.gmra.mxu1 %vm400_vm0, %v6489_v18 }
  0x7d   : > { %5449 = vmatmul.msk.f32.gmra.mxu3 %vm400_vm0, %v6489_v18 }
  0x91   : > { %v6590_v36 = vpop.f32.mrf.mxu0  ;;  %v6592_v37 = vpop.f32.mrf.mxu1 }
  0x92   : > { %v431_v16 = vadd.f32 %v5960_v11, %v6590_v36  ;;  %v437_v29 = vadd.f32 %v5960_v11, %v6592_v37 }
  0x99   : > { %v6607_v41 = vpop.f32.mrf.mxu0  ;;  %v6609_v42 = vpop.f32.mrf.mxu1 }
  0x9a   : > { %v434_v25 = vadd.f32 %v5960_v11, %v6607_v41  ;;  %v440_v38 = vadd.f32 %v5960_v11, %v6609_v42 }
  0x9d   : > { %v515_v51 = vpop.f32.mrf.mxu3 }
  0x9e   : > { %v516_v52 = vadd.f32 %v6632_v47, %v515_v51  ;;  %v506_v51 = vpop.f32.mrf.mxu2 }
  0xa0   : > { %1129 = vmatpush.msra.mxu3 %v516_v52 }
  0xa1   : > { %v469_v49 = vpop.f32.mrf.mxu1  ;;  %v584_v50 = vpop.f32.mrf.mxu0 }
  0xa2   : > { %v470_v9 = vadd.f32 %v5961_v57, %v469_v49  ;;  %v585_v12 = vadd.f32 %v5962_v58, %v584_v50 }
  0xa8   : > { %v545_v1 = vpop.f32.mrf.mxu3 }
  0xa9   : > { %v472_v53 = vpop.f32.mrf.mxu1  ;;  %v587_v54 = vpop.f32.mrf.mxu0  ;;  %v546_v14 = vadd.f32 %v5964_v6, %v545_v1 }
  0xaa   : > { %v473_v2 = vadd.f32 %v5961_v57, %v472_v53  ;;  %v588_v3 = vadd.f32 %v5962_v58, %v587_v54 }
  0xb0   : > { %v548_v15 = vpop.f32.mrf.mxu3 }
  0xb1   : > { %v475_v55 = vpop.f32.mrf.mxu1  ;;  %v590_v56 = vpop.f32.mrf.mxu0  ;;  %v549_v24 = vadd.f32 %v5964_v6, %v548_v15 }
  0xb2   : > { %v476_v63 = vadd.f32 %v5961_v57, %v475_v55  ;;  %v591_v0 = vadd.f32 %v5962_v58, %v590_v56  ;;  %v509_v55 = vpop.f32.mrf.mxu2 }
  0xb8   : > { %v551_v27 = vpop.f32.mrf.mxu3 }
  0xb9   : > { %v478_v59 = vpop.f32.mrf.mxu1  ;;  %v593_v60 = vpop.f32.mrf.mxu0  ;;  %v552_v30 = vadd.f32 %v5964_v6, %v551_v27 }
  0xba   : > { %v479_v61 = vadd.f32 %v5961_v57, %v478_v59  ;;  %v594_v62 = vadd.f32 %v5962_v58, %v593_v60  ;;  %v512_v59 = vpop.f32.mrf.mxu2  ;;  %v510_v60 = vadd.f32 %v6632_v47, %v509_v55  ;;  %v5970_v55 = vld [vmem:[%s8589_s3 + $0x7] ss:$0 sm:$0xff] }
  0xbc   : > { %5450 = vmatpush.xpose.msk.msrb.mxu0 %vm869_vm1, %v479_v61  ;;  %5458 = vmatpush.xpose.msk.msra.mxu1 %vm869_vm1, %v594_v62  ;;  %v513_v61 = vadd.f32 %v6632_v47, %v512_v59  ;;  %v507_v62 = vadd.f32 %v6632_v47, %v506_v51 }
  0xbe   : > { %1130 = vmatpush.msra.mxu3 %v513_v61 }
  0xc0   : > { %5451 = vmatpush.xpose.msk.msrb.mxu0 %vm869_vm1, %v476_v63  ;;  %5459 = vmatpush.xpose.msk.msra.mxu1 %vm869_vm1, %v591_v0  ;;  %v554_v33 = vpop.f32.mrf.mxu3  ;;  %v5968_v63 = vld [vmem:[%s8589_s3 + $0x6] ss:$0 sm:$0xff] }
  0xc1   : > { %v623_v7 = vpop.f32.mrf.mxu1  ;;  %v555_v39 = vadd.f32 %v5964_v6, %v554_v33  ;;  %v740_v40 = vpop.f32.mrf.mxu0  ;;  %1131 = vmatpush.msra.mxu3 %v510_v60 }
  0xc2   : > { %v624_v37 = vadd.f32 %v5965_v31, %v623_v7  ;;  %v741_v17 = vadd.f32 %v5966_v43, %v740_v40  ;;  %v662_v11 = vpop.f32.mrf.mxu2 }
  0xc3   : > { %1132 = vmatpush.msra.mxu3 %v507_v62 }
  0xc4   : > { %5452 = vmatpush.xpose.msk.msrb.mxu0 %vm869_vm1, %v473_v2  ;;  %5460 = vmatpush.xpose.msk.msra.mxu1 %vm869_vm1, %v588_v3 }
  0xc8   : > { %5453 = vmatpush.xpose.msk.msrb.mxu0 %vm869_vm1, %v470_v9  ;;  %5461 = vmatpush.xpose.msk.msra.mxu1 %vm869_vm1, %v585_v12  ;;  %v701_v50 = vpop.f32.mrf.mxu3  ;;  %v5969_v9 = vld [vmem:[%s8589_s3 + $0x2] ss:$0 sm:$0xff] }
  0xc9   : > { %v626_v21 = vpop.f32.mrf.mxu1  ;;  %v743_v41 = vpop.f32.mrf.mxu0  ;;  %v702_v10 = vadd.f32 %v5968_v63, %v701_v50  ;;  %v663_v12 = vadd.f32 %v5969_v9, %v662_v11 }
  0xca   : > { %v627_v36 = vadd.f32 %v5965_v31, %v626_v21  ;;  %v744_v48 = vadd.f32 %v5966_v43, %v743_v41 }
  0xcb   : > { %5454 = vmatmul.msk.f32.vlgmr.msrb.gmra.mxu0 %vm869_vm1, %v431_v16  ;;  %5462 = vmatmul.msk.f32.vlgmr.msra.gmra.mxu1 %vm869_vm1, %v546_v14 }
  0xd0   : > { %v704_v54 = vpop.f32.mrf.mxu3 }
  0xd1   : > { %v629_v28 = vpop.f32.mrf.mxu1  ;;  %v746_v42 = vpop.f32.mrf.mxu0  ;;  %v705_v47 = vadd.f32 %v5968_v63, %v704_v54 }
  0xd2   : > { %v630_v34 = vadd.f32 %v5965_v31, %v629_v28  ;;  %v747_v4 = vadd.f32 %v5966_v43, %v746_v42 }
  0xd3   : > { %5455 = vmatmul.msk.f32.gmra.mxu0 %vm869_vm1, %v434_v25  ;;  %5463 = vmatmul.msk.f32.gmra.mxu1 %vm869_vm1, %v549_v24  ;;  %v665_v24 = vpop.f32.mrf.mxu2 }
  0xd4   : > { %v666_v26 = vadd.f32 %v5969_v9, %v665_v24 }
  0xd8   : > { %v707_v58 = vpop.f32.mrf.mxu3 }
  0xd9   : > { %v632_v32 = vpop.f32.mrf.mxu1  ;;  %v749_v45 = vpop.f32.mrf.mxu0  ;;  %v708_v6 = vadd.f32 %v5968_v63, %v707_v58 }
  0xda   : > { %v633_v35 = vadd.f32 %v5965_v31, %v632_v32  ;;  %v750_v46 = vadd.f32 %v5966_v43, %v749_v45 }
  0xdb   : > { %5456 = vmatmul.msk.f32.gmra.mxu0 %vm869_vm1, %v437_v29  ;;  %5464 = vmatmul.msk.f32.gmra.mxu1 %vm869_vm1, %v552_v30  ;;  %v668_v32 = vpop.f32.mrf.mxu2 }
  0xdc   : > { %1088 = vmatpush.msrb.mxu2 %v633_v35  ;;  %1267 = vmatpush.msrb.mxu1 %v750_v46  ;;  %v669_v33 = vadd.f32 %v5969_v9, %v668_v32 }
  0xde   : > { %1089 = vmatpush.msrb.mxu2 %v630_v34  ;;  %1268 = vmatpush.msrb.mxu1 %v747_v4 }
  0xe0   : > { %1090 = vmatpush.msrb.mxu2 %v627_v36  ;;  %1269 = vmatpush.msrb.mxu1 %v744_v48  ;;  %v710_v2 = vpop.f32.mrf.mxu3 }
  0xe1   : > { %v6734_v44 = vpop.f32.mrf.mxu1  ;;  %v711_v3 = vadd.f32 %v5968_v63, %v710_v2 }
  0xe2   : > { %1091 = vmatpush.msrb.mxu2 %v624_v37  ;;  %1270 = vmatpush.msrb.mxu1 %v741_v17 }
  0xe3   : > { %5457 = vmatmul.msk.f32.gmra.mxu0 %vm869_vm1, %v440_v38  ;;  %5465 = vmatmul.msk.f32.gmra.mxu1 %vm869_vm1, %v555_v39  ;;  %v671_v41 = vpop.f32.mrf.mxu2 }
  0xe4   : > { %5474 = vmatpush.xpose.msk.msra.mxu0 %vm869_vm1, %v711_v3  ;;  %v672_v42 = vadd.f32 %v5969_v9, %v671_v41 }
  0xe8   : > { %5475 = vmatpush.xpose.msk.msra.mxu0 %vm869_vm1, %v708_v6 }
  0xe9   : > { %v6736_v5 = vpop.f32.mrf.mxu1 }
  0xeb   : > { %v818_v17 = vpop.f32.mrf.mxu2 }
  0xec   : > { %5476 = vmatpush.xpose.msk.msra.mxu0 %vm869_vm1, %v705_v47  ;;  %v819_v60 = vadd.f32 %v5970_v55, %v818_v17 }
  0xf0   : > { %5477 = vmatpush.xpose.msk.msra.mxu0 %vm869_vm1, %v702_v10  ;;  %v5967_v10 = vld [vmem:[%s8589_s3 + $0x3] ss:$0 sm:$0xff] }
  0xf1   : > { %v6738_v18 = vpop.f32.mrf.mxu1  ;;  %v780_v11 = vadd.f32 %v5967_v10, %v6734_v44 }
  0xf3   : > { %5478 = vmatmul.msk.f32.vlgmr.msra.gmra.mxu0 %vm869_vm1, %v663_v12  ;;  %v821_v51 = vpop.f32.mrf.mxu2  ;;  %v783_v12 = vadd.f32 %v5967_v10, %v6736_v5 }
  0xf4   : > { %v822_v59 = vadd.f32 %v5970_v55, %v821_v51 }
  0xf9   : > { %v6740_v49 = vpop.f32.mrf.mxu1 }
  0xfb   : > { %5479 = vmatmul.msk.f32.gmra.mxu0 %vm869_vm1, %v666_v26  ;;  %v824_v54 = vpop.f32.mrf.mxu2 }
  0xfc   : > { %v825_v58 = vadd.f32 %v5970_v55, %v824_v54 }
 0x103   : > { %5480 = vmatmul.msk.f32.gmra.mxu0 %vm869_vm1, %v669_v33 }
 0x10b   : > { %5481 = vmatmul.msk.f32.gmra.mxu0 %vm869_vm1, %v672_v42 }
 0x148   : > { %v1008_v52 = vpop.f32.mrf.mxu1  ;;  %v6760_v16 = vpop.f32.mrf.mxu0 }
 0x149   : > { %v1020_v53 = vsel %vm400_vm0, %v1008_v52, -inf  ;;  %v923_v40 = vsel %vm400_vm0, %v6760_v16, -inf }
 0x14a   : > { %1021 = vmax.xlane.f32.xlu0 %v1020_v53 }
 0x150   : > { %v1011_v56 = vpop.f32.mrf.mxu1  ;;  %v6763_v25 = vpop.f32.mrf.mxu0 }
 0x151   : > { %v1023_v57 = vsel %vm400_vm0, %v1011_v56, -inf  ;;  %v926_v46 = vsel %vm400_vm0, %v6763_v25, -inf }
 0x152   : > { %1024 = vmax.xlane.f32.xlu0 %v1023_v57 }
 0x158   : > { %v1014_v0 = vpop.f32.mrf.mxu1  ;;  %v6767_v34 = vpop.f32.mrf.mxu0 }
 0x159   : > { %v1026_v1 = vsel %vm400_vm0, %v1014_v0, -inf  ;;  %v929_v50 = vsel %vm400_vm0, %v6767_v34, -inf }
 0x15a   : > { %1027 = vmax.xlane.f32.xlu1 %v1026_v1 }
 0x160   : > { %v1017_v7 = vpop.f32.mrf.mxu1  ;;  %v6774_v43 = vpop.f32.mrf.mxu0 }
 0x161   : > { %v1029_v8 = vsel %vm400_vm0, %v1017_v7, -inf  ;;  %v932_v48 = vsel %vm400_vm0, %v6774_v43, -inf }
 0x162   : > { %1030 = vmax.xlane.f32.xlu1 %v1029_v8 }
 0x1bd   : > { %v1022_v13 = vpop.xlane.xlu0 %1021 }
 0x1be   : > { %v1032_v14 = vsub.f32 %v1008_v52, %v1022_v13  ;;  %v6783_v52 = vpop.f32.mrf.mxu0  ;;  %v786_v13 = vadd.f32 %v5967_v10, %v6738_v18 }
 0x1bf   : > { %v1199_v53 = vsel %vm400_vm0, %v6783_v52, -inf }
 0x1c0   : > { %v1036_v15 = vmul.f32 1.442695, %v1032_v14  ;;  %v789_v14 = vadd.f32 %v5967_v10, %v6740_v49 }
 0x1c2   : > { %6029 = vpow2.f32 %v1036_v15 }
 0x1c5   : > { %v1025_v19 = vpop.xlane.xlu0 %1024 }
 0x1c6   : > { %v1033_v20 = vsub.f32 %v1011_v56, %v1025_v19  ;;  %v827_v56 = vpop.f32.mrf.mxu2 }
 0x1c7   : > { %v828_v57 = vadd.f32 %v5970_v55, %v827_v56 }
 0x1c8   : > { %v6030_v21 = vpop.eup %6029  ;;  %v1038_v22 = vmul.f32 1.442695, %v1033_v20 }
 0x1c9   : > { %v1044_v23 = vsel %vm400_vm0, %v6030_v21, 0.0  ;;  %5486 = vmatpush.xpose.msk.msra.mxu2 %vm869_vm1, %v828_v57 }
 0x1ca   : > { %6031 = vpow2.f32 %v1038_v22  ;;  %1045 = vadd.xlane.f32.xlu2 %v1044_v23  ;;  %v1190_v23 = vpop.f32.mrf.mxu0 }
 0x1cd   : > { %v1028_v27 = vpop.xlane.xlu1 %1027  ;;  %5487 = vmatpush.xpose.msk.msra.mxu2 %vm869_vm1, %v825_v58 }
 0x1ce   : > { %v1034_v28 = vsub.f32 %v1014_v0, %v1028_v27 }
 0x1d0   : > { %v6032_v29 = vpop.eup %6031  ;;  %v1040_v30 = vmul.f32 1.442695, %v1034_v28  ;;  %v1202_v28 = vsel %vm400_vm0, %v1190_v23, -inf }
 0x1d1   : > { %v1047_v31 = vsel %vm400_vm0, %v6032_v29, 0.0  ;;  %5488 = vmatpush.xpose.msk.msra.mxu2 %vm869_vm1, %v822_v59 }
 0x1d2   : > { %6033 = vpow2.f32 %v1040_v30  ;;  %1048 = vadd.xlane.f32.xlu2 %v1047_v31  ;;  %v6822_v30 = vpop.f32.mrf.mxu0 }
 0x1d5   : > { %v1031_v35 = vpop.xlane.xlu1 %1030  ;;  %5489 = vmatpush.xpose.msk.msra.mxu2 %vm869_vm1, %v819_v60 }
 0x1d6   : > { %v1035_v36 = vsub.f32 %v1017_v7, %v1031_v35 }
 0x1d8   : > { %v6034_v38 = vpop.eup %6033  ;;  %v1042_v39 = vmul.f32 1.442695, %v1035_v36 }
 0x1d9   : > { %v1050_v37 = vsel %vm400_vm0, %v6034_v38, 0.0 }
 0x1da   : > { %6035 = vpow2.f32 %v1042_v39  ;;  %1051 = vadd.xlane.f32.xlu0 %v1050_v37  ;;  %924 = vmax.xlane.f32.xlu2 %v923_v40  ;;  %v1205_v39 = vsel %vm400_vm0, %v6822_v30, -inf }
 0x1e0   : > { %v6036_v45 = vpop.eup %6035 }
 0x1e1   : > { %v1053_v4 = vsel %vm400_vm0, %v6036_v45, 0.0 }
 0x1e2   : > { %1054 = vadd.xlane.f32.xlu1 %v1053_v4  ;;  %927 = vmax.xlane.f32.xlu0 %v926_v46 }
 0x1e3   : > { %933 = vmax.xlane.f32.xlu2 %v932_v48 }
 0x1ea   : > { %930 = vmax.xlane.f32.xlu1 %v929_v50 }
 0x1f2   : > { %1200 = vmax.xlane.f32.xlu1 %v1199_v53 }
 0x23d   : > { %v1046_v61 = vpop.xlane.xlu2 %1045 }
 0x23e   : > { %6037 = vrcp.f32 %v1046_v61 }
 0x244   : > { %v6038_v62 = vpop.eup %6037 }
 0x245   : > { %v1060_v63 = vmul.f32 %v6038_v62, %v6030_v21  ;;  %v1049_v0 = vpop.xlane.xlu2 %1048 }
 0x246   : > { %6039 = vrcp.f32 %v1049_v0 }
 0x247   : > { %5466 = vmatmul.msk.f32.vlgmr.msrb.gmra.mxu2 %vm400_vm0, %v1060_v63 }
 0x24c   : > { %v6040_v1 = vpop.eup %6039 }
 0x24d   : > { %v1052_v2 = vpop.xlane.xlu0 %1051  ;;  %v1061_v3 = vmul.f32 %v6040_v1, %v6032_v29  ;;  %v925_v21 = vpop.xlane.xlu2 %924 }
 0x24e   : > { %6041 = vrcp.f32 %v1052_v2  ;;  %v935_v22 = vsub.f32 %v6760_v16, %v925_v21 }
 0x24f   : > { %5467 = vmatmul.msk.f32.gmra.mxu2 %vm400_vm0, %v1061_v3 }
 0x250   : > { %v939_v24 = vmul.f32 1.442695, %v935_v22 }
 0x254   : > { %v6042_v6 = vpop.eup %6041 }
 0x255   : > { %v1055_v7 = vpop.xlane.xlu1 %1054  ;;  %v1062_v8 = vmul.f32 %v6042_v6, %v6034_v38  ;;  %v928_v49 = vpop.xlane.xlu0 %927 }
 0x256   : > { %6043 = vrcp.f32 %v1055_v7  ;;  %v936_v27 = vsub.f32 %v6763_v25, %v928_v49  ;;  %v934_v32 = vpop.xlane.xlu2 %933 }
 0x257   : > { %5468 = vmatmul.msk.f32.gmra.mxu2 %vm400_vm0, %v1062_v8  ;;  %6045 = vpow2.f32 %v939_v24  ;;  %v938_v38 = vsub.f32 %v6774_v43, %v934_v32 }
 0x258   : > { %v941_v31 = vmul.f32 1.442695, %v936_v27 }
 0x259   : > { %v945_v41 = vmul.f32 1.442695, %v938_v38 }
 0x25a   : > { %6047 = vpow2.f32 %v941_v31 }
 0x25c   : > { %v6044_v47 = vpop.eup %6043 }
 0x25d   : > { %v1063_v9 = vmul.f32 %v6044_v47, %v6036_v45  ;;  %v931_v16 = vpop.xlane.xlu1 %930  ;;  %v6824_v33 = vpop.eup %6045 }
 0x25e   : > { %v937_v35 = vsub.f32 %v6767_v34, %v931_v16  ;;  %v947_v37 = vsel %vm400_vm0, %v6824_v33, 0.0  ;;  %v6833_v45 = vpop.f32.mrf.mxu0 }
 0x25f   : > { %5469 = vmatmul.msk.f32.gmra.mxu2 %vm400_vm0, %v1063_v9  ;;  %v1208_v48 = vsel %vm400_vm0, %v6833_v45, -inf }
 0x260   : > { %v943_v40 = vmul.f32 1.442695, %v937_v35  ;;  %v6835_v34 = vpop.eup %6047 }
 0x261   : > { %v950_v17 = vsel %vm400_vm0, %v6835_v34, 0.0 }
 0x262   : > { %6049 = vpow2.f32 %v943_v40 }
 0x263   : > { %6051 = vpow2.f32 %v945_v41 }
 0x265   : > { %v1201_v42 = vpop.xlane.xlu1 %1200 }
 0x266   : > { %v1211_v43 = vsub.f32 %v6783_v52, %v1201_v42 }
 0x267   : > { %5490 = vmatmul.msk.f32.vlgmr.msra.gmra.mxu2 %vm869_vm1, %v780_v11 }
 0x268   : > { %v1215_v50 = vmul.f32 1.442695, %v1211_v43  ;;  %v6843_v51 = vpop.eup %6049 }
 0x269   : > { %v6845_v53 = vpop.eup %6051  ;;  %v953_v52 = vsel %vm400_vm0, %v6843_v51, 0.0 }
 0x26a   : > { %6053 = vpow2.f32 %v1215_v50  ;;  %v956_v54 = vsel %vm400_vm0, %v6845_v53, 0.0 }
 0x26f   : > { %5491 = vmatmul.msk.f32.gmra.mxu2 %vm869_vm1, %v783_v12 }
 0x270   : > { %v6851_v55 = vpop.eup %6053 }
 0x271   : > { %v1223_v56 = vsel %vm400_vm0, %v6851_v55, 0.0 }
 0x277   : > { %5492 = vmatmul.msk.f32.gmra.mxu2 %vm869_vm1, %v786_v13  ;;  %v857_v13 = vpop.f32.mrf.mxu3 }
 0x27f   : > { %5493 = vmatmul.msk.f32.gmra.mxu2 %vm869_vm1, %v789_v14  ;;  %v860_v31 = vpop.f32.mrf.mxu3 }
 0x2ca   : > { %v6809_v15 = vpop.f32.mrf.mxu2 }
 0x2d2   : > { %v6811_v19 = vpop.f32.mrf.mxu2 }
 0x2da   : > { %v6813_v20 = vpop.f32.mrf.mxu2 }
 0x2e2   : > { %v6815_v44 = vpop.f32.mrf.mxu2 }
 0x2ea   : > { %v1329_v5 = vpop.f32.mrf.mxu2 }
 0x2eb   : > { %v1341_v18 = vsel %vm400_vm0, %v1329_v5, -inf }
 0x2ec   : > { %1342 = vmax.xlane.f32.xlu0 %v1341_v18 }
 0x2f2   : > { %v1332_v26 = vpop.f32.mrf.mxu2 }
 0x2f3   : > { %v1344_v29 = vsel %vm400_vm0, %v1332_v26, -inf }
 0x2f4   : > { %1203 = vmax.xlane.f32.xlu0 %v1202_v28  ;;  %1345 = vmax.xlane.f32.xlu2 %v1344_v29 }
 0x2fa   : > { %v1335_v36 = vpop.f32.mrf.mxu2 }
 0x2fb   : > { %v1347_v25 = vsel %vm400_vm0, %v1335_v36, -inf }
 0x2fc   : > { %1348 = vmax.xlane.f32.xlu1 %v1347_v25  ;;  %1206 = vmax.xlane.f32.xlu0 %v1205_v39  ;;  %v863_v39 = vpop.f32.mrf.mxu3 }
 0x2fd   : > { %948 = vadd.xlane.f32.xlu2 %v947_v37 }
 0x302   : > { %v1338_v4 = vpop.f32.mrf.mxu2 }
 0x303   : > { %v1350_v46 = vsel %vm400_vm0, %v1338_v4, -inf }
 0x304   : > { %1351 = vmax.xlane.f32.xlu1 %v1350_v46  ;;  %1209 = vmax.xlane.f32.xlu0 %v1208_v48  ;;  %v866_v46 = vpop.f32.mrf.mxu3 }
 0x305   : > { %951 = vadd.xlane.f32.xlu2 %v950_v17 }
 0x30c   : > { %954 = vadd.xlane.f32.xlu1 %v953_v52 }
 0x30d   : > { %957 = vadd.xlane.f32.xlu2 %v956_v54 }
 0x314   : > { %1224 = vadd.xlane.f32.xlu1 %v1223_v56 }
 0x35f   : > { %v1343_v57 = vpop.xlane.xlu0 %1342 }
 0x360   : > { %v1353_v58 = vsub.f32 %v1329_v5, %v1343_v57 }
 0x362   : > { %v1357_v59 = vmul.f32 1.442695, %v1353_v58 }
 0x364   : > { %6055 = vpow2.f32 %v1357_v59 }
 0x367   : > { %v1204_v60 = vpop.xlane.xlu0 %1203  ;;  %v1346_v61 = vpop.xlane.xlu2 %1345 }
 0x368   : > { %v1212_v62 = vsub.f32 %v1190_v23, %v1204_v60  ;;  %v1354_v63 = vsub.f32 %v1332_v26, %v1346_v61 }
 0x36a   : > { %v6855_v0 = vpop.eup %6055  ;;  %v1217_v1 = vmul.f32 1.442695, %v1212_v62  ;;  %v1359_v2 = vmul.f32 1.442695, %v1354_v63 }
 0x36b   : > { %v1365_v3 = vsel %vm400_vm0, %v6855_v0, 0.0 }
 0x36c   : > { %6057 = vpow2.f32 %v1217_v1  ;;  %1366 = vadd.xlane.f32.xlu0 %v1365_v3 }
 0x36d   : > { %6059 = vpow2.f32 %v1359_v2 }
 0x36f   : > { %v1349_v6 = vpop.xlane.xlu1 %1348  ;;  %v1207_v7 = vpop.xlane.xlu0 %1206 }
 0x370   : > { %v1355_v8 = vsub.f32 %v1335_v36, %v1349_v6  ;;  %v1213_v47 = vsub.f32 %v6822_v30, %v1207_v7  ;;  %v949_v9 = vpop.xlane.xlu2 %948 }
 0x371   : > { %6061 = vrcp.f32 %v949_v9 }
 0x372   : > { %v6860_v10 = vpop.eup %6057  ;;  %v1361_v11 = vmul.f32 1.442695, %v1355_v8  ;;  %v1219_v12 = vmul.f32 1.442695, %v1213_v47 }
 0x373   : > { %v6862_v14 = vpop.eup %6059  ;;  %v1226_v21 = vsel %vm400_vm0, %v6860_v10, 0.0 }
 0x374   : > { %6063 = vpow2.f32 %v1361_v11  ;;  %1227 = vadd.xlane.f32.xlu0 %v1226_v21  ;;  %v1368_v5 = vsel %vm400_vm0, %v6862_v14, 0.0 }
 0x375   : > { %6065 = vpow2.f32 %v1219_v12  ;;  %1369 = vadd.xlane.f32.xlu2 %v1368_v5 }
 0x377   : > { %v6062_v22 = vpop.eup %6061  ;;  %v1352_v18 = vpop.xlane.xlu1 %1351 }
 0x378   : > { %v1210_v23 = vpop.xlane.xlu0 %1209  ;;  %v963_v24 = vmul.f32 %v6062_v22, %v6824_v33  ;;  %v1356_v49 = vsub.f32 %v1338_v4, %v1352_v18  ;;  %v952_v27 = vpop.xlane.xlu2 %951 }
 0x379   : > { %v1214_v26 = vsub.f32 %v6833_v45, %v1210_v23  ;;  %6067 = vrcp.f32 %v952_v27 }
 0x37a   : > { %v6870_v28 = vpop.eup %6063  ;;  %v1363_v29 = vmul.f32 1.442695, %v1356_v49  ;;  %5470 = vmatmul.msk.f32.vlgmr.msra.gmra.mxu3 %vm400_vm0, %v963_v24  ;;  %v5972_v49 = vld [vmem:[%s8595_s9] ss:$0 sm:$0xff] }
 0x37b   : > { %v1221_v30 = vmul.f32 1.442695, %v1214_v26  ;;  %v6873_v16 = vpop.eup %6065  ;;  %v1371_v32 = vsel %vm400_vm0, %v6870_v28, 0.0 }
 0x37c   : > { %6069 = vpow2.f32 %v1363_v29  ;;  %1372 = vadd.xlane.f32.xlu1 %v1371_v32  ;;  %v1229_v33 = vsel %vm400_vm0, %v6873_v16, 0.0 }
 0x37d   : > { %6071 = vpow2.f32 %v1221_v30  ;;  %1230 = vadd.xlane.f32.xlu2 %v1229_v33  ;;  %v6335_v30 = vld [vmem:[%s8587_s1] sm:$0xff] }
 0x37f   : > { %v6068_v35 = vpop.eup %6067  ;;  %v955_v36 = vpop.xlane.xlu1 %954 }
 0x380   : > { %6073 = vrcp.f32 %v955_v36  ;;  %v964_v38 = vmul.f32 %v6068_v35, %v6835_v34  ;;  %v958_v41 = vpop.xlane.xlu2 %957  ;;  %v5971_v34 = vld [vmem:[%s8591_s5 + $0x3] ss:$0 sm:$0xff] }
 0x381   : > { %6075 = vrcp.f32 %v958_v41  ;;  %v864_v48 = vadd.f32 %v5971_v34, %v863_v39  ;;  %v867_v17 = vadd.f32 %v5971_v34, %v866_v46  ;;  %v861_v52 = vadd.f32 %v5971_v34, %v860_v31  ;;  %v6336_v39 = vld [vmem:[%s8587_s1 + $0x8] sm:$0xff] }
 0x382   : > { %v6070_v25 = vpop.eup %6069  ;;  %5471 = vmatmul.msk.f32.gmra.mxu3 %vm400_vm0, %v964_v38  ;;  %v858_v57 = vadd.f32 %v5971_v34, %v857_v13  ;;  %v6337_v34 = vld [vmem:[%s8587_s1 + $0x10] sm:$0xff] }
 0x383   : > { %v6072_v37 = vpop.eup %6071  ;;  %v1374_v40 = vsel %vm400_vm0, %v6070_v25, 0.0  ;;  %1409 = vmatpush.msrb.mxu3 %v867_v17 }
 0x384   : > { %1375 = vadd.xlane.f32.xlu0 %v1374_v40  ;;  %v1232_v42 = vsel %vm400_vm0, %v6072_v37, 0.0 }
 0x385   : > { %1233 = vadd.xlane.f32.xlu1 %v1232_v42  ;;  %1410 = vmatpush.msrb.mxu3 %v864_v48 }
 0x386   : > { %v6074_v45 = vpop.eup %6073 }
 0x387   : > { %v1225_v43 = vpop.xlane.xlu1 %1224  ;;  %v965_v4 = vmul.f32 %v6074_v45, %v6843_v51  ;;  %v6076_v50 = vpop.eup %6075  ;;  %1411 = vmatpush.msrb.mxu3 %v861_v52 }
 0x388   : > { %6077 = vrcp.f32 %v1225_v43  ;;  %v966_v51 = vmul.f32 %v6076_v50, %v6845_v53 }
 0x389   : > { %1412 = vmatpush.msrb.mxu3 %v858_v57 }
 0x38a   : > { %5472 = vmatmul.msk.f32.gmra.mxu3 %vm400_vm0, %v965_v4 }
 0x38e   : > { %v6078_v54 = vpop.eup %6077 }
 0x38f   : > { %v1239_v56 = vmul.f32 %v6078_v54, %v6851_v55  ;;  %v6338_v54 = vld [vmem:[%s8587_s1 + $0x18] sm:$0xff] }
 0x391   : > { %5482 = vmatmul.msk.f32.vlgmr.msrb.gmra.mxu1 %vm400_vm0, %v1239_v56 }
 0x392   : > { %5473 = vmatmul.msk.f32.gmra.mxu3 %vm400_vm0, %v966_v51 }
 0x3df   : > { %v1367_v58 = vpop.xlane.xlu0 %1366 }
 0x3e0   : > { %6079 = vrcp.f32 %v1367_v58 }
 0x3e6   : > { %v6080_v59 = vpop.eup %6079 }
 0x3e7   : > { %v1381_v60 = vmul.f32 %v6080_v59, %v6855_v0  ;;  %v1228_v61 = vpop.xlane.xlu0 %1227 }
 0x3e8   : > { %6081 = vrcp.f32 %v1228_v61  ;;  %v1370_v62 = vpop.xlane.xlu2 %1369 }
 0x3e9   : > { %6083 = vrcp.f32 %v1370_v62  ;;  %5494 = vmatmul.msk.f32.vlgmr.msrb.gmra.mxu3 %vm400_vm0, %v1381_v60 }
 0x3ee   : > { %v6082_v55 = vpop.eup %6081 }
 0x3ef   : > { %v6084_v63 = vpop.eup %6083  ;;  %v1373_v53 = vpop.xlane.xlu1 %1372  ;;  %v1240_v1 = vmul.f32 %v6082_v55, %v6860_v10 }
 0x3f0   : > { %6085 = vrcp.f32 %v1373_v53  ;;  %v1231_v2 = vpop.xlane.xlu2 %1230  ;;  %v1382_v3 = vmul.f32 %v6084_v63, %v6862_v14 }
 0x3f1   : > { %6087 = vrcp.f32 %v1231_v2  ;;  %5483 = vmatmul.msk.f32.gmra.mxu1 %vm400_vm0, %v1240_v1 }
 0x3f2   : > { %5495 = vmatmul.msk.f32.gmra.mxu3 %vm400_vm0, %v1382_v3 }
 0x3f6   : > { %v6086_v0 = vpop.eup %6085 }
 0x3f7   : > { %v6088_v6 = vpop.eup %6087  ;;  %v1376_v7 = vpop.xlane.xlu0 %1375  ;;  %v1383_v8 = vmul.f32 %v6086_v0, %v6870_v28 }
 0x3f8   : > { %v1234_v47 = vpop.xlane.xlu1 %1233  ;;  %6089 = vrcp.f32 %v1376_v7  ;;  %v1241_v9 = vmul.f32 %v6088_v6, %v6873_v16 }
 0x3f9   : > { %6091 = vrcp.f32 %v1234_v47 }
 0x3fa   : > { %5484 = vmatmul.msk.f32.gmra.mxu1 %vm400_vm0, %v1241_v9  ;;  %5496 = vmatmul.msk.f32.gmra.mxu3 %vm400_vm0, %v1383_v8 }
 0x3fd   : > { %v1134_v14 = vpop.f32.mrf.mxu3 }
 0x3fe   : > { %v6090_v10 = vpop.eup %6089  ;;  %v1135_v23 = vadd.f32 %v1134_v14, %v6809_v15 }
 0x3ff   : > { %v6092_v11 = vpop.eup %6091  ;;  %v1384_v12 = vmul.f32 %v6090_v10, %v6070_v25 }
 0x400   : > { %v1242_v13 = vmul.f32 %v6092_v11, %v6072_v37 }
 0x402   : > { %5485 = vmatmul.msk.f32.gmra.mxu1 %vm400_vm0, %v1242_v13  ;;  %5497 = vmatmul.msk.f32.gmra.mxu3 %vm400_vm0, %v1384_v12 }
 0x405   : > { %v1137_v21 = vpop.f32.mrf.mxu3 }
 0x406   : > { %v1138_v16 = vadd.f32 %v1137_v21, %v6811_v19 }
 0x40d   : > { %v1140_v5 = vpop.f32.mrf.mxu3 }
 0x40e   : > { %v1272_v18 = vpop.f32.mrf.mxu1  ;;  %v1141_v25 = vadd.f32 %v1140_v5, %v6813_v20 }
 0x40f   : > { %v1284_v24 = vadd.f32 %v1272_v18, %v1135_v23  ;;  %v5513_v18 = vld [vmem:[%s8588_s2 + $0x198] sm:$0xff]  ;;  %v5512_v23 = vld [vmem:[%s8588_s2 + $0x190] sm:$0xff] }
 0x410   : > { %1632 = vmatpush.msra.mxu1 %v5513_v18 }
 0x412   : > { %1633 = vmatpush.msra.mxu1 %v5512_v23 }
 0x415   : > { %v1143_v22 = vpop.f32.mrf.mxu3 }
 0x416   : > { %v1144_v4 = vadd.f32 %v1143_v22, %v6815_v44  ;;  %v6348_v44 = vmov 32.0  }
 0x417   : > { %6093 = vrcp.f32 %v6348_v44 }
 0x41d   : > { %v6094_v51 = vpop.eup %6093 }
 0x41e   : > { %v1458_v58 = vmul.f32 32.0, %v6094_v51  ;;  %vm1462_vm2 = vweird.f32 %v6094_v51 }
 0x420   : > { %v1459_v59 = vsub.f32 1.0, %v1458_v58 }
 0x422   : > { %v1460_v60 = vmul.f32 %v6094_v51, %v1459_v59  ;;  %v5554_v59 = vld [vmem:[%s8588_s2 + $0x1d0] sm:$0xff] }
 0x424   : > { %v1461_v61 = vadd.f32 %v6094_v51, %v1460_v60 }
 0x426   : > { %v6927_v62 = vsel %vm1462_vm2, %v6094_v51, %v1461_v61  ;;  %v5555_v51 = vld [vmem:[%s8588_s2 + $0x1d8] sm:$0xff] }
 0x46c   : > { %v1414_v26 = vpop.f32.mrf.mxu3 }
 0x46d   : > { %v1426_v27 = vadd.f32 %v1414_v26, %v1284_v24  ;;  %v5511_v24 = vld [vmem:[%s8588_s2 + $0x188] sm:$0xff]  ;;  %v6973_v26 = vld [vmem:[%s6967_s24] sm:$0xff] }
 0x46e   : > { %v1275_v28 = vpop.f32.mrf.mxu1  ;;  %1634 = vmatpush.msra.mxu1 %v5511_v24 }
 0x46f   : > { %v1433_v29 = vadd.f32 %v5972_v49, %v1426_v27  ;;  %v1285_v33 = vadd.f32 %v1275_v28, %v1138_v16  ;;  %v5534_v27 = vld [vmem:[%s8588_s2 + $0x1b8] sm:$0xff]  ;;  %v5533_v28 = vld [vmem:[%s8588_s2 + $0x1b0] sm:$0xff] }
 0x470   : > { %v5504_v16 = vld [vmem:[%s8588_s2 + $0x118] sm:$0xff] }
 0x471   : > { %v1437_v31 = vadd.f32 %v6335_v30, %v1433_v29  ;;  %v5532_v29 = vld [vmem:[%s8588_s2 + $0x1a8] sm:$0xff]  ;;  %v5531_v30 = vld [vmem:[%s8588_s2 + $0x1a0] sm:$0xff]  ;;  %1590 = vmatpush.msrb.mxu0 %v5504_v16 }
 0x473   : > { %v1445_v32 = vsel %vm400_vm0, %v1437_v31, 0.0 }
 0x474   : > { %1446 = vadd.xlane.f32.xlu2 %v1445_v32  ;;  %v5546_v32 = vld [vmem:[%s8588_s2 + $0x158] sm:$0xff] }
 0x475   : > { %v1417_v15 = vpop.f32.mrf.mxu3 }
 0x476   : > { %v1427_v35 = vadd.f32 %v1417_v15, %v1285_v33  ;;  %v5524_v33 = vld [vmem:[%s8588_s2 + $0x130] sm:$0xff] }
 0x477   : > { %v1278_v36 = vpop.f32.mrf.mxu1  ;;  %v5503_v15 = vld [vmem:[%s8588_s2 + $0x110] sm:$0xff] }
 0x478   : > { %v1434_v38 = vadd.f32 %v5972_v49, %v1427_v35  ;;  %v1286_v40 = vadd.f32 %v1278_v36, %v1141_v25  ;;  %v5545_v35 = vld [vmem:[%s8588_s2 + $0x150] sm:$0xff]  ;;  %1591 = vmatpush.msrb.mxu0 %v5503_v15  ;;  %v5502_v36 = vld [vmem:[%s8588_s2 + $0x108] sm:$0xff] }
 0x479   : > { %v5544_v25 = vld [vmem:[%s8588_s2 + $0x148] sm:$0xff] }
 0x47a   : > { %v1438_v37 = vadd.f32 %v6336_v39, %v1434_v38  ;;  %v5523_v38 = vld [vmem:[%s8588_s2 + $0x128] sm:$0xff]  ;;  %1592 = vmatpush.msrb.mxu0 %v5502_v36  ;;  %v5501_v39 = vld [vmem:[%s8588_s2 + $0x100] sm:$0xff] }
 0x47c   : > { %v1448_v41 = vsel %vm400_vm0, %v1438_v37, 0.0  ;;  %1593 = vmatpush.msrb.mxu0 %v5501_v39 }
 0x47d   : > { %1449 = vadd.xlane.f32.xlu0 %v1448_v41  ;;  %v1420_v19 = vpop.f32.mrf.mxu3  ;;  %v5519_v41 = vld [vmem:[%s8590_s4 + $0x98] sm:$0xff] }
 0x47e   : > { %v1428_v42 = vadd.f32 %v1420_v19, %v1286_v40  ;;  %v5543_v40 = vld [vmem:[%s8588_s2 + $0x140] sm:$0xff]  ;;  %1662 = vmatpush.msrb.mxu2 %v5519_v41  ;;  %v5518_v19 = vld [vmem:[%s8590_s4 + $0x90] sm:$0xff] }
 0x47f   : > { %v1281_v43 = vpop.f32.mrf.mxu1 }
 0x480   : > { %v1435_v45 = vadd.f32 %v5972_v49, %v1428_v42  ;;  %v1287_v46 = vadd.f32 %v1281_v43, %v1144_v4  ;;  %1663 = vmatpush.msrb.mxu2 %v5518_v19  ;;  %v5517_v43 = vld [vmem:[%s8590_s4 + $0x88] sm:$0xff] }
 0x482   : > { %v1439_v20 = vadd.f32 %v6337_v34, %v1435_v45  ;;  %1664 = vmatpush.msrb.mxu2 %v5517_v43  ;;  %v5516_v34 = vld [vmem:[%s8590_s4 + $0x80] sm:$0xff] }
 0x484   : > { %v1451_v48 = vsel %vm400_vm0, %v1439_v20, 0.0  ;;  %1665 = vmatpush.msrb.mxu2 %v5516_v34 }
 0x485   : > { %v1423_v17 = vpop.f32.mrf.mxu3  ;;  %1452 = vadd.xlane.f32.xlu1 %v1451_v48  ;;  %5521 = vmatmul.msk.f32.vlgmr.msrb.gmra.mxu2 %vm400_vm0, %v6973_v26 }
 0x486   : > { %v1429_v50 = vadd.f32 %v1423_v17, %v1287_v46  ;;  %v5539_v46 = vld [vmem:[%s8590_s4 + $0xb0] sm:$0xff] }
 0x488   : > { %v1436_v52 = vadd.f32 %v5972_v49, %v1429_v50  ;;  %v5510_v49 = vld [vmem:[%s8588_s2 + $0x180] sm:$0xff]  ;;  %v5538_v50 = vld [vmem:[%s8590_s4 + $0xa8] sm:$0xff] }
 0x489   : > { %1635 = vmatpush.msra.mxu1 %v5510_v49 }
 0x48a   : > { %v1440_v56 = vadd.f32 %v6338_v54, %v1436_v52  ;;  %5515 = vmatmul.msk.f32.vlgmr.msra.gmra.mxu1 %vm400_vm0, %v6973_v26 }
 0x48b   : > { %1731 = vmatpush.msrb.mxu1 %v5534_v27  ;;  %v5564_v27 = vld [vmem:[%s8588_s2 + $0x160] sm:$0xff] }
 0x48c   : > { %v1454_v57 = vsel %vm400_vm0, %v1440_v56, 0.0 }
 0x48d   : > { %1455 = vadd.xlane.f32.xlu2 %v1454_v57  ;;  %1732 = vmatpush.msrb.mxu1 %v5533_v28  ;;  %v5537_v57 = vld [vmem:[%s8590_s4 + $0xa0] sm:$0xff] }
 0x48f   : > { %1733 = vmatpush.msrb.mxu1 %v5532_v29 }
 0x491   : > { %1734 = vmatpush.msrb.mxu1 %v5531_v30 }
 0x492   : > { %5536 = vmatmul.msk.f32.vlgmr.msrb.gmra.mxu1 %vm400_vm0, %v6973_v26 }
 0x493   : > { %1791 = vmatpush.msra.mxu1 %v5546_v32 }
 0x495   : > { %1792 = vmatpush.msra.mxu1 %v5545_v35 }
 0x497   : > { %1793 = vmatpush.msra.mxu1 %v5544_v25 }
 0x499   : > { %1794 = vmatpush.msra.mxu1 %v5543_v40 }
 0x4e7   : > { %v1447_v55 = vpop.xlane.xlu2 %1446 }
 0x4e8   : > { %v1464_v63 = vmul.f32 %v6927_v62, %v1447_v55 }
 0x4ea   : > { %v6930_v53 = vsub.f32 %v1437_v31, %v1464_v63  ;;  %v5525_v31 = vld [vmem:[%s8588_s2 + $0x138] sm:$0xff]  ;;  %v5553_v63 = vld [vmem:[%s8588_s2 + $0x1c8] sm:$0xff] }
 0x4eb   : > { %1692 = vmatpush.msra.mxu3 %v5525_v31 }
 0x4ec   : > { %v1472_v1 = vmul.f32 %v6930_v53, %v6930_v53 }
 0x4ed   : > { %1693 = vmatpush.msra.mxu3 %v5524_v33 }
 0x4ee   : > { %v1476_v2 = vsel %vm400_vm0, %v1472_v1, 0.0  ;;  %v5552_v1 = vld [vmem:[%s8588_s2 + $0x1c0] sm:$0xff] }
 0x4ef   : > { %1477 = vadd.xlane.f32.xlu0 %v1476_v2  ;;  %1694 = vmatpush.msra.mxu3 %v5523_v38 }
 0x4f0   : > { %v1450_v3 = vpop.xlane.xlu0 %1449 }
 0x4f1   : > { %v1465_v0 = vmul.f32 %v6927_v62, %v1450_v3 }
 0x4f3   : > { %v6936_v6 = vsub.f32 %v1438_v37, %v1465_v0  ;;  %v5522_v37 = vld [vmem:[%s8588_s2 + $0x120] sm:$0xff] }
 0x4f4   : > { %1695 = vmatpush.msra.mxu3 %v5522_v37 }
 0x4f5   : > { %v1473_v7 = vmul.f32 %v6936_v6, %v6936_v6 }
 0x4f7   : > { %v1479_v8 = vsel %vm400_vm0, %v1473_v7, 0.0  ;;  %v7073_v7 = vld [vmem:[%s8595_s9 + $0x3] ss:$0 sm:$0xff] }
 0x4f8   : > { %1480 = vadd.xlane.f32.xlu1 %v1479_v8  ;;  %v1453_v47 = vpop.xlane.xlu1 %1452 }
 0x4f9   : > { %v1466_v9 = vmul.f32 %v6927_v62, %v1453_v47 }
 0x4fb   : > { %v6942_v10 = vsub.f32 %v1439_v20, %v1466_v9  ;;  %v5540_v20 = vld [vmem:[%s8590_s4 + $0xb8] sm:$0xff] }
 0x4fc   : > { %1761 = vmatpush.msra.mxu2 %v5540_v20 }
 0x4fd   : > { %v1474_v11 = vmul.f32 %v6942_v10, %v6942_v10 }
 0x4fe   : > { %1762 = vmatpush.msra.mxu2 %v5539_v46 }
 0x4ff   : > { %v1482_v12 = vsel %vm400_vm0, %v1474_v11, 0.0 }
 0x500   : > { %1483 = vadd.xlane.f32.xlu2 %v1482_v12  ;;  %v1456_v13 = vpop.xlane.xlu2 %1455  ;;  %1763 = vmatpush.msra.mxu2 %v5538_v50  ;;  %v5974_v12 = vld [vmem:[%s8595_s9 + $0x6] ss:$0 sm:$0xff] }
 0x501   : > { %v1467_v14 = vmul.f32 %v6927_v62, %v1456_v13  ;;  %v5567_v13 = vld [vmem:[%s8588_s2 + $0x178] sm:$0xff]  ;;  %v5558_v50 = vld [vmem:[%s8590_s4 + $0xc0] sm:$0xff] }
 0x502   : > { %1764 = vmatpush.msra.mxu2 %v5537_v57  ;;  %1890 = vmatpush.msra.mxu0 %v5567_v13  ;;  %v5574_v57 = vld [vmem:[%s8588_s2 + $0x1e8] sm:$0xff] }
 0x503   : > { %v6948_v21 = vsub.f32 %v1440_v56, %v1467_v14  ;;  %5542 = vmatmul.msk.f32.vlgmr.msra.gmra.mxu2 %vm400_vm0, %v6973_v26  ;;  %v5566_v14 = vld [vmem:[%s8588_s2 + $0x170] sm:$0xff] }
 0x504   : > { %1830 = vmatpush.msrb.mxu2 %v5555_v51  ;;  %1891 = vmatpush.msra.mxu0 %v5566_v14  ;;  %v5581_v51 = vld [vmem:[%s8590_s4 + $0xf0] sm:$0xff] }
 0x505   : > { %v1475_v5 = vmul.f32 %v6948_v21, %v6948_v21 }
 0x506   : > { %1831 = vmatpush.msrb.mxu2 %v5554_v59  ;;  %v5975_v59 = vld [vmem:[%s8589_s3 + $0xc] ss:$0 sm:$0xff] }
 0x507   : > { %v1485_v22 = vsel %vm400_vm0, %v1475_v5, 0.0 }
 0x508   : > { %1486 = vadd.xlane.f32.xlu0 %v1485_v22  ;;  %1832 = vmatpush.msrb.mxu2 %v5553_v63 }
 0x50a   : > { %1833 = vmatpush.msrb.mxu2 %v5552_v1 }
 0x50b   : > { %5557 = vmatmul.msk.f32.vlgmr.msrb.gmra.mxu2 %vm400_vm0, %v6973_v26 }
 0x562   : > { %v1478_v42 = vpop.xlane.xlu0 %1477 }
 0x563   : > { %v1488_v45 = vmul.f32 %v1478_v42, %v6927_v62 }
 0x565   : > { %v1492_v4 = vadd.f32 1e-05, %v1488_v45 }
 0x567   : > { %6095 = vrsqrt.f32 %v1492_v4  ;;  %vm1502_vm4 = vweird.f32 %v1492_v4 }
 0x56b   : > { %v1481_v48 = vpop.xlane.xlu1 %1480 }
 0x56c   : > { %v1489_v17 = vmul.f32 %v1481_v48, %v6927_v62  ;;  %v5561_v48 = vld [vmem:[%s8590_s4 + $0xd8] sm:$0xff] }
 0x56d   : > { %v6096_v52 = vpop.eup %6095  ;;  %1860 = vmatpush.msra.mxu2 %v5561_v48 }
 0x56e   : > { %v1497_v54 = vmul.f32 %v6096_v52, %v1492_v4  ;;  %v1493_v56 = vadd.f32 1e-05, %v1489_v17  ;;  %vm1503_vm3 = vweird.f32 %v6096_v52  ;;  %v5560_v17 = vld [vmem:[%s8590_s4 + $0xd0] sm:$0xff] }
 0x56f   : > { %vm1504_vm5 = vmor %vm1502_vm4, %vm1503_vm3  ;;  %1861 = vmatpush.msra.mxu2 %v5560_v17  ;;  %v5986_v17 = vld [vmem:[%s8591_s5 + $0x7] ss:$0 sm:$0xff] }
 0x570   : > { %v1498_v44 = vmul.f32 %v6096_v52, %v1497_v54  ;;  %6097 = vrsqrt.f32 %v1493_v56  ;;  %vm1512_vm7 = vweird.f32 %v1493_v56  ;;  %v5576_v54 = vld [vmem:[%s8588_s2 + $0x1f8] sm:$0xff] }
 0x572   : > { %v1499_v58 = vmul.f32 0.5, %v1498_v44  ;;  %v5573_v44 = vld [vmem:[%s8588_s2 + $0x1e0] sm:$0xff] }
 0x573   : > { %v1484_v60 = vpop.xlane.xlu2 %1483 }
 0x574   : > { %v1500_v61 = vsub.f32 1.5, %v1499_v58  ;;  %v1490_v55 = vmul.f32 %v1484_v60, %v6927_v62  ;;  %v5580_v58 = vld [vmem:[%s8590_s4 + $0xe8] sm:$0xff]  ;;  %v1637_v60 = vpop.f32.mrf.mxu1 }
 0x576   : > { %v6098_v2 = vpop.eup %6097  ;;  %v1501_v3 = vmul.f32 %v6096_v52, %v1500_v61  ;;  %v1494_v0 = vadd.f32 1e-05, %v1490_v55  ;;  %v1638_v61 = vadd.f32 %v5975_v59, %v1637_v60  ;;  %v5976_v55 = vld [vmem:[%s8589_s3 + $0xd] ss:$0 sm:$0xff] }
 0x577   : > { %v1507_v8 = vmul.f32 %v6098_v2, %v1493_v56  ;;  %vm1513_vm6 = vweird.f32 %v6098_v2  ;;  %v5575_v56 = vld [vmem:[%s8588_s2 + $0x1f0] sm:$0xff] }
 0x578   : > { %v1505_v47 = vsel %vm1504_vm5, %v6096_v52, %v1501_v3  ;;  %6099 = vrsqrt.f32 %v1494_v0  ;;  %vm1514_vm8 = vmor %vm1512_vm7, %vm1513_vm6  ;;  %vm1522_vm10 = vweird.f32 %v1494_v0  ;;  %v5582_v52 = vld [vmem:[%s8590_s4 + $0xf8] sm:$0xff]  ;;  %v5980_v3 = vld [vmem:[%s8591_s5 + $0x4] ss:$0 sm:$0xff] }
 0x579   : > { %v1536_v9 = vmul.f32 %v1505_v47, %v6930_v53  ;;  %v1508_v11 = vmul.f32 %v6098_v2, %v1507_v8  ;;  %v5565_v53 = vld [vmem:[%s8588_s2 + $0x168] sm:$0xff]  ;;  %1959 = vmatpush.msrb.mxu3 %v5582_v52  ;;  %v5981_v8 = vld [vmem:[%s8591_s5 + $0x5] ss:$0 sm:$0xff] }
 0x57a   : > { %1892 = vmatpush.msra.mxu0 %v5565_v53 }
 0x57b   : > { %v1543_v5 = vmul.f32 %v7073_v7, %v1536_v9  ;;  %v1509_v22 = vmul.f32 0.5, %v1508_v11  ;;  %v1487_v18 = vpop.xlane.xlu0 %1486  ;;  %1960 = vmatpush.msrb.mxu3 %v5581_v51  ;;  %v5977_v11 = vld [vmem:[%s8589_s3 + $0x8] ss:$0 sm:$0xff] }
 0x57c   : > { %v1491_v23 = vmul.f32 %v1487_v18, %v6927_v62  ;;  %1893 = vmatpush.msra.mxu0 %v5564_v27  ;;  %v1736_v63 = vpop.f32.mrf.mxu1 }
 0x57d   : > { %v1510_v24 = vsub.f32 1.5, %v1509_v22  ;;  %v7092_v49 = vadd.f32 %v5974_v12, %v1543_v5  ;;  %1961 = vmatpush.msrb.mxu3 %v5580_v58  ;;  %v1737_v1 = vadd.f32 %v5976_v55, %v1736_v63  ;;  %v5979_v22 = vld [vmem:[%s8589_s3 + $0x9] ss:$0 sm:$0xff] }
 0x57e   : > { %v6100_v28 = vpop.eup %6099  ;;  %v1495_v29 = vadd.f32 1e-05, %v1491_v23 }
 0x57f   : > { %v1511_v30 = vmul.f32 %v6098_v2, %v1510_v24  ;;  %v1517_v31 = vmul.f32 %v6100_v28, %v1494_v0  ;;  %5506 = vmatmul.msk.f32.vlgmr.msrb.gmra.mxu0 %vm400_vm0, %v7092_v49  ;;  %5527 = vmatmul.msk.f32.vlgmr.msra.gmra.mxu3 %vm400_vm0, %v7092_v49  ;;  %vm1523_vm9 = vweird.f32 %v6100_v28  ;;  %v1667_v0 = vpop.f32.mrf.mxu2 }
 0x580   : > { %6101 = vrsqrt.f32 %v1495_v29  ;;  %5548 = vmatmul.msk.f32.vlgmr.msra.gmra.mxu1 %vm400_vm0, %v7092_v49  ;;  %vm1524_vm11 = vmor %vm1522_vm10, %vm1523_vm9  ;;  %vm1532_vm13 = vweird.f32 %v1495_v29 }
 0x581   : > { %v1515_v16 = vsel %vm1514_vm8, %v6098_v2, %v1511_v30  ;;  %v1518_v32 = vmul.f32 %v6100_v28, %v1517_v31  ;;  %v5579_v2 = vld [vmem:[%s8590_s4 + $0xe0] sm:$0xff] }
 0x582   : > { %v1537_v33 = vmul.f32 %v1515_v16, %v6936_v6  ;;  %1962 = vmatpush.msrb.mxu3 %v5579_v2 }
 0x583   : > { %v1519_v15 = vmul.f32 0.5, %v1518_v32 }
 0x584   : > { %v1544_v35 = vmul.f32 %v7073_v7, %v1537_v33  ;;  %5590 = vmatpush.xpose.msk.msra.mxu3 %vm869_vm1, %v1737_v1 }
 0x585   : > { %v1520_v36 = vsub.f32 1.5, %v1519_v15 }
 0x586   : > { %v6102_v38 = vpop.eup %6101  ;;  %v7105_v25 = vadd.f32 %v5974_v12, %v1544_v35  ;;  %v5978_v35 = vld [vmem:[%s8589_s3 + $0xa] ss:$0 sm:$0xff] }
 0x587   : > { %v1521_v39 = vmul.f32 %v6100_v28, %v1520_v36  ;;  %v1527_v37 = vmul.f32 %v6102_v38, %v1495_v29  ;;  %vm1533_vm12 = vweird.f32 %v6102_v38  ;;  %v1766_v47 = vpop.f32.mrf.mxu2 }
 0x588   : > { %5507 = vmatmul.msk.f32.gmra.mxu0 %vm400_vm0, %v7105_v25  ;;  %5528 = vmatmul.msk.f32.gmra.mxu3 %vm400_vm0, %v7105_v25  ;;  %vm1534_vm14 = vmor %vm1532_vm13, %vm1533_vm12  ;;  %v1767_v9 = vadd.f32 %v5981_v8, %v1766_v47  ;;  %vm2674_vm13 = vcmask 523264  }
 0x589   : > { %v1525_v40 = vsel %vm1524_vm11, %v6100_v28, %v1521_v39  ;;  %v1528_v6 = vmul.f32 %v6102_v38, %v1527_v37  ;;  %5549 = vmatmul.msk.f32.gmra.mxu1 %vm400_vm0, %v7105_v25 }
 0x58a   : > { %v1538_v41 = vmul.f32 %v1525_v40, %v6942_v10  ;;  %2170 = vmatpush.msrb.mxu1 %v1767_v9 }
 0x58b   : > { %v1529_v19 = vmul.f32 0.5, %v1528_v6 }
 0x58c   : > { %v1545_v42 = vmul.f32 %v7073_v7, %v1538_v41 }
 0x58d   : > { %v1530_v45 = vsub.f32 1.5, %v1529_v19  ;;  %v5984_v19 = vld [vmem:[%s8591_s5 + $0x6] ss:$0 sm:$0xff] }
 0x58e   : > { %v7115_v43 = vadd.f32 %v5974_v12, %v1545_v42 }
 0x58f   : > { %v1531_v4 = vmul.f32 %v6102_v38, %v1530_v45 }
 0x590   : > { %5508 = vmatmul.msk.f32.gmra.mxu0 %vm400_vm0, %v7115_v43  ;;  %5529 = vmatmul.msk.f32.gmra.mxu3 %vm400_vm0, %v7115_v43 }
 0x591   : > { %v1535_v34 = vsel %vm1534_vm14, %v6102_v38, %v1531_v4  ;;  %5550 = vmatmul.msk.f32.gmra.mxu1 %vm400_vm0, %v7115_v43 }
 0x592   : > { %v1539_v10 = vmul.f32 %v1535_v34, %v6948_v21  ;;  %v5559_v21 = vld [vmem:[%s8590_s4 + $0xc8] sm:$0xff] }
 0x593   : > { %1862 = vmatpush.msra.mxu2 %v5559_v21 }
 0x594   : > { %v1546_v20 = vmul.f32 %v7073_v7, %v1539_v10  ;;  %v1668_v7 = vadd.f32 %v5980_v3, %v1667_v0  ;;  %v5985_v10 = vld [vmem:[%s8589_s3 + $0xf] ss:$0 sm:$0xff] }
 0x595   : > { %1863 = vmatpush.msra.mxu2 %v5558_v50 }
 0x596   : > { %v7125_v46 = vadd.f32 %v5974_v12, %v1546_v20  ;;  %5563 = vmatmul.msk.f32.vlgmr.msra.gmra.mxu2 %vm400_vm0, %v6973_v26  ;;  %2211 = vmatpush.msrb.mxu0 %v1668_v7  ;;  %v1835_v12 = vpop.f32.mrf.mxu2 }
 0x597   : > { %1929 = vmatpush.msrb.mxu2 %v5576_v54 }
 0x598   : > { %5509 = vmatmul.msk.f32.gmra.mxu0 %vm400_vm0, %v7125_v46  ;;  %5530 = vmatmul.msk.f32.gmra.mxu3 %vm400_vm0, %v7125_v46 }
 0x599   : > { %5551 = vmatmul.msk.f32.gmra.mxu1 %vm400_vm0, %v7125_v46  ;;  %1930 = vmatpush.msrb.mxu2 %v5575_v56 }
 0x59b   : > { %1931 = vmatpush.msrb.mxu2 %v5574_v57 }
 0x59d   : > { %1932 = vmatpush.msrb.mxu2 %v5573_v44 }
 0x59e   : > { %5578 = vmatmul.msk.f32.vlgmr.msrb.gmra.mxu2 %vm400_vm0, %v6973_v26 }
 0x59f   : > { %5585 = vmatpush.xpose.msk.msra.mxu2 %vm869_vm1, %v1638_v61 }
 0x5a0   : > { %5569 = vmatmul.msk.f32.vlgmr.msra.gmra.mxu0 %vm400_vm0, %v7092_v49  ;;  %5584 = vmatmul.msk.f32.vlgmr.msrb.gmra.mxu3 %vm400_vm0, %v6973_v26  ;;  %v5982_v26 = vld [vmem:[%s8589_s3 + $0xe] ss:$0 sm:$0xff] }
 0x5a1   : > { %v1836_v14 = vadd.f32 %v5982_v26, %v1835_v12 }
 0x5a3   : > { %5603 = vmatpush.xpose.msk.msrb.mxu2 %vm869_vm1, %v1836_v14 }
 0x5a8   : > { %5570 = vmatmul.msk.f32.gmra.mxu0 %vm400_vm0, %v7105_v25 }
 0x5b0   : > { %5571 = vmatmul.msk.f32.gmra.mxu0 %vm400_vm0, %v7115_v43 }
 0x5b8   : > { %5572 = vmatmul.msk.f32.gmra.mxu0 %vm400_vm0, %v7125_v46 }
 0x5fc   : > { %v1595_v13 = vpop.f32.mrf.mxu0 }
 0x5fd   : > { %v1596_v5 = vadd.f32 %v5977_v11, %v1595_v13  ;;  %v1796_v32 = vpop.f32.mrf.mxu1 }
 0x5fe   : > { %v1797_v39 = vadd.f32 %v5978_v35, %v1796_v32 }
 0x5ff   : > { %5586 = vmatmul.msk.f32.vlgmr.msra.gmra.mxu2 %vm869_vm1, %v1596_v5 }
 0x602   : > { %v1697_v18 = vpop.f32.mrf.mxu3 }
 0x603   : > { %v1698_v53 = vadd.f32 %v5979_v22, %v1697_v18 }
 0x605   : > { %v1598_v23 = vpop.f32.mrf.mxu0  ;;  %5591 = vmatmul.msk.f32.vlgmr.msra.gmra.mxu3 %vm869_vm1, %v1698_v53 }
 0x606   : > { %v1599_v24 = vadd.f32 %v5977_v11, %v1598_v23  ;;  %v1799_v37 = vpop.f32.mrf.mxu1 }
 0x607   : > { %v1800_v40 = vadd.f32 %v5978_v35, %v1799_v37 }
 0x608   : > { %5587 = vmatmul.msk.f32.gmra.mxu2 %vm869_vm1, %v1599_v24 }
 0x60b   : > { %v1700_v27 = vpop.f32.mrf.mxu3 }
 0x60c   : > { %v1701_v28 = vadd.f32 %v5979_v22, %v1700_v27 }
 0x60d   : > { %v1601_v29 = vpop.f32.mrf.mxu0 }
 0x60e   : > { %v1602_v30 = vadd.f32 %v5977_v11, %v1601_v29  ;;  %5592 = vmatmul.msk.f32.gmra.mxu3 %vm869_vm1, %v1701_v28  ;;  %v1802_v6 = vpop.f32.mrf.mxu1 }
 0x60f   : > { %v1803_v41 = vadd.f32 %v5978_v35, %v1802_v6 }
 0x610   : > { %5588 = vmatmul.msk.f32.gmra.mxu2 %vm869_vm1, %v1602_v30 }
 0x613   : > { %v1703_v31 = vpop.f32.mrf.mxu3 }
 0x614   : > { %v1704_v16 = vadd.f32 %v5979_v22, %v1703_v31 }
 0x615   : > { %v1604_v33 = vpop.f32.mrf.mxu0 }
 0x616   : > { %v1605_v15 = vadd.f32 %v5977_v11, %v1604_v33  ;;  %5593 = vmatmul.msk.f32.gmra.mxu3 %vm869_vm1, %v1704_v16  ;;  %v1805_v42 = vpop.f32.mrf.mxu1 }
 0x617   : > { %v1806_v4 = vadd.f32 %v5978_v35, %v1805_v42 }
 0x618   : > { %5589 = vmatmul.msk.f32.gmra.mxu2 %vm869_vm1, %v1605_v15 }
 0x619   : > { %v1865_v45 = vpop.f32.mrf.mxu2 }
 0x61a   : > { %v1866_v34 = vadd.f32 %v5984_v19, %v1865_v45 }
 0x61b   : > { %v1706_v36 = vpop.f32.mrf.mxu3 }
 0x61c   : > { %v1707_v38 = vadd.f32 %v5979_v22, %v1706_v36  ;;  %2340 = vmatpush.msrb.mxu3 %v1866_v34 }
 0x61e   : > { %5594 = vmatmul.msk.f32.gmra.mxu3 %vm869_vm1, %v1707_v38 }
 0x620   : > { %5604 = vmatmul.msk.f32.vlgmr.msrb.gmra.mxu2 %vm869_vm1, %v1797_v39 }
 0x621   : > { %v1934_v20 = vpop.f32.mrf.mxu2 }
 0x622   : > { %v1935_v48 = vadd.f32 %v5985_v10, %v1934_v20  ;;  %v1895_v10 = vpop.f32.mrf.mxu0 }
 0x623   : > { %v1964_v21 = vpop.f32.mrf.mxu3 }
 0x624   : > { %5612 = vmatpush.xpose.msk.msra.mxu1 %vm869_vm1, %v1935_v48  ;;  %v1965_v50 = vadd.f32 %v5986_v17, %v1964_v21  ;;  %v5983_v48 = vld [vmem:[%s8589_s3 + $0xb] ss:$0 sm:$0xff] }
 0x625   : > { %v1896_v17 = vadd.f32 %v5983_v48, %v1895_v10 }
 0x626   : > { %2473 = vmatpush.msra.mxu0 %v1965_v50 }
 0x628   : > { %5605 = vmatmul.msk.f32.gmra.mxu2 %vm869_vm1, %v1800_v40 }
 0x62a   : > { %v1898_v21 = vpop.f32.mrf.mxu0 }
 0x62b   : > { %v1899_v50 = vadd.f32 %v5983_v48, %v1898_v21 }
 0x630   : > { %5606 = vmatmul.msk.f32.gmra.mxu2 %vm869_vm1, %v1803_v41 }
 0x638   : > { %5607 = vmatmul.msk.f32.gmra.mxu2 %vm869_vm1, %v1806_v4 }
 0x682   : > { %v7236_v60 = vpop.f32.mrf.mxu2 }
 0x683   : > { %v2011_v24 = vsel %vm869_vm1, %v7236_v60, -inf }
 0x688   : > { %v2087_v52 = vpop.f32.mrf.mxu3 }
 0x689   : > { %v2099_v54 = vsel %vm869_vm1, %v2087_v52, -inf }
 0x68a   : > { %2100 = vmax.xlane.f32.xlu1 %v2099_v54 }
 0x68b   : > { %v7238_v61 = vpop.f32.mrf.mxu2 }
 0x68c   : > { %v2014_v30 = vsel %vm869_vm1, %v7238_v61, -inf }
 0x691   : > { %v2090_v56 = vpop.f32.mrf.mxu3 }
 0x692   : > { %v2102_v57 = vsel %vm869_vm1, %v2090_v56, -inf }
 0x693   : > { %2103 = vmax.xlane.f32.xlu2 %v2102_v57  ;;  %v7240_v3 = vpop.f32.mrf.mxu2 }
 0x694   : > { %v2017_v32 = vsel %vm869_vm1, %v7240_v3, -inf }
 0x699   : > { %v2093_v44 = vpop.f32.mrf.mxu3 }
 0x69a   : > { %v2105_v51 = vsel %vm869_vm1, %v2093_v44, -inf }
 0x69b   : > { %2106 = vmax.xlane.f32.xlu0 %v2105_v51  ;;  %v7243_v12 = vpop.f32.mrf.mxu2 }
 0x69c   : > { %v2020_v31 = vsel %vm869_vm1, %v7243_v12, -inf }
 0x6a1   : > { %v2096_v58 = vpop.f32.mrf.mxu3 }
 0x6a2   : > { %v2108_v59 = vsel %vm869_vm1, %v2096_v58, -inf }
 0x6a3   : > { %2109 = vmax.xlane.f32.xlu1 %v2108_v59  ;;  %v7249_v27 = vpop.f32.mrf.mxu2 }
 0x6a4   : > { %v2269_v33 = vsel %vm869_vm1, %v7249_v27, -inf }
 0x6ab   : > { %v7256_v16 = vpop.f32.mrf.mxu2 }
 0x6ac   : > { %v2272_v35 = vsel %vm869_vm1, %v7256_v16, -inf }
 0x6b3   : > { %v7262_v15 = vpop.f32.mrf.mxu2 }
 0x6b4   : > { %v2275_v36 = vsel %vm869_vm1, %v7262_v15, -inf }
 0x6fd   : > { %v2101_v55 = vpop.xlane.xlu1 %2100 }
 0x6fe   : > { %v2111_v63 = vsub.f32 %v2087_v52, %v2101_v55  ;;  %v1901_v52 = vpop.f32.mrf.mxu0 }
 0x6ff   : > { %v1902_v54 = vadd.f32 %v5983_v48, %v1901_v52 }
 0x700   : > { %v2115_v1 = vmul.f32 1.442695, %v2111_v63 }
 0x702   : > { %6103 = vpow2.f32 %v2115_v1 }
 0x706   : > { %v2104_v2 = vpop.xlane.xlu2 %2103 }
 0x707   : > { %v2112_v0 = vsub.f32 %v2090_v56, %v2104_v2  ;;  %v1904_v56 = vpop.f32.mrf.mxu0 }
 0x708   : > { %v6104_v7 = vpop.eup %6103  ;;  %v1905_v57 = vadd.f32 %v5983_v48, %v1904_v56 }
 0x709   : > { %v2117_v8 = vmul.f32 1.442695, %v2112_v0  ;;  %v2123_v47 = vsel %vm869_vm1, %v6104_v7, 0.0 }
 0x70a   : > { %2124 = vadd.xlane.f32.xlu2 %v2123_v47  ;;  %v7292_v47 = vpop.f32.mrf.mxu2 }
 0x70b   : > { %6105 = vpow2.f32 %v2117_v8 }
 0x70e   : > { %v2107_v9 = vpop.xlane.xlu0 %2106 }
 0x70f   : > { %v2113_v26 = vsub.f32 %v2093_v44, %v2107_v9 }
 0x711   : > { %v6106_v11 = vpop.eup %6105  ;;  %v2119_v13 = vmul.f32 1.442695, %v2113_v26 }
 0x712   : > { %v2126_v14 = vsel %vm869_vm1, %v6106_v11, 0.0 }
 0x713   : > { %6107 = vpow2.f32 %v2119_v13  ;;  %2127 = vadd.xlane.f32.xlu0 %v2126_v14 }
 0x716   : > { %v2110_v5 = vpop.xlane.xlu1 %2109 }
 0x717   : > { %v2114_v22 = vsub.f32 %v2096_v58, %v2110_v5 }
 0x719   : > { %v6108_v18 = vpop.eup %6107  ;;  %v2121_v53 = vmul.f32 1.442695, %v2114_v22 }
 0x71a   : > { %v2129_v23 = vsel %vm869_vm1, %v6108_v18, 0.0 }
 0x71b   : > { %6109 = vpow2.f32 %v2121_v53  ;;  %2130 = vadd.xlane.f32.xlu1 %v2129_v23  ;;  %2012 = vmax.xlane.f32.xlu0 %v2011_v24 }
 0x721   : > { %v6110_v28 = vpop.eup %6109 }
 0x722   : > { %v2132_v29 = vsel %vm869_vm1, %v6110_v28, 0.0 }
 0x723   : > { %2133 = vadd.xlane.f32.xlu2 %v2132_v29  ;;  %2015 = vmax.xlane.f32.xlu1 %v2014_v30 }
 0x724   : > { %2021 = vmax.xlane.f32.xlu0 %v2020_v31 }
 0x72b   : > { %2018 = vmax.xlane.f32.xlu2 %v2017_v32  ;;  %2270 = vmax.xlane.f32.xlu1 %v2269_v33 }
 0x733   : > { %2273 = vmax.xlane.f32.xlu2 %v2272_v35  ;;  %2276 = vmax.xlane.f32.xlu1 %v2275_v36 }
 0x77d   : > { %v2125_v38 = vpop.xlane.xlu2 %2124 }
 0x77e   : > { %6111 = vrcp.f32 %v2125_v38 }
 0x784   : > { %v6112_v39 = vpop.eup %6111 }
 0x785   : > { %v2139_v37 = vmul.f32 %v6112_v39, %v6104_v7 }
 0x786   : > { %v2128_v40 = vpop.xlane.xlu0 %2127 }
 0x787   : > { %6113 = vrcp.f32 %v2128_v40  ;;  %5595 = vmatmul.msk.f32.vlgmr.msrb.gmra.mxu1 %vm869_vm1, %v2139_v37 }
 0x78d   : > { %v6114_v6 = vpop.eup %6113 }
 0x78e   : > { %v2131_v41 = vpop.xlane.xlu1 %2130  ;;  %v2140_v19 = vmul.f32 %v6114_v6, %v6106_v11  ;;  %v2013_v55 = vpop.xlane.xlu0 %2012 }
 0x78f   : > { %6115 = vrcp.f32 %v2131_v41  ;;  %v2023_v63 = vsub.f32 %v7236_v60, %v2013_v55  ;;  %v2278_v60 = vsel %vm869_vm1, %v7292_v47, -inf }
 0x790   : > { %5596 = vmatmul.msk.f32.gmra.mxu1 %vm869_vm1, %v2140_v19 }
 0x791   : > { %v2027_v8 = vmul.f32 1.442695, %v2023_v63 }
 0x795   : > { %v6116_v42 = vpop.eup %6115 }
 0x796   : > { %v2134_v45 = vpop.xlane.xlu2 %2133  ;;  %v2141_v4 = vmul.f32 %v6116_v42, %v6108_v18  ;;  %v2016_v2 = vpop.xlane.xlu1 %2015 }
 0x797   : > { %6117 = vrcp.f32 %v2134_v45  ;;  %v2024_v9 = vsub.f32 %v7238_v61, %v2016_v2  ;;  %v2022_v23 = vpop.xlane.xlu0 %2021 }
 0x798   : > { %5597 = vmatmul.msk.f32.gmra.mxu1 %vm869_vm1, %v2141_v4  ;;  %6119 = vpow2.f32 %v2027_v8 }
 0x799   : > { %v2029_v14 = vmul.f32 1.442695, %v2024_v9 }
 0x79b   : > { %6121 = vpow2.f32 %v2029_v14 }
 0x79d   : > { %v6118_v34 = vpop.eup %6117 }
 0x79e   : > { %v2142_v20 = vmul.f32 %v6118_v34, %v6110_v28  ;;  %v2019_v7 = vpop.xlane.xlu2 %2018  ;;  %v2271_v5 = vpop.xlane.xlu1 %2270  ;;  %v2026_v28 = vsub.f32 %v7243_v12, %v2022_v23 }
 0x79f   : > { %v2025_v26 = vsub.f32 %v7240_v3, %v2019_v7  ;;  %v7299_v53 = vpop.eup %6119  ;;  %v2281_v61 = vsub.f32 %v7249_v27, %v2271_v5 }
 0x7a0   : > { %5598 = vmatmul.msk.f32.gmra.mxu1 %vm869_vm1, %v2142_v20  ;;  %v2035_v29 = vsel %vm869_vm1, %v7299_v53, 0.0  ;;  %v2033_v35 = vmul.f32 1.442695, %v2026_v28 }
 0x7a1   : > { %v2031_v22 = vmul.f32 1.442695, %v2025_v26  ;;  %v2285_v31 = vmul.f32 1.442695, %v2281_v61  ;;  %v7307_v33 = vpop.eup %6121 }
 0x7a2   : > { %v2038_v39 = vsel %vm869_vm1, %v7307_v33, 0.0 }
 0x7a3   : > { %6123 = vpow2.f32 %v2031_v22 }
 0x7a4   : > { %6125 = vpow2.f32 %v2285_v31 }
 0x7a6   : > { %v2274_v18 = vpop.xlane.xlu2 %2273  ;;  %v2277_v36 = vpop.xlane.xlu1 %2276 }
 0x7a7   : > { %v2282_v3 = vsub.f32 %v7256_v16, %v2274_v18  ;;  %v2283_v16 = vsub.f32 %v7262_v15, %v2277_v36 }
 0x7a8   : > { %5613 = vmatmul.msk.f32.vlgmr.msra.gmra.mxu1 %vm869_vm1, %v1896_v17 }
 0x7a9   : > { %v2287_v32 = vmul.f32 1.442695, %v2282_v3  ;;  %v7309_v27 = vpop.eup %6123  ;;  %v2289_v40 = vmul.f32 1.442695, %v2283_v16 }
 0x7aa   : > { %v2041_v38 = vsel %vm869_vm1, %v7309_v27, 0.0  ;;  %v7317_v6 = vpop.eup %6125 }
 0x7ab   : > { %6127 = vpow2.f32 %v2287_v32  ;;  %v2293_v42 = vsel %vm869_vm1, %v7317_v6, 0.0 }
 0x7ac   : > { %6129 = vpow2.f32 %v2033_v35 }
 0x7ad   : > { %6131 = vpow2.f32 %v2289_v40 }
 0x7b0   : > { %5614 = vmatmul.msk.f32.gmra.mxu1 %vm869_vm1, %v1899_v50 }
 0x7b1   : > { %v7319_v41 = vpop.eup %6127 }
 0x7b2   : > { %v7321_v19 = vpop.eup %6129  ;;  %v2296_v15 = vsel %vm869_vm1, %v7319_v41, 0.0 }
 0x7b3   : > { %v2044_v45 = vsel %vm869_vm1, %v7321_v19, 0.0  ;;  %v7329_v4 = vpop.eup %6131 }
 0x7b4   : > { %v2299_v34 = vsel %vm869_vm1, %v7329_v4, 0.0 }
 0x7b8   : > { %5615 = vmatmul.msk.f32.gmra.mxu1 %vm869_vm1, %v1902_v54 }
 0x7c0   : > { %5616 = vmatmul.msk.f32.gmra.mxu1 %vm869_vm1, %v1905_v57 }
 0x804   : > { %v7279_v44 = vpop.f32.mrf.mxu1 }
 0x80d   : > { %v7281_v51 = vpop.f32.mrf.mxu1 }
 0x815   : > { %v7283_v58 = vpop.f32.mrf.mxu1 }
 0x81d   : > { %v7285_v59 = vpop.f32.mrf.mxu1 }
 0x825   : > { %v7288_v1 = vpop.f32.mrf.mxu1 }
 0x826   : > { %v2402_v0 = vsel %vm869_vm1, %v7288_v1, -inf }
 0x827   : > { %2403 = vmax.xlane.f32.xlu0 %v2402_v0 }
 0x82d   : > { %v2393_v11 = vpop.f32.mrf.mxu1 }
 0x82e   : > { %v2405_v13 = vsel %vm869_vm1, %v2393_v11, -inf }
 0x82f   : > { %2406 = vmax.xlane.f32.xlu2 %v2405_v13  ;;  %2279 = vmax.xlane.f32.xlu0 %v2278_v60 }
 0x835   : > { %v2396_v24 = vpop.f32.mrf.mxu1 }
 0x836   : > { %v2408_v30 = vsel %vm869_vm1, %v2396_v24, -inf }
 0x837   : > { %2036 = vadd.xlane.f32.xlu2 %v2035_v29  ;;  %2409 = vmax.xlane.f32.xlu1 %v2408_v30 }
 0x83d   : > { %v2399_v12 = vpop.f32.mrf.mxu1 }
 0x83e   : > { %v2411_v37 = vsel %vm869_vm1, %v2399_v12, -inf }
 0x83f   : > { %2042 = vadd.xlane.f32.xlu2 %v2041_v38  ;;  %2039 = vadd.xlane.f32.xlu1 %v2038_v39 }
 0x840   : > { %2412 = vmax.xlane.f32.xlu0 %v2411_v37 }
 0x847   : > { %2297 = vadd.xlane.f32.xlu2 %v2296_v15  ;;  %2294 = vadd.xlane.f32.xlu1 %v2293_v42 }
 0x848   : > { %2045 = vadd.xlane.f32.xlu0 %v2044_v45 }
 0x84f   : > { %2300 = vadd.xlane.f32.xlu1 %v2299_v34 }
 0x89a   : > { %v2404_v10 = vpop.xlane.xlu0 %2403 }
 0x89b   : > { %v2414_v20 = vsub.f32 %v7288_v1, %v2404_v10 }
 0x89d   : > { %v2418_v48 = vmul.f32 1.442695, %v2414_v20 }
 0x89f   : > { %6133 = vpow2.f32 %v2418_v48 }
 0x8a2   : > { %v2407_v17 = vpop.xlane.xlu2 %2406  ;;  %v2280_v21 = vpop.xlane.xlu0 %2279 }
 0x8a3   : > { %v2415_v50 = vsub.f32 %v2393_v11, %v2407_v17  ;;  %v2284_v52 = vsub.f32 %v7292_v47, %v2280_v21 }
 0x8a5   : > { %v7335_v54 = vpop.eup %6133  ;;  %v2420_v56 = vmul.f32 1.442695, %v2415_v50  ;;  %v2291_v57 = vmul.f32 1.442695, %v2284_v52 }
 0x8a6   : > { %v2426_v55 = vsel %vm869_vm1, %v7335_v54, 0.0 }
 0x8a7   : > { %6135 = vpow2.f32 %v2420_v56  ;;  %2427 = vadd.xlane.f32.xlu0 %v2426_v55 }
 0x8a8   : > { %6137 = vpow2.f32 %v2291_v57 }
 0x8aa   : > { %v2037_v63 = vpop.xlane.xlu2 %2036  ;;  %v2410_v2 = vpop.xlane.xlu1 %2409 }
 0x8ab   : > { %6139 = vrcp.f32 %v2037_v63  ;;  %v2416_v1 = vsub.f32 %v2396_v24, %v2410_v2 }
 0x8ad   : > { %v7339_v0 = vpop.eup %6135  ;;  %v2422_v7 = vmul.f32 1.442695, %v2416_v1  ;;  %v5987_v1 = vld [vmem:[%s8595_s9 + $0x1] ss:$0 sm:$0xff] }
 0x8ae   : > { %v7341_v8 = vpop.eup %6137  ;;  %v2429_v47 = vsel %vm869_vm1, %v7339_v0, 0.0 }
 0x8af   : > { %6141 = vpow2.f32 %v2422_v7  ;;  %2430 = vadd.xlane.f32.xlu2 %v2429_v47  ;;  %v2302_v9 = vsel %vm869_vm1, %v7341_v8, 0.0 }
 0x8b0   : > { %2303 = vadd.xlane.f32.xlu0 %v2302_v9 }
 0x8b1   : > { %v6140_v26 = vpop.eup %6139 }
 0x8b2   : > { %v2051_v11 = vmul.f32 %v6140_v26, %v7299_v53  ;;  %v2040_v13 = vpop.xlane.xlu1 %2039  ;;  %v2043_v14 = vpop.xlane.xlu2 %2042 }
 0x8b3   : > { %v2413_v60 = vpop.xlane.xlu0 %2412  ;;  %6143 = vrcp.f32 %v2040_v13 }
 0x8b4   : > { %v2417_v5 = vsub.f32 %v2399_v12, %v2413_v60  ;;  %5599 = vmatmul.msk.f32.vlgmr.msrb.gmra.mxu0 %vm869_vm1, %v2051_v11 }
 0x8b5   : > { %v6142_v22 = vpop.eup %6141 }
 0x8b6   : > { %v2424_v18 = vmul.f32 1.442695, %v2417_v5  ;;  %v2432_v23 = vsel %vm869_vm1, %v6142_v22, 0.0 }
 0x8b7   : > { %2433 = vadd.xlane.f32.xlu1 %v2432_v23 }
 0x8b8   : > { %6145 = vpow2.f32 %v2424_v18 }
 0x8b9   : > { %v6144_v61 = vpop.eup %6143  ;;  %6147 = vrcp.f32 %v2043_v14 }
 0x8ba   : > { %v2295_v3 = vpop.xlane.xlu1 %2294  ;;  %v2052_v24 = vmul.f32 %v6144_v61, %v7307_v33  ;;  %v2298_v28 = vpop.xlane.xlu2 %2297 }
 0x8bb   : > { %6149 = vrcp.f32 %v2295_v3  ;;  %v2046_v29 = vpop.xlane.xlu0 %2045 }
 0x8bc   : > { %5600 = vmatmul.msk.f32.gmra.mxu0 %vm869_vm1, %v2052_v24  ;;  %6151 = vrcp.f32 %v2298_v28 }
 0x8bd   : > { %6153 = vrcp.f32 %v2046_v29 }
 0x8be   : > { %v6146_v53 = vpop.eup %6145 }
 0x8bf   : > { %v2435_v30 = vsel %vm869_vm1, %v6146_v53, 0.0  ;;  %v6148_v31 = vpop.eup %6147 }
 0x8c0   : > { %2436 = vadd.xlane.f32.xlu2 %v2435_v30  ;;  %v2053_v36 = vmul.f32 %v6148_v31, %v7309_v27 }
 0x8c1   : > { %v6150_v32 = vpop.eup %6149 }
 0x8c2   : > { %v2309_v35 = vmul.f32 %v6150_v32, %v7317_v6  ;;  %v6152_v33 = vpop.eup %6151  ;;  %v2301_v16 = vpop.xlane.xlu1 %2300 }
 0x8c3   : > { %v6154_v12 = vpop.eup %6153  ;;  %6155 = vrcp.f32 %v2301_v16  ;;  %v2310_v39 = vmul.f32 %v6152_v33, %v7319_v41 }
 0x8c4   : > { %5601 = vmatmul.msk.f32.gmra.mxu0 %vm869_vm1, %v2053_v36  ;;  %5608 = vmatmul.msk.f32.vlgmr.msrb.gmra.mxu3 %vm869_vm1, %v2309_v35  ;;  %v2054_v38 = vmul.f32 %v6154_v12, %v7321_v19 }
 0x8c9   : > { %v6156_v37 = vpop.eup %6155 }
 0x8ca   : > { %v2311_v40 = vmul.f32 %v6156_v37, %v7329_v4 }
 0x8cc   : > { %5602 = vmatmul.msk.f32.gmra.mxu0 %vm869_vm1, %v2054_v38  ;;  %5609 = vmatmul.msk.f32.gmra.mxu3 %vm869_vm1, %v2310_v39 }
 0x8d4   : > { %5610 = vmatmul.msk.f32.gmra.mxu3 %vm869_vm1, %v2311_v40 }
 0x91a   : > { %v2428_v27 = vpop.xlane.xlu0 %2427 }
 0x91b   : > { %6157 = vrcp.f32 %v2428_v27 }
 0x921   : > { %v6158_v6 = vpop.eup %6157 }
 0x922   : > { %v2442_v15 = vmul.f32 %v6158_v6, %v7335_v54  ;;  %v2431_v42 = vpop.xlane.xlu2 %2430 }
 0x923   : > { %6159 = vrcp.f32 %v2431_v42  ;;  %v2304_v45 = vpop.xlane.xlu0 %2303 }
 0x924   : > { %6161 = vrcp.f32 %v2304_v45  ;;  %5617 = vmatmul.msk.f32.vlgmr.msra.gmra.mxu0 %vm869_vm1, %v2442_v15 }
 0x929   : > { %v6160_v41 = vpop.eup %6159 }
 0x92a   : > { %v6162_v19 = vpop.eup %6161  ;;  %v2434_v34 = vpop.xlane.xlu1 %2433  ;;  %v2443_v10 = vmul.f32 %v6160_v41, %v7339_v0 }
 0x92b   : > { %6163 = vrcp.f32 %v2434_v34  ;;  %v2312_v4 = vmul.f32 %v6162_v19, %v7341_v8 }
 0x92c   : > { %5618 = vmatmul.msk.f32.gmra.mxu0 %vm869_vm1, %v2443_v10 }
 0x92d   : > { %5611 = vmatmul.msk.f32.gmra.mxu3 %vm869_vm1, %v2312_v4  ;;  %v2611_v4 = vld [vmem:[%s8592_s6 + $0x18] sm:$0xff] }
 0x92e   : > { %2640 = vmatpush.msra.mxu2 %v2611_v4 }
 0x931   : > { %v6164_v20 = vpop.eup %6163  ;;  %v2213_v52 = vpop.f32.mrf.mxu0 }
 0x932   : > { %v2444_v48 = vmul.f32 %v6164_v20, %v6142_v22  ;;  %v2214_v63 = vadd.f32 %v2213_v52, %v7279_v44  ;;  %v2610_v20 = vld [vmem:[%s8592_s6 + $0x10] sm:$0xff] }
 0x933   : > { %v2437_v17 = vpop.xlane.xlu2 %2436  ;;  %2641 = vmatpush.msra.mxu2 %v2610_v20 }
 0x934   : > { %6165 = vrcp.f32 %v2437_v17  ;;  %5619 = vmatmul.msk.f32.gmra.mxu0 %vm869_vm1, %v2444_v48  ;;  %v2609_v48 = vld [vmem:[%s8592_s6 + $0x8] sm:$0xff]  ;;  %v2608_v17 = vld [vmem:[%s8592_s6] sm:$0xff] }
 0x935   : > { %2642 = vmatpush.msra.mxu2 %v2609_v48  ;;  %v2662_v48 = vld [vmem:[%s8594_s8 + $0x8] sm:$0xff] }
 0x937   : > { %2643 = vmatpush.msra.mxu2 %v2608_v17  ;;  %v2661_v17 = vld [vmem:[%s8594_s8] sm:$0xff] }
 0x939   : > { %v2216_v54 = vpop.f32.mrf.mxu0 }
 0x93a   : > { %v6166_v21 = vpop.eup %6165  ;;  %v2217_v9 = vadd.f32 %v2216_v54, %v7281_v51 }
 0x93b   : > { %v2445_v50 = vmul.f32 %v6166_v21, %v6146_v53 }
 0x93d   : > { %5620 = vmatmul.msk.f32.gmra.mxu0 %vm869_vm1, %v2445_v50 }
 0x941   : > { %v2219_v56 = vpop.f32.mrf.mxu0 }
 0x942   : > { %v2220_v22 = vadd.f32 %v2219_v56, %v7283_v58 }
 0x947   : > { %v2342_v57 = vpop.f32.mrf.mxu3 }
 0x948   : > { %v2354_v2 = vadd.f32 %v2342_v57, %v2214_v63 }
 0x949   : > { %v2222_v55 = vpop.f32.mrf.mxu0 }
 0x94a   : > { %v2223_v28 = vadd.f32 %v2222_v55, %v7285_v59 }
 0x94f   : > { %v2345_v8 = vpop.f32.mrf.mxu3 }
 0x950   : > { %v2355_v11 = vadd.f32 %v2345_v8, %v2217_v9 }
 0x957   : > { %v2348_v5 = vpop.f32.mrf.mxu3 }
 0x958   : > { %v2356_v23 = vadd.f32 %v2348_v5, %v2220_v22  ;;  %v2667_v5 = vld [vmem:[%s8594_s8 + $0x30] sm:$0xff]  ;;  %v5989_v22 = vld [vmem:[%s8595_s9 + $0x7] ss:$0 sm:$0xff] }
 0x9a1   : > { %v2475_v0 = vpop.f32.mrf.mxu0 }
 0x9a2   : > { %v2487_v7 = vadd.f32 %v2475_v0, %v2354_v2 }
 0x9a4   : > { %v2494_v47 = vadd.f32 %v5987_v1, %v2487_v7 }
 0x9a6   : > { %v2498_v26 = vadd.f32 %v2494_v47, %v7092_v49 }
 0x9a8   : > { %v2506_v13 = vsel %vm400_vm0, %v2498_v26, 0.0 }
 0x9a9   : > { %2507 = vadd.xlane.f32.xlu0 %v2506_v13  ;;  %v2478_v60 = vpop.f32.mrf.mxu0  ;;  %v5988_v13 = vld [vmem:[%s8595_s9 + $0x4] ss:$0 sm:$0xff] }
 0x9aa   : > { %v2488_v14 = vadd.f32 %v2478_v60, %v2355_v11 }
 0x9ac   : > { %v2495_v44 = vadd.f32 %v5987_v1, %v2488_v14 }
 0x9ae   : > { %v2499_v18 = vadd.f32 %v2495_v44, %v7105_v25  ;;  %v2668_v44 = vld [vmem:[%s8594_s8 + $0x38] sm:$0xff] }
 0x9af   : > { %2695 = vmatpush.msra.mxu3 %v2668_v44 }
 0x9b0   : > { %v2509_v61 = vsel %vm400_vm0, %v2499_v18, 0.0  ;;  %v2351_v49 = vpop.f32.mrf.mxu3 }
 0x9b1   : > { %2510 = vadd.xlane.f32.xlu1 %v2509_v61  ;;  %v2481_v3 = vpop.f32.mrf.mxu0  ;;  %v2357_v30 = vadd.f32 %v2351_v49, %v2223_v28  ;;  %v2666_v61 = vld [vmem:[%s8594_s8 + $0x28] sm:$0xff]  ;;  %2696 = vmatpush.msra.mxu3 %v2667_v5 }
 0x9b2   : > { %v2489_v51 = vadd.f32 %v2481_v3, %v2356_v23 }
 0x9b3   : > { %2697 = vmatpush.msra.mxu3 %v2666_v61 }
 0x9b4   : > { %v2496_v24 = vadd.f32 %v5987_v1, %v2489_v51 }
 0x9b6   : > { %v2500_v53 = vadd.f32 %v2496_v24, %v7115_v43 }
 0x9b8   : > { %v2512_v29 = vsel %vm400_vm0, %v2500_v53, 0.0 }
 0x9b9   : > { %2513 = vadd.xlane.f32.xlu2 %v2512_v29 }
 0x9ba   : > { %v2484_v31 = vpop.f32.mrf.mxu0 }
 0x9bb   : > { %v2490_v58 = vadd.f32 %v2484_v31, %v2357_v30 }
 0x9bd   : > { %v2497_v32 = vadd.f32 %v5987_v1, %v2490_v58 }
 0x9bf   : > { %v2501_v25 = vadd.f32 %v2497_v32, %v7125_v46  ;;  %v2664_v32 = vld [vmem:[%s8594_s8 + $0x18] sm:$0xff] }
 0x9c1   : > { %v2515_v35 = vsel %vm400_vm0, %v2501_v25, 0.0 }
 0x9c2   : > { %2516 = vadd.xlane.f32.xlu0 %v2515_v35 }
 0xa1c   : > { %v2508_v36 = vpop.xlane.xlu0 %2507 }
 0xa1d   : > { %v2518_v33 = vmul.f32 %v2508_v36, %v6927_v62 }
 0xa1f   : > { %v2522_v16 = vsub.f32 %v2498_v26, %v2518_v33 }
 0xa21   : > { %v2526_v12 = vmul.f32 %v2522_v16, %v2522_v16 }
 0xa23   : > { %v2530_v43 = vsel %vm400_vm0, %v2526_v12, 0.0 }
 0xa24   : > { %v2511_v59 = vpop.xlane.xlu1 %2510  ;;  %2531 = vadd.xlane.f32.xlu1 %v2530_v43 }
 0xa25   : > { %v2519_v38 = vmul.f32 %v2511_v59, %v6927_v62 }
 0xa27   : > { %v7389_v39 = vsub.f32 %v2499_v18, %v2519_v38 }
 0xa29   : > { %v2527_v37 = vmul.f32 %v7389_v39, %v7389_v39 }
 0xa2b   : > { %v2533_v46 = vsel %vm400_vm0, %v2527_v37, 0.0 }
 0xa2c   : > { %2534 = vadd.xlane.f32.xlu2 %v2533_v46  ;;  %v2514_v40 = vpop.xlane.xlu2 %2513 }
 0xa2d   : > { %v2520_v27 = vmul.f32 %v2514_v40, %v6927_v62 }
 0xa2f   : > { %v7395_v6 = vsub.f32 %v2500_v53, %v2520_v27  ;;  %v2665_v53 = vld [vmem:[%s8594_s8 + $0x20] sm:$0xff] }
 0xa30   : > { %2698 = vmatpush.msra.mxu3 %v2665_v53 }
 0xa31   : > { %v2528_v15 = vmul.f32 %v7395_v6, %v7395_v6 }
 0xa32   : > { %2699 = vmatpush.msra.mxu3 %v2664_v32 }
 0xa33   : > { %v2536_v42 = vsel %vm400_vm0, %v2528_v15, 0.0 }
 0xa34   : > { %2537 = vadd.xlane.f32.xlu0 %v2536_v42 }
 0xa35   : > { %v2517_v45 = vpop.xlane.xlu0 %2516 }
 0xa36   : > { %v2521_v41 = vmul.f32 %v2517_v45, %v6927_v62 }
 0xa38   : > { %v7401_v19 = vsub.f32 %v2501_v25, %v2521_v41 }
 0xa3a   : > { %v2529_v34 = vmul.f32 %v7401_v19, %v7401_v19 }
 0xa3c   : > { %v2539_v10 = vsel %vm400_vm0, %v2529_v34, 0.0 }
 0xa3d   : > { %2540 = vadd.xlane.f32.xlu1 %v2539_v10 }
 0xa97   : > { %v2532_v21 = vpop.xlane.xlu1 %2531 }
 0xa98   : > { %v2542_v50 = vmul.f32 %v2532_v21, %v6927_v62 }
 0xa9a   : > { %v2546_v52 = vadd.f32 1e-05, %v2542_v50 }
 0xa9c   : > { %6167 = vrsqrt.f32 %v2546_v52  ;;  %vm2556_vm2 = vweird.f32 %v2546_v52 }
 0xa9f   : > { %v2535_v54 = vpop.xlane.xlu2 %2534 }
 0xaa0   : > { %v2543_v56 = vmul.f32 %v2535_v54, %v6927_v62 }
 0xaa2   : > { %v6168_v57 = vpop.eup %6167  ;;  %v2547_v55 = vadd.f32 1e-05, %v2543_v56 }
 0xaa3   : > { %v2551_v63 = vmul.f32 %v6168_v57, %v2546_v52  ;;  %vm2557_vm15 = vweird.f32 %v6168_v57 }
 0xaa4   : > { %6169 = vrsqrt.f32 %v2547_v55  ;;  %vm2558_vm3 = vmor %vm2556_vm2, %vm2557_vm15  ;;  %vm2566_vm5 = vweird.f32 %v2547_v55 }
 0xaa5   : > { %v2552_v2 = vmul.f32 %v6168_v57, %v2551_v63 }
 0xaa7   : > { %v2553_v1 = vmul.f32 0.5, %v2552_v2  ;;  %v2538_v0 = vpop.xlane.xlu0 %2537 }
 0xaa8   : > { %v2544_v7 = vmul.f32 %v2538_v0, %v6927_v62 }
 0xaa9   : > { %v2554_v8 = vsub.f32 1.5, %v2553_v1 }
 0xaaa   : > { %v6170_v47 = vpop.eup %6169  ;;  %v2548_v9 = vadd.f32 1e-05, %v2544_v7 }
 0xaab   : > { %v2555_v26 = vmul.f32 %v6168_v57, %v2554_v8  ;;  %v2561_v11 = vmul.f32 %v6170_v47, %v2547_v55  ;;  %vm2567_vm4 = vweird.f32 %v6170_v47  ;;  %v5991_v8 = vld [vmem:[%s8595_s9 + $0x2] ss:$0 sm:$0xff] }
 0xaac   : > { %6171 = vrsqrt.f32 %v2548_v9  ;;  %vm2568_vm6 = vmor %vm2566_vm5, %vm2567_vm4  ;;  %vm2576_vm8 = vweird.f32 %v2548_v9 }
 0xaad   : > { %v2559_v60 = vsel %vm2558_vm3, %v6168_v57, %v2555_v26  ;;  %v2562_v14 = vmul.f32 %v6170_v47, %v2561_v11 }
 0xaae   : > { %v2590_v18 = vmul.f32 %v2559_v60, %v2522_v16 }
 0xaaf   : > { %v2563_v23 = vmul.f32 0.5, %v2562_v14 }
 0xab0   : > { %v2597_v3 = vmul.f32 %v5988_v13, %v2590_v18  ;;  %v2541_v51 = vpop.xlane.xlu1 %2540 }
 0xab1   : > { %v2564_v24 = vsub.f32 1.5, %v2563_v23  ;;  %v2545_v49 = vmul.f32 %v2541_v51, %v6927_v62 }
 0xab2   : > { %v6172_v28 = vpop.eup %6171  ;;  %v7440_v29 = vadd.f32 %v5989_v22, %v2597_v3 }
 0xab3   : > { %v2565_v30 = vmul.f32 %v6170_v47, %v2564_v24  ;;  %v2571_v31 = vmul.f32 %v6172_v28, %v2548_v9  ;;  %v2549_v58 = vadd.f32 1e-05, %v2545_v49  ;;  %vm2577_vm7 = vweird.f32 %v6172_v28 }
 0xab4   : > { %5623 = vmatmul.msk.f32.vlgmr.msra.gmra.mxu2 %vm400_vm0, %v7440_v29  ;;  %vm2578_vm9 = vmor %vm2576_vm8, %vm2577_vm7 }
 0xab5   : > { %v2569_v25 = vsel %vm2568_vm6, %v6170_v47, %v2565_v30  ;;  %v2572_v35 = vmul.f32 %v6172_v28, %v2571_v31  ;;  %6173 = vrsqrt.f32 %v2549_v58  ;;  %vm2586_vm11 = vweird.f32 %v2549_v58 }
 0xab6   : > { %v2591_v36 = vmul.f32 %v2569_v25, %v7389_v39 }
 0xab7   : > { %v2573_v33 = vmul.f32 0.5, %v2572_v35 }
 0xab8   : > { %v2598_v16 = vmul.f32 %v5988_v13, %v2591_v36 }
 0xab9   : > { %v2574_v12 = vsub.f32 1.5, %v2573_v33 }
 0xaba   : > { %v2605_v43 = vadd.f32 %v5989_v22, %v2598_v16 }
 0xabb   : > { %v6174_v59 = vpop.eup %6173  ;;  %v2575_v38 = vmul.f32 %v6172_v28, %v2574_v12 }
 0xabc   : > { %v2581_v37 = vmul.f32 %v6174_v59, %v2549_v58  ;;  %5624 = vmatmul.msk.f32.gmra.mxu2 %vm400_vm0, %v2605_v43  ;;  %vm2587_vm10 = vweird.f32 %v6174_v59 }
 0xabd   : > { %v2579_v46 = vsel %vm2578_vm9, %v6172_v28, %v2575_v38  ;;  %vm2588_vm12 = vmor %vm2586_vm11, %vm2587_vm10 }
 0xabe   : > { %v2592_v40 = vmul.f32 %v2579_v46, %v7395_v6  ;;  %v2582_v27 = vmul.f32 %v6174_v59, %v2581_v37  ;;  %v2663_v6 = vld [vmem:[%s8594_s8 + $0x10] sm:$0xff] }
 0xabf   : > { %2700 = vmatpush.msra.mxu3 %v2663_v6  ;;  %v5654_v6 = vld [vmem:[%s8590_s4 + $0x108] sm:$0xff] }
 0xac0   : > { %v2583_v15 = vmul.f32 0.5, %v2582_v27  ;;  %v2599_v42 = vmul.f32 %v5988_v13, %v2592_v40  ;;  %v5638_v27 = vld [vmem:[%s8588_s2 + $0x218] sm:$0xff] }
 0xac1   : > { %2701 = vmatpush.msra.mxu3 %v2662_v48  ;;  %2862 = vmatpush.msrb.mxu1 %v5638_v27  ;;  %v5663_v48 = vld [vmem:[%s8588_s2 + $0x228] sm:$0xff] }
 0xac2   : > { %v2584_v39 = vsub.f32 1.5, %v2583_v15  ;;  %v2606_v45 = vadd.f32 %v5989_v22, %v2599_v42  ;;  %v5647_v15 = vld [vmem:[%s8588_s2 + $0x298] sm:$0xff]  ;;  %v5699_v27 = vld [vmem:[%s8588_s2 + $0x2c8] sm:$0xff] }
 0xac3   : > { %2702 = vmatpush.msra.mxu3 %v2661_v17  ;;  %v5656_v42 = vld [vmem:[%s8590_s4 + $0x118] sm:$0xff]  ;;  %2901 = vmatpush.msrb.mxu0 %v5647_v15  ;;  %v5635_v17 = vld [vmem:[%s8588_s2 + $0x200] sm:$0xff] }
 0xac4   : > { %v2585_v41 = vmul.f32 %v6174_v59, %v2584_v39  ;;  %5625 = vmatmul.msk.f32.gmra.mxu2 %vm400_vm0, %v2606_v45  ;;  %v5665_v39 = vld [vmem:[%s8588_s2 + $0x238] sm:$0xff]  ;;  %v5680_v15 = vld [vmem:[%s8590_s4 + $0x120] sm:$0xff] }
 0xac5   : > { %2940 = vmatpush.msrb.mxu2 %v5656_v42  ;;  %2979 = vmatpush.msrb.mxu3 %v5665_v39 }
 0xac6   : > { %v2589_v34 = vsel %vm2588_vm12, %v6174_v59, %v2585_v41  ;;  %v5646_v41 = vld [vmem:[%s8588_s2 + $0x290] sm:$0xff] }
 0xac7   : > { %v2593_v10 = vmul.f32 %v2589_v34, %v7401_v19  ;;  %v5990_v19 = vld [vmem:[%s8593_s7] ss:$0 sm:$0xff]  ;;  %v5655_v34 = vld [vmem:[%s8590_s4 + $0x110] sm:$0xff]  ;;  %2902 = vmatpush.msrb.mxu0 %v5646_v41 }
 0xac8   : > { %2941 = vmatpush.msrb.mxu2 %v5655_v34  ;;  %v5698_v41 = vld [vmem:[%s8588_s2 + $0x2c0] sm:$0xff] }
 0xac9   : > { %v2600_v4 = vmul.f32 %v5988_v13, %v2593_v10  ;;  %v5664_v10 = vld [vmem:[%s8588_s2 + $0x230] sm:$0xff] }
 0xaca   : > { %2980 = vmatpush.msrb.mxu3 %v5664_v10  ;;  %2942 = vmatpush.msrb.mxu2 %v5654_v6 }
 0xacb   : > { %v2607_v20 = vadd.f32 %v5989_v22, %v2600_v4  ;;  %v5636_v4 = vld [vmem:[%s8588_s2 + $0x208] sm:$0xff] }
 0xacc   : > { %2981 = vmatpush.msrb.mxu3 %v5663_v48 }
 0xacd   : > { %5626 = vmatmul.msk.f32.gmra.mxu2 %vm400_vm0, %v2607_v20 }
 0xb37   : > { %v2645_v21 = vpop.f32.mrf.mxu2 }
 0xb38   : > { %v2646_v50 = vadd.f32 %v5990_v19, %v2645_v21  ;;  %v5653_v21 = vld [vmem:[%s8590_s4 + $0x100] sm:$0xff] }
 0xb39   : > { %2943 = vmatpush.msrb.mxu2 %v5653_v21 }
 0xb3a   : > { %v2657_v52 = vmax.f32 %v2646_v50, 0.0  ;;  %v5662_v50 = vld [vmem:[%s8588_s2 + $0x220] sm:$0xff] }
 0xb3b   : > { %2982 = vmatpush.msrb.mxu3 %v5662_v50 }
 0xb3c   : > { %5628 = vmatmul.msk.f32.vlgmr.msra.gmra.mxu3 %vm2674_vm13, %v2657_v52 }
 0xb3f   : > { %v2648_v54 = vpop.f32.mrf.mxu2 }
 0xb40   : > { %v2649_v56 = vadd.f32 %v5990_v19, %v2648_v54 }
 0xb42   : > { %v2658_v57 = vmax.f32 %v2649_v56, 0.0 }
 0xb44   : > { %5629 = vmatmul.msk.f32.gmra.mxu3 %vm2674_vm13, %v2658_v57 }
 0xb47   : > { %v2651_v55 = vpop.f32.mrf.mxu2 }
 0xb48   : > { %v2652_v63 = vadd.f32 %v5990_v19, %v2651_v55 }
 0xb4a   : > { %v2659_v2 = vmax.f32 %v2652_v63, 0.0 }
 0xb4c   : > { %5630 = vmatmul.msk.f32.gmra.mxu3 %vm2674_vm13, %v2659_v2 }
 0xb50   : > { %v2654_v1 = vpop.f32.mrf.mxu2 }
 0xb51   : > { %v2655_v0 = vadd.f32 %v5990_v19, %v2654_v1  ;;  %v5644_v19 = vld [vmem:[%s8588_s2 + $0x280] sm:$0xff] }
 0xb53   : > { %v2660_v7 = vmax.f32 %v2655_v0, 0.0 }
 0xb55   : > { %5631 = vmatmul.msk.f32.gmra.mxu3 %vm2674_vm13, %v2660_v7 }
 0xbbf   : > { %v2704_v47 = vpop.f32.mrf.mxu3 }
 0xbc0   : > { %v2705_v9 = vadd.f32 %v5991_v8, %v2704_v47 }
 0xbc2   : > { %v2716_v26 = vadd.f32 %v2705_v9, %v7440_v29 }
 0xbc4   : > { %v2724_v11 = vsel %vm400_vm0, %v2716_v26, 0.0 }
 0xbc5   : > { %2725 = vadd.xlane.f32.xlu2 %v2724_v11 }
 0xbc7   : > { %v2707_v13 = vpop.f32.mrf.mxu3 }
 0xbc8   : > { %v2708_v60 = vadd.f32 %v5991_v8, %v2707_v13 }
 0xbca   : > { %v2717_v14 = vadd.f32 %v2708_v60, %v2605_v43 }
 0xbcc   : > { %v2727_v44 = vsel %vm400_vm0, %v2717_v14, 0.0 }
 0xbcd   : > { %2728 = vadd.xlane.f32.xlu0 %v2727_v44  ;;  %v7560_v44 = vld [vmem:[%s8595_s9 + $0x5] ss:$0 sm:$0xff] }
 0xbcf   : > { %v2710_v5 = vpop.f32.mrf.mxu3 }
 0xbd0   : > { %v2711_v22 = vadd.f32 %v5991_v8, %v2710_v5  ;;  %v7566_v5 = vld [vmem:[%s8595_s9 + $0x8] ss:$0 sm:$0xff] }
 0xbd2   : > { %v2718_v18 = vadd.f32 %v2711_v22, %v2606_v45  ;;  %v5637_v45 = vld [vmem:[%s8588_s2 + $0x210] sm:$0xff] }
 0xbd3   : > { %2863 = vmatpush.msrb.mxu1 %v5637_v45  ;;  %v5689_v45 = vld [vmem:[%s8588_s2 + $0x240] sm:$0xff] }
 0xbd4   : > { %v2730_v23 = vsel %vm400_vm0, %v2718_v18, 0.0 }
 0xbd5   : > { %2731 = vadd.xlane.f32.xlu1 %v2730_v23  ;;  %2864 = vmatpush.msrb.mxu1 %v5636_v4 }
 0xbd7   : > { %2865 = vmatpush.msrb.mxu1 %v5635_v17 }
 0xbd8   : > { %v2713_v61 = vpop.f32.mrf.mxu3 }
 0xbd9   : > { %v2714_v3 = vadd.f32 %v5991_v8, %v2713_v61  ;;  %v5673_v61 = vld [vmem:[%s8588_s2 + $0x2b0] sm:$0xff] }
 0xbdb   : > { %v2719_v51 = vadd.f32 %v2714_v3, %v2607_v20  ;;  %v5645_v20 = vld [vmem:[%s8588_s2 + $0x288] sm:$0xff]  ;;  %v5683_v3 = vld [vmem:[%s8590_s4 + $0x138] sm:$0xff] }
 0xbdc   : > { %2903 = vmatpush.msrb.mxu0 %v5645_v20 }
 0xbdd   : > { %v2733_v24 = vsel %vm400_vm0, %v2719_v51, 0.0 }
 0xbde   : > { %2734 = vadd.xlane.f32.xlu2 %v2733_v24  ;;  %2904 = vmatpush.msrb.mxu0 %v5644_v19 }
 0xbe0   : > { %3057 = vmatpush.msra.mxu0 %v5683_v3 }
 0xc38   : > { %v2726_v49 = vpop.xlane.xlu2 %2725 }
 0xc39   : > { %v2736_v53 = vmul.f32 %v2726_v49, %v6927_v62  ;;  %v5701_v49 = vld [vmem:[%s8588_s2 + $0x2d8] sm:$0xff] }
 0xc3a   : > { %3135 = vmatpush.msra.mxu3 %v5701_v49 }
 0xc3b   : > { %v7478_v28 = vsub.f32 %v2716_v26, %v2736_v53  ;;  %v5682_v53 = vld [vmem:[%s8590_s4 + $0x130] sm:$0xff] }
 0xc3c   : > { %3058 = vmatpush.msra.mxu0 %v5682_v53 }
 0xc3d   : > { %v2744_v29 = vmul.f32 %v7478_v28, %v7478_v28 }
 0xc3f   : > { %v2748_v30 = vsel %vm400_vm0, %v2744_v29, 0.0 }
 0xc40   : > { %2749 = vadd.xlane.f32.xlu0 %v2748_v30  ;;  %v2729_v31 = vpop.xlane.xlu0 %2728 }
 0xc41   : > { %v2737_v58 = vmul.f32 %v2729_v31, %v6927_v62  ;;  %v5700_v31 = vld [vmem:[%s8588_s2 + $0x2d0] sm:$0xff] }
 0xc42   : > { %3136 = vmatpush.msra.mxu3 %v5700_v31 }
 0xc43   : > { %v7484_v32 = vsub.f32 %v2717_v14, %v2737_v58  ;;  %v5674_v14 = vld [vmem:[%s8588_s2 + $0x2b8] sm:$0xff]  ;;  %v5672_v58 = vld [vmem:[%s8588_s2 + $0x2a8] sm:$0xff] }
 0xc44   : > { %3018 = vmatpush.msra.mxu1 %v5674_v14  ;;  %3137 = vmatpush.msra.mxu3 %v5699_v27  ;;  %v5726_v14 = vld [vmem:[%s8588_s2 + $0x2e8] sm:$0xff] }
 0xc45   : > { %v2745_v25 = vmul.f32 %v7484_v32, %v7484_v32 }
 0xc46   : > { %3019 = vmatpush.msra.mxu1 %v5673_v61  ;;  %3138 = vmatpush.msra.mxu3 %v5698_v41  ;;  %v5994_v41 = vld [vmem:[%s8589_s3 + $0x10] ss:$0 sm:$0xff] }
 0xc47   : > { %v2751_v35 = vsel %vm400_vm0, %v2745_v25, 0.0  ;;  %v5681_v25 = vld [vmem:[%s8590_s4 + $0x128] sm:$0xff] }
 0xc48   : > { %v2732_v36 = vpop.xlane.xlu1 %2731  ;;  %2752 = vadd.xlane.f32.xlu1 %v2751_v35  ;;  %3020 = vmatpush.msra.mxu1 %v5672_v58 }
 0xc49   : > { %v2738_v33 = vmul.f32 %v2732_v36, %v6927_v62  ;;  %3059 = vmatpush.msra.mxu0 %v5681_v25 }
 0xc4b   : > { %v7490_v16 = vsub.f32 %v2718_v18, %v2738_v33  ;;  %v5671_v33 = vld [vmem:[%s8588_s2 + $0x2a0] sm:$0xff]  ;;  %3060 = vmatpush.msra.mxu0 %v5680_v15 }
 0xc4c   : > { %3021 = vmatpush.msra.mxu1 %v5671_v33 }
 0xc4d   : > { %v2746_v12 = vmul.f32 %v7490_v16, %v7490_v16 }
 0xc4f   : > { %v2754_v43 = vsel %vm400_vm0, %v2746_v12, 0.0 }
 0xc50   : > { %2755 = vadd.xlane.f32.xlu2 %v2754_v43 }
 0xc51   : > { %v2735_v59 = vpop.xlane.xlu2 %2734 }
 0xc52   : > { %v2739_v38 = vmul.f32 %v2735_v59, %v6927_v62 }
 0xc54   : > { %v7496_v37 = vsub.f32 %v2719_v51, %v2739_v38  ;;  %v5692_v51 = vld [vmem:[%s8588_s2 + $0x258] sm:$0xff] }
 0xc55   : > { %3096 = vmatpush.msra.mxu2 %v5692_v51 }
 0xc56   : > { %v2747_v46 = vmul.f32 %v7496_v37, %v7496_v37 }
 0xc58   : > { %v2757_v40 = vsel %vm400_vm0, %v2747_v46, 0.0 }
 0xc59   : > { %2758 = vadd.xlane.f32.xlu0 %v2757_v40  ;;  %v5690_v40 = vld [vmem:[%s8588_s2 + $0x248] sm:$0xff] }
 0xcb3   : > { %v2750_v52 = vpop.xlane.xlu0 %2749 }
 0xcb4   : > { %v2760_v54 = vmul.f32 %v2750_v52, %v6927_v62 }
 0xcb6   : > { %v2764_v56 = vadd.f32 1e-05, %v2760_v54 }
 0xcb8   : > { %6175 = vrsqrt.f32 %v2764_v56  ;;  %vm2774_vm15 = vweird.f32 %v2764_v56 }
 0xcbb   : > { %v2753_v57 = vpop.xlane.xlu1 %2752 }
 0xcbc   : > { %v2761_v55 = vmul.f32 %v2753_v57, %v6927_v62 }
 0xcbe   : > { %v6176_v63 = vpop.eup %6175  ;;  %v2765_v2 = vadd.f32 1e-05, %v2761_v55 }
 0xcbf   : > { %v2769_v1 = vmul.f32 %v6176_v63, %v2764_v56  ;;  %vm2775_vm14 = vweird.f32 %v6176_v63 }
 0xcc0   : > { %6177 = vrsqrt.f32 %v2765_v2  ;;  %vm2776_vm2 = vmor %vm2774_vm15, %vm2775_vm14  ;;  %vm2784_vm4 = vweird.f32 %v2765_v2 }
 0xcc1   : > { %v2770_v0 = vmul.f32 %v6176_v63, %v2769_v1 }
 0xcc3   : > { %v2771_v7 = vmul.f32 0.5, %v2770_v0  ;;  %v2756_v8 = vpop.xlane.xlu2 %2755  ;;  %v5719_v0 = vld [vmem:[%s8588_s2 + $0x278] sm:$0xff] }
 0xcc4   : > { %v2762_v47 = vmul.f32 %v2756_v8, %v6927_v62  ;;  %v5737_v8 = vld [vmem:[%s8590_s4 + $0x178] sm:$0xff] }
 0xcc5   : > { %v2772_v9 = vsub.f32 1.5, %v2771_v7  ;;  %v5728_v7 = vld [vmem:[%s8588_s2 + $0x2f8] sm:$0xff] }
 0xcc6   : > { %v6178_v26 = vpop.eup %6177  ;;  %v7552_v11 = vadd.f32 1e-05, %v2762_v47  ;;  %v5709_v47 = vld [vmem:[%s8590_s4 + $0x150] sm:$0xff] }
 0xcc7   : > { %v2773_v13 = vmul.f32 %v6176_v63, %v2772_v9  ;;  %v2779_v60 = vmul.f32 %v6178_v26, %v2765_v2  ;;  %vm2785_vm3 = vweird.f32 %v6178_v26  ;;  %v5718_v9 = vld [vmem:[%s8588_s2 + $0x270] sm:$0xff] }
 0xcc8   : > { %6179 = vrsqrt.f32 %v7552_v11  ;;  %vm2786_vm5 = vmor %vm2784_vm4, %vm2785_vm3  ;;  %vm2794_vm7 = vweird.f32 %v7552_v11 }
 0xcc9   : > { %v2777_v22 = vsel %vm2776_vm2, %v6176_v63, %v2773_v13  ;;  %v2780_v18 = vmul.f32 %v6178_v26, %v2779_v60  ;;  %v5708_v13 = vld [vmem:[%s8590_s4 + $0x148] sm:$0xff] }
 0xcca   : > { %v2808_v23 = vmul.f32 %v2777_v22, %v7478_v28  ;;  %v5691_v28 = vld [vmem:[%s8588_s2 + $0x250] sm:$0xff]  ;;  %v5717_v60 = vld [vmem:[%s8588_s2 + $0x268] sm:$0xff]  ;;  %v5716_v22 = vld [vmem:[%s8588_s2 + $0x260] sm:$0xff] }
 0xccb   : > { %v2781_v24 = vmul.f32 0.5, %v2780_v18  ;;  %3097 = vmatpush.msra.mxu2 %v5691_v28  ;;  %v5725_v18 = vld [vmem:[%s8588_s2 + $0x2e0] sm:$0xff] }
 0xccc   : > { %v2815_v29 = vmul.f32 %v7560_v44, %v2808_v23  ;;  %v2759_v30 = vpop.xlane.xlu0 %2758  ;;  %v5734_v23 = vld [vmem:[%s8590_s4 + $0x160] sm:$0xff] }
 0xccd   : > { %v2782_v35 = vsub.f32 1.5, %v2781_v24  ;;  %v2763_v36 = vmul.f32 %v2759_v30, %v6927_v62  ;;  %3098 = vmatpush.msra.mxu2 %v5690_v40 }
 0xcce   : > { %v6180_v12 = vpop.eup %6179  ;;  %v7602_v43 = vadd.f32 %v7566_v5, %v2815_v29 }
 0xccf   : > { %v2783_v59 = vmul.f32 %v6178_v26, %v2782_v35  ;;  %v2789_v38 = vmul.f32 %v6180_v12, %v7552_v11  ;;  %v2767_v46 = vadd.f32 1e-05, %v2763_v36  ;;  %3099 = vmatpush.msra.mxu2 %v5689_v45  ;;  %vm2795_vm6 = vweird.f32 %v6180_v12  ;;  %v5736_v11 = vld [vmem:[%s8590_s4 + $0x170] sm:$0xff] }
 0xcd0   : > { %5640 = vmatmul.msk.f32.vlgmr.msrb.gmra.mxu1 %vm400_vm0, %v7602_v43  ;;  %5649 = vmatmul.msk.f32.vlgmr.msrb.gmra.mxu0 %vm400_vm0, %v7602_v43  ;;  %vm2796_vm8 = vmor %vm2794_vm7, %vm2795_vm6  ;;  %v5995_v35 = vld [vmem:[%s8589_s3 + $0x14] ss:$0 sm:$0xff] }
 0xcd1   : > { %v2787_v42 = vsel %vm2786_vm5, %v6178_v26, %v2783_v59  ;;  %v2790_v39 = vmul.f32 %v6180_v12, %v2789_v38  ;;  %6181 = vrsqrt.f32 %v2767_v46  ;;  %5658 = vmatmul.msk.f32.vlgmr.msrb.gmra.mxu2 %vm400_vm0, %v7602_v43  ;;  %5667 = vmatmul.msk.f32.vlgmr.msrb.gmra.mxu3 %vm400_vm0, %v7602_v43  ;;  %vm2804_vm10 = vweird.f32 %v2767_v46  ;;  %v5727_v26 = vld [vmem:[%s8588_s2 + $0x2f0] sm:$0xff]  ;;  %v5996_v38 = vld [vmem:[%s8591_s5 + $0x8] ss:$0 sm:$0xff] }
 0xcd2   : > { %v2809_v34 = vmul.f32 %v2787_v42, %v7484_v32  ;;  %3213 = vmatpush.msrb.mxu0 %v5719_v0  ;;  %3252 = vmatpush.msrb.mxu2 %v5728_v7 }
 0xcd3   : > { %v2791_v10 = vmul.f32 0.5, %v2790_v39  ;;  %3291 = vmatpush.msrb.mxu3 %v5737_v8 }
 0xcd4   : > { %v2816_v4 = vmul.f32 %v7560_v44, %v2809_v34  ;;  %3214 = vmatpush.msrb.mxu0 %v5718_v9  ;;  %3253 = vmatpush.msrb.mxu2 %v5727_v26 }
 0xcd5   : > { %v2792_v20 = vsub.f32 1.5, %v2791_v10  ;;  %3292 = vmatpush.msrb.mxu3 %v5736_v11 }
 0xcd6   : > { %v7632_v6 = vadd.f32 %v7566_v5, %v2816_v4  ;;  %3215 = vmatpush.msrb.mxu0 %v5717_v60  ;;  %3254 = vmatpush.msrb.mxu2 %v5726_v14 }
 0xcd7   : > { %v6182_v48 = vpop.eup %6181  ;;  %v2793_v17 = vmul.f32 %v6180_v12, %v2792_v20 }
 0xcd8   : > { %v2799_v19 = vmul.f32 %v6182_v48, %v2767_v46  ;;  %5641 = vmatmul.msk.f32.gmra.mxu1 %vm400_vm0, %v7632_v6  ;;  %5650 = vmatmul.msk.f32.gmra.mxu0 %vm400_vm0, %v7632_v6  ;;  %vm2805_vm9 = vweird.f32 %v6182_v48 }
 0xcd9   : > { %v2797_v32 = vsel %vm2796_vm8, %v6180_v12, %v2793_v17  ;;  %5659 = vmatmul.msk.f32.gmra.mxu2 %vm400_vm0, %v7632_v6  ;;  %5668 = vmatmul.msk.f32.gmra.mxu3 %vm400_vm0, %v7632_v6  ;;  %vm2806_vm11 = vmor %vm2804_vm10, %vm2805_vm9 }
 0xcda   : > { %v2810_v21 = vmul.f32 %v2797_v32, %v7490_v16  ;;  %v2800_v50 = vmul.f32 %v6182_v48, %v2799_v19  ;;  %3216 = vmatpush.msrb.mxu0 %v5716_v22  ;;  %3255 = vmatpush.msrb.mxu2 %v5725_v18 }
 0xcdc   : > { %v2817_v52 = vmul.f32 %v7560_v44, %v2810_v21  ;;  %v2801_v54 = vmul.f32 0.5, %v2800_v50 }
 0xcde   : > { %v7646_v56 = vadd.f32 %v7566_v5, %v2817_v52  ;;  %v2802_v57 = vsub.f32 1.5, %v2801_v54 }
 0xce0   : > { %v2803_v55 = vmul.f32 %v6182_v48, %v2802_v57  ;;  %5642 = vmatmul.msk.f32.gmra.mxu1 %vm400_vm0, %v7646_v56  ;;  %5651 = vmatmul.msk.f32.gmra.mxu0 %vm400_vm0, %v7646_v56 }
 0xce1   : > { %5660 = vmatmul.msk.f32.gmra.mxu2 %vm400_vm0, %v7646_v56  ;;  %5669 = vmatmul.msk.f32.gmra.mxu3 %vm400_vm0, %v7646_v56 }
 0xce2   : > { %v2807_v16 = vsel %vm2806_vm11, %v6182_v48, %v2803_v55  ;;  %v5998_v55 = vld [vmem:[%s8589_s3 + $0x15] ss:$0 sm:$0xff] }
 0xce3   : > { %v2811_v63 = vmul.f32 %v2807_v16, %v7496_v37  ;;  %v5710_v37 = vld [vmem:[%s8590_s4 + $0x158] sm:$0xff]  ;;  %v5999_v16 = vld [vmem:[%s8591_s5 + $0x9] ss:$0 sm:$0xff] }
 0xce4   : > { %3174 = vmatpush.msrb.mxu1 %v5710_v37 }
 0xce5   : > { %v2818_v2 = vmul.f32 %v7560_v44, %v2811_v63  ;;  %v5735_v44 = vld [vmem:[%s8590_s4 + $0x168] sm:$0xff] }
 0xce6   : > { %3175 = vmatpush.msrb.mxu1 %v5709_v47  ;;  %3293 = vmatpush.msrb.mxu3 %v5735_v44 }
 0xce7   : > { %v7659_v1 = vadd.f32 %v7566_v5, %v2818_v2  ;;  %v5707_v5 = vld [vmem:[%s8590_s4 + $0x140] sm:$0xff] }
 0xce8   : > { %3176 = vmatpush.msrb.mxu1 %v5708_v13  ;;  %3294 = vmatpush.msrb.mxu3 %v5734_v23  ;;  %v6001_v13 = vld [vmem:[%s8589_s3 + $0x16] ss:$0 sm:$0xff] }
 0xce9   : > { %5643 = vmatmul.msk.f32.gmra.mxu1 %vm400_vm0, %v7659_v1  ;;  %5652 = vmatmul.msk.f32.gmra.mxu0 %vm400_vm0, %v7659_v1 }
 0xcea   : > { %5661 = vmatmul.msk.f32.gmra.mxu2 %vm400_vm0, %v7659_v1  ;;  %5670 = vmatmul.msk.f32.gmra.mxu3 %vm400_vm0, %v7659_v1 }
 0xceb   : > { %3177 = vmatpush.msrb.mxu1 %v5707_v5 }
 0xcf1   : > { %5676 = vmatmul.msk.f32.vlgmr.msra.gmra.mxu1 %vm400_vm0, %v7602_v43  ;;  %5685 = vmatmul.msk.f32.vlgmr.msra.gmra.mxu0 %vm400_vm0, %v7602_v43 }
 0xcf2   : > { %5694 = vmatmul.msk.f32.vlgmr.msra.gmra.mxu2 %vm400_vm0, %v7602_v43  ;;  %5703 = vmatmul.msk.f32.vlgmr.msra.gmra.mxu3 %vm400_vm0, %v7602_v43 }
 0xcf9   : > { %5677 = vmatmul.msk.f32.gmra.mxu1 %vm400_vm0, %v7632_v6  ;;  %5686 = vmatmul.msk.f32.gmra.mxu0 %vm400_vm0, %v7632_v6 }
 0xcfa   : > { %5695 = vmatmul.msk.f32.gmra.mxu2 %vm400_vm0, %v7632_v6  ;;  %5704 = vmatmul.msk.f32.gmra.mxu3 %vm400_vm0, %v7632_v6 }
 0xd01   : > { %5678 = vmatmul.msk.f32.gmra.mxu1 %vm400_vm0, %v7646_v56  ;;  %5687 = vmatmul.msk.f32.gmra.mxu0 %vm400_vm0, %v7646_v56 }
 0xd02   : > { %5696 = vmatmul.msk.f32.gmra.mxu2 %vm400_vm0, %v7646_v56  ;;  %5705 = vmatmul.msk.f32.gmra.mxu3 %vm400_vm0, %v7646_v56 }
 0xd09   : > { %5679 = vmatmul.msk.f32.gmra.mxu1 %vm400_vm0, %v7659_v1  ;;  %5688 = vmatmul.msk.f32.gmra.mxu0 %vm400_vm0, %v7659_v1 }
 0xd0a   : > { %5697 = vmatmul.msk.f32.gmra.mxu2 %vm400_vm0, %v7659_v1  ;;  %5706 = vmatmul.msk.f32.gmra.mxu3 %vm400_vm0, %v7659_v1 }
 0xd11   : > { %5712 = vmatmul.msk.f32.vlgmr.msrb.gmra.mxu1 %vm400_vm0, %v7602_v43  ;;  %5721 = vmatmul.msk.f32.vlgmr.msrb.gmra.mxu0 %vm400_vm0, %v7602_v43 }
 0xd12   : > { %5730 = vmatmul.msk.f32.vlgmr.msrb.gmra.mxu2 %vm400_vm0, %v7602_v43  ;;  %5739 = vmatmul.msk.f32.vlgmr.msrb.gmra.mxu3 %vm400_vm0, %v7602_v43 }
 0xd19   : > { %5713 = vmatmul.msk.f32.gmra.mxu1 %vm400_vm0, %v7632_v6  ;;  %5722 = vmatmul.msk.f32.gmra.mxu0 %vm400_vm0, %v7632_v6 }
 0xd1a   : > { %5731 = vmatmul.msk.f32.gmra.mxu2 %vm400_vm0, %v7632_v6  ;;  %5740 = vmatmul.msk.f32.gmra.mxu3 %vm400_vm0, %v7632_v6 }
 0xd21   : > { %5714 = vmatmul.msk.f32.gmra.mxu1 %vm400_vm0, %v7646_v56  ;;  %5723 = vmatmul.msk.f32.gmra.mxu0 %vm400_vm0, %v7646_v56 }
 0xd22   : > { %5732 = vmatmul.msk.f32.gmra.mxu2 %vm400_vm0, %v7646_v56  ;;  %5741 = vmatmul.msk.f32.gmra.mxu3 %vm400_vm0, %v7646_v56 }
 0xd29   : > { %5715 = vmatmul.msk.f32.gmra.mxu1 %vm400_vm0, %v7659_v1  ;;  %5724 = vmatmul.msk.f32.gmra.mxu0 %vm400_vm0, %v7659_v1 }
 0xd2a   : > { %5733 = vmatmul.msk.f32.gmra.mxu2 %vm400_vm0, %v7659_v1  ;;  %5742 = vmatmul.msk.f32.gmra.mxu3 %vm400_vm0, %v7659_v1 }
 0xd4d   : > { %v2867_v61 = vpop.f32.mrf.mxu1  ;;  %v2906_v3 = vpop.f32.mrf.mxu0 }
 0xd4e   : > { %v2907_v10 = vadd.f32 %v5995_v35, %v2906_v3  ;;  %v2868_v17 = vadd.f32 %v5994_v41, %v2867_v61  ;;  %v5997_v61 = vld [vmem:[%s8589_s3 + $0x11] ss:$0 sm:$0xff] }
 0xd54   : > { %v2945_v51 = vpop.f32.mrf.mxu2  ;;  %v7781_v24 = vpop.f32.mrf.mxu3 }
 0xd55   : > { %v2870_v49 = vpop.f32.mrf.mxu1  ;;  %v2909_v53 = vpop.f32.mrf.mxu0  ;;  %v2946_v4 = vadd.f32 %v5996_v38, %v2945_v51 }
 0xd56   : > { %v2910_v39 = vadd.f32 %v5995_v35, %v2909_v53  ;;  %v2871_v52 = vadd.f32 %v5994_v41, %v2870_v49 }
 0xd5c   : > { %v2948_v28 = vpop.f32.mrf.mxu2  ;;  %v7783_v29 = vpop.f32.mrf.mxu3 }
 0xd5d   : > { %v2873_v30 = vpop.f32.mrf.mxu1  ;;  %v2912_v31 = vpop.f32.mrf.mxu0  ;;  %v2949_v34 = vadd.f32 %v5996_v38, %v2948_v28  ;;  %v2985_v28 = vadd.f32 %v5997_v61, %v7781_v24 }
 0xd5e   : > { %v2913_v59 = vadd.f32 %v5995_v35, %v2912_v31  ;;  %v2874_v37 = vadd.f32 %v5994_v41, %v2873_v30 }
 0xd64   : > { %v2951_v58 = vpop.f32.mrf.mxu2  ;;  %v7785_v25 = vpop.f32.mrf.mxu3 }
 0xd65   : > { %v2952_v45 = vadd.f32 %v5996_v38, %v2951_v58  ;;  %v6000_v58 = vld [vmem:[%s8589_s3 + $0x12] ss:$0 sm:$0xff] }
 0xd66   : > { %v2876_v36 = vpop.f32.mrf.mxu1  ;;  %v2915_v33 = vpop.f32.mrf.mxu0 }
 0xd67   : > { %v2916_v12 = vadd.f32 %v5995_v35, %v2915_v33  ;;  %v2877_v18 = vadd.f32 %v5994_v41, %v2876_v36 }
 0xd69   : > { %5743 = vmatpush.xpose.msk.msra.mxu1 %vm869_vm1, %v2916_v12 }
 0xd6d   : > { %v2954_v46 = vpop.f32.mrf.mxu2  ;;  %v7794_v40 = vpop.f32.mrf.mxu3  ;;  %5744 = vmatpush.xpose.msk.msra.mxu1 %vm869_vm1, %v2913_v59  ;;  %v2988_v59 = vadd.f32 %v5997_v61, %v7783_v29 }
 0xd6e   : > { %v2955_v27 = vadd.f32 %v5996_v38, %v2954_v46  ;;  %v3023_v15 = vpop.f32.mrf.mxu1  ;;  %v3062_v42 = vpop.f32.mrf.mxu0  ;;  %v6002_v46 = vld [vmem:[%s8591_s5 + $0xa] ss:$0 sm:$0xff] }
 0xd6f   : > { %v3063_v60 = vadd.f32 %v5999_v16, %v3062_v42  ;;  %v3024_v51 = vadd.f32 %v5998_v55, %v3023_v15  ;;  %v2991_v42 = vadd.f32 %v5997_v61, %v7785_v25 }
 0xd70   : > { %3567 = vmatpush.msra.mxu3 %v2955_v27 }
 0xd71   : > { %5745 = vmatpush.xpose.msk.msra.mxu1 %vm869_vm1, %v2910_v39 }
 0xd72   : > { %3568 = vmatpush.msra.mxu3 %v2952_v45 }
 0xd74   : > { %3569 = vmatpush.msra.mxu3 %v2949_v34  ;;  %v6004_v34 = vld [vmem:[%s8589_s3 + $0x17] ss:$0 sm:$0xff] }
 0xd75   : > { %v3101_v20 = vpop.f32.mrf.mxu2  ;;  %v3140_v48 = vpop.f32.mrf.mxu3  ;;  %5746 = vmatpush.xpose.msk.msra.mxu1 %vm869_vm1, %v2907_v10  ;;  %v6005_v10 = vld [vmem:[%s8591_s5 + $0xb] ss:$0 sm:$0xff] }
 0xd76   : > { %3570 = vmatpush.msra.mxu3 %v2946_v4  ;;  %v3026_v19 = vpop.f32.mrf.mxu1  ;;  %v3065_v32 = vpop.f32.mrf.mxu0  ;;  %v3141_v35 = vadd.f32 %v6001_v13, %v3140_v48  ;;  %v3102_v36 = vadd.f32 %v6000_v58, %v3101_v20 }
 0xd77   : > { %v3066_v26 = vadd.f32 %v5999_v16, %v3065_v32  ;;  %v3027_v23 = vadd.f32 %v5998_v55, %v3026_v19  ;;  %v2994_v32 = vadd.f32 %v5997_v61, %v7794_v40 }
 0xd78   : > { %5747 = vmatmul.msk.f32.vlgmr.msra.gmra.mxu1 %vm869_vm1, %v2868_v17 }
 0xd7d   : > { %v3104_v21 = vpop.f32.mrf.mxu2  ;;  %v3143_v50 = vpop.f32.mrf.mxu3 }
 0xd7e   : > { %v3029_v54 = vpop.f32.mrf.mxu1  ;;  %v3068_v57 = vpop.f32.mrf.mxu0  ;;  %v3144_v30 = vadd.f32 %v6001_v13, %v3143_v50  ;;  %v3105_v24 = vadd.f32 %v6000_v58, %v3104_v21 }
 0xd7f   : > { %v3069_v9 = vadd.f32 %v5999_v16, %v3068_v57  ;;  %v3030_v11 = vadd.f32 %v5998_v55, %v3029_v54 }
 0xd80   : > { %5748 = vmatmul.msk.f32.gmra.mxu1 %vm869_vm1, %v2871_v52 }
 0xd85   : > { %v7810_v63 = vpop.f32.mrf.mxu2  ;;  %v3146_v2 = vpop.f32.mrf.mxu3 }
 0xd86   : > { %v3032_v0 = vpop.f32.mrf.mxu1  ;;  %v3071_v7 = vpop.f32.mrf.mxu0  ;;  %v3147_v3 = vadd.f32 %v6001_v13, %v3146_v2  ;;  %v3108_v25 = vadd.f32 %v6000_v58, %v7810_v63 }
 0xd87   : > { %v3033_v8 = vadd.f32 %v5998_v55, %v3032_v0  ;;  %v3072_v47 = vadd.f32 %v5999_v16, %v3071_v7 }
 0xd88   : > { %5749 = vmatmul.msk.f32.gmra.mxu1 %vm869_vm1, %v2874_v37 }
 0xd89   : > { %5751 = vmatpush.xpose.msk.msra.mxu0 %vm869_vm1, %v3033_v8  ;;  %3526 = vmatpush.msra.mxu2 %v3072_v47 }
 0xd8b   : > { %3527 = vmatpush.msra.mxu2 %v3069_v9 }
 0xd8d   : > { %v7817_v14 = vpop.f32.mrf.mxu2  ;;  %v3149_v44 = vpop.f32.mrf.mxu3  ;;  %5752 = vmatpush.xpose.msk.msra.mxu0 %vm869_vm1, %v3030_v11  ;;  %3528 = vmatpush.msra.mxu2 %v3066_v26 }
 0xd8e   : > { %v3150_v5 = vadd.f32 %v6001_v13, %v3149_v44  ;;  %v3179_v22 = vpop.f32.mrf.mxu1  ;;  %v3111_v57 = vadd.f32 %v6000_v58, %v7817_v14  ;;  %v7860_v16 = vpop.f32.mrf.mxu0 }
 0xd8f   : > { %3529 = vmatpush.msra.mxu2 %v3063_v60  ;;  %v3180_v4 = vadd.f32 %v6002_v46, %v3179_v22 }
 0xd90   : > { %5767 = vmatpush.xpose.msk.msrb.mxu1 %vm869_vm1, %v3150_v5 }
 0xd91   : > { %5750 = vmatmul.msk.f32.gmra.mxu1 %vm869_vm1, %v2877_v18  ;;  %5753 = vmatpush.xpose.msk.msra.mxu0 %vm869_vm1, %v3027_v23 }
 0xd94   : > { %5768 = vmatpush.xpose.msk.msrb.mxu1 %vm869_vm1, %v3147_v3 }
 0xd95   : > { %v3257_v49 = vpop.f32.mrf.mxu2  ;;  %v3296_v53 = vpop.f32.mrf.mxu3  ;;  %5754 = vmatpush.xpose.msk.msra.mxu0 %vm869_vm1, %v3024_v51 }
 0xd96   : > { %v3182_v31 = vpop.f32.mrf.mxu1  ;;  %v3297_v54 = vadd.f32 %v6005_v10, %v3296_v53  ;;  %v3258_v40 = vadd.f32 %v6004_v34, %v3257_v49  ;;  %v7862_v63 = vpop.f32.mrf.mxu0 }
 0xd97   : > { %v3183_v41 = vadd.f32 %v6002_v46, %v3182_v31 }
 0xd98   : > { %5769 = vmatpush.xpose.msk.msrb.mxu1 %vm869_vm1, %v3144_v30  ;;  %5755 = vmatmul.msk.f32.vlgmr.msra.gmra.mxu0 %vm869_vm1, %v2985_v28 }
 0xd9c   : > { %5770 = vmatpush.xpose.msk.msrb.mxu1 %vm869_vm1, %v3141_v35 }
 0xd9d   : > { %v3260_v33 = vpop.f32.mrf.mxu2  ;;  %v3299_v12 = vpop.f32.mrf.mxu3 }
 0xd9e   : > { %v3185_v38 = vpop.f32.mrf.mxu1  ;;  %v3300_v50 = vadd.f32 %v6005_v10, %v3299_v12  ;;  %v3261_v55 = vadd.f32 %v6004_v34, %v3260_v33  ;;  %v7864_v2 = vpop.f32.mrf.mxu0 }
 0xd9f   : > { %5771 = vmatmul.msk.f32.vlgmr.msrb.gmra.mxu1 %vm869_vm1, %v3102_v36  ;;  %v3186_v29 = vadd.f32 %v6002_v46, %v3185_v38 }
 0xda0   : > { %5756 = vmatmul.msk.f32.gmra.mxu0 %vm869_vm1, %v2988_v59 }
 0xda5   : > { %v3263_v27 = vpop.f32.mrf.mxu2  ;;  %v3302_v15 = vpop.f32.mrf.mxu3 }
 0xda6   : > { %v3188_v39 = vpop.f32.mrf.mxu1  ;;  %v3303_v21 = vadd.f32 %v6005_v10, %v3302_v15  ;;  %v3264_v52 = vadd.f32 %v6004_v34, %v3263_v27  ;;  %v7866_v37 = vpop.f32.mrf.mxu0 }
 0xda7   : > { %v3189_v45 = vadd.f32 %v6002_v46, %v3188_v39  ;;  %5772 = vmatmul.msk.f32.gmra.mxu1 %vm869_vm1, %v3105_v24 }
 0xda8   : > { %5757 = vmatmul.msk.f32.gmra.mxu0 %vm869_vm1, %v2991_v42 }
 0xda9   : > { %3705 = vmatpush.msrb.mxu0 %v3189_v45 }
 0xdab   : > { %3706 = vmatpush.msrb.mxu0 %v3186_v29 }
 0xdad   : > { %v3266_v20 = vpop.f32.mrf.mxu2  ;;  %v3305_v48 = vpop.f32.mrf.mxu3  ;;  %3707 = vmatpush.msrb.mxu0 %v3183_v41 }
 0xdae   : > { %v3267_v17 = vadd.f32 %v6004_v34, %v3266_v20  ;;  %v3306_v19 = vadd.f32 %v6005_v10, %v3305_v48 }
 0xdaf   : > { %5773 = vmatmul.msk.f32.gmra.mxu1 %vm869_vm1, %v3108_v25  ;;  %3708 = vmatpush.msrb.mxu0 %v3180_v4 }
 0xdb0   : > { %5779 = vmatpush.xpose.msk.msrb.mxu2 %vm869_vm1, %v3267_v17  ;;  %3847 = vmatpush.msrb.mxu3 %v3306_v19 }
 0xdb1   : > { %5758 = vmatmul.msk.f32.gmra.mxu0 %vm869_vm1, %v2994_v32 }
 0xdb2   : > { %3848 = vmatpush.msrb.mxu3 %v3303_v21 }
 0xdb4   : > { %5780 = vmatpush.xpose.msk.msrb.mxu2 %vm869_vm1, %v3264_v52  ;;  %3849 = vmatpush.msrb.mxu3 %v3300_v50  ;;  %v6003_v52 = vld [vmem:[%s8589_s3 + $0x13] ss:$0 sm:$0xff] }
 0xdb6   : > { %3850 = vmatpush.msrb.mxu3 %v3297_v54  ;;  %v3219_v54 = vadd.f32 %v6003_v52, %v7860_v16 }
 0xdb7   : > { %5774 = vmatmul.msk.f32.gmra.mxu1 %vm869_vm1, %v3111_v57  ;;  %v3222_v57 = vadd.f32 %v6003_v52, %v7862_v63 }
 0xdb8   : > { %5781 = vmatpush.xpose.msk.msrb.mxu2 %vm869_vm1, %v3261_v55  ;;  %v3225_v55 = vadd.f32 %v6003_v52, %v7864_v2 }
 0xdbc   : > { %5782 = vmatpush.xpose.msk.msrb.mxu2 %vm869_vm1, %v3258_v40  ;;  %v3228_v40 = vadd.f32 %v6003_v52, %v7866_v37 }
 0xdf5   : > { %v7872_v44 = vpop.f32.mrf.mxu1 }
 0xdf6   : > { %v3361_v59 = vsel %vm400_vm0, %v7872_v44, -inf }
 0xdfd   : > { %v7875_v51 = vpop.f32.mrf.mxu1 }
 0xdfe   : > { %v3364_v27 = vsel %vm400_vm0, %v7875_v51, -inf }
 0xe05   : > { %v7878_v58 = vpop.f32.mrf.mxu1 }
 0xe06   : > { %v3367_v39 = vsel %vm400_vm0, %v7878_v58, -inf }
 0xe0e   : > { %v7883_v24 = vpop.f32.mrf.mxu1 }
 0xe0f   : > { %v3370_v15 = vsel %vm400_vm0, %v7883_v24, -inf }
 0xe15   : > { %v3446_v0 = vpop.f32.mrf.mxu0 }
 0xe16   : > { %v3458_v7 = vsel %vm400_vm0, %v3446_v0, -inf }
 0xe17   : > { %3459 = vmax.xlane.f32.xlu1 %v3458_v7 }
 0xe1c   : > { %v7892_v45 = vpop.f32.mrf.mxu1 }
 0xe1d   : > { %v3449_v8 = vpop.f32.mrf.mxu0  ;;  %v3637_v29 = vsel %vm400_vm0, %v7892_v45, -inf }
 0xe1e   : > { %v3461_v47 = vsel %vm400_vm0, %v3449_v8, -inf }
 0xe1f   : > { %3462 = vmax.xlane.f32.xlu2 %v3461_v47 }
 0xe25   : > { %v3452_v9 = vpop.f32.mrf.mxu0 }
 0xe26   : > { %v3464_v26 = vsel %vm400_vm0, %v3452_v9, -inf }
 0xe27   : > { %3465 = vmax.xlane.f32.xlu0 %v3464_v26  ;;  %v3628_v26 = vpop.f32.mrf.mxu1 }
 0xe2e   : > { %v3455_v11 = vpop.f32.mrf.mxu0 }
 0xe2f   : > { %v3467_v13 = vsel %vm400_vm0, %v3455_v11, -inf }
 0xe30   : > { %3468 = vmax.xlane.f32.xlu1 %v3467_v13 }
 0xe8a   : > { %v3460_v60 = vpop.xlane.xlu1 %3459 }
 0xe8b   : > { %v3470_v14 = vsub.f32 %v3446_v0, %v3460_v60 }
 0xe8d   : > { %v3474_v5 = vmul.f32 1.442695, %v3470_v14  ;;  %v3640_v14 = vsel %vm400_vm0, %v3628_v26, -inf }
 0xe8f   : > { %6183 = vpow2.f32 %v3474_v5 }
 0xe92   : > { %v3463_v22 = vpop.xlane.xlu2 %3462 }
 0xe93   : > { %v3471_v18 = vsub.f32 %v3449_v8, %v3463_v22 }
 0xe95   : > { %v6184_v23 = vpop.eup %6183  ;;  %v3476_v61 = vmul.f32 1.442695, %v3471_v18  ;;  %v7924_v18 = vpop.f32.mrf.mxu1 }
 0xe96   : > { %v3482_v3 = vsel %vm400_vm0, %v6184_v23, 0.0 }
 0xe97   : > { %6185 = vpow2.f32 %v3476_v61  ;;  %3483 = vadd.xlane.f32.xlu2 %v3482_v3 }
 0xe9a   : > { %v3466_v49 = vpop.xlane.xlu0 %3465 }
 0xe9b   : > { %v3472_v53 = vsub.f32 %v3452_v9, %v3466_v49 }
 0xe9d   : > { %v6186_v28 = vpop.eup %6185  ;;  %v3478_v30 = vmul.f32 1.442695, %v3472_v53 }
 0xe9e   : > { %v3485_v31 = vsel %vm400_vm0, %v6186_v28, 0.0 }
 0xe9f   : > { %6187 = vpow2.f32 %v3478_v30  ;;  %3486 = vadd.xlane.f32.xlu0 %v3485_v31 }
 0xea3   : > { %v3469_v35 = vpop.xlane.xlu1 %3468 }
 0xea4   : > { %v3473_v36 = vsub.f32 %v3455_v11, %v3469_v35 }
 0xea5   : > { %v6188_v33 = vpop.eup %6187 }
 0xea6   : > { %v3480_v12 = vmul.f32 1.442695, %v3473_v36  ;;  %v3488_v38 = vsel %vm400_vm0, %v6188_v33, 0.0 }
 0xea7   : > { %3362 = vmax.xlane.f32.xlu0 %v3361_v59  ;;  %3489 = vadd.xlane.f32.xlu1 %v3488_v38 }
 0xea8   : > { %6189 = vpow2.f32 %v3480_v12 }
 0xeae   : > { %v6190_v46 = vpop.eup %6189 }
 0xeaf   : > { %3365 = vmax.xlane.f32.xlu1 %v3364_v27  ;;  %v3491_v42 = vsel %vm400_vm0, %v6190_v46, 0.0  ;;  %3371 = vmax.xlane.f32.xlu0 %v3370_v15 }
 0xeb0   : > { %3492 = vadd.xlane.f32.xlu2 %v3491_v42 }
 0xeb8   : > { %3368 = vmax.xlane.f32.xlu2 %v3367_v39 }
 0xec0   : > { %3638 = vmax.xlane.f32.xlu2 %v3637_v29 }
 0xf0a   : > { %v3484_v41 = vpop.xlane.xlu2 %3483 }
 0xf0b   : > { %6191 = vrcp.f32 %v3484_v41 }
 0xf11   : > { %v6192_v34 = vpop.eup %6191 }
 0xf12   : > { %v3498_v10 = vmul.f32 %v6192_v34, %v6184_v23  ;;  %v3487_v25 = vpop.xlane.xlu0 %3486 }
 0xf13   : > { %6193 = vrcp.f32 %v3487_v25 }
 0xf14   : > { %5759 = vmatmul.msk.f32.vlgmr.msra.gmra.mxu2 %vm400_vm0, %v3498_v10 }
 0xf19   : > { %v6194_v4 = vpop.eup %6193 }
 0xf1a   : > { %v3490_v20 = vpop.xlane.xlu1 %3489  ;;  %v3499_v48 = vmul.f32 %v6194_v4, %v6186_v28  ;;  %v3363_v47 = vpop.xlane.xlu0 %3362  ;;  %v3643_v28 = vsel %vm400_vm0, %v7924_v18, -inf }
 0xf1b   : > { %6195 = vrcp.f32 %v3490_v20  ;;  %v3373_v9 = vsub.f32 %v7872_v44, %v3363_v47 }
 0xf1c   : > { %5760 = vmatmul.msk.f32.gmra.mxu2 %vm400_vm0, %v3499_v48 }
 0xf1d   : > { %v3377_v11 = vmul.f32 1.442695, %v3373_v9 }
 0xf21   : > { %v6196_v17 = vpop.eup %6195 }
 0xf22   : > { %v3500_v19 = vmul.f32 %v6196_v17, %v6188_v33  ;;  %v3366_v37 = vpop.xlane.xlu1 %3365  ;;  %v3372_v23 = vpop.xlane.xlu0 %3371 }
 0xf23   : > { %v3493_v32 = vpop.xlane.xlu2 %3492  ;;  %v3374_v60 = vsub.f32 %v7875_v51, %v3366_v37  ;;  %v3376_v53 = vsub.f32 %v7883_v24, %v3372_v23  ;;  %v7935_v33 = vpop.f32.mrf.mxu1 }
 0xf24   : > { %6197 = vrcp.f32 %v3493_v32  ;;  %5761 = vmatmul.msk.f32.gmra.mxu2 %vm400_vm0, %v3500_v19  ;;  %v3646_v24 = vsel %vm400_vm0, %v7935_v33, -inf }
 0xf25   : > { %6199 = vpow2.f32 %v3377_v11  ;;  %v3379_v44 = vmul.f32 1.442695, %v3374_v60  ;;  %v3383_v35 = vmul.f32 1.442695, %v3376_v53 }
 0xf27   : > { %6201 = vpow2.f32 %v3379_v44 }
 0xf2a   : > { %v6198_v21 = vpop.eup %6197 }
 0xf2b   : > { %v3501_v50 = vmul.f32 %v6198_v21, %v6190_v46  ;;  %v3369_v22 = vpop.xlane.xlu2 %3368  ;;  %v7926_v61 = vpop.eup %6199 }
 0xf2c   : > { %v3375_v3 = vsub.f32 %v7878_v58, %v3369_v22  ;;  %v3385_v30 = vsel %vm400_vm0, %v7926_v61, 0.0 }
 0xf2d   : > { %5762 = vmatmul.msk.f32.gmra.mxu2 %vm400_vm0, %v3501_v50  ;;  %v7937_v58 = vpop.eup %6201 }
 0xf2e   : > { %v3381_v31 = vmul.f32 1.442695, %v3375_v3  ;;  %v3388_v46 = vsel %vm400_vm0, %v7937_v58, 0.0 }
 0xf30   : > { %6203 = vpow2.f32 %v3381_v31 }
 0xf31   : > { %6205 = vpow2.f32 %v3383_v35 }
 0xf33   : > { %v3639_v36 = vpop.xlane.xlu2 %3638 }
 0xf34   : > { %v3649_v12 = vsub.f32 %v7892_v45, %v3639_v36 }
 0xf35   : > { %5783 = vmatmul.msk.f32.vlgmr.msrb.gmra.mxu2 %vm869_vm1, %v3219_v54 }
 0xf36   : > { %v3653_v27 = vmul.f32 1.442695, %v3649_v12  ;;  %v7945_v15 = vpop.eup %6203 }
 0xf37   : > { %v7947_v42 = vpop.eup %6205  ;;  %v3391_v39 = vsel %vm400_vm0, %v7945_v15, 0.0 }
 0xf38   : > { %6207 = vpow2.f32 %v3653_v27  ;;  %v3394_v45 = vsel %vm400_vm0, %v7947_v42, 0.0 }
 0xf3d   : > { %5784 = vmatmul.msk.f32.gmra.mxu2 %vm869_vm1, %v3222_v57 }
 0xf3e   : > { %v7953_v29 = vpop.eup %6207 }
 0xf3f   : > { %v3661_v41 = vsel %vm400_vm0, %v7953_v29, 0.0 }
 0xf45   : > { %5785 = vmatmul.msk.f32.gmra.mxu2 %vm869_vm1, %v3225_v55 }
 0xf4d   : > { %5786 = vmatmul.msk.f32.gmra.mxu2 %vm869_vm1, %v3228_v40 }
 0xf97   : > { %v7911_v0 = vpop.f32.mrf.mxu2 }
 0xf9f   : > { %v7913_v7 = vpop.f32.mrf.mxu2 }
 0xfa7   : > { %v7915_v8 = vpop.f32.mrf.mxu2 }
 0xfb0   : > { %v7917_v16 = vpop.f32.mrf.mxu2 }
 0xfb8   : > { %v3767_v63 = vpop.f32.mrf.mxu2 }
 0xfb9   : > { %v3779_v2 = vsel %vm400_vm0, %v3767_v63, -inf }
 0xfba   : > { %3780 = vmax.xlane.f32.xlu1 %v3779_v2 }
 0xfc0   : > { %v3770_v13 = vpop.f32.mrf.mxu2 }
 0xfc1   : > { %v3782_v5 = vsel %vm400_vm0, %v3770_v13, -inf }
 0xfc2   : > { %3641 = vmax.xlane.f32.xlu1 %v3640_v14  ;;  %3783 = vmax.xlane.f32.xlu0 %v3782_v5 }
 0xfc8   : > { %v3773_v49 = vpop.f32.mrf.mxu2 }
 0xfc9   : > { %v3785_v51 = vsel %vm400_vm0, %v3773_v49, -inf }
 0xfca   : > { %3786 = vmax.xlane.f32.xlu2 %v3785_v51  ;;  %3644 = vmax.xlane.f32.xlu1 %v3643_v28 }
 0xfcb   : > { %3386 = vadd.xlane.f32.xlu0 %v3385_v30 }
 0xfd0   : > { %v3776_v59 = vpop.f32.mrf.mxu2 }
 0xfd1   : > { %v3788_v38 = vsel %vm400_vm0, %v3776_v59, -inf }
 0xfd2   : > { %3789 = vmax.xlane.f32.xlu2 %v3788_v38  ;;  %3647 = vmax.xlane.f32.xlu1 %v3646_v24 }
 0xfd3   : > { %3389 = vadd.xlane.f32.xlu0 %v3388_v46 }
 0xfda   : > { %3392 = vadd.xlane.f32.xlu2 %v3391_v39 }
 0xfdb   : > { %3395 = vadd.xlane.f32.xlu0 %v3394_v45 }
 0xfe2   : > { %3662 = vadd.xlane.f32.xlu2 %v3661_v41 }
0x102d   : > { %v3781_v34 = vpop.xlane.xlu1 %3780 }
0x102e   : > { %v3791_v10 = vsub.f32 %v3767_v63, %v3781_v34 }
0x1030   : > { %v3795_v25 = vmul.f32 1.442695, %v3791_v10 }
0x1032   : > { %6209 = vpow2.f32 %v3795_v25 }
0x1035   : > { %v3642_v4 = vpop.xlane.xlu1 %3641  ;;  %v3784_v20 = vpop.xlane.xlu0 %3783 }
0x1036   : > { %v3650_v48 = vsub.f32 %v3628_v26, %v3642_v4  ;;  %v3792_v17 = vsub.f32 %v3770_v13, %v3784_v20 }
0x1038   : > { %v7957_v19 = vpop.eup %6209  ;;  %v3655_v32 = vmul.f32 1.442695, %v3650_v48  ;;  %v3797_v21 = vmul.f32 1.442695, %v3792_v17 }
0x1039   : > { %v3803_v50 = vsel %vm400_vm0, %v7957_v19, 0.0 }
0x103a   : > { %6211 = vpow2.f32 %v3655_v32  ;;  %3804 = vadd.xlane.f32.xlu1 %v3803_v50 }
0x103b   : > { %6213 = vpow2.f32 %v3797_v21 }
0x103d   : > { %v3787_v52 = vpop.xlane.xlu2 %3786  ;;  %v3645_v54 = vpop.xlane.xlu1 %3644 }
0x103e   : > { %v3793_v57 = vsub.f32 %v3773_v49, %v3787_v52  ;;  %v3651_v55 = vsub.f32 %v7924_v18, %v3645_v54  ;;  %v3387_v40 = vpop.xlane.xlu0 %3386 }
0x103f   : > { %6215 = vrcp.f32 %v3387_v40 }
0x1040   : > { %v7962_v47 = vpop.eup %6211  ;;  %v3799_v63 = vmul.f32 1.442695, %v3793_v57  ;;  %v3657_v9 = vmul.f32 1.442695, %v3651_v55 }
0x1041   : > { %v7964_v2 = vpop.eup %6213  ;;  %v3664_v26 = vsel %vm400_vm0, %v7962_v47, 0.0 }
0x1042   : > { %6217 = vpow2.f32 %v3799_v63  ;;  %3665 = vadd.xlane.f32.xlu1 %v3664_v26  ;;  %v3806_v11 = vsel %vm400_vm0, %v7964_v2, 0.0 }
0x1043   : > { %6219 = vpow2.f32 %v3657_v9  ;;  %3807 = vadd.xlane.f32.xlu0 %v3806_v11 }
0x1045   : > { %v6216_v37 = vpop.eup %6215  ;;  %v3790_v13 = vpop.xlane.xlu2 %3789 }
0x1046   : > { %v3648_v60 = vpop.xlane.xlu1 %3647  ;;  %v3401_v14 = vmul.f32 %v6216_v37, %v7926_v61  ;;  %v3794_v5 = vsub.f32 %v3776_v59, %v3790_v13  ;;  %v3390_v18 = vpop.xlane.xlu0 %3389  ;;  %v6006_v13 = vld [vmem:[%s8595_s9 + $0x9] ss:$0 sm:$0xff] }
0x1047   : > { %v3652_v22 = vsub.f32 %v7935_v33, %v3648_v60  ;;  %6221 = vrcp.f32 %v3390_v18 }
0x1048   : > { %v6218_v44 = vpop.eup %6217  ;;  %v3801_v23 = vmul.f32 1.442695, %v3794_v5  ;;  %5763 = vmatmul.msk.f32.vlgmr.msra.gmra.mxu3 %vm400_vm0, %v3401_v14 }
0x1049   : > { %v3659_v3 = vmul.f32 1.442695, %v3652_v22  ;;  %v6220_v49 = vpop.eup %6219  ;;  %v3809_v53 = vsel %vm400_vm0, %v6218_v44, 0.0 }
0x104a   : > { %6223 = vpow2.f32 %v3801_v23  ;;  %3810 = vadd.xlane.f32.xlu2 %v3809_v53  ;;  %v3667_v51 = vsel %vm400_vm0, %v6220_v49, 0.0 }
0x104b   : > { %6225 = vpow2.f32 %v3659_v3  ;;  %3668 = vadd.xlane.f32.xlu0 %v3667_v51 }
0x104d   : > { %v6222_v61 = vpop.eup %6221  ;;  %v3393_v28 = vpop.xlane.xlu2 %3392 }
0x104e   : > { %6227 = vrcp.f32 %v3393_v28  ;;  %v3402_v30 = vmul.f32 %v6222_v61, %v7937_v58  ;;  %v3396_v33 = vpop.xlane.xlu0 %3395 }
0x104f   : > { %6229 = vrcp.f32 %v3396_v33 }
0x1050   : > { %v6224_v31 = vpop.eup %6223  ;;  %5764 = vmatmul.msk.f32.gmra.mxu3 %vm400_vm0, %v3402_v30 }
0x1051   : > { %v6226_v35 = vpop.eup %6225  ;;  %v3812_v36 = vsel %vm400_vm0, %v6224_v31, 0.0 }
0x1052   : > { %3813 = vadd.xlane.f32.xlu1 %v3812_v36  ;;  %v3670_v12 = vsel %vm400_vm0, %v6226_v35, 0.0 }
0x1053   : > { %3671 = vadd.xlane.f32.xlu2 %v3670_v12 }
0x1054   : > { %v6228_v59 = vpop.eup %6227 }
0x1055   : > { %v3663_v38 = vpop.xlane.xlu2 %3662  ;;  %v3403_v24 = vmul.f32 %v6228_v59, %v7945_v15  ;;  %v6230_v58 = vpop.eup %6229 }
0x1056   : > { %6231 = vrcp.f32 %v3663_v38  ;;  %v3404_v39 = vmul.f32 %v6230_v58, %v7947_v42 }
0x1058   : > { %5765 = vmatmul.msk.f32.gmra.mxu3 %vm400_vm0, %v3403_v24 }
0x105c   : > { %v6232_v46 = vpop.eup %6231 }
0x105d   : > { %v3677_v27 = vmul.f32 %v6232_v46, %v7953_v29 }
0x105f   : > { %5775 = vmatmul.msk.f32.vlgmr.msrb.gmra.mxu0 %vm400_vm0, %v3677_v27 }
0x1060   : > { %5766 = vmatmul.msk.f32.gmra.mxu3 %vm400_vm0, %v3404_v39 }
0x10ad   : > { %v3805_v45 = vpop.xlane.xlu1 %3804 }
0x10ae   : > { %6233 = vrcp.f32 %v3805_v45 }
0x10b4   : > { %v6234_v41 = vpop.eup %6233 }
0x10b5   : > { %v3819_v34 = vmul.f32 %v6234_v41, %v7957_v19  ;;  %v3666_v10 = vpop.xlane.xlu1 %3665 }
0x10b6   : > { %6235 = vrcp.f32 %v3666_v10  ;;  %v3808_v15 = vpop.xlane.xlu0 %3807 }
0x10b7   : > { %6237 = vrcp.f32 %v3808_v15  ;;  %5787 = vmatmul.msk.f32.vlgmr.msrb.gmra.mxu3 %vm400_vm0, %v3819_v34 }
0x10bc   : > { %v6236_v25 = vpop.eup %6235 }
0x10bd   : > { %v6238_v4 = vpop.eup %6237  ;;  %v3811_v29 = vpop.xlane.xlu2 %3810  ;;  %v3678_v42 = vmul.f32 %v6236_v25, %v7962_v47 }
0x10be   : > { %6239 = vrcp.f32 %v3811_v29  ;;  %v3669_v20 = vpop.xlane.xlu0 %3668  ;;  %v3820_v48 = vmul.f32 %v6238_v4, %v7964_v2 }
0x10bf   : > { %6241 = vrcp.f32 %v3669_v20  ;;  %5776 = vmatmul.msk.f32.gmra.mxu0 %vm400_vm0, %v3678_v42 }
0x10c0   : > { %5788 = vmatmul.msk.f32.gmra.mxu3 %vm400_vm0, %v3820_v48 }
0x10c4   : > { %v6240_v17 = vpop.eup %6239 }
0x10c5   : > { %v6242_v19 = vpop.eup %6241  ;;  %v3814_v32 = vpop.xlane.xlu1 %3813  ;;  %v3821_v21 = vmul.f32 %v6240_v17, %v6218_v44 }
0x10c6   : > { %v3672_v50 = vpop.xlane.xlu2 %3671  ;;  %6243 = vrcp.f32 %v3814_v32  ;;  %v3679_v52 = vmul.f32 %v6242_v19, %v6220_v49 }
0x10c7   : > { %6245 = vrcp.f32 %v3672_v50  ;;  %v5827_v50 = vld [vmem:[%s8588_s2 + $0x3b8] sm:$0xff] }
0x10c8   : > { %5777 = vmatmul.msk.f32.gmra.mxu0 %vm400_vm0, %v3679_v52  ;;  %5789 = vmatmul.msk.f32.gmra.mxu3 %vm400_vm0, %v3821_v21  ;;  %v5826_v52 = vld [vmem:[%s8588_s2 + $0x3b0] sm:$0xff] }
0x10c9   : > { %4159 = vmatpush.msra.mxu3 %v5827_v50 }
0x10cb   : > { %v3572_v47 = vpop.f32.mrf.mxu3  ;;  %4160 = vmatpush.msra.mxu3 %v5826_v52 }
0x10cc   : > { %v6244_v54 = vpop.eup %6243  ;;  %v3573_v11 = vadd.f32 %v3572_v47, %v7911_v0  ;;  %v5847_v47 = vld [vmem:[%s8588_s2 + $0x3d0] sm:$0xff] }
0x10cd   : > { %v6246_v57 = vpop.eup %6245  ;;  %v3822_v55 = vmul.f32 %v6244_v54, %v6224_v31  ;;  %v5825_v54 = vld [vmem:[%s8588_s2 + $0x3a8] sm:$0xff] }
0x10ce   : > { %v3680_v40 = vmul.f32 %v6246_v57, %v6226_v35  ;;  %4161 = vmatpush.msra.mxu3 %v5825_v54  ;;  %v5824_v57 = vld [vmem:[%s8588_s2 + $0x3a0] sm:$0xff] }
0x10d0   : > { %5778 = vmatmul.msk.f32.gmra.mxu0 %vm400_vm0, %v3680_v40  ;;  %5790 = vmatmul.msk.f32.gmra.mxu3 %vm400_vm0, %v3822_v55  ;;  %v8047_v55 = vld [vmem:[%s6967_s24] sm:$0xff]  ;;  %v5848_v40 = vld [vmem:[%s8588_s2 + $0x3d8] sm:$0xff] }
0x10d1   : > { %4162 = vmatpush.msra.mxu3 %v5824_v57 }
0x10d3   : > { %v3575_v63 = vpop.f32.mrf.mxu3  ;;  %4258 = vmatpush.msrb.mxu3 %v5848_v40 }
0x10d4   : > { %v3576_v44 = vadd.f32 %v3575_v63, %v7913_v7  ;;  %v5846_v63 = vld [vmem:[%s8588_s2 + $0x3c8] sm:$0xff] }
0x10d5   : > { %4259 = vmatpush.msrb.mxu3 %v5847_v47 }
0x10d7   : > { %4260 = vmatpush.msrb.mxu3 %v5846_v63 }
0x10d8   : > { %5829 = vmatmul.msk.f32.vlgmr.msra.gmra.mxu3 %vm400_vm0, %v8047_v55 }
0x10db   : > { %v3578_v9 = vpop.f32.mrf.mxu3 }
0x10dc   : > { %v3710_v26 = vpop.f32.mrf.mxu0  ;;  %v3579_v61 = vadd.f32 %v3578_v9, %v7915_v8  ;;  %v5806_v9 = vld [vmem:[%s8588_s2 + $0x398] sm:$0xff] }
0x10dd   : > { %v3722_v37 = vadd.f32 %v3710_v26, %v3573_v11  ;;  %4060 = vmatpush.msra.mxu0 %v5806_v9  ;;  %v5805_v26 = vld [vmem:[%s8588_s2 + $0x390] sm:$0xff]  ;;  %v5818_v11 = vld [vmem:[%s8588_s2 + $0x338] sm:$0xff] }
0x10de   : > { %4120 = vmatpush.msra.mxu2 %v5818_v11 }
0x10df   : > { %4061 = vmatpush.msra.mxu0 %v5805_v26 }
0x10e3   : > { %v3581_v2 = vpop.f32.mrf.mxu3 }
0x10e4   : > { %v3582_v33 = vadd.f32 %v3581_v2, %v7917_v16  ;;  %v5845_v2 = vld [vmem:[%s8588_s2 + $0x3c0] sm:$0xff] }
0x10e5   : > { %4261 = vmatpush.msrb.mxu3 %v5845_v2 }
0x10e6   : > { %5850 = vmatmul.msk.f32.vlgmr.msrb.gmra.mxu3 %vm400_vm0, %v8047_v55 }
0x113a   : > { %v3852_v60 = vpop.f32.mrf.mxu3 }
0x113b   : > { %v3864_v14 = vadd.f32 %v3852_v60, %v3722_v37  ;;  %v5797_v37 = vld [vmem:[%s8588_s2 + $0x318] sm:$0xff]  ;;  %v5804_v60 = vld [vmem:[%s8588_s2 + $0x388] sm:$0xff] }
0x113c   : > { %v3713_v5 = vpop.f32.mrf.mxu0  ;;  %4021 = vmatpush.msra.mxu1 %v5797_v37  ;;  %4062 = vmatpush.msra.mxu0 %v5804_v60 }
0x113d   : > { %v3871_v22 = vadd.f32 %v6006_v13, %v3864_v14  ;;  %v3723_v3 = vadd.f32 %v3713_v5, %v3576_v44  ;;  %v5817_v14 = vld [vmem:[%s8588_s2 + $0x330] sm:$0xff]  ;;  %v5795_v44 = vld [vmem:[%s8588_s2 + $0x308] sm:$0xff] }
0x113e   : > { %v5796_v5 = vld [vmem:[%s8588_s2 + $0x310] sm:$0xff]  ;;  %4121 = vmatpush.msra.mxu2 %v5817_v14 }
0x113f   : > { %v3875_v18 = vadd.f32 %v3871_v22, %v7602_v43  ;;  %v5859_v22 = vld [vmem:[%s8588_s2 + $0x370] sm:$0xff]  ;;  %4022 = vmatpush.msra.mxu1 %v5796_v5 }
0x1141   : > { %v3883_v23 = vsel %vm400_vm0, %v3875_v18, 0.0  ;;  %4023 = vmatpush.msra.mxu1 %v5795_v44 }
0x1142   : > { %3884 = vadd.xlane.f32.xlu0 %v3883_v23  ;;  %v5816_v23 = vld [vmem:[%s8588_s2 + $0x328] sm:$0xff] }
0x1143   : > { %v3855_v49 = vpop.f32.mrf.mxu3  ;;  %4122 = vmatpush.msra.mxu2 %v5816_v23 }
0x1144   : > { %v3865_v53 = vadd.f32 %v3855_v49, %v3723_v3  ;;  %v5858_v3 = vld [vmem:[%s8588_s2 + $0x368] sm:$0xff]  ;;  %v5794_v49 = vld [vmem:[%s8588_s2 + $0x300] sm:$0xff] }
0x1145   : > { %v3716_v0 = vpop.f32.mrf.mxu0  ;;  %4024 = vmatpush.msra.mxu1 %v5794_v49  ;;  %v5812_v49 = vld [vmem:[%s8590_s4 + $0x198] sm:$0xff] }
0x1146   : > { %v3872_v51 = vadd.f32 %v6006_v13, %v3865_v53  ;;  %v3724_v30 = vadd.f32 %v3716_v0, %v3579_v61  ;;  %v5815_v53 = vld [vmem:[%s8588_s2 + $0x320] sm:$0xff] }
0x1147   : > { %v5857_v0 = vld [vmem:[%s8588_s2 + $0x360] sm:$0xff]  ;;  %4123 = vmatpush.msra.mxu2 %v5815_v53  ;;  %v5811_v53 = vld [vmem:[%s8590_s4 + $0x190] sm:$0xff] }
0x1148   : > { %v3876_v28 = vadd.f32 %v3872_v51, %v7632_v6 }
0x114a   : > { %v3886_v31 = vsel %vm400_vm0, %v3876_v28, 0.0 }
0x114b   : > { %3887 = vadd.xlane.f32.xlu1 %v3886_v31  ;;  %v3858_v35 = vpop.f32.mrf.mxu3 }
0x114c   : > { %v3866_v43 = vadd.f32 %v3858_v35, %v3724_v30 }
0x114d   : > { %v3719_v7 = vpop.f32.mrf.mxu0 }
0x114e   : > { %v3873_v36 = vadd.f32 %v6006_v13, %v3866_v43  ;;  %v3725_v59 = vadd.f32 %v3719_v7, %v3582_v33 }
0x1150   : > { %v3877_v12 = vadd.f32 %v3873_v36, %v7646_v56 }
0x1152   : > { %v3889_v38 = vsel %vm400_vm0, %v3877_v12, 0.0 }
0x1153   : > { %v3861_v24 = vpop.f32.mrf.mxu3  ;;  %3890 = vadd.xlane.f32.xlu2 %v3889_v38 }
0x1154   : > { %v3867_v8 = vadd.f32 %v3861_v24, %v3725_v59 }
0x1156   : > { %v3874_v58 = vadd.f32 %v6006_v13, %v3867_v8  ;;  %v5860_v13 = vld [vmem:[%s8588_s2 + $0x378] sm:$0xff] }
0x1157   : > { %4318 = vmatpush.msra.mxu3 %v5860_v13 }
0x1158   : > { %v3878_v6 = vadd.f32 %v3874_v58, %v7659_v1 }
0x1159   : > { %4319 = vmatpush.msra.mxu3 %v5859_v22 }
0x115a   : > { %v3892_v46 = vsel %vm400_vm0, %v3878_v6, 0.0 }
0x115b   : > { %3893 = vadd.xlane.f32.xlu0 %v3892_v46  ;;  %4320 = vmatpush.msra.mxu3 %v5858_v3 }
0x115d   : > { %4321 = vmatpush.msra.mxu3 %v5857_v0  ;;  %v5809_v0 = vld [vmem:[%s8590_s4 + $0x180] sm:$0xff] }
0x11b5   : > { %v3885_v27 = vpop.xlane.xlu0 %3884 }
0x11b6   : > { %v3895_v39 = vmul.f32 %v3885_v27, %v6927_v62 }
0x11b8   : > { %v8011_v45 = vsub.f32 %v3875_v18, %v3895_v39  ;;  %v5803_v18 = vld [vmem:[%s8588_s2 + $0x380] sm:$0xff]  ;;  %v6008_v39 = vld [vmem:[%s8595_s9 + $0xf] ss:$0 sm:$0xff] }
0x11b9   : > { %4063 = vmatpush.msra.mxu0 %v5803_v18 }
0x11ba   : > { %v3903_v56 = vmul.f32 %v8011_v45, %v8011_v45  ;;  %5808 = vmatmul.msk.f32.vlgmr.msra.gmra.mxu0 %vm400_vm0, %v8047_v55 }
0x11bb   : > { %4090 = vmatpush.msrb.mxu0 %v5812_v49 }
0x11bc   : > { %v3907_v16 = vsel %vm400_vm0, %v3903_v56, 0.0 }
0x11bd   : > { %3908 = vadd.xlane.f32.xlu1 %v3907_v16  ;;  %4091 = vmatpush.msrb.mxu0 %v5811_v53 }
0x11be   : > { %v3888_v41 = vpop.xlane.xlu1 %3887 }
0x11bf   : > { %v3896_v34 = vmul.f32 %v3888_v41, %v6927_v62  ;;  %v5839_v41 = vld [vmem:[%s8588_s2 + $0x358] sm:$0xff] }
0x11c0   : > { %4219 = vmatpush.msrb.mxu1 %v5839_v41 }
0x11c1   : > { %v8017_v10 = vsub.f32 %v3876_v28, %v3896_v34  ;;  %v5838_v34 = vld [vmem:[%s8588_s2 + $0x350] sm:$0xff] }
0x11c2   : > { %4220 = vmatpush.msrb.mxu1 %v5838_v34 }
0x11c3   : > { %v3904_v1 = vmul.f32 %v8017_v10, %v8017_v10 }
0x11c5   : > { %v3910_v15 = vsel %vm400_vm0, %v3904_v1, 0.0 }
0x11c6   : > { %3911 = vadd.xlane.f32.xlu2 %v3910_v15  ;;  %v3891_v25 = vpop.xlane.xlu2 %3890 }
0x11c7   : > { %v3897_v4 = vmul.f32 %v3891_v25, %v6927_v62 }
0x11c9   : > { %v8023_v29 = vsub.f32 %v3877_v12, %v3897_v4  ;;  %v5837_v4 = vld [vmem:[%s8588_s2 + $0x348] sm:$0xff] }
0x11ca   : > { %4221 = vmatpush.msrb.mxu1 %v5837_v4 }
0x11cb   : > { %v3905_v42 = vmul.f32 %v8023_v29, %v8023_v29 }
0x11cd   : > { %v3913_v20 = vsel %vm400_vm0, %v3905_v42, 0.0 }
0x11ce   : > { %3914 = vadd.xlane.f32.xlu0 %v3913_v20  ;;  %v3894_v48 = vpop.xlane.xlu0 %3893 }
0x11cf   : > { %v3898_v17 = vmul.f32 %v3894_v48, %v6927_v62  ;;  %v5836_v48 = vld [vmem:[%s8588_s2 + $0x340] sm:$0xff] }
0x11d0   : > { %4222 = vmatpush.msrb.mxu1 %v5836_v48 }
0x11d1   : > { %v8029_v19 = vsub.f32 %v3878_v6, %v3898_v17  ;;  %v8121_v6 = vld [vmem:[%s8595_s9 + $0xc] ss:$0 sm:$0xff] }
0x11d3   : > { %v3906_v32 = vmul.f32 %v8029_v19, %v8029_v19 }
0x11d5   : > { %v3916_v21 = vsel %vm400_vm0, %v3906_v32, 0.0 }
0x11d6   : > { %3917 = vadd.xlane.f32.xlu1 %v3916_v21 }
0x1230   : > { %v3909_v51 = vpop.xlane.xlu1 %3908 }
0x1231   : > { %v3919_v61 = vmul.f32 %v3909_v51, %v6927_v62  ;;  %v5833_v51 = vld [vmem:[%s8590_s4 + $0x1b8] sm:$0xff] }
0x1233   : > { %v3923_v28 = vadd.f32 1e-05, %v3919_v61  ;;  %v5832_v61 = vld [vmem:[%s8590_s4 + $0x1b0] sm:$0xff] }
0x1235   : > { %6247 = vrsqrt.f32 %v3923_v28  ;;  %vm3933_vm14 = vweird.f32 %v3923_v28 }
0x1239   : > { %v3912_v30 = vpop.xlane.xlu2 %3911 }
0x123a   : > { %v3920_v31 = vmul.f32 %v3912_v30, %v6927_v62  ;;  %v5830_v30 = vld [vmem:[%s8590_s4 + $0x1a0] sm:$0xff] }
0x123b   : > { %v6248_v35 = vpop.eup %6247 }
0x123c   : > { %v3928_v43 = vmul.f32 %v6248_v35, %v3923_v28  ;;  %v3924_v36 = vadd.f32 1e-05, %v3920_v31  ;;  %vm3934_vm12 = vweird.f32 %v6248_v35  ;;  %v5831_v28 = vld [vmem:[%s8590_s4 + $0x1a8] sm:$0xff]  ;;  %v5854_v31 = vld [vmem:[%s8590_s4 + $0x1d8] sm:$0xff] }
0x123d   : > { %vm3935_vm15 = vmor %vm3933_vm14, %vm3934_vm12 }
0x123e   : > { %v3929_v7 = vmul.f32 %v6248_v35, %v3928_v43  ;;  %6249 = vrsqrt.f32 %v3924_v36  ;;  %vm3943_vm3 = vweird.f32 %v3924_v36  ;;  %v5852_v43 = vld [vmem:[%s8590_s4 + $0x1c8] sm:$0xff] }
0x1240   : > { %v3930_v33 = vmul.f32 0.5, %v3929_v7  ;;  %v5869_v7 = vld [vmem:[%s8588_s2 + $0x3f8] sm:$0xff] }
0x1241   : > { %v3915_v12 = vpop.xlane.xlu0 %3914 }
0x1242   : > { %v3931_v59 = vsub.f32 1.5, %v3930_v33  ;;  %v3921_v38 = vmul.f32 %v3915_v12, %v6927_v62  ;;  %v5868_v33 = vld [vmem:[%s8588_s2 + $0x3f0] sm:$0xff]  ;;  %v5867_v12 = vld [vmem:[%s8588_s2 + $0x3e8] sm:$0xff] }
0x1244   : > { %v6250_v24 = vpop.eup %6249  ;;  %v3932_v8 = vmul.f32 %v6248_v35, %v3931_v59  ;;  %v3925_v58 = vadd.f32 1e-05, %v3921_v38  ;;  %v5866_v59 = vld [vmem:[%s8588_s2 + $0x3e0] sm:$0xff]  ;;  %v5875_v38 = vld [vmem:[%s8590_s4 + $0x1f8] sm:$0xff] }
0x1245   : > { %v3938_v46 = vmul.f32 %v6250_v24, %v3924_v36  ;;  %vm3944_vm2 = vweird.f32 %v6250_v24  ;;  %v5851_v36 = vld [vmem:[%s8590_s4 + $0x1c0] sm:$0xff] }
0x1246   : > { %v3936_v27 = vsel %vm3935_vm15, %v6248_v35, %v3932_v8  ;;  %6251 = vrsqrt.f32 %v3925_v58  ;;  %vm3945_vm4 = vmor %vm3943_vm3, %vm3944_vm2  ;;  %vm3953_vm6 = vweird.f32 %v3925_v58  ;;  %v5853_v35 = vld [vmem:[%s8590_s4 + $0x1d0] sm:$0xff]  ;;  %v5873_v8 = vld [vmem:[%s8590_s4 + $0x1e8] sm:$0xff] }
0x1247   : > { %v3967_v56 = vmul.f32 %v3936_v27, %v8011_v45  ;;  %v3939_v16 = vmul.f32 %v6250_v24, %v3938_v46  ;;  %v6009_v46 = vld [vmem:[%s8589_s3 + $0x1d] ss:$0 sm:$0xff]  ;;  %v6011_v27 = vld [vmem:[%s8589_s3 + $0x1e] ss:$0 sm:$0xff] }
0x1249   : > { %v3974_v1 = vmul.f32 %v8121_v6, %v3967_v56  ;;  %v3940_v15 = vmul.f32 0.5, %v3939_v16  ;;  %v3918_v25 = vpop.xlane.xlu1 %3917 }
0x124a   : > { %v3922_v45 = vmul.f32 %v3918_v25, %v6927_v62 }
0x124b   : > { %v8138_v42 = vadd.f32 %v6008_v39, %v3974_v1  ;;  %v3941_v20 = vsub.f32 1.5, %v3940_v15  ;;  %v5872_v1 = vld [vmem:[%s8590_s4 + $0x1e0] sm:$0xff]  ;;  %v6012_v15 = vld [vmem:[%s8589_s3 + $0x18] ss:$0 sm:$0xff] }
0x124c   : > { %v6252_v17 = vpop.eup %6251  ;;  %v3926_v32 = vadd.f32 1e-05, %v3922_v45  ;;  %v6013_v45 = vld [vmem:[%s8589_s3 + $0x19] ss:$0 sm:$0xff] }
0x124d   : > { %v3942_v21 = vmul.f32 %v6250_v24, %v3941_v20  ;;  %v3948_v50 = vmul.f32 %v6252_v17, %v3925_v58  ;;  %5799 = vmatmul.msk.f32.vlgmr.msra.gmra.mxu1 %vm400_vm0, %v8138_v42  ;;  %5820 = vmatmul.msk.f32.vlgmr.msra.gmra.mxu2 %vm400_vm0, %v8138_v42  ;;  %vm3954_vm5 = vweird.f32 %v6252_v17  ;;  %v4164_v58 = vpop.f32.mrf.mxu3 }
0x124e   : > { %6253 = vrsqrt.f32 %v3926_v32  ;;  %5862 = vmatmul.msk.f32.vlgmr.msra.gmra.mxu3 %vm400_vm0, %v8138_v42  ;;  %vm3955_vm7 = vmor %vm3953_vm6, %vm3954_vm5  ;;  %vm3963_vm9 = vweird.f32 %v3926_v32  ;;  %v4165_v41 = vadd.f32 %v6009_v46, %v4164_v58 }
0x124f   : > { %v3946_v52 = vsel %vm3945_vm4, %v6250_v24, %v3942_v21  ;;  %v3949_v54 = vmul.f32 %v6252_v17, %v3948_v50  ;;  %v5874_v24 = vld [vmem:[%s8590_s4 + $0x1f0] sm:$0xff] }
0x1250   : > { %v3968_v57 = vmul.f32 %v3946_v52, %v8017_v10 }
0x1251   : > { %v3950_v40 = vmul.f32 0.5, %v3949_v54 }
0x1252   : > { %v3975_v47 = vmul.f32 %v8121_v6, %v3968_v57 }
0x1253   : > { %v3951_v63 = vsub.f32 1.5, %v3950_v40 }
0x1254   : > { %v6254_v9 = vpop.eup %6253  ;;  %v8151_v2 = vadd.f32 %v6008_v39, %v3975_v47 }
0x1255   : > { %v3952_v26 = vmul.f32 %v6252_v17, %v3951_v63  ;;  %v3958_v11 = vmul.f32 %v6254_v9, %v3926_v32  ;;  %vm3964_vm8 = vweird.f32 %v6254_v9  ;;  %v4263_v16 = vpop.f32.mrf.mxu3  ;;  %v6015_v63 = vld [vmem:[%s8589_s3 + $0x1a] ss:$0 sm:$0xff] }
0x1256   : > { %5800 = vmatmul.msk.f32.gmra.mxu1 %vm400_vm0, %v8151_v2  ;;  %5821 = vmatmul.msk.f32.gmra.mxu2 %vm400_vm0, %v8151_v2  ;;  %vm3965_vm10 = vmor %vm3963_vm9, %vm3964_vm8  ;;  %v4264_v34 = vadd.f32 %v6011_v27, %v4263_v16 }
0x1257   : > { %v3956_v37 = vsel %vm3955_vm7, %v6252_v17, %v3952_v26  ;;  %v3959_v10 = vmul.f32 %v6254_v9, %v3958_v11  ;;  %5863 = vmatmul.msk.f32.gmra.mxu3 %vm400_vm0, %v8151_v2 }
0x1258   : > { %v3969_v13 = vmul.f32 %v3956_v37, %v8023_v29 }
0x1259   : > { %v3960_v60 = vmul.f32 0.5, %v3959_v10 }
0x125a   : > { %v3976_v14 = vmul.f32 %v8121_v6, %v3969_v13 }
0x125b   : > { %v3961_v5 = vsub.f32 1.5, %v3960_v60 }
0x125c   : > { %v8161_v22 = vadd.f32 %v6008_v39, %v3976_v14  ;;  %v6017_v14 = vld [vmem:[%s8591_s5 + $0xd] ss:$0 sm:$0xff] }
0x125d   : > { %v3962_v18 = vmul.f32 %v6254_v9, %v3961_v5 }
0x125e   : > { %5801 = vmatmul.msk.f32.gmra.mxu1 %vm400_vm0, %v8161_v22  ;;  %5822 = vmatmul.msk.f32.gmra.mxu2 %vm400_vm0, %v8161_v22 }
0x125f   : > { %v3966_v44 = vsel %vm3965_vm10, %v6254_v9, %v3962_v18  ;;  %5864 = vmatmul.msk.f32.gmra.mxu3 %vm400_vm0, %v8161_v22  ;;  %v6016_v9 = vld [vmem:[%s8591_s5 + $0xc] ss:$0 sm:$0xff] }
0x1260   : > { %v3970_v29 = vmul.f32 %v3966_v44, %v8029_v19  ;;  %v5810_v19 = vld [vmem:[%s8590_s4 + $0x188] sm:$0xff] }
0x1261   : > { %4092 = vmatpush.msrb.mxu0 %v5810_v19 }
0x1262   : > { %v3977_v23 = vmul.f32 %v8121_v6, %v3970_v29  ;;  %v6010_v6 = vld [vmem:[%s8589_s3 + $0x1c] ss:$0 sm:$0xff] }
0x1263   : > { %4093 = vmatpush.msrb.mxu0 %v5809_v0 }
0x1264   : > { %v8171_v3 = vadd.f32 %v6008_v39, %v3977_v23  ;;  %5814 = vmatmul.msk.f32.vlgmr.msrb.gmra.mxu0 %vm400_vm0, %v8047_v55  ;;  %v4065_v39 = vpop.f32.mrf.mxu0  ;;  %v6018_v23 = vld [vmem:[%s8591_s5 + $0xe] ss:$0 sm:$0xff] }
0x1265   : > { %4189 = vmatpush.msra.mxu0 %v5833_v51  ;;  %v4066_v56 = vadd.f32 %v6010_v6, %v4065_v39  ;;  %v6019_v51 = vld [vmem:[%s8589_s3 + $0x1f] ss:$0 sm:$0xff] }
0x1266   : > { %5802 = vmatmul.msk.f32.gmra.mxu1 %vm400_vm0, %v8171_v3  ;;  %5823 = vmatmul.msk.f32.gmra.mxu2 %vm400_vm0, %v8171_v3 }
0x1267   : > { %5865 = vmatmul.msk.f32.gmra.mxu3 %vm400_vm0, %v8171_v3  ;;  %4190 = vmatpush.msra.mxu0 %v5832_v61 }
0x1268   : > { %5878 = vmatpush.xpose.msk.msrb.mxu2 %vm869_vm1, %v4066_v56 }
0x1269   : > { %4191 = vmatpush.msra.mxu0 %v5831_v28 }
0x126b   : > { %4192 = vmatpush.msra.mxu0 %v5830_v30 }
0x126c   : > { %5835 = vmatmul.msk.f32.vlgmr.msra.gmra.mxu0 %vm400_vm0, %v8047_v55  ;;  %5896 = vmatpush.xpose.msk.msra.mxu2 %vm869_vm1, %v4264_v34 }
0x126d   : > { %4288 = vmatpush.msrb.mxu0 %v5854_v31 }
0x126e   : > { %5841 = vmatmul.msk.f32.vlgmr.msrb.gmra.mxu1 %vm400_vm0, %v8138_v42 }
0x126f   : > { %4289 = vmatpush.msrb.mxu0 %v5853_v35  ;;  %v6020_v35 = vld [vmem:[%s8591_s5 + $0xf] ss:$0 sm:$0xff] }
0x1271   : > { %4290 = vmatpush.msrb.mxu0 %v5852_v43 }
0x1273   : > { %4291 = vmatpush.msrb.mxu0 %v5851_v36 }
0x1274   : > { %5856 = vmatmul.msk.f32.vlgmr.msrb.gmra.mxu0 %vm400_vm0, %v8047_v55 }
0x1275   : > { %4357 = vmatpush.msra.mxu0 %v5869_v7 }
0x1276   : > { %5842 = vmatmul.msk.f32.gmra.mxu1 %vm400_vm0, %v8151_v2 }
0x1277   : > { %4358 = vmatpush.msra.mxu0 %v5868_v33 }
0x1279   : > { %4359 = vmatpush.msra.mxu0 %v5867_v12 }
0x127b   : > { %4360 = vmatpush.msra.mxu0 %v5866_v59 }
0x127c   : > { %5871 = vmatmul.msk.f32.vlgmr.msra.gmra.mxu0 %vm400_vm0, %v8047_v55 }
0x127d   : > { %4387 = vmatpush.msrb.mxu0 %v5875_v38 }
0x127e   : > { %5843 = vmatmul.msk.f32.gmra.mxu1 %vm400_vm0, %v8161_v22 }
0x127f   : > { %4388 = vmatpush.msrb.mxu0 %v5874_v24 }
0x1281   : > { %4389 = vmatpush.msrb.mxu0 %v5873_v8 }
0x1283   : > { %4390 = vmatpush.msrb.mxu0 %v5872_v1 }
0x1284   : > { %5877 = vmatmul.msk.f32.vlgmr.msrb.gmra.mxu0 %vm400_vm0, %v8047_v55 }
0x1285   : > { %5883 = vmatpush.xpose.msk.msra.mxu0 %vm869_vm1, %v4165_v41 }
0x1286   : > { %5844 = vmatmul.msk.f32.gmra.mxu1 %vm400_vm0, %v8171_v3 }
0x12ca   : > { %v4026_v25 = vpop.f32.mrf.mxu1 }
0x12cb   : > { %v4027_v4 = vadd.f32 %v6012_v15, %v4026_v25 }
0x12cd   : > { %5879 = vmatmul.msk.f32.vlgmr.msrb.gmra.mxu2 %vm869_vm1, %v4027_v4 }
0x12d0   : > { %v4125_v20 = vpop.f32.mrf.mxu2 }
0x12d1   : > { %v4126_v48 = vadd.f32 %v6013_v45, %v4125_v20 }
0x12d3   : > { %v4029_v17 = vpop.f32.mrf.mxu1  ;;  %5884 = vmatmul.msk.f32.vlgmr.msra.gmra.mxu0 %vm869_vm1, %v4126_v48 }
0x12d4   : > { %v4030_v55 = vadd.f32 %v6012_v15, %v4029_v17 }
0x12d6   : > { %5880 = vmatmul.msk.f32.gmra.mxu2 %vm869_vm1, %v4030_v55 }
0x12d9   : > { %v4128_v32 = vpop.f32.mrf.mxu2 }
0x12da   : > { %v4129_v21 = vadd.f32 %v6013_v45, %v4128_v32 }
0x12db   : > { %v4032_v50 = vpop.f32.mrf.mxu1 }
0x12dc   : > { %v4033_v52 = vadd.f32 %v6012_v15, %v4032_v50  ;;  %5885 = vmatmul.msk.f32.gmra.mxu0 %vm869_vm1, %v4129_v21 }
0x12de   : > { %5881 = vmatmul.msk.f32.gmra.mxu2 %vm869_vm1, %v4033_v52 }
0x12e1   : > { %v4131_v54 = vpop.f32.mrf.mxu2  ;;  %v4095_v10 = vpop.f32.mrf.mxu0 }
0x12e2   : > { %v4132_v57 = vadd.f32 %v6013_v45, %v4131_v54  ;;  %v4096_v60 = vadd.f32 %v6016_v9, %v4095_v10 }
0x12e3   : > { %v4035_v40 = vpop.f32.mrf.mxu1 }
0x12e4   : > { %v4036_v47 = vadd.f32 %v6012_v15, %v4035_v40  ;;  %5886 = vmatmul.msk.f32.gmra.mxu0 %vm869_vm1, %v4132_v57  ;;  %4639 = vmatpush.msrb.mxu3 %v4096_v60 }
0x12e6   : > { %5882 = vmatmul.msk.f32.gmra.mxu2 %vm869_vm1, %v4036_v47 }
0x12e9   : > { %v4134_v26 = vpop.f32.mrf.mxu2  ;;  %v4194_v18 = vpop.f32.mrf.mxu0 }
0x12ea   : > { %v4135_v11 = vadd.f32 %v6013_v45, %v4134_v26  ;;  %v4195_v29 = vadd.f32 %v6017_v14, %v4194_v18 }
0x12eb   : > { %v4224_v37 = vpop.f32.mrf.mxu1 }
0x12ec   : > { %v4225_v13 = vadd.f32 %v6015_v63, %v4224_v37  ;;  %5887 = vmatmul.msk.f32.gmra.mxu0 %vm869_vm1, %v4135_v11  ;;  %4598 = vmatpush.msra.mxu1 %v4195_v29 }
0x12ee   : > { %5897 = vmatmul.msk.f32.vlgmr.msra.gmra.mxu2 %vm869_vm1, %v4225_v13 }
0x12f1   : > { %v4293_v53 = vpop.f32.mrf.mxu0 }
0x12f2   : > { %v4294_v0 = vadd.f32 %v6018_v23, %v4293_v53 }
0x12f3   : > { %v4227_v5 = vpop.f32.mrf.mxu1 }
0x12f4   : > { %v4228_v44 = vadd.f32 %v6015_v63, %v4227_v5  ;;  %4768 = vmatpush.msrb.mxu0 %v4294_v0 }
0x12f6   : > { %5898 = vmatmul.msk.f32.gmra.mxu2 %vm869_vm1, %v4228_v44 }
0x12f9   : > { %v4362_v28 = vpop.f32.mrf.mxu0 }
0x12fa   : > { %v4363_v31 = vadd.f32 %v6019_v51, %v4362_v28  ;;  %v6014_v51 = vld [vmem:[%s8589_s3 + $0x1b] ss:$0 sm:$0xff] }
0x12fb   : > { %v4230_v49 = vpop.f32.mrf.mxu1 }
0x12fc   : > { %v4231_v19 = vadd.f32 %v6015_v63, %v4230_v49  ;;  %5905 = vmatpush.xpose.msk.msrb.mxu1 %vm869_vm1, %v4363_v31 }
0x12fe   : > { %5899 = vmatmul.msk.f32.gmra.mxu2 %vm869_vm1, %v4231_v19  ;;  %v4323_v19 = vpop.f32.mrf.mxu3 }
0x1301   : > { %v4392_v43 = vpop.f32.mrf.mxu0 }
0x1302   : > { %v4393_v36 = vadd.f32 %v6020_v35, %v4392_v43 }
0x1303   : > { %v4233_v61 = vpop.f32.mrf.mxu1 }
0x1304   : > { %v4234_v30 = vadd.f32 %v6015_v63, %v4233_v61  ;;  %4901 = vmatpush.msra.mxu3 %v4393_v36  ;;  %v4324_v61 = vadd.f32 %v6014_v51, %v4323_v19 }
0x1306   : > { %5900 = vmatmul.msk.f32.gmra.mxu2 %vm869_vm1, %v4234_v30  ;;  %v4326_v28 = vpop.f32.mrf.mxu3 }
0x1307   : > { %v4327_v30 = vadd.f32 %v6014_v51, %v4326_v28 }
0x130e   : > { %v4329_v31 = vpop.f32.mrf.mxu3 }
0x130f   : > { %v4330_v35 = vadd.f32 %v6014_v51, %v4329_v31 }
0x1316   : > { %v4332_v43 = vpop.f32.mrf.mxu3 }
0x1317   : > { %v4333_v36 = vadd.f32 %v6014_v51, %v4332_v43 }
0x1350   : > { %v4515_v7 = vpop.f32.mrf.mxu0  ;;  %v8310_v39 = vpop.f32.mrf.mxu2 }
0x1351   : > { %v4527_v33 = vsel %vm869_vm1, %v4515_v7, -inf  ;;  %v4439_v54 = vsel %vm869_vm1, %v8310_v39, -inf }
0x1352   : > { %4528 = vmax.xlane.f32.xlu2 %v4527_v33 }
0x1359   : > { %v4518_v12 = vpop.f32.mrf.mxu0  ;;  %v8313_v15 = vpop.f32.mrf.mxu2 }
0x135a   : > { %v4530_v59 = vsel %vm869_vm1, %v4518_v12, -inf  ;;  %v4442_v47 = vsel %vm869_vm1, %v8313_v15, -inf }
0x135b   : > { %4531 = vmax.xlane.f32.xlu0 %v4530_v59 }
0x1361   : > { %v4521_v38 = vpop.f32.mrf.mxu0  ;;  %v8316_v17 = vpop.f32.mrf.mxu2 }
0x1362   : > { %v4533_v24 = vsel %vm869_vm1, %v4521_v38, -inf  ;;  %v4445_v26 = vsel %vm869_vm1, %v8316_v17, -inf }
0x1363   : > { %4534 = vmax.xlane.f32.xlu1 %v4533_v24 }
0x1369   : > { %v4524_v8 = vpop.f32.mrf.mxu0  ;;  %v8321_v57 = vpop.f32.mrf.mxu2 }
0x136a   : > { %v4536_v58 = vsel %vm869_vm1, %v4524_v8, -inf  ;;  %v4448_v9 = vsel %vm869_vm1, %v8321_v57, -inf }
0x136b   : > { %4537 = vmax.xlane.f32.xlu2 %v4536_v58 }
0x1371   : > { %v8330_v11 = vpop.f32.mrf.mxu2 }
0x1372   : > { %v4697_v37 = vsel %vm869_vm1, %v8330_v11, -inf }
0x1379   : > { %v4688_v58 = vpop.f32.mrf.mxu2 }
0x13c5   : > { %v4529_v6 = vpop.xlane.xlu2 %4528 }
0x13c6   : > { %v4539_v46 = vsub.f32 %v4515_v7, %v4529_v6 }
0x13c8   : > { %v4543_v27 = vmul.f32 1.442695, %v4539_v46 }
0x13ca   : > { %6255 = vpow2.f32 %v4543_v27 }
0x13ce   : > { %v4532_v56 = vpop.xlane.xlu0 %4531 }
0x13cf   : > { %v4540_v16 = vsub.f32 %v4518_v12, %v4532_v56 }
0x13d0   : > { %v6256_v41 = vpop.eup %6255 }
0x13d1   : > { %v4545_v34 = vmul.f32 1.442695, %v4540_v16  ;;  %v4551_v1 = vsel %vm869_vm1, %v6256_v41, 0.0 }
0x13d2   : > { %4552 = vadd.xlane.f32.xlu0 %v4551_v1  ;;  %v8358_v1 = vpop.f32.mrf.mxu2 }
0x13d3   : > { %6257 = vpow2.f32 %v4545_v34 }
0x13d6   : > { %v4535_v25 = vpop.xlane.xlu1 %4534 }
0x13d7   : > { %v4541_v4 = vsub.f32 %v4521_v38, %v4535_v25 }
0x13d9   : > { %v6258_v45 = vpop.eup %6257  ;;  %v4547_v20 = vmul.f32 1.442695, %v4541_v4 }
0x13da   : > { %v4554_v48 = vsel %vm869_vm1, %v6258_v45, 0.0 }
0x13db   : > { %6259 = vpow2.f32 %v4547_v20  ;;  %4555 = vadd.xlane.f32.xlu1 %v4554_v48 }
0x13de   : > { %v4538_v55 = vpop.xlane.xlu2 %4537 }
0x13df   : > { %v4542_v32 = vsub.f32 %v4524_v8, %v4538_v55  ;;  %v4703_v55 = vsel %vm869_vm1, %v8358_v1, -inf }
0x13e1   : > { %v6260_v21 = vpop.eup %6259  ;;  %v4549_v50 = vmul.f32 1.442695, %v4542_v32 }
0x13e2   : > { %v4557_v52 = vsel %vm869_vm1, %v6260_v21, 0.0 }
0x13e3   : > { %6261 = vpow2.f32 %v4549_v50  ;;  %4558 = vadd.xlane.f32.xlu2 %v4557_v52  ;;  %4440 = vmax.xlane.f32.xlu1 %v4439_v54  ;;  %v8369_v52 = vpop.f32.mrf.mxu2 }
0x13e9   : > { %v6262_v40 = vpop.eup %6261 }
0x13ea   : > { %v4560_v63 = vsel %vm869_vm1, %v6262_v40, 0.0 }
0x13eb   : > { %4443 = vmax.xlane.f32.xlu2 %v4442_v47  ;;  %4561 = vadd.xlane.f32.xlu0 %v4560_v63  ;;  %v4706_v47 = vsel %vm869_vm1, %v8369_v52, -inf }
0x13ec   : > { %4449 = vmax.xlane.f32.xlu1 %v4448_v9 }
0x13f3   : > { %4446 = vmax.xlane.f32.xlu0 %v4445_v26 }
0x13fb   : > { %4698 = vmax.xlane.f32.xlu0 %v4697_v37 }
0x1445   : > { %v4553_v10 = vpop.xlane.xlu0 %4552 }
0x1446   : > { %6263 = vrcp.f32 %v4553_v10 }
0x144c   : > { %v6264_v13 = vpop.eup %6263 }
0x144d   : > { %v4567_v60 = vmul.f32 %v6264_v13, %v6256_v41  ;;  %v4700_v41 = vsel %vm869_vm1, %v4688_v58, -inf }
0x144e   : > { %v4556_v14 = vpop.xlane.xlu1 %4555 }
0x144f   : > { %6265 = vrcp.f32 %v4556_v14  ;;  %5888 = vmatmul.msk.f32.vlgmr.msra.gmra.mxu1 %vm869_vm1, %v4567_v60 }
0x1455   : > { %v6266_v5 = vpop.eup %6265 }
0x1456   : > { %v4559_v18 = vpop.xlane.xlu2 %4558  ;;  %v4568_v44 = vmul.f32 %v6266_v5, %v6258_v45  ;;  %v4441_v38 = vpop.xlane.xlu1 %4440 }
0x1457   : > { %6267 = vrcp.f32 %v4559_v18  ;;  %v4451_v24 = vsub.f32 %v8310_v39, %v4441_v38 }
0x1458   : > { %5889 = vmatmul.msk.f32.gmra.mxu1 %vm869_vm1, %v4568_v44 }
0x1459   : > { %v4455_v46 = vmul.f32 1.442695, %v4451_v24 }
0x145d   : > { %v6268_v29 = vpop.eup %6267 }
0x145e   : > { %v4562_v23 = vpop.xlane.xlu0 %4561  ;;  %v4569_v49 = vmul.f32 %v6268_v29, %v6260_v21  ;;  %v4444_v27 = vpop.xlane.xlu2 %4443 }
0x145f   : > { %6269 = vrcp.f32 %v4562_v23  ;;  %v4452_v56 = vsub.f32 %v8313_v15, %v4444_v27  ;;  %v4450_v4 = vpop.xlane.xlu1 %4449 }
0x1460   : > { %5890 = vmatmul.msk.f32.gmra.mxu1 %vm869_vm1, %v4569_v49  ;;  %6271 = vpow2.f32 %v4455_v46  ;;  %v4454_v20 = vsub.f32 %v8321_v57, %v4450_v4 }
0x1461   : > { %v4457_v39 = vmul.f32 1.442695, %v4452_v56 }
0x1462   : > { %v4461_v50 = vmul.f32 1.442695, %v4454_v20 }
0x1463   : > { %6273 = vpow2.f32 %v4457_v39 }
0x1464   : > { %6275 = vpow2.f32 %v4461_v50 }
0x1465   : > { %v6270_v53 = vpop.eup %6269 }
0x1466   : > { %v4570_v0 = vmul.f32 %v6270_v53, %v6262_v40  ;;  %v4447_v25 = vpop.xlane.xlu0 %4446  ;;  %v8360_v45 = vpop.eup %6271 }
0x1467   : > { %v4453_v15 = vsub.f32 %v8316_v17, %v4447_v25  ;;  %v4463_v32 = vsel %vm869_vm1, %v8360_v45, 0.0 }
0x1468   : > { %5891 = vmatmul.msk.f32.gmra.mxu1 %vm869_vm1, %v4570_v0 }
0x1469   : > { %v4459_v54 = vmul.f32 1.442695, %v4453_v15  ;;  %v8371_v40 = vpop.eup %6273 }
0x146a   : > { %v4466_v26 = vsel %vm869_vm1, %v8371_v40, 0.0  ;;  %v8382_v10 = vpop.eup %6275 }
0x146b   : > { %6277 = vpow2.f32 %v4459_v54  ;;  %v4472_v60 = vsel %vm869_vm1, %v8382_v10, 0.0 }
0x146e   : > { %v4699_v57 = vpop.xlane.xlu0 %4698 }
0x146f   : > { %v4709_v63 = vsub.f32 %v8330_v11, %v4699_v57 }
0x1470   : > { %5906 = vmatmul.msk.f32.vlgmr.msrb.gmra.mxu1 %vm869_vm1, %v4324_v61 }
0x1471   : > { %v4713_v37 = vmul.f32 1.442695, %v4709_v63  ;;  %v8384_v13 = vpop.eup %6277 }
0x1472   : > { %v4469_v11 = vsel %vm869_vm1, %v8384_v13, 0.0 }
0x1473   : > { %6279 = vpow2.f32 %v4713_v37 }
0x1478   : > { %5907 = vmatmul.msk.f32.gmra.mxu1 %vm869_vm1, %v4327_v30 }
0x1479   : > { %v8390_v14 = vpop.eup %6279 }
0x147a   : > { %v4721_v5 = vsel %vm869_vm1, %v8390_v14, 0.0 }
0x1480   : > { %5908 = vmatmul.msk.f32.gmra.mxu1 %vm869_vm1, %v4330_v35 }
0x1488   : > { %5909 = vmatmul.msk.f32.gmra.mxu1 %vm869_vm1, %v4333_v36 }
0x14cc   : > { %v8345_v7 = vpop.f32.mrf.mxu1 }
0x14d5   : > { %v8347_v33 = vpop.f32.mrf.mxu1 }
0x14dd   : > { %v8349_v12 = vpop.f32.mrf.mxu1 }
0x14e5   : > { %v8351_v59 = vpop.f32.mrf.mxu1 }
0x14ed   : > { %v4818_v8 = vpop.f32.mrf.mxu1 }
0x14ee   : > { %v4830_v6 = vsel %vm869_vm1, %v4818_v8, -inf }
0x14ef   : > { %4831 = vmax.xlane.f32.xlu2 %v4830_v6 }
0x14f5   : > { %v4821_v16 = vpop.f32.mrf.mxu1 }
0x14f6   : > { %v4833_v34 = vsel %vm869_vm1, %v4821_v16, -inf }
0x14f7   : > { %4701 = vmax.xlane.f32.xlu2 %v4700_v41  ;;  %4834 = vmax.xlane.f32.xlu1 %v4833_v34 }
0x14fd   : > { %v4824_v48 = vpop.f32.mrf.mxu1 }
0x14fe   : > { %v4836_v21 = vsel %vm869_vm1, %v4824_v48, -inf }
0x14ff   : > { %4704 = vmax.xlane.f32.xlu2 %v4703_v55  ;;  %4464 = vadd.xlane.f32.xlu1 %v4463_v32 }
0x1500   : > { %4837 = vmax.xlane.f32.xlu0 %v4836_v21 }
0x1505   : > { %v8373_v17 = vpop.f32.mrf.mxu1 }
0x1506   : > { %v4839_v9 = vsel %vm869_vm1, %v8373_v17, -inf }
0x1507   : > { %4707 = vmax.xlane.f32.xlu2 %v4706_v47  ;;  %4467 = vadd.xlane.f32.xlu1 %v4466_v26 }
0x1508   : > { %4840 = vmax.xlane.f32.xlu0 %v4839_v9 }
0x150f   : > { %4473 = vadd.xlane.f32.xlu1 %v4472_v60 }
0x1510   : > { %4470 = vadd.xlane.f32.xlu0 %v4469_v11 }
0x1518   : > { %4722 = vadd.xlane.f32.xlu0 %v4721_v5 }
0x1562   : > { %v4832_v18 = vpop.xlane.xlu2 %4831 }
0x1563   : > { %v4842_v44 = vsub.f32 %v4818_v8, %v4832_v18 }
0x1565   : > { %v4846_v29 = vmul.f32 1.442695, %v4842_v44 }
0x1567   : > { %6281 = vpow2.f32 %v4846_v29 }
0x156a   : > { %v4702_v23 = vpop.xlane.xlu2 %4701  ;;  %v4835_v49 = vpop.xlane.xlu1 %4834 }
0x156b   : > { %v4710_v53 = vsub.f32 %v4688_v58, %v4702_v23  ;;  %v4843_v19 = vsub.f32 %v4821_v16, %v4835_v49 }
0x156d   : > { %v8394_v0 = vpop.eup %6281  ;;  %v4715_v51 = vmul.f32 1.442695, %v4710_v53  ;;  %v4848_v61 = vmul.f32 1.442695, %v4843_v19 }
0x156e   : > { %v4854_v28 = vsel %vm869_vm1, %v8394_v0, 0.0 }
0x156f   : > { %6283 = vpow2.f32 %v4715_v51  ;;  %4855 = vadd.xlane.f32.xlu2 %v4854_v28 }
0x1570   : > { %6285 = vpow2.f32 %v4848_v61 }
0x1572   : > { %v4705_v30 = vpop.xlane.xlu2 %4704  ;;  %v4465_v31 = vpop.xlane.xlu1 %4464 }
0x1573   : > { %v4711_v35 = vsub.f32 %v8358_v1, %v4705_v30  ;;  %6287 = vrcp.f32 %v4465_v31  ;;  %v4838_v43 = vpop.xlane.xlu0 %4837 }
0x1574   : > { %v4844_v36 = vsub.f32 %v4824_v48, %v4838_v43 }
0x1575   : > { %v8399_v38 = vpop.eup %6283  ;;  %v4717_v24 = vmul.f32 1.442695, %v4711_v35 }
0x1576   : > { %v8401_v8 = vpop.eup %6285  ;;  %v4850_v58 = vmul.f32 1.442695, %v4844_v36  ;;  %v4724_v6 = vsel %vm869_vm1, %v8399_v38, 0.0 }
0x1577   : > { %6289 = vpow2.f32 %v4717_v24  ;;  %4725 = vadd.xlane.f32.xlu2 %v4724_v6  ;;  %v4857_v46 = vsel %vm869_vm1, %v8401_v8, 0.0 }
0x1578   : > { %6291 = vpow2.f32 %v4850_v58  ;;  %4858 = vadd.xlane.f32.xlu1 %v4857_v46 }
0x1579   : > { %v6288_v27 = vpop.eup %6287 }
0x157a   : > { %v4479_v56 = vmul.f32 %v6288_v27, %v8360_v45  ;;  %v4708_v16 = vpop.xlane.xlu2 %4707  ;;  %v4468_v41 = vpop.xlane.xlu1 %4467 }
0x157b   : > { %v4712_v34 = vsub.f32 %v8369_v52, %v4708_v16  ;;  %6293 = vrcp.f32 %v4468_v41  ;;  %v4841_v1 = vpop.xlane.xlu0 %4840 }
0x157c   : > { %v4845_v39 = vsub.f32 %v8373_v17, %v4841_v1  ;;  %5892 = vmatmul.msk.f32.vlgmr.msrb.gmra.mxu3 %vm869_vm1, %v4479_v56  ;;  %v6021_v56 = vld [vmem:[%s8595_s9 + $0xa] ss:$0 sm:$0xff] }
0x157d   : > { %v6290_v25 = vpop.eup %6289  ;;  %v4719_v4 = vmul.f32 1.442695, %v4712_v34 }
0x157e   : > { %v6292_v20 = vpop.eup %6291  ;;  %v4852_v48 = vmul.f32 1.442695, %v4845_v39  ;;  %v4727_v15 = vsel %vm869_vm1, %v6290_v25, 0.0 }
0x157f   : > { %6295 = vpow2.f32 %v4719_v4  ;;  %v4860_v55 = vsel %vm869_vm1, %v6292_v20, 0.0 }
0x1580   : > { %6297 = vpow2.f32 %v4852_v48  ;;  %4728 = vadd.xlane.f32.xlu1 %v4727_v15  ;;  %4861 = vadd.xlane.f32.xlu0 %v4860_v55 }
0x1581   : > { %v6294_v45 = vpop.eup %6293 }
0x1582   : > { %v4480_v32 = vmul.f32 %v6294_v45, %v8371_v40  ;;  %v4474_v57 = vpop.xlane.xlu1 %4473 }
0x1583   : > { %v4471_v21 = vpop.xlane.xlu0 %4470 }
0x1584   : > { %6299 = vrcp.f32 %v4471_v21  ;;  %5893 = vmatmul.msk.f32.gmra.mxu3 %vm869_vm1, %v4480_v32 }
0x1585   : > { %v6296_v50 = vpop.eup %6295  ;;  %6301 = vrcp.f32 %v4474_v57 }
0x1586   : > { %v6298_v52 = vpop.eup %6297  ;;  %v4730_v54 = vsel %vm869_vm1, %v6296_v50, 0.0 }
0x1587   : > { %v4863_v17 = vsel %vm869_vm1, %v6298_v52, 0.0 }
0x1588   : > { %4731 = vadd.xlane.f32.xlu0 %v4730_v54  ;;  %4864 = vadd.xlane.f32.xlu2 %v4863_v17 }
0x158a   : > { %v6300_v47 = vpop.eup %6299 }
0x158b   : > { %v4723_v63 = vpop.xlane.xlu0 %4722  ;;  %v4481_v9 = vmul.f32 %v6300_v47, %v8384_v13  ;;  %v6302_v40 = vpop.eup %6301 }
0x158c   : > { %6303 = vrcp.f32 %v4723_v63  ;;  %v4482_v60 = vmul.f32 %v6302_v40, %v8382_v10 }
0x158d   : > { %5894 = vmatmul.msk.f32.gmra.mxu3 %vm869_vm1, %v4481_v9 }
0x1592   : > { %v6304_v26 = vpop.eup %6303 }
0x1593   : > { %v4737_v37 = vmul.f32 %v6304_v26, %v8390_v14 }
0x1595   : > { %5895 = vmatmul.msk.f32.gmra.mxu3 %vm869_vm1, %v4482_v60  ;;  %5901 = vmatmul.msk.f32.vlgmr.msrb.gmra.mxu0 %vm869_vm1, %v4737_v37 }
0x15e2   : > { %v4856_v11 = vpop.xlane.xlu2 %4855 }
0x15e3   : > { %6305 = vrcp.f32 %v4856_v11 }
0x15e9   : > { %v6306_v5 = vpop.eup %6305 }
0x15ea   : > { %v4870_v18 = vmul.f32 %v6306_v5, %v8394_v0  ;;  %v4726_v44 = vpop.xlane.xlu2 %4725 }
0x15eb   : > { %6307 = vrcp.f32 %v4726_v44  ;;  %v4859_v13 = vpop.xlane.xlu1 %4858 }
0x15ec   : > { %6309 = vrcp.f32 %v4859_v13  ;;  %5910 = vmatmul.msk.f32.vlgmr.msra.gmra.mxu3 %vm869_vm1, %v4870_v18 }
0x15f1   : > { %v6308_v29 = vpop.eup %6307 }
0x15f2   : > { %v6310_v23 = vpop.eup %6309  ;;  %v4738_v14 = vmul.f32 %v6308_v29, %v8399_v38 }
0x15f3   : > { %v4729_v10 = vpop.xlane.xlu1 %4728  ;;  %v4862_v49 = vpop.xlane.xlu0 %4861  ;;  %v4871_v53 = vmul.f32 %v6310_v23, %v8401_v8 }
0x15f4   : > { %6311 = vrcp.f32 %v4729_v10  ;;  %5902 = vmatmul.msk.f32.gmra.mxu0 %vm869_vm1, %v4738_v14 }
0x15f5   : > { %6313 = vrcp.f32 %v4862_v49  ;;  %5911 = vmatmul.msk.f32.gmra.mxu3 %vm869_vm1, %v4871_v53 }
0x15fa   : > { %v6312_v19 = vpop.eup %6311 }
0x15fb   : > { %v6314_v0 = vpop.eup %6313  ;;  %v4865_v51 = vpop.xlane.xlu2 %4864  ;;  %v4739_v28 = vmul.f32 %v6312_v19, %v6290_v25 }
0x15fc   : > { %v4732_v61 = vpop.xlane.xlu0 %4731  ;;  %6315 = vrcp.f32 %v4865_v51  ;;  %v4872_v30 = vmul.f32 %v6314_v0, %v6292_v20 }
0x15fd   : > { %6317 = vrcp.f32 %v4732_v61  ;;  %5903 = vmatmul.msk.f32.gmra.mxu0 %vm869_vm1, %v4739_v28  ;;  %v5919_v28 = vld [vmem:[%s8592_s6 + $0x38] sm:$0xff] }
0x15fe   : > { %5912 = vmatmul.msk.f32.gmra.mxu3 %vm869_vm1, %v4872_v30  ;;  %5070 = vmatpush.msrb.mxu2 %v5919_v28  ;;  %v5918_v30 = vld [vmem:[%s8592_s6 + $0x30] sm:$0xff] }
0x15ff   : > { %v4641_v38 = vpop.f32.mrf.mxu3 }
0x1600   : > { %v4642_v46 = vadd.f32 %v4641_v38, %v8345_v7  ;;  %5071 = vmatpush.msrb.mxu2 %v5918_v30 }
0x1602   : > { %v6316_v31 = vpop.eup %6315 }
0x1603   : > { %v6318_v35 = vpop.eup %6317  ;;  %v4873_v43 = vmul.f32 %v6316_v31, %v6298_v52  ;;  %v5917_v31 = vld [vmem:[%s8592_s6 + $0x28] sm:$0xff] }
0x1604   : > { %v4740_v36 = vmul.f32 %v6318_v35, %v6296_v50  ;;  %5072 = vmatpush.msrb.mxu2 %v5917_v31  ;;  %v5916_v35 = vld [vmem:[%s8592_s6 + $0x20] sm:$0xff]  ;;  %v5926_v31 = vld [vmem:[%s8594_s8 + $0x48] sm:$0xff] }
0x1606   : > { %5904 = vmatmul.msk.f32.gmra.mxu0 %vm869_vm1, %v4740_v36  ;;  %5913 = vmatmul.msk.f32.gmra.mxu3 %vm869_vm1, %v4873_v43 }
0x1607   : > { %v4644_v24 = vpop.f32.mrf.mxu3  ;;  %5073 = vmatpush.msrb.mxu2 %v5916_v35  ;;  %v5925_v35 = vld [vmem:[%s8594_s8 + $0x40] sm:$0xff] }
0x1608   : > { %v4645_v25 = vadd.f32 %v4644_v24, %v8347_v33 }
0x1610   : > { %v4647_v8 = vpop.f32.mrf.mxu3 }
0x1611   : > { %v4648_v32 = vadd.f32 %v4647_v8, %v8349_v12 }
0x1612   : > { %v4770_v6 = vpop.f32.mrf.mxu0 }
0x1613   : > { %v4782_v27 = vadd.f32 %v4770_v6, %v4642_v46 }
0x1618   : > { %v4650_v58 = vpop.f32.mrf.mxu3 }
0x1619   : > { %v4651_v57 = vadd.f32 %v4650_v58, %v8351_v59 }
0x166f   : > { %v4903_v16 = vpop.f32.mrf.mxu3 }
0x1670   : > { %v4915_v41 = vadd.f32 %v4903_v16, %v4782_v27 }
0x1671   : > { %v4773_v34 = vpop.f32.mrf.mxu0 }
0x1672   : > { %v4922_v1 = vadd.f32 %v6021_v56, %v4915_v41  ;;  %v4783_v20 = vadd.f32 %v4773_v34, %v4645_v25  ;;  %v6022_v25 = vld [vmem:[%s8595_s9 + $0xd] ss:$0 sm:$0xff] }
0x1674   : > { %v4926_v39 = vadd.f32 %v4922_v1, %v8138_v42 }
0x1676   : > { %v4934_v4 = vsel %vm400_vm0, %v4926_v39, 0.0 }
0x1677   : > { %4935 = vadd.xlane.f32.xlu1 %v4934_v4 }
0x1678   : > { %v4906_v48 = vpop.f32.mrf.mxu3 }
0x1679   : > { %v4916_v15 = vadd.f32 %v4906_v48, %v4783_v20 }
0x167a   : > { %v4776_v55 = vpop.f32.mrf.mxu0 }
0x167b   : > { %v4923_v7 = vadd.f32 %v6021_v56, %v4916_v15  ;;  %v4784_v50 = vadd.f32 %v4776_v55, %v4648_v32  ;;  %v6023_v15 = vld [vmem:[%s8595_s9 + $0x10] ss:$0 sm:$0xff] }
0x167c   : > { %v5931_v32 = vld [vmem:[%s8594_s8 + $0x70] sm:$0xff] }
0x167d   : > { %v4927_v45 = vadd.f32 %v4923_v7, %v8151_v2 }
0x167f   : > { %v4937_v21 = vsel %vm400_vm0, %v4927_v45, 0.0 }
0x1680   : > { %4938 = vadd.xlane.f32.xlu2 %v4937_v21 }
0x1681   : > { %v4909_v52 = vpop.f32.mrf.mxu3 }
0x1682   : > { %v4917_v42 = vadd.f32 %v4909_v52, %v4784_v50  ;;  %v5930_v52 = vld [vmem:[%s8594_s8 + $0x68] sm:$0xff] }
0x1683   : > { %v4779_v33 = vpop.f32.mrf.mxu0 }
0x1684   : > { %v4924_v54 = vadd.f32 %v6021_v56, %v4917_v42  ;;  %v4785_v47 = vadd.f32 %v4779_v33, %v4651_v57 }
0x1686   : > { %v4928_v17 = vadd.f32 %v4924_v54, %v8161_v22 }
0x1688   : > { %v4940_v63 = vsel %vm400_vm0, %v4928_v17, 0.0 }
0x1689   : > { %4941 = vadd.xlane.f32.xlu0 %v4940_v63  ;;  %v4912_v9 = vpop.f32.mrf.mxu3 }
0x168a   : > { %v4918_v2 = vadd.f32 %v4912_v9, %v4785_v47 }
0x168c   : > { %v4925_v40 = vadd.f32 %v6021_v56, %v4918_v2  ;;  %v5928_v2 = vld [vmem:[%s8594_s8 + $0x58] sm:$0xff] }
0x168e   : > { %v4929_v12 = vadd.f32 %v4925_v40, %v8171_v3 }
0x1690   : > { %v4943_v26 = vsel %vm400_vm0, %v4929_v12, 0.0 }
0x1691   : > { %4944 = vadd.xlane.f32.xlu1 %v4943_v26 }
0x16ea   : > { %v4936_v37 = vpop.xlane.xlu1 %4935 }
0x16eb   : > { %v4946_v60 = vmul.f32 %v4936_v37, %v6927_v62 }
0x16ed   : > { %v4950_v11 = vsub.f32 %v4926_v39, %v4946_v60 }
0x16ef   : > { %v4954_v5 = vmul.f32 %v4950_v11, %v4950_v11 }
0x16f1   : > { %v4958_v59 = vsel %vm400_vm0, %v4954_v5, 0.0 }
0x16f2   : > { %4959 = vadd.xlane.f32.xlu2 %v4958_v59 }
0x16f3   : > { %v4939_v22 = vpop.xlane.xlu2 %4938 }
0x16f4   : > { %v4947_v18 = vmul.f32 %v4939_v22, %v6927_v62 }
0x16f6   : > { %v8451_v44 = vsub.f32 %v4927_v45, %v4947_v18  ;;  %v5932_v45 = vld [vmem:[%s8594_s8 + $0x78] sm:$0xff] }
0x16f7   : > { %5125 = vmatpush.msra.mxu0 %v5932_v45 }
0x16f8   : > { %v4955_v13 = vmul.f32 %v8451_v44, %v8451_v44 }
0x16f9   : > { %5126 = vmatpush.msra.mxu0 %v5931_v32 }
0x16fa   : > { %v4961_v3 = vsel %vm400_vm0, %v4955_v13, 0.0 }
0x16fb   : > { %4962 = vadd.xlane.f32.xlu0 %v4961_v3  ;;  %5127 = vmatpush.msra.mxu0 %v5930_v52 }
0x16fc   : > { %v4942_v29 = vpop.xlane.xlu0 %4941 }
0x16fd   : > { %v4948_v23 = vmul.f32 %v4942_v29, %v6927_v62 }
0x16ff   : > { %v8457_v14 = vsub.f32 %v4928_v17, %v4948_v23  ;;  %v5929_v17 = vld [vmem:[%s8594_s8 + $0x60] sm:$0xff] }
0x1700   : > { %5128 = vmatpush.msra.mxu0 %v5929_v17 }
0x1701   : > { %v4956_v10 = vmul.f32 %v8457_v14, %v8457_v14 }
0x1702   : > { %5129 = vmatpush.msra.mxu0 %v5928_v2 }
0x1703   : > { %v4964_v49 = vsel %vm400_vm0, %v4956_v10, 0.0 }
0x1704   : > { %v4945_v53 = vpop.xlane.xlu1 %4944  ;;  %4965 = vadd.xlane.f32.xlu1 %v4964_v49 }
0x1705   : > { %v4949_v19 = vmul.f32 %v4945_v53, %v6927_v62 }
0x1707   : > { %v8463_v0 = vsub.f32 %v4929_v12, %v4949_v19 }
0x1709   : > { %v4957_v51 = vmul.f32 %v8463_v0, %v8463_v0 }
0x170b   : > { %v4967_v61 = vsel %vm400_vm0, %v4957_v51, 0.0 }
0x170c   : > { %4968 = vadd.xlane.f32.xlu2 %v4967_v61 }
0x1765   : > { %v4960_v43 = vpop.xlane.xlu2 %4959 }
0x1766   : > { %v4970_v36 = vmul.f32 %v4960_v43, %v6927_v62 }
0x1768   : > { %v4974_v38 = vadd.f32 1e-05, %v4970_v36 }
0x176a   : > { %6319 = vrsqrt.f32 %v4974_v38  ;;  %vm4984_vm11 = vweird.f32 %v4974_v38 }
0x176e   : > { %v4963_v24 = vpop.xlane.xlu0 %4962 }
0x176f   : > { %v4971_v8 = vmul.f32 %v4963_v24, %v6927_v62 }
0x1770   : > { %v6320_v58 = vpop.eup %6319 }
0x1771   : > { %v4979_v6 = vmul.f32 %v6320_v58, %v4974_v38  ;;  %v4975_v46 = vadd.f32 1e-05, %v4971_v8  ;;  %vm4985_vm1 = vweird.f32 %v6320_v58 }
0x1772   : > { %vm4986_vm12 = vmor %vm4984_vm11, %vm4985_vm1 }
0x1773   : > { %v4980_v27 = vmul.f32 %v6320_v58, %v4979_v6  ;;  %6321 = vrsqrt.f32 %v4975_v46  ;;  %vm4994_vm15 = vweird.f32 %v4975_v46 }
0x1775   : > { %v4981_v56 = vmul.f32 0.5, %v4980_v27 }
0x1777   : > { %v4982_v16 = vsub.f32 1.5, %v4981_v56  ;;  %v4966_v41 = vpop.xlane.xlu1 %4965 }
0x1778   : > { %v4972_v34 = vmul.f32 %v4966_v41, %v6927_v62 }
0x1779   : > { %v6322_v1 = vpop.eup %6321  ;;  %v4983_v39 = vmul.f32 %v6320_v58, %v4982_v16 }
0x177a   : > { %v4989_v4 = vmul.f32 %v6322_v1, %v4975_v46  ;;  %v4976_v20 = vadd.f32 1e-05, %v4972_v34  ;;  %vm4995_vm14 = vweird.f32 %v6322_v1  ;;  %v6025_v34 = vld [vmem:[%s8595_s9 + $0xb] ss:$0 sm:$0xff] }
0x177b   : > { %v4987_v48 = vsel %vm4986_vm12, %v6320_v58, %v4983_v39  ;;  %vm4996_vm2 = vmor %vm4994_vm15, %vm4995_vm14 }
0x177c   : > { %v5018_v7 = vmul.f32 %v4987_v48, %v4950_v11  ;;  %v4990_v55 = vmul.f32 %v6322_v1, %v4989_v4  ;;  %6323 = vrsqrt.f32 %v4976_v20  ;;  %vm5004_vm4 = vweird.f32 %v4976_v20 }
0x177e   : > { %v5025_v21 = vmul.f32 %v6022_v25, %v5018_v7  ;;  %v4991_v50 = vmul.f32 0.5, %v4990_v55 }
0x177f   : > { %v4969_v42 = vpop.xlane.xlu2 %4968 }
0x1780   : > { %v8498_v54 = vadd.f32 %v6023_v15, %v5025_v21  ;;  %v4992_v33 = vsub.f32 1.5, %v4991_v50  ;;  %v4973_v57 = vmul.f32 %v4969_v42, %v6927_v62 }
0x1782   : > { %v6324_v47 = vpop.eup %6323  ;;  %v4993_v63 = vmul.f32 %v6322_v1, %v4992_v33  ;;  %v4977_v9 = vadd.f32 1e-05, %v4973_v57  ;;  %5921 = vmatmul.msk.f32.vlgmr.msrb.gmra.mxu2 %vm400_vm0, %v8498_v54 }
0x1783   : > { %v4999_v40 = vmul.f32 %v6324_v47, %v4976_v20  ;;  %vm5005_vm3 = vweird.f32 %v6324_v47 }
0x1784   : > { %v4997_v12 = vsel %vm4996_vm2, %v6322_v1, %v4993_v63  ;;  %6325 = vrsqrt.f32 %v4977_v9  ;;  %vm5006_vm5 = vmor %vm5004_vm4, %vm5005_vm3  ;;  %vm5014_vm7 = vweird.f32 %v4977_v9 }
0x1785   : > { %v5019_v26 = vmul.f32 %v4997_v12, %v8451_v44  ;;  %v5000_v37 = vmul.f32 %v6324_v47, %v4999_v40 }
0x1787   : > { %v5001_v60 = vmul.f32 0.5, %v5000_v37  ;;  %v5026_v11 = vmul.f32 %v6022_v25, %v5019_v26 }
0x1789   : > { %v5002_v5 = vsub.f32 1.5, %v5001_v60  ;;  %v5033_v59 = vadd.f32 %v6023_v15, %v5026_v11 }
0x178a   : > { %v6326_v22 = vpop.eup %6325 }
0x178b   : > { %v5003_v18 = vmul.f32 %v6324_v47, %v5002_v5  ;;  %v5009_v13 = vmul.f32 %v6326_v22, %v4977_v9  ;;  %5922 = vmatmul.msk.f32.gmra.mxu2 %vm400_vm0, %v5033_v59  ;;  %vm5015_vm6 = vweird.f32 %v6326_v22 }
0x178c   : > { %vm5016_vm8 = vmor %vm5014_vm7, %vm5015_vm6  ;;  %vm5283_vm6 = vcmask 7168  }
0x178d   : > { %v5007_v3 = vsel %vm5006_vm5, %v6324_v47, %v5003_v18  ;;  %v5010_v29 = vmul.f32 %v6326_v22, %v5009_v13 }
0x178e   : > { %v5020_v23 = vmul.f32 %v5007_v3, %v8457_v14  ;;  %v5927_v14 = vld [vmem:[%s8594_s8 + $0x50] sm:$0xff] }
0x178f   : > { %v5011_v10 = vmul.f32 0.5, %v5010_v29  ;;  %5130 = vmatpush.msra.mxu0 %v5927_v14 }
0x1790   : > { %v5027_v44 = vmul.f32 %v6022_v25, %v5020_v23 }
0x1791   : > { %v5012_v49 = vsub.f32 1.5, %v5011_v10  ;;  %5131 = vmatpush.msra.mxu0 %v5926_v31 }
0x1792   : > { %v5034_v53 = vadd.f32 %v6023_v15, %v5027_v44 }
0x1793   : > { %v5013_v19 = vmul.f32 %v6326_v22, %v5012_v49  ;;  %5132 = vmatpush.msra.mxu0 %v5925_v35 }
0x1794   : > { %5923 = vmatmul.msk.f32.gmra.mxu2 %vm400_vm0, %v5034_v53 }
0x1795   : > { %v5017_v51 = vsel %vm5016_vm8, %v6326_v22, %v5013_v19 }
0x1796   : > { %v5021_v61 = vmul.f32 %v5017_v51, %v8463_v0  ;;  %v6024_v0 = vld [vmem:[%s8593_s7 + $0x1] ss:$0 sm:$0xff] }
0x1798   : > { %v5028_v28 = vmul.f32 %v6022_v25, %v5021_v61 }
0x179a   : > { %v5035_v30 = vadd.f32 %v6023_v15, %v5028_v28 }
0x179c   : > { %5924 = vmatmul.msk.f32.gmra.mxu2 %vm400_vm0, %v5035_v30 }
0x1805   : > { %v5075_v43 = vpop.f32.mrf.mxu2 }
0x1806   : > { %v5076_v36 = vadd.f32 %v6024_v0, %v5075_v43 }
0x1808   : > { %v5087_v38 = vmax.f32 %v5076_v36, 0.0 }
0x180a   : > { %5934 = vmatmul.msk.f32.vlgmr.msra.gmra.mxu0 %vm2674_vm13, %v5087_v38 }
0x180e   : > { %v5078_v24 = vpop.f32.mrf.mxu2 }
0x180f   : > { %v5079_v8 = vadd.f32 %v6024_v0, %v5078_v24  ;;  %v6026_v24 = vld [vmem:[%s8595_s9 + $0xe] ss:$0 sm:$0xff] }
0x1811   : > { %v5088_v58 = vmax.f32 %v5079_v8, 0.0 }
0x1813   : > { %5935 = vmatmul.msk.f32.gmra.mxu0 %vm2674_vm13, %v5088_v58 }
0x1817   : > { %v5081_v6 = vpop.f32.mrf.mxu2 }
0x1818   : > { %v5082_v46 = vadd.f32 %v6024_v0, %v5081_v6 }
0x181a   : > { %v5089_v27 = vmax.f32 %v5082_v46, 0.0  ;;  %v6027_v46 = vld [vmem:[%s8595_s9 + $0x11] ss:$0 sm:$0xff] }
0x181c   : > { %5936 = vmatmul.msk.f32.gmra.mxu0 %vm2674_vm13, %v5089_v27 }
0x181f   : > { %v5084_v56 = vpop.f32.mrf.mxu2 }
0x1820   : > { %v5085_v16 = vadd.f32 %v6024_v0, %v5084_v56 }
0x1822   : > { %v5090_v41 = vmax.f32 %v5085_v16, 0.0  ;;  %v6028_v16 = vld [vmem:[%s8595_s9 + $0x12] ss:$0 sm:$0xff] }
0x1824   : > { %5937 = vmatmul.msk.f32.gmra.mxu0 %vm2674_vm13, %v5090_v41 }
0x1887   : > { %v5134_v1 = vpop.f32.mrf.mxu0 }
0x1888   : > { %v5135_v39 = vadd.f32 %v6025_v34, %v5134_v1 }
0x188a   : > { %v5146_v25 = vadd.f32 %v5135_v39, %v8498_v54 }
0x188c   : > { %v5154_v4 = vsel %vm400_vm0, %v5146_v25, 0.0 }
0x188d   : > { %5155 = vadd.xlane.f32.xlu0 %v5154_v4 }
0x1890   : > { %v5137_v20 = vpop.f32.mrf.mxu0 }
0x1891   : > { %v5138_v48 = vadd.f32 %v6025_v34, %v5137_v20 }
0x1893   : > { %v5147_v15 = vadd.f32 %v5138_v48, %v5033_v59 }
0x1895   : > { %v5157_v7 = vsel %vm400_vm0, %v5147_v15, 0.0 }
0x1896   : > { %5158 = vadd.xlane.f32.xlu1 %v5157_v7 }
0x1899   : > { %v5140_v55 = vpop.f32.mrf.mxu0 }
0x189a   : > { %v5141_v45 = vadd.f32 %v6025_v34, %v5140_v55 }
0x189c   : > { %v5148_v32 = vadd.f32 %v5141_v45, %v5034_v53 }
0x189e   : > { %v5160_v21 = vsel %vm400_vm0, %v5148_v32, 0.0 }
0x189f   : > { %5161 = vadd.xlane.f32.xlu2 %v5160_v21 }
0x18a1   : > { %v5143_v50 = vpop.f32.mrf.mxu0 }
0x18a2   : > { %v5144_v52 = vadd.f32 %v6025_v34, %v5143_v50 }
0x18a4   : > { %v5149_v42 = vadd.f32 %v5144_v52, %v5035_v30 }
0x18a6   : > { %v5163_v54 = vsel %vm400_vm0, %v5149_v42, 0.0 }
0x18a7   : > { %5164 = vadd.xlane.f32.xlu0 %v5163_v54 }
0x1900   : > { %v5156_v33 = vpop.xlane.xlu0 %5155 }
0x1901   : > { %v5166_v57 = vmul.f32 %v5156_v33, %v6927_v62 }
0x1903   : > { %v5170_v17 = vsub.f32 %v5146_v25, %v5166_v57 }
0x1905   : > { %v5174_v47 = vmul.f32 %v5170_v17, %v5170_v17 }
0x1907   : > { %v5178_v63 = vsel %vm400_vm0, %v5174_v47, 0.0 }
0x1908   : > { %5179 = vadd.xlane.f32.xlu1 %v5178_v63 }
0x1909   : > { %v5159_v9 = vpop.xlane.xlu1 %5158 }
0x190a   : > { %v5167_v2 = vmul.f32 %v5159_v9, %v6927_v62 }
0x190c   : > { %v8542_v40 = vsub.f32 %v5147_v15, %v5167_v2 }
0x190e   : > { %v5175_v12 = vmul.f32 %v8542_v40, %v8542_v40 }
0x1910   : > { %v5181_v26 = vsel %vm400_vm0, %v5175_v12, 0.0 }
0x1911   : > { %5182 = vadd.xlane.f32.xlu2 %v5181_v26 }
0x1912   : > { %v5162_v37 = vpop.xlane.xlu2 %5161 }
0x1913   : > { %v5168_v60 = vmul.f32 %v5162_v37, %v6927_v62 }
0x1915   : > { %v8548_v11 = vsub.f32 %v5148_v32, %v5168_v60 }
0x1917   : > { %v5176_v5 = vmul.f32 %v8548_v11, %v8548_v11 }
0x1919   : > { %v5184_v59 = vsel %vm400_vm0, %v5176_v5, 0.0 }
0x191a   : > { %5185 = vadd.xlane.f32.xlu0 %v5184_v59  ;;  %v5165_v22 = vpop.xlane.xlu0 %5164 }
0x191b   : > { %v5169_v18 = vmul.f32 %v5165_v22, %v6927_v62 }
0x191d   : > { %v8554_v13 = vsub.f32 %v5149_v42, %v5169_v18 }
0x191f   : > { %v5177_v3 = vmul.f32 %v8554_v13, %v8554_v13 }
0x1921   : > { %v5187_v29 = vsel %vm400_vm0, %v5177_v3, 0.0 }
0x1922   : > { %5188 = vadd.xlane.f32.xlu1 %v5187_v29 }
0x197b   : > { %v5180_v23 = vpop.xlane.xlu1 %5179 }
0x197c   : > { %v5190_v10 = vmul.f32 %v5180_v23, %v6927_v62  ;;  %v5278_v23 = vstv %s5277_s15 }
0x197e   : > { %v5194_v44 = vadd.f32 1e-05, %v5190_v10 }
0x1980   : > { %6327 = vrsqrt.f32 %v5194_v44  ;;  %vm5204_vm9 = vweird.f32 %v5194_v44 }
0x1984   : > { %v5183_v49 = vpop.xlane.xlu2 %5182 }
0x1985   : > { %v5191_v53 = vmul.f32 %v5183_v49, %v6927_v62 }
0x1986   : > { %v6328_v19 = vpop.eup %6327 }
0x1987   : > { %v5199_v51 = vmul.f32 %v6328_v19, %v5194_v44  ;;  %v5195_v61 = vadd.f32 1e-05, %v5191_v53  ;;  %vm5205_vm13 = vweird.f32 %v6328_v19 }
0x1988   : > { %vm5206_vm10 = vmor %vm5204_vm9, %vm5205_vm13 }
0x1989   : > { %v5200_v28 = vmul.f32 %v6328_v19, %v5199_v51  ;;  %6329 = vrsqrt.f32 %v5195_v61  ;;  %vm5214_vm11 = vweird.f32 %v5195_v61 }
0x198b   : > { %v5201_v30 = vmul.f32 0.5, %v5200_v28 }
0x198d   : > { %v5202_v14 = vsub.f32 1.5, %v5201_v30  ;;  %v5186_v31 = vpop.xlane.xlu0 %5185 }
0x198e   : > { %v5192_v35 = vmul.f32 %v5186_v31, %v6927_v62 }
0x198f   : > { %v6330_v0 = vpop.eup %6329  ;;  %v5203_v43 = vmul.f32 %v6328_v19, %v5202_v14 }
0x1990   : > { %v5209_v36 = vmul.f32 %v6330_v0, %v5195_v61  ;;  %v5196_v38 = vadd.f32 1e-05, %v5192_v35  ;;  %vm5215_vm1 = vweird.f32 %v6330_v0 }
0x1991   : > { %v5207_v8 = vsel %vm5206_vm10, %v6328_v19, %v5203_v43  ;;  %vm5216_vm12 = vmor %vm5214_vm11, %vm5215_vm1 }
0x1992   : > { %v5210_v58 = vmul.f32 %v6330_v0, %v5209_v36  ;;  %6331 = vrsqrt.f32 %v5196_v38  ;;  %v5238_v6 = vmul.f32 %v5207_v8, %v5170_v17  ;;  %vm5224_vm15 = vweird.f32 %v5196_v38 }
0x1994   : > { %v5211_v27 = vmul.f32 0.5, %v5210_v58  ;;  %v5245_v56 = vmul.f32 %v6026_v24, %v5238_v6 }
0x1995   : > { %v5189_v41 = vpop.xlane.xlu1 %5188 }
0x1996   : > { %v5212_v34 = vsub.f32 1.5, %v5211_v27  ;;  %v5193_v1 = vmul.f32 %v5189_v41, %v6927_v62  ;;  %v5252_v39 = vadd.f32 %v6027_v46, %v5245_v56 }
0x1998   : > { %v6332_v25 = vpop.eup %6331  ;;  %v5213_v4 = vmul.f32 %v6330_v0, %v5212_v34  ;;  %v5197_v20 = vadd.f32 1e-05, %v5193_v1  ;;  %v5261_v48 = vmul.f32 %v6028_v16, %v5252_v39 }
0x1999   : > { %v5219_v15 = vmul.f32 %v6332_v25, %v5196_v38  ;;  %vm5225_vm14 = vweird.f32 %v6332_v25 }
0x199a   : > { %v5217_v7 = vsel %vm5216_vm12, %v6330_v0, %v5213_v4  ;;  %6333 = vrsqrt.f32 %v5197_v20  ;;  %v5265_v55 = vsel %vm400_vm0, %v5261_v48, 0.0  ;;  %vm5226_vm2 = vmor %vm5224_vm15, %vm5225_vm14  ;;  %vm5234_vm4 = vweird.f32 %v5197_v20 }
0x199b   : > { %v5220_v45 = vmul.f32 %v6332_v25, %v5219_v15  ;;  %5266 = vadd.xlane.f32.xlu2 %v5265_v55  ;;  %v5239_v32 = vmul.f32 %v5217_v7, %v8542_v40 }
0x199d   : > { %v5221_v21 = vmul.f32 0.5, %v5220_v45  ;;  %v5246_v50 = vmul.f32 %v6026_v24, %v5239_v32 }
0x199f   : > { %v5222_v52 = vsub.f32 1.5, %v5221_v21  ;;  %v5253_v62 = vadd.f32 %v6027_v46, %v5246_v50 }
0x19a0   : > { %v6334_v42 = vpop.eup %6333 }
0x19a1   : > { %v5223_v54 = vmul.f32 %v6332_v25, %v5222_v52  ;;  %v5229_v33 = vmul.f32 %v6334_v42, %v5197_v20  ;;  %v5262_v57 = vmul.f32 %v6028_v16, %v5253_v62  ;;  %vm5235_vm3 = vweird.f32 %v6334_v42 }
0x19a2   : > { %vm5236_vm5 = vmor %vm5234_vm4, %vm5235_vm3 }
0x19a3   : > { %v5227_v17 = vsel %vm5226_vm2, %v6332_v25, %v5223_v54  ;;  %v5230_v47 = vmul.f32 %v6334_v42, %v5229_v33  ;;  %v5268_v63 = vsel %vm400_vm0, %v5262_v57, 0.0 }
0x19a4   : > { %5269 = vadd.xlane.f32.xlu0 %v5268_v63  ;;  %v5240_v9 = vmul.f32 %v5227_v17, %v8548_v11 }
0x19a5   : > { %v5231_v2 = vmul.f32 0.5, %v5230_v47 }
0x19a6   : > { %v5247_v40 = vmul.f32 %v6026_v24, %v5240_v9 }
0x19a7   : > { %v5232_v12 = vsub.f32 1.5, %v5231_v2 }
0x19a8   : > { %v5254_v26 = vadd.f32 %v6027_v46, %v5247_v40 }
0x19a9   : > { %v5233_v37 = vmul.f32 %v6334_v42, %v5232_v12 }
0x19aa   : > { %v5263_v60 = vmul.f32 %v6028_v16, %v5254_v26 }
0x19ab   : > { %v5237_v5 = vsel %vm5236_vm5, %v6334_v42, %v5233_v37 }
0x19ac   : > { %v5271_v59 = vsel %vm400_vm0, %v5263_v60, 0.0  ;;  %v5241_v22 = vmul.f32 %v5237_v5, %v8554_v13 }
0x19ad   : > { %5272 = vadd.xlane.f32.xlu1 %v5271_v59 }
0x19ae   : > { %v5248_v18 = vmul.f32 %v6026_v24, %v5241_v22 }
0x19b0   : > { %v5255_v3 = vadd.f32 %v6027_v46, %v5248_v18 }
0x19b2   : > { %v5264_v29 = vmul.f32 %v6028_v16, %v5255_v3 }
0x19b4   : > { %v5274_v11 = vsel %vm400_vm0, %v5264_v29, 0.0 }
0x19b5   : > { %5275 = vadd.xlane.f32.xlu2 %v5274_v11 }
0x1a0e   : > { %v5267_v10 = vpop.xlane.xlu2 %5266 }
0x1a0f   : > { %v5279_v13 = vadd.f32 %v5278_v23, %v5267_v10 }
0x1a11   : > { %5284 = vst.msk [vmem:[%s384_s21] sm:$0xff] %vm5283_vm6, %v5279_v13 }
0x1a17   : > { %v5270_v44 = vpop.xlane.xlu0 %5269 }
0x1a18   : > { %v5280_v49 = vadd.f32 %v5278_v23, %v5270_v44 }
0x1a1a   : > { %5285 = vst.msk [vmem:[%s384_s21 + $0x8] sm:$0xff] %vm5283_vm6, %v5280_v49 }
0x1a20   : > { %v5273_v53 = vpop.xlane.xlu1 %5272 }
0x1a21   : > { %v5281_v19 = vadd.f32 %v5278_v23, %v5273_v53 }
0x1a23   : > { %5286 = vst.msk [vmem:[%s384_s21 + $0x10] sm:$0xff] %vm5283_vm6, %v5281_v19 }
0x1a28   : > { %v5276_v51 = vpop.xlane.xlu2 %5275 }
0x1a29   : > { %v5282_v61 = vadd.f32 %v5278_v23, %v5276_v51 }
0x1a2b   : > { %5287 = vst.msk [vmem:[%s384_s21 + $0x18] sm:$0xff] %vm5283_vm6, %v5282_v61 }
0x1a2c PF: > { %s22_s19 = sadd.s32 1, %s6346_s19  }
0x1a2d   : > { %p19_p5 = scmp.ge.s32.totalorder %s22_s19, 4  }
0x1a2f   :  { %21 = sbr.rel (!%p19_p5) target bundleno = 2 (0x2), region = 207 }

</bundles_post_ra>
